<compile_context>
chip_gen: v5e
topology: v5e:2x2
jax: 0.10.0
libtpu: 0.0.40
codegen_flags: <defaults>
</compile_context>

<pallas_src>
import functools
import math

import numpy as np
import jax
import jax.numpy as jnp
from jax.experimental import pallas as pl
from jax.experimental.pallas import tpu as pltpu

# ---- model config (matches TransformerModel defaults) ----
EMBED_SIZE = 16
IMAGE_EMBED_SIZE = 128
NUM_DECODER_LAYERS = 2
N_HEAD = 4
RECURRENCE = 8
DIM_FEEDFORWARD = 2048          # nn.TransformerEncoderLayer default
N_OBJECTS = 11                  # len(OBJECT_TO_IDX)
N_COLORS = 6                    # len(COLOR_TO_IDX)
N_ACTIONS = 7                   # action_space.n
LN_EPS = 1e-5
NEG_INF = -1e30
FFN_CHUNK = 512


def _fs(a):
    """Full-array BlockSpec; index_map absorbs grid indices + prefetch refs."""
    n = a.ndim
    return pl.BlockSpec(a.shape, lambda *args, n=n: (0,) * n)


def _layer_norm(x, w, b, eps=LN_EPS):
    mu = jnp.mean(x, axis=-1, keepdims=True)
    var = jnp.mean((x - mu) ** 2, axis=-1, keepdims=True)
    return (x - mu) * jax.lax.rsqrt(var + eps) * w + b


# ---------------------------------------------------------------------------
# Fused, batched conv stack: conv1 + ReLU + maxpool(2x2) + conv2 + ReLU +
# conv3 + ReLU.  grid=(1,); whole batch processed in one step.
# ---------------------------------------------------------------------------
def _conv_stack_kernel(p_ref, w1_ref, b1_ref, s2_ref, w2_ref, b2_ref,
                       s3_ref, w3_ref, b3_ref, o_ref):
    # p_ref: (B*36, 192) conv1 im2col patches (rows row-major over 6x6 grid).
    h1 = jnp.dot(p_ref[...].astype(jnp.bfloat16), w1_ref[...],
                 preferred_element_type=jnp.float32) + b1_ref[...]
    h1 = jnp.maximum(h1, 0.0)                                      # (B*36, 64)

    # 2x2 stride-2 maxpool on the per-sample 6x6 grid via two shifted maxes;
    # bmax[r] = max over the 2x2 window whose origin is row r.
    a = jnp.maximum(h1[:-1, :], h1[1:, :])                         # (B*36-1, 64)
    bmax = jnp.maximum(a[:-6, :], a[6:, :]).astype(jnp.bfloat16)   # (B*36-7, 64)

    # conv2 (2x2 valid on 3x3): window rows gathered with selection matmuls.
    acc2 = jnp.zeros((s2_ref.shape[1], w2_ref.shape[-1]), jnp.float32)
    for k in range(4):
        win = jnp.dot(s2_ref[k], bmax, preferred_element_type=jnp.float32)
        acc2 = acc2 + jnp.dot(win.astype(jnp.bfloat16), w2_ref[k],
                              preferred_element_type=jnp.float32)
    h2 = jnp.maximum(acc2 + b2_ref[...], 0.0).astype(jnp.bfloat16)  # (B*4, 64)

    # conv3 (2x2 valid on 2x2) -> single spatial position, 128 channels.
    acc3 = jnp.zeros((s3_ref.shape[1], w3_ref.shape[-1]), jnp.float32)
    for k in range(4):
        sel = jnp.dot(s3_ref[k], h2, preferred_element_type=jnp.float32)
        acc3 = acc3 + jnp.dot(sel.astype(jnp.bfloat16), w3_ref[k],
                              preferred_element_type=jnp.float32)
    o_ref[...] = jnp.maximum(acc3 + b3_ref[...], 0.0).astype(o_ref.dtype)


@functools.lru_cache(maxsize=None)
def _conv_sel_mats(batch):
    """Host-built selection matrices for pooled->conv2 windows and h2->conv3."""
    origins = [0, 2, 4, 12, 14, 16, 24, 26, 28]       # pool origins in the 6x6 grid
    w2idx = [[0, 1, 3, 4], [1, 2, 4, 5], [3, 4, 6, 7], [4, 5, 7, 8]]
    ncol = batch * 36 - 7
    s2 = np.zeros((4, batch * 4, ncol), np.float32)
    for k in range(4):
        for b in range(batch):
            for pp in range(4):
                s2[k, b * 4 + pp, b * 36 + origins[w2idx[pp][k]]] = 1.0
    s3 = np.zeros((4, batch, batch * 4), np.float32)
    for k in range(4):
        for b in range(batch):
            s3[k, b, b * 4 + k] = 1.0
    return jnp.asarray(s2, jnp.bfloat16), jnp.asarray(s3, jnp.bfloat16)


def conv_stack(patches2d, s2, s3, kp, batch):
    args = (patches2d, kp["conv1_wm"], kp["conv1_b"], s2, kp["conv2_wk"],
            kp["conv2_b"], s3, kp["conv3_wk"], kp["conv3_b"])
    return pl.pallas_call(
        _conv_stack_kernel,
        out_shape=jax.ShapeDtypeStruct((batch, IMAGE_EMBED_SIZE), jnp.float32),
        grid=(1,),
        in_specs=[_fs(a) for a in args],
        out_specs=pl.BlockSpec((batch, IMAGE_EMBED_SIZE), lambda *a: (0, 0)),
        compiler_params=pltpu.CompilerParams(
            dimension_semantics=("arbitrary",)),
    )(*args)


# ---------------------------------------------------------------------------
# Fused transformer (both encoder layers) + row select + actor/critic heads.
# ---------------------------------------------------------------------------
def _transformer_heads_kernel(act_ref, x_ref, wqkv_ref, bqkv_ref, wo_ref, bo_ref,
                              ln1w_ref, ln1b_ref, w1_ref, b1_ref, w2_ref, b2_ref,
                              ln2w_ref, ln2b_ref, hw1_ref, hb1_ref, hw2_ref,
                              hb2_ref, out_ref, xs_ref, *,
                              n_layers, n_head, seq, batch):
    M, D = x_ref.shape
    hd = D // n_head
    scale = 1.0 / math.sqrt(hd)
    x = x_ref[...]                                               # (M, D) f32

    # Block-diagonal causal mask over the folded (batch*seq) axis.
    shift = int(round(math.log2(seq)))
    row = jax.lax.broadcasted_iota(jnp.int32, (M, M), 0)
    col = jax.lax.broadcasted_iota(jnp.int32, (M, M), 1)
    ok = ((row >> shift) == (col >> shift)) & \
         ((col & (seq - 1)) <= (row & (seq - 1)))
    mask = jnp.where(ok, 0.0, NEG_INF)

    # TODO(synk): dropout (p=0.1 in train mode) is treated as identity.
    for l in range(n_layers):
        xb = x.astype(jnp.bfloat16)
        qkv = jnp.dot(xb, wqkv_ref[l],
                      preferred_element_type=jnp.float32) + bqkv_ref[l]  # (M, 3D)
        q = qkv[:, :D]
        k = qkv[:, D:2 * D]
        v = qkv[:, 2 * D:]

        o_parts = []
        for h in range(n_head):
            sl = slice(h * hd, (h + 1) * hd)
            qh = q[:, sl].astype(jnp.bfloat16)
            kh = k[:, sl].astype(jnp.bfloat16)
            vh = v[:, sl].astype(jnp.bfloat16)
            s = jax.lax.dot_general(qh, kh, (((1,), (1,)), ((), ())),
                                    preferred_element_type=jnp.float32)
            s = s * scale + mask
            s = s - jnp.max(s, axis=-1, keepdims=True)
            e = jnp.exp(s)
            p = e * pl.reciprocal(jnp.sum(e, axis=-1, keepdims=True), approx=True)
            o_parts.append(jnp.dot(p.astype(jnp.bfloat16), vh,
                                   preferred_element_type=jnp.float32))
        o_cat = jnp.concatenate(o_parts, axis=-1)                # (M, D)
        attn = jnp.dot(o_cat.astype(jnp.bfloat16), wo_ref[l],
                       preferred_element_type=jnp.float32) + bo_ref[l]

        # post-norm (norm_first=False): x = LN1(x + attn); x = LN2(x + FFN(x))
        y = _layer_norm(x + attn, ln1w_ref[l], ln1b_ref[l])
        yb = y.astype(jnp.bfloat16)
        acc = jnp.zeros((M, D), jnp.float32)
        for c in range(0, DIM_FEEDFORWARD, FFN_CHUNK):
            h1 = jnp.dot(yb, w1_ref[l, :, c:c + FFN_CHUNK],
                         preferred_element_type=jnp.float32) + \
                 b1_ref[l, :, c:c + FFN_CHUNK]
            h1 = jnp.maximum(h1, 0.0)
            acc = acc + jnp.dot(h1.astype(jnp.bfloat16),
                                w2_ref[l, c:c + FFN_CHUNK, :],
                                preferred_element_type=jnp.float32)
        x = _layer_norm(y + acc + b2_ref[l], ln2w_ref[l], ln2b_ref[l])

    # Per-sample row select: row b*seq + act_ind[b].
    xs_ref[...] = x
    rows = [xs_ref[pl.ds(b * seq + act_ref[b], 1), :] for b in range(batch)]
    xsel = jnp.concatenate(rows, axis=0)                          # (B, D)

    # Packed actor/critic heads (both first layers in one 128-wide matmul).
    hh = jnp.tanh(jnp.dot(xsel.astype(jnp.bfloat16), hw1_ref[...],
                          preferred_element_type=jnp.float32) + hb1_ref[...])
    z = jnp.dot(hh.astype(jnp.bfloat16), hw2_ref[...],
                preferred_element_type=jnp.float32) + hb2_ref[...]  # (B, 128)

    # log_softmax on cols [0, N_ACTIONS); value already sits in col N_ACTIONS.
    ci = jax.lax.broadcasted_iota(jnp.int32, z.shape, 1)
    is_logit = ci < N_ACTIONS
    zmax = jnp.max(jnp.where(is_logit, z, NEG_INF), axis=-1, keepdims=True)
    e = jnp.where(is_logit, jnp.exp(z - zmax), 0.0)
    lse = zmax + jnp.log(jnp.sum(e, axis=-1, keepdims=True))
    res = jnp.where(is_logit, z - lse, z)
    out_ref[...] = res.astype(out_ref.dtype)


def transformer_heads(x, act_ind, kp, batch):
    M, D = x.shape
    assert (RECURRENCE & (RECURRENCE - 1)) == 0
    args = (x, kp["wqkv"], kp["bqkv"], kp["wo"], kp["bo"],
            kp["ln1w"], kp["ln1b"], kp["w1"], kp["b1"], kp["w2"], kp["b2"],
            kp["ln2w"], kp["ln2b"],
            kp["head_w1"], kp["head_b1"], kp["head_w2"], kp["head_b2"])
    kernel = functools.partial(_transformer_heads_kernel,
                               n_layers=NUM_DECODER_LAYERS, n_head=N_HEAD,
                               seq=RECURRENCE, batch=batch)
    return pl.pallas_call(
        kernel,
        out_shape=jax.ShapeDtypeStruct((batch, D), jnp.float32),
        grid_spec=pltpu.PrefetchScalarGridSpec(
            num_scalar_prefetch=1,
            grid=(1,),
            in_specs=[_fs(a) for a in args],
            out_specs=pl.BlockSpec((batch, D), lambda *a: (0, 0)),
            scratch_shapes=[pltpu.VMEM((M, D), jnp.float32)]),
        compiler_params=pltpu.CompilerParams(
            dimension_semantics=("arbitrary",)),
    )(act_ind, *args)


# ---------------------------------------------------------------------------
# Parameters
# ---------------------------------------------------------------------------
def _init_linear(key, fan_in, fan_out):
    # mimics init_params: N(0,1) weight, each output row L2-normalized; zero bias
    w = jax.random.normal(key, (fan_out, fan_in), jnp.float32)
    w = w / jnp.sqrt(jnp.sum(w * w, axis=1, keepdims=True))
    return w.T, jnp.zeros((fan_out,), jnp.float32)              # stored (in, out)


def _init_conv(key, cin, cout, kh, kw):
    fan_in = cin * kh * kw
    w = jax.random.normal(key, (cout, cin, kh, kw), jnp.float32) / math.sqrt(fan_in)
    return w, jnp.zeros((cout,), jnp.float32)


def _init_encoder_layer(key, d, dff):
    ks = jax.random.split(key, 4)
    # TODO(synk): PyTorch uses xavier_uniform_ for in_proj_weight; stats differ slightly.
    wqkv = jax.random.normal(ks[0], (d, 3 * d), jnp.float32) / math.sqrt(d)
    wo, bo = _init_linear(ks[1], d, d)
    w1, b1 = _init_linear(ks[2], d, dff)
    w2, b2 = _init_linear(ks[3], dff, d)
    return dict(wqkv=wqkv, bqkv=jnp.zeros((3 * d,), jnp.float32),
                wo=wo, bo=bo, w1=w1, b1=b1, w2=w2, b2=b2,
                ln1w=jnp.ones((d,), jnp.float32), ln1b=jnp.zeros((d,), jnp.float32),
                ln2w=jnp.ones((d,), jnp.float32), ln2b=jnp.zeros((d,), jnp.float32))


def init_params(key):
    keys = jax.random.split(key, 12)
    p = {}
    p["object_embed"] = jax.random.normal(keys[0], (N_OBJECTS, EMBED_SIZE), jnp.float32)
    p["color_embed"] = jax.random.normal(keys[1], (N_COLORS, EMBED_SIZE), jnp.float32)
    p["state_embed"] = jax.random.normal(keys[2], (2, EMBED_SIZE), jnp.float32)
    p["conv1_w"], p["conv1_b"] = _init_conv(keys[3], EMBED_SIZE * 3, IMAGE_EMBED_SIZE // 2, 2, 2)
    p["conv2_w"], p["conv2_b"] = _init_conv(keys[4], IMAGE_EMBED_SIZE // 2, IMAGE_EMBED_SIZE // 2, 2, 2)
    p["conv3_w"], p["conv3_b"] = _init_conv(keys[5], IMAGE_EMBED_SIZE // 2, IMAGE_EMBED_SIZE, 2, 2)
    p["pos_embed"] = jax.random.normal(keys[6], (RECURRENCE, IMAGE_EMBED_SIZE), jnp.float32)
    p["decoder"] = [_init_encoder_layer(keys[7 + i], IMAGE_EMBED_SIZE, DIM_FEEDFORWARD)
                    for i in range(NUM_DECODER_LAYERS)]
    p["actor_w1"], p["actor_b1"] = _init_linear(keys[9], IMAGE_EMBED_SIZE, 64)
    p["actor_w2"], p["actor_b2"] = _init_linear(keys[10], 64, N_ACTIONS)
    ks2 = jax.random.split(keys[11], 2)
    p["critic_w1"], p["critic_b1"] = _init_linear(ks2[0], IMAGE_EMBED_SIZE, 64)
    p["critic_w2"], p["critic_b2"] = _init_linear(ks2[1], 64, 1)
    return p


def prepare_params(p):
    """One-time repack into kernel layout: bf16 matmul weights, fused QKV,
    (D,D) output projection, layer-stacked tensors, lane-dense packed heads."""
    def conv_mat(w):     # (Cout, Cin, kh, kw) -> (kh*kw*Cin, Cout)
        return jnp.transpose(w, (2, 3, 1, 0)).reshape(-1, w.shape[0])

    def conv_kpos(w):    # (Cout, Cin, kh, kw) -> (kh*kw, Cin, Cout)
        return jnp.transpose(w, (2, 3, 1, 0)).reshape(w.shape[2] * w.shape[3],
                                                      w.shape[1], w.shape[0])

    kp = dict(
        object_embed=p["object_embed"], color_embed=p["color_embed"],
        state_embed=p["state_embed"], pos_embed=p["pos_embed"],
        conv1_wm=conv_mat(p["conv1_w"]).astype(jnp.bfloat16),
        conv1_b=p["conv1_b"].reshape(1, -1),
        conv2_wk=conv_kpos(p["conv2_w"]).astype(jnp.bfloat16),
        conv2_b=p["conv2_b"].reshape(1, -1),
        conv3_wk=conv_kpos(p["conv3_w"]).astype(jnp.bfloat16),
        conv3_b=p["conv3_b"].reshape(1, -1),
    )

    # Heads packed lane-dense: first layers concatenated, second layers padded
    # into a (128,128) matrix ([logits(7) | value(1) | zeros]).
    hw1 = jnp.concatenate([p["actor_w1"], p["critic_w1"]], axis=1)      # (128,128)
    hb1 = jnp.concatenate([p["actor_b1"], p["critic_b1"]]).reshape(1, -1)
    hw2 = jnp.zeros((IMAGE_EMBED_SIZE, IMAGE_EMBED_SIZE), jnp.float32)
    hw2 = hw2.at[:64, :N_ACTIONS].set(p["actor_w2"])
    hw2 = hw2.at[64:, N_ACTIONS:N_ACTIONS + 1].set(p["critic_w2"])
    hb2 = jnp.zeros((1, IMAGE_EMBED_SIZE), jnp.float32)
    hb2 = hb2.at[0, :N_ACTIONS].set(p["actor_b2"])
    hb2 = hb2.at[0, N_ACTIONS].set(p["critic_b2"][0])
    kp.update(head_w1=hw1.astype(jnp.bfloat16), head_b1=hb1,
              head_w2=hw2.astype(jnp.bfloat16), head_b2=hb2)

    stk = {k: [] for k in ("wqkv", "bqkv", "wo", "bo", "ln1w", "ln1b",
                           "ln2w", "ln2b", "w1", "b1", "w2", "b2")}
    for lp in p["decoder"]:
        stk["wqkv"].append(lp["wqkv"].astype(jnp.bfloat16))              # (128,384)
        stk["bqkv"].append(lp["bqkv"].reshape(1, -1))
        stk["wo"].append(lp["wo"].astype(jnp.bfloat16))                  # (128,128)
        stk["bo"].append(lp["bo"].reshape(1, -1))
        stk["ln1w"].append(lp["ln1w"].reshape(1, -1))
        stk["ln1b"].append(lp["ln1b"].reshape(1, -1))
        stk["ln2w"].append(lp["ln2w"].reshape(1, -1))
        stk["ln2b"].append(lp["ln2b"].reshape(1, -1))
        stk["w1"].append(lp["w1"].astype(jnp.bfloat16))                  # (128,2048)
        stk["b1"].append(lp["b1"].reshape(1, -1))
        stk["w2"].append(lp["w2"].astype(jnp.bfloat16))                  # (2048,128)
        stk["b2"].append(lp["b2"].reshape(1, -1))
    kp.update({k: jnp.stack(v) for k, v in stk.items()})
    return kp


# ---------------------------------------------------------------------------
# Forward pass (glue + 2 fused Pallas kernels)
# ---------------------------------------------------------------------------
def process_memory(x_seq, memory, act_ind):
    """Vectorized per-sample memory shuffling; reproduces the reference quirk
    `cur_mem[act_ind] = x[i]` (indexing with the FULL act_ind tensor)."""
    R = memory.shape[1]

    def per_sample(mem_i, a_i, x_i):
        zero_mem = jnp.zeros_like(mem_i).at[0].set(x_i[0])
        idx = (jnp.arange(R) - a_i) % R
        rolled = mem_i[idx]                                   # last a rows -> front
        rolled = jnp.where((jnp.arange(R) < a_i)[:, None], rolled, 0.0)
        rolled = rolled.at[act_ind].set(x_i)                  # cur_mem[act_ind] = x[i]
        return jnp.where(a_i == 0, zero_mem, rolled)

    return jax.vmap(per_sample)(memory, act_ind, x_seq)       # (B, R, D)


def forward(kp, image, memory, act_ind):
    # image: (B, 7, 7, 3) int32; memory: (B, R, 128); act_ind: (B,) int32
    B = image.shape[0]
    obj = kp["object_embed"][image[..., 0]]
    col = kp["color_embed"][image[..., 1]]
    sta = kp["state_embed"][image[..., 2]]
    im = jnp.concatenate([col, obj, sta], axis=-1)            # (B, 7, 7, 48) NHWC

    # conv1 im2col (2x2 valid): rows ordered i*6+j, channels ordered (di,dj,c)
    patches = jnp.concatenate(
        [im[:, di:di + 6, dj:dj + 6, :] for di in (0, 1) for dj in (0, 1)],
        axis=-1).reshape(B * 36, 4 * 3 * EMBED_SIZE)          # (B*36, 192)

    s2, s3 = _conv_sel_mats(B)
    cur = conv_stack(patches, s2, s3, kp, B)                  # (B, 128)
    cur_memory = cur[:, None, :]                              # (B, 1, 128)

    x = process_memory(cur_memory, memory, act_ind)           # (B, R, 128)
    x = x + kp["pos_embed"][None]
    x = x.reshape(B * RECURRENCE, IMAGE_EMBED_SIZE)

    out = transformer_heads(x, act_ind, kp, B)                # (B, 128)
    log_probs = out[:, :N_ACTIONS]                            # (B, 7)
    value = out[:, N_ACTIONS]                                 # (B,)
    return log_probs, value, cur_memory


# ---------------------------------------------------------------------------
if __name__ == "__main__":
    key = jax.random.PRNGKey(0)
    pkey, k1, k2, k3, k4 = jax.random.split(key, 5)
    params = init_params(pkey)
    kp = prepare_params(params)

    B = 2
    image = jnp.stack([
        jax.random.randint(k1, (B, 7, 7), 0, N_OBJECTS),
        jax.random.randint(k2, (B, 7, 7), 0, N_COLORS),
        jax.random.randint(k3, (B, 7, 7), 0, 2),
    ], axis=-1).astype(jnp.int32)                             # (B, 7, 7, 3)
    memory = jax.random.normal(k4, (B, RECURRENCE, IMAGE_EMBED_SIZE), jnp.float32)
    act_ind = jnp.array([0, 3], dtype=jnp.int32)

    log_probs, value, cur_memory = jax.jit(forward)(kp, image, memory, act_ind)
    jax.block_until_ready((log_probs, value, cur_memory))

    assert log_probs.shape == (B, N_ACTIONS)
    assert value.shape == (B,)
    assert cur_memory.shape == (B, 1, IMAGE_EMBED_SIZE)
    assert bool(jnp.all(jnp.isfinite(log_probs))) and bool(jnp.all(jnp.isfinite(value)))
    print("KERNEL_OK")
</pallas_src>

<mosaic_0001>
module attributes {stable_mosaic.version = 11 : i64} {
  func.func @_conv_stack_kernel(%arg0: i32, %arg1: memref<72x192xf32, #tpu.memory_space<vmem>>, %arg2: memref<192x64xbf16, #tpu.memory_space<vmem>>, %arg3: memref<1x64xf32, #tpu.memory_space<vmem>>, %arg4: memref<4x8x65xbf16, #tpu.memory_space<vmem>>, %arg5: memref<4x64x64xbf16, #tpu.memory_space<vmem>>, %arg6: memref<1x64xf32, #tpu.memory_space<vmem>>, %arg7: memref<4x2x8xbf16, #tpu.memory_space<vmem>>, %arg8: memref<4x64x128xbf16, #tpu.memory_space<vmem>>, %arg9: memref<1x128xf32, #tpu.memory_space<vmem>>, %arg10: memref<2x128xf32, #tpu.memory_space<vmem>>) attributes {dimension_semantics = [#tpu.dimension_semantics<arbitrary>], iteration_bounds = array<i64: 1>, scalar_prefetch = 0 : i64, scratch_operands = 0 : i64, tpu.core_type = #tpu.core_type<tc>, window_params = [{pipeline_mode = #tpu.pipeline_mode<synchronous>, transform_indices = @transform_0, window_bounds = array<i64: 72, 192>}, {pipeline_mode = #tpu.pipeline_mode<synchronous>, transform_indices = @transform_1, window_bounds = array<i64: 192, 64>}, {pipeline_mode = #tpu.pipeline_mode<synchronous>, transform_indices = @transform_2, window_bounds = array<i64: 1, 64>}, {pipeline_mode = #tpu.pipeline_mode<synchronous>, transform_indices = @transform_3, window_bounds = array<i64: 4, 8, 65>}, {pipeline_mode = #tpu.pipeline_mode<synchronous>, transform_indices = @transform_4, window_bounds = array<i64: 4, 64, 64>}, {pipeline_mode = #tpu.pipeline_mode<synchronous>, transform_indices = @transform_5, window_bounds = array<i64: 1, 64>}, {pipeline_mode = #tpu.pipeline_mode<synchronous>, transform_indices = @transform_6, window_bounds = array<i64: 4, 2, 8>}, {pipeline_mode = #tpu.pipeline_mode<synchronous>, transform_indices = @transform_7, window_bounds = array<i64: 4, 64, 128>}, {pipeline_mode = #tpu.pipeline_mode<synchronous>, transform_indices = @transform_8, window_bounds = array<i64: 1, 128>}, {pipeline_mode = #tpu.pipeline_mode<synchronous>, transform_indices = @transform_9, window_bounds = array<i64: 2, 128>}]} {
    %c0 = arith.constant 0 : index
    %c0_0 = arith.constant 0 : index
    %0 = vector.load %arg1[%c0, %c0_0] : memref<72x192xf32, #tpu.memory_space<vmem>>, vector<72x192xf32>
    %1 = arith.truncf %0 : vector<72x192xf32> to vector<72x192xbf16>
    %c0_1 = arith.constant 0 : index
    %c0_2 = arith.constant 0 : index
    %2 = vector.load %arg2[%c0_1, %c0_2] : memref<192x64xbf16, #tpu.memory_space<vmem>>, vector<192x64xbf16>
    %cst = arith.constant dense<0.000000e+00> : vector<72x64xf32>
    %3 = tpu.matmul %1, %2, %cst {dimension_numbers = #tpu.dot_dimension_numbers<[1], [0], [0], [1], [0, 0, 1, 1], [], []>} : vector<72x192xbf16>, vector<192x64xbf16>, vector<72x64xf32> -> vector<72x64xf32>
    %c0_3 = arith.constant 0 : index
    %c0_4 = arith.constant 0 : index
    %4 = vector.load %arg3[%c0_3, %c0_4] : memref<1x64xf32, #tpu.memory_space<vmem>>, vector<1x64xf32>
    %5 = vector.broadcast %4 : vector<1x64xf32> to vector<72x64xf32>
    %6 = arith.addf %3, %5 : vector<72x64xf32>
    %cst_5 = arith.constant 0.000000e+00 : f32
    %7 = vector.broadcast %cst_5 : f32 to vector<72x64xf32>
    %8 = arith.maximumf %6, %7 : vector<72x64xf32>
    %9 = vector.extract_strided_slice %8 {offsets = [0, 0], sizes = [71, 64], strides = [1, 1]} : vector<72x64xf32> to vector<71x64xf32>
    %10 = vector.extract_strided_slice %8 {offsets = [1, 0], sizes = [71, 64], strides = [1, 1]} : vector<72x64xf32> to vector<71x64xf32>
    %11 = arith.maximumf %9, %10 : vector<71x64xf32>
    %12 = vector.extract_strided_slice %11 {offsets = [0, 0], sizes = [65, 64], strides = [1, 1]} : vector<71x64xf32> to vector<65x64xf32>
    %13 = vector.extract_strided_slice %11 {offsets = [6, 0], sizes = [65, 64], strides = [1, 1]} : vector<71x64xf32> to vector<65x64xf32>
    %14 = arith.maximumf %12, %13 : vector<65x64xf32>
    %15 = arith.truncf %14 : vector<65x64xf32> to vector<65x64xbf16>
    %cst_6 = arith.constant 0.000000e+00 : f32
    %16 = vector.broadcast %cst_6 : f32 to vector<8x64xf32>
    %c0_7 = arith.constant 0 : index
    %c0_8 = arith.constant 0 : index
    %c0_9 = arith.constant 0 : index
    %17 = vector.load %arg4[%c0_7, %c0_8, %c0_9] : memref<4x8x65xbf16, #tpu.memory_space<vmem>>, vector<1x8x65xbf16>
    %18 = vector.shape_cast %17 : vector<1x8x65xbf16> to vector<8x65xbf16>
    %cst_10 = arith.constant dense<0.000000e+00> : vector<8x64xf32>
    %19 = tpu.matmul %18, %15, %cst_10 {dimension_numbers = #tpu.dot_dimension_numbers<[1], [0], [0], [1], [0, 0, 1, 1], [], []>} : vector<8x65xbf16>, vector<65x64xbf16>, vector<8x64xf32> -> vector<8x64xf32>
    %20 = arith.truncf %19 : vector<8x64xf32> to vector<8x64xbf16>
    %c0_11 = arith.constant 0 : index
    %c0_12 = arith.constant 0 : index
    %c0_13 = arith.constant 0 : index
    %21 = vector.load %arg5[%c0_11, %c0_12, %c0_13] : memref<4x64x64xbf16, #tpu.memory_space<vmem>>, vector<1x64x64xbf16>
    %22 = vector.shape_cast %21 : vector<1x64x64xbf16> to vector<64x64xbf16>
    %cst_14 = arith.constant dense<0.000000e+00> : vector<8x64xf32>
    %23 = tpu.matmul %20, %22, %cst_14 {dimension_numbers = #tpu.dot_dimension_numbers<[1], [0], [0], [1], [0, 0, 1, 1], [], []>} : vector<8x64xbf16>, vector<64x64xbf16>, vector<8x64xf32> -> vector<8x64xf32>
    %24 = arith.addf %16, %23 : vector<8x64xf32>
    %c1 = arith.constant 1 : index
    %c0_15 = arith.constant 0 : index
    %c0_16 = arith.constant 0 : index
    %25 = vector.load %arg4[%c1, %c0_15, %c0_16] : memref<4x8x65xbf16, #tpu.memory_space<vmem>>, vector<1x8x65xbf16>
    %26 = vector.shape_cast %25 : vector<1x8x65xbf16> to vector<8x65xbf16>
    %cst_17 = arith.constant dense<0.000000e+00> : vector<8x64xf32>
    %27 = tpu.matmul %26, %15, %cst_17 {dimension_numbers = #tpu.dot_dimension_numbers<[1], [0], [0], [1], [0, 0, 1, 1], [], []>} : vector<8x65xbf16>, vector<65x64xbf16>, vector<8x64xf32> -> vector<8x64xf32>
    %28 = arith.truncf %27 : vector<8x64xf32> to vector<8x64xbf16>
    %c1_18 = arith.constant 1 : index
    %c0_19 = arith.constant 0 : index
    %c0_20 = arith.constant 0 : index
    %29 = vector.load %arg5[%c1_18, %c0_19, %c0_20] : memref<4x64x64xbf16, #tpu.memory_space<vmem>>, vector<1x64x64xbf16>
    %30 = vector.shape_cast %29 : vector<1x64x64xbf16> to vector<64x64xbf16>
    %cst_21 = arith.constant dense<0.000000e+00> : vector<8x64xf32>
    %31 = tpu.matmul %28, %30, %cst_21 {dimension_numbers = #tpu.dot_dimension_numbers<[1], [0], [0], [1], [0, 0, 1, 1], [], []>} : vector<8x64xbf16>, vector<64x64xbf16>, vector<8x64xf32> -> vector<8x64xf32>
    %32 = arith.addf %24, %31 : vector<8x64xf32>
    %c2 = arith.constant 2 : index
    %c0_22 = arith.constant 0 : index
    %c0_23 = arith.constant 0 : index
    %33 = vector.load %arg4[%c2, %c0_22, %c0_23] : memref<4x8x65xbf16, #tpu.memory_space<vmem>>, vector<1x8x65xbf16>
    %34 = vector.shape_cast %33 : vector<1x8x65xbf16> to vector<8x65xbf16>
    %cst_24 = arith.constant dense<0.000000e+00> : vector<8x64xf32>
    %35 = tpu.matmul %34, %15, %cst_24 {dimension_numbers = #tpu.dot_dimension_numbers<[1], [0], [0], [1], [0, 0, 1, 1], [], []>} : vector<8x65xbf16>, vector<65x64xbf16>, vector<8x64xf32> -> vector<8x64xf32>
    %36 = arith.truncf %35 : vector<8x64xf32> to vector<8x64xbf16>
    %c2_25 = arith.constant 2 : index
    %c0_26 = arith.constant 0 : index
    %c0_27 = arith.constant 0 : index
    %37 = vector.load %arg5[%c2_25, %c0_26, %c0_27] : memref<4x64x64xbf16, #tpu.memory_space<vmem>>, vector<1x64x64xbf16>
    %38 = vector.shape_cast %37 : vector<1x64x64xbf16> to vector<64x64xbf16>
    %cst_28 = arith.constant dense<0.000000e+00> : vector<8x64xf32>
    %39 = tpu.matmul %36, %38, %cst_28 {dimension_numbers = #tpu.dot_dimension_numbers<[1], [0], [0], [1], [0, 0, 1, 1], [], []>} : vector<8x64xbf16>, vector<64x64xbf16>, vector<8x64xf32> -> vector<8x64xf32>
    %40 = arith.addf %32, %39 : vector<8x64xf32>
    %c3 = arith.constant 3 : index
    %c0_29 = arith.constant 0 : index
    %c0_30 = arith.constant 0 : index
    %41 = vector.load %arg4[%c3, %c0_29, %c0_30] : memref<4x8x65xbf16, #tpu.memory_space<vmem>>, vector<1x8x65xbf16>
    %42 = vector.shape_cast %41 : vector<1x8x65xbf16> to vector<8x65xbf16>
    %cst_31 = arith.constant dense<0.000000e+00> : vector<8x64xf32>
    %43 = tpu.matmul %42, %15, %cst_31 {dimension_numbers = #tpu.dot_dimension_numbers<[1], [0], [0], [1], [0, 0, 1, 1], [], []>} : vector<8x65xbf16>, vector<65x64xbf16>, vector<8x64xf32> -> vector<8x64xf32>
    %44 = arith.truncf %43 : vector<8x64xf32> to vector<8x64xbf16>
    %c3_32 = arith.constant 3 : index
    %c0_33 = arith.constant 0 : index
    %c0_34 = arith.constant 0 : index
    %45 = vector.load %arg5[%c3_32, %c0_33, %c0_34] : memref<4x64x64xbf16, #tpu.memory_space<vmem>>, vector<1x64x64xbf16>
    %46 = vector.shape_cast %45 : vector<1x64x64xbf16> to vector<64x64xbf16>
    %cst_35 = arith.constant dense<0.000000e+00> : vector<8x64xf32>
    %47 = tpu.matmul %44, %46, %cst_35 {dimension_numbers = #tpu.dot_dimension_numbers<[1], [0], [0], [1], [0, 0, 1, 1], [], []>} : vector<8x64xbf16>, vector<64x64xbf16>, vector<8x64xf32> -> vector<8x64xf32>
    %48 = arith.addf %40, %47 : vector<8x64xf32>
    %c0_36 = arith.constant 0 : index
    %c0_37 = arith.constant 0 : index
    %49 = vector.load %arg6[%c0_36, %c0_37] : memref<1x64xf32, #tpu.memory_space<vmem>>, vector<1x64xf32>
    %50 = vector.broadcast %49 : vector<1x64xf32> to vector<8x64xf32>
    %51 = arith.addf %48, %50 : vector<8x64xf32>
    %cst_38 = arith.constant 0.000000e+00 : f32
    %52 = vector.broadcast %cst_38 : f32 to vector<8x64xf32>
    %53 = arith.maximumf %51, %52 : vector<8x64xf32>
    %54 = arith.truncf %53 : vector<8x64xf32> to vector<8x64xbf16>
    %cst_39 = arith.constant 0.000000e+00 : f32
    %55 = vector.broadcast %cst_39 : f32 to vector<2x128xf32>
    %c0_40 = arith.constant 0 : index
    %c0_41 = arith.constant 0 : index
    %c0_42 = arith.constant 0 : index
    %56 = vector.load %arg7[%c0_40, %c0_41, %c0_42] : memref<4x2x8xbf16, #tpu.memory_space<vmem>>, vector<1x2x8xbf16>
    %57 = vector.shape_cast %56 : vector<1x2x8xbf16> to vector<2x8xbf16>
    %cst_43 = arith.constant dense<0.000000e+00> : vector<2x64xf32>
    %58 = tpu.matmul %57, %54, %cst_43 {dimension_numbers = #tpu.dot_dimension_numbers<[1], [0], [0], [1], [0, 0, 1, 1], [], []>} : vector<2x8xbf16>, vector<8x64xbf16>, vector<2x64xf32> -> vector<2x64xf32>
    %59 = arith.truncf %58 : vector<2x64xf32> to vector<2x64xbf16>
    %c0_44 = arith.constant 0 : index
    %c0_45 = arith.constant 0 : index
    %c0_46 = arith.constant 0 : index
    %60 = vector.load %arg8[%c0_44, %c0_45, %c0_46] : memref<4x64x128xbf16, #tpu.memory_space<vmem>>, vector<1x64x128xbf16>
    %61 = vector.shape_cast %60 : vector<1x64x128xbf16> to vector<64x128xbf16>
    %cst_47 = arith.constant dense<0.000000e+00> : vector<2x128xf32>
    %62 = tpu.matmul %59, %61, %cst_47 {dimension_numbers = #tpu.dot_dimension_numbers<[1], [0], [0], [1], [0, 0, 1, 1], [], []>} : vector<2x64xbf16>, vector<64x128xbf16>, vector<2x128xf32> -> vector<2x128xf32>
    %63 = arith.addf %55, %62 : vector<2x128xf32>
    %c1_48 = arith.constant 1 : index
    %c0_49 = arith.constant 0 : index
    %c0_50 = arith.constant 0 : index
    %64 = vector.load %arg7[%c1_48, %c0_49, %c0_50] : memref<4x2x8xbf16, #tpu.memory_space<vmem>>, vector<1x2x8xbf16>
    %65 = vector.shape_cast %64 : vector<1x2x8xbf16> to vector<2x8xbf16>
    %cst_51 = arith.constant dense<0.000000e+00> : vector<2x64xf32>
    %66 = tpu.matmul %65, %54, %cst_51 {dimension_numbers = #tpu.dot_dimension_numbers<[1], [0], [0], [1], [0, 0, 1, 1], [], []>} : vector<2x8xbf16>, vector<8x64xbf16>, vector<2x64xf32> -> vector<2x64xf32>
    %67 = arith.truncf %66 : vector<2x64xf32> to vector<2x64xbf16>
    %c1_52 = arith.constant 1 : index
    %c0_53 = arith.constant 0 : index
    %c0_54 = arith.constant 0 : index
    %68 = vector.load %arg8[%c1_52, %c0_53, %c0_54] : memref<4x64x128xbf16, #tpu.memory_space<vmem>>, vector<1x64x128xbf16>
    %69 = vector.shape_cast %68 : vector<1x64x128xbf16> to vector<64x128xbf16>
    %cst_55 = arith.constant dense<0.000000e+00> : vector<2x128xf32>
    %70 = tpu.matmul %67, %69, %cst_55 {dimension_numbers = #tpu.dot_dimension_numbers<[1], [0], [0], [1], [0, 0, 1, 1], [], []>} : vector<2x64xbf16>, vector<64x128xbf16>, vector<2x128xf32> -> vector<2x128xf32>
    %71 = arith.addf %63, %70 : vector<2x128xf32>
    %c2_56 = arith.constant 2 : index
    %c0_57 = arith.constant 0 : index
    %c0_58 = arith.constant 0 : index
    %72 = vector.load %arg7[%c2_56, %c0_57, %c0_58] : memref<4x2x8xbf16, #tpu.memory_space<vmem>>, vector<1x2x8xbf16>
    %73 = vector.shape_cast %72 : vector<1x2x8xbf16> to vector<2x8xbf16>
    %cst_59 = arith.constant dense<0.000000e+00> : vector<2x64xf32>
    %74 = tpu.matmul %73, %54, %cst_59 {dimension_numbers = #tpu.dot_dimension_numbers<[1], [0], [0], [1], [0, 0, 1, 1], [], []>} : vector<2x8xbf16>, vector<8x64xbf16>, vector<2x64xf32> -> vector<2x64xf32>
    %75 = arith.truncf %74 : vector<2x64xf32> to vector<2x64xbf16>
    %c2_60 = arith.constant 2 : index
    %c0_61 = arith.constant 0 : index
    %c0_62 = arith.constant 0 : index
    %76 = vector.load %arg8[%c2_60, %c0_61, %c0_62] : memref<4x64x128xbf16, #tpu.memory_space<vmem>>, vector<1x64x128xbf16>
    %77 = vector.shape_cast %76 : vector<1x64x128xbf16> to vector<64x128xbf16>
    %cst_63 = arith.constant dense<0.000000e+00> : vector<2x128xf32>
    %78 = tpu.matmul %75, %77, %cst_63 {dimension_numbers = #tpu.dot_dimension_numbers<[1], [0], [0], [1], [0, 0, 1, 1], [], []>} : vector<2x64xbf16>, vector<64x128xbf16>, vector<2x128xf32> -> vector<2x128xf32>
    %79 = arith.addf %71, %78 : vector<2x128xf32>
    %c3_64 = arith.constant 3 : index
    %c0_65 = arith.constant 0 : index
    %c0_66 = arith.constant 0 : index
    %80 = vector.load %arg7[%c3_64, %c0_65, %c0_66] : memref<4x2x8xbf16, #tpu.memory_space<vmem>>, vector<1x2x8xbf16>
    %81 = vector.shape_cast %80 : vector<1x2x8xbf16> to vector<2x8xbf16>
    %cst_67 = arith.constant dense<0.000000e+00> : vector<2x64xf32>
    %82 = tpu.matmul %81, %54, %cst_67 {dimension_numbers = #tpu.dot_dimension_numbers<[1], [0], [0], [1], [0, 0, 1, 1], [], []>} : vector<2x8xbf16>, vector<8x64xbf16>, vector<2x64xf32> -> vector<2x64xf32>
    %83 = arith.truncf %82 : vector<2x64xf32> to vector<2x64xbf16>
    %c3_68 = arith.constant 3 : index
    %c0_69 = arith.constant 0 : index
    %c0_70 = arith.constant 0 : index
    %84 = vector.load %arg8[%c3_68, %c0_69, %c0_70] : memref<4x64x128xbf16, #tpu.memory_space<vmem>>, vector<1x64x128xbf16>
    %85 = vector.shape_cast %84 : vector<1x64x128xbf16> to vector<64x128xbf16>
    %cst_71 = arith.constant dense<0.000000e+00> : vector<2x128xf32>
    %86 = tpu.matmul %83, %85, %cst_71 {dimension_numbers = #tpu.dot_dimension_numbers<[1], [0], [0], [1], [0, 0, 1, 1], [], []>} : vector<2x64xbf16>, vector<64x128xbf16>, vector<2x128xf32> -> vector<2x128xf32>
    %87 = arith.addf %79, %86 : vector<2x128xf32>
    %c0_72 = arith.constant 0 : index
    %c0_73 = arith.constant 0 : index
    %88 = vector.load %arg9[%c0_72, %c0_73] : memref<1x128xf32, #tpu.memory_space<vmem>>, vector<1x128xf32>
    %89 = vector.broadcast %88 : vector<1x128xf32> to vector<2x128xf32>
    %90 = arith.addf %87, %89 : vector<2x128xf32>
    %cst_74 = arith.constant 0.000000e+00 : f32
    %91 = vector.broadcast %cst_74 : f32 to vector<2x128xf32>
    %92 = arith.maximumf %90, %91 : vector<2x128xf32>
    %c0_75 = arith.constant 0 : index
    %c0_76 = arith.constant 0 : index
    %93 = vector.load %arg10[%c0_75, %c0_76] : memref<2x128xf32, #tpu.memory_space<vmem>>, vector<2x128xf32>
    tpu.vector_store %arg10[%c0_75, %c0_76], %92 {strides = array<i32>} : memref<2x128xf32, #tpu.memory_space<vmem>>, vector<2x128xf32>,
    return
  }
  func.func @transform_0(%arg0: i32) -> (i32, i32) {
    %c0_i32 = arith.constant 0 : i32
    %c0_i32_0 = arith.constant 0 : i32
    %c0_i32_1 = arith.constant 0 : i32
    return %c0_i32, %c0_i32_0 : i32, i32
  }
  func.func @transform_1(%arg0: i32) -> (i32, i32) {
    %c0_i32 = arith.constant 0 : i32
    %c0_i32_0 = arith.constant 0 : i32
    %c0_i32_1 = arith.constant 0 : i32
    return %c0_i32, %c0_i32_0 : i32, i32
  }
  func.func @transform_2(%arg0: i32) -> (i32, i32) {
    %c0_i32 = arith.constant 0 : i32
    %c0_i32_0 = arith.constant 0 : i32
    %c0_i32_1 = arith.constant 0 : i32
    return %c0_i32, %c0_i32_0 : i32, i32
  }
  func.func @transform_3(%arg0: i32) -> (i32, i32, i32) {
    %c0_i32 = arith.constant 0 : i32
    %c0_i32_0 = arith.constant 0 : i32
    %c0_i32_1 = arith.constant 0 : i32
    %c0_i32_2 = arith.constant 0 : i32
    return %c0_i32, %c0_i32_0, %c0_i32_1 : i32, i32, i32
  }
  func.func @transform_4(%arg0: i32) -> (i32, i32, i32) {
    %c0_i32 = arith.constant 0 : i32
    %c0_i32_0 = arith.constant 0 : i32
    %c0_i32_1 = arith.constant 0 : i32
    %c0_i32_2 = arith.constant 0 : i32
    return %c0_i32, %c0_i32_0, %c0_i32_1 : i32, i32, i32
  }
  func.func @transform_5(%arg0: i32) -> (i32, i32) {
    %c0_i32 = arith.constant 0 : i32
    %c0_i32_0 = arith.constant 0 : i32
    %c0_i32_1 = arith.constant 0 : i32
    return %c0_i32, %c0_i32_0 : i32, i32
  }
  func.func @transform_6(%arg0: i32) -> (i32, i32, i32) {
    %c0_i32 = arith.constant 0 : i32
    %c0_i32_0 = arith.constant 0 : i32
    %c0_i32_1 = arith.constant 0 : i32
    %c0_i32_2 = arith.constant 0 : i32
    return %c0_i32, %c0_i32_0, %c0_i32_1 : i32, i32, i32
  }
  func.func @transform_7(%arg0: i32) -> (i32, i32, i32) {
    %c0_i32 = arith.constant 0 : i32
    %c0_i32_0 = arith.constant 0 : i32
    %c0_i32_1 = arith.constant 0 : i32
    %c0_i32_2 = arith.constant 0 : i32
    return %c0_i32, %c0_i32_0, %c0_i32_1 : i32, i32, i32
  }
  func.func @transform_8(%arg0: i32) -> (i32, i32) {
    %c0_i32 = arith.constant 0 : i32
    %c0_i32_0 = arith.constant 0 : i32
    %c0_i32_1 = arith.constant 0 : i32
    return %c0_i32, %c0_i32_0 : i32, i32
  }
  func.func @transform_9(%arg0: i32) -> (i32, i32) {
    %c0_i32 = arith.constant 0 : i32
    %c0_i32_0 = arith.constant 0 : i32
    %c0_i32_1 = arith.constant 0 : i32
    return %c0_i32, %c0_i32_0 : i32, i32
  }
}

module attributes {stable_mosaic.version = 11 : i64} {
  func.func @_transformer_heads_kernel(%arg0: i32, %arg1: memref<2xi32, #tpu.memory_space<smem>>, %arg2: memref<16x128xf32, #tpu.memory_space<vmem>>, %arg3: memref<2x128x384xbf16, #tpu.memory_space<vmem>>, %arg4: memref<2x1x384xf32, #tpu.memory_space<vmem>>, %arg5: memref<2x128x128xbf16, #tpu.memory_space<vmem>>, %arg6: memref<2x1x128xf32, #tpu.memory_space<vmem>>, %arg7: memref<2x1x128xf32, #tpu.memory_space<vmem>>, %arg8: memref<2x1x128xf32, #tpu.memory_space<vmem>>, %arg9: memref<2x128x2048xbf16, #tpu.memory_space<vmem>>, %arg10: memref<2x1x2048xf32, #tpu.memory_space<vmem>>, %arg11: memref<2x2048x128xbf16, #tpu.memory_space<vmem>>, %arg12: memref<2x1x128xf32, #tpu.memory_space<vmem>>, %arg13: memref<2x1x128xf32, #tpu.memory_space<vmem>>, %arg14: memref<2x1x128xf32, #tpu.memory_space<vmem>>, %arg15: memref<128x128xbf16, #tpu.memory_space<vmem>>, %arg16: memref<1x128xf32, #tpu.memory_space<vmem>>, %arg17: memref<128x128xbf16, #tpu.memory_space<vmem>>, %arg18: memref<1x128xf32, #tpu.memory_space<vmem>>, %arg19: memref<2x128xf32, #tpu.memory_space<vmem>>, %arg20: memref<16x128xf32, #tpu.memory_space<vmem>>) attributes {dimension_semantics = [#tpu.dimension_semantics<arbitrary>], iteration_bounds = array<i64: 1>, scalar_prefetch = 1 : i64, scratch_operands = 1 : i64, tpu.core_type = #tpu.core_type<tc>, window_params = [{pipeline_mode = #tpu.pipeline_mode<synchronous>, transform_indices = @transform_0, window_bounds = array<i64: 16, 128>}, {pipeline_mode = #tpu.pipeline_mode<synchronous>, transform_indices = @transform_1, window_bounds = array<i64: 2, 128, 384>}, {pipeline_mode = #tpu.pipeline_mode<synchronous>, transform_indices = @transform_2, window_bounds = array<i64: 2, 1, 384>}, {pipeline_mode = #tpu.pipeline_mode<synchronous>, transform_indices = @transform_3, window_bounds = array<i64: 2, 128, 128>}, {pipeline_mode = #tpu.pipeline_mode<synchronous>, transform_indices = @transform_4, window_bounds = array<i64: 2, 1, 128>}, {pipeline_mode = #tpu.pipeline_mode<synchronous>, transform_indices = @transform_5, window_bounds = array<i64: 2, 1, 128>}, {pipeline_mode = #tpu.pipeline_mode<synchronous>, transform_indices = @transform_6, window_bounds = array<i64: 2, 1, 128>}, {pipeline_mode = #tpu.pipeline_mode<synchronous>, transform_indices = @transform_7, window_bounds = array<i64: 2, 128, 2048>}, {pipeline_mode = #tpu.pipeline_mode<synchronous>, transform_indices = @transform_8, window_bounds = array<i64: 2, 1, 2048>}, {pipeline_mode = #tpu.pipeline_mode<synchronous>, transform_indices = @transform_9, window_bounds = array<i64: 2, 2048, 128>}, {pipeline_mode = #tpu.pipeline_mode<synchronous>, transform_indices = @transform_10, window_bounds = array<i64: 2, 1, 128>}, {pipeline_mode = #tpu.pipeline_mode<synchronous>, transform_indices = @transform_11, window_bounds = array<i64: 2, 1, 128>}, {pipeline_mode = #tpu.pipeline_mode<synchronous>, transform_indices = @transform_12, window_bounds = array<i64: 2, 1, 128>}, {pipeline_mode = #tpu.pipeline_mode<synchronous>, transform_indices = @transform_13, window_bounds = array<i64: 128, 128>}, {pipeline_mode = #tpu.pipeline_mode<synchronous>, transform_indices = @transform_14, window_bounds = array<i64: 1, 128>}, {pipeline_mode = #tpu.pipeline_mode<synchronous>, transform_indices = @transform_15, window_bounds = array<i64: 128, 128>}, {pipeline_mode = #tpu.pipeline_mode<synchronous>, transform_indices = @transform_16, window_bounds = array<i64: 1, 128>}, {pipeline_mode = #tpu.pipeline_mode<synchronous>, transform_indices = @transform_17, window_bounds = array<i64: 2, 128>}]} {
    %c0 = arith.constant 0 : index
    %c0_0 = arith.constant 0 : index
    %0 = vector.load %arg2[%c0, %c0_0] : memref<16x128xf32, #tpu.memory_space<vmem>>, vector<16x128xf32>
    %1 = tpu.iota {dimensions = array<i32: 0>} : vector<16x16xi32>
    %2 = tpu.iota {dimensions = array<i32: 1>} : vector<16x16xi32>
    %c3_i32 = arith.constant 3 : i32
    %3 = vector.broadcast %c3_i32 : i32 to vector<16x16xi32>
    %4 = arith.shrsi %1, %3 : vector<16x16xi32>
    %c3_i32_1 = arith.constant 3 : i32
    %5 = vector.broadcast %c3_i32_1 : i32 to vector<16x16xi32>
    %6 = arith.shrsi %2, %5 : vector<16x16xi32>
    %7 = arith.cmpi eq, %4, %6 : vector<16x16xi32>
    %c7_i32 = arith.constant 7 : i32
    %8 = vector.broadcast %c7_i32 : i32 to vector<16x16xi32>
    %9 = arith.andi %2, %8 : vector<16x16xi32>
    %c7_i32_2 = arith.constant 7 : i32
    %10 = vector.broadcast %c7_i32_2 : i32 to vector<16x16xi32>
    %11 = arith.andi %1, %10 : vector<16x16xi32>
    %12 = arith.cmpi sle, %9, %11 : vector<16x16xi32>
    %13 = arith.andi %7, %12 : vector<16x16xi1>
    %cst = arith.constant 0.000000e+00 : f32
    %cst_3 = arith.constant -1.000000e+30 : f32
    %14 = vector.broadcast %cst : f32 to vector<16x16xf32>
    %15 = vector.broadcast %cst_3 : f32 to vector<16x16xf32>
    %16 = arith.select %13, %14, %15 : vector<16x16xi1>, vector<16x16xf32>
    %17 = arith.truncf %0 : vector<16x128xf32> to vector<16x128xbf16>
    %c0_4 = arith.constant 0 : index
    %c0_5 = arith.constant 0 : index
    %c0_6 = arith.constant 0 : index
    %18 = vector.load %arg3[%c0_4, %c0_5, %c0_6] : memref<2x128x384xbf16, #tpu.memory_space<vmem>>, vector<1x128x384xbf16>
    %19 = vector.shape_cast %18 : vector<1x128x384xbf16> to vector<128x384xbf16>
    %cst_7 = arith.constant dense<0.000000e+00> : vector<16x384xf32>
    %20 = tpu.matmul %17, %19, %cst_7 {dimension_numbers = #tpu.dot_dimension_numbers<[1], [0], [0], [1], [0, 0, 1, 1], [], []>} : vector<16x128xbf16>, vector<128x384xbf16>, vector<16x384xf32> -> vector<16x384xf32>
    %c0_8 = arith.constant 0 : index
    %c0_9 = arith.constant 0 : index
    %c0_10 = arith.constant 0 : index
    %21 = vector.load %arg4[%c0_8, %c0_9, %c0_10] : memref<2x1x384xf32, #tpu.memory_space<vmem>>, vector<1x1x384xf32>
    %22 = vector.shape_cast %21 : vector<1x1x384xf32> to vector<1x384xf32>
    %23 = vector.broadcast %22 : vector<1x384xf32> to vector<16x384xf32>
    %24 = arith.addf %20, %23 : vector<16x384xf32>
    %25 = vector.extract_strided_slice %24 {offsets = [0, 0], sizes = [16, 128], strides = [1, 1]} : vector<16x384xf32> to vector<16x128xf32>
    %26 = vector.extract_strided_slice %24 {offsets = [0, 128], sizes = [16, 128], strides = [1, 1]} : vector<16x384xf32> to vector<16x128xf32>
    %27 = vector.extract_strided_slice %24 {offsets = [0, 256], sizes = [16, 128], strides = [1, 1]} : vector<16x384xf32> to vector<16x128xf32>
    %28 = vector.extract_strided_slice %25 {offsets = [0, 0], sizes = [16, 32], strides = [1, 1]} : vector<16x128xf32> to vector<16x32xf32>
    %29 = arith.truncf %28 : vector<16x32xf32> to vector<16x32xbf16>
    %30 = vector.extract_strided_slice %26 {offsets = [0, 0], sizes = [16, 32], strides = [1, 1]} : vector<16x128xf32> to vector<16x32xf32>
    %31 = arith.truncf %30 : vector<16x32xf32> to vector<16x32xbf16>
    %32 = vector.extract_strided_slice %27 {offsets = [0, 0], sizes = [16, 32], strides = [1, 1]} : vector<16x128xf32> to vector<16x32xf32>
    %33 = arith.truncf %32 : vector<16x32xf32> to vector<16x32xbf16>
    %cst_11 = arith.constant dense<0.000000e+00> : vector<16x16xf32>
    %34 = tpu.matmul %29, %31, %cst_11 {dimension_numbers = #tpu.dot_dimension_numbers<[1], [1], [0], [0], [0, 0, 1, 0], [], []>} : vector<16x32xbf16>, vector<16x32xbf16>, vector<16x16xf32> -> vector<16x16xf32>
    %cst_12 = arith.constant 0.176776692 : f32
    %35 = vector.broadcast %cst_12 : f32 to vector<16x16xf32>
    %36 = arith.mulf %34, %35 : vector<16x16xf32>
    %37 = arith.addf %36, %16 : vector<16x16xf32>
    %cst_13 = arith.constant dense<0xFF800000> : vector<16xf32>
    %38 = vector.multi_reduction <maximumf>, %37, %cst_13 [1] : vector<16x16xf32> to vector<16xf32>
    %39 = vector.shape_cast %38 : vector<16xf32> to vector<16x1xf32>
    %40 = vector.broadcast %39 : vector<16x1xf32> to vector<16x16xf32>
    %41 = arith.subf %37, %40 : vector<16x16xf32>
    %42 = math.exp %41 : vector<16x16xf32>
    %cst_14 = arith.constant dense<0.000000e+00> : vector<16xf32>
    %43 = vector.multi_reduction <add>, %42, %cst_14 [1] : vector<16x16xf32> to vector<16xf32>
    %44 = vector.shape_cast %43 : vector<16xf32> to vector<16x1xf32>
    %45 = tpu.reciprocal %44 {approx = true} : vector<16x1xf32> -> vector<16x1xf32>
    %46 = vector.broadcast %45 : vector<16x1xf32> to vector<16x16xf32>
    %47 = arith.mulf %42, %46 : vector<16x16xf32>
    %48 = arith.truncf %47 : vector<16x16xf32> to vector<16x16xbf16>
    %cst_15 = arith.constant dense<0.000000e+00> : vector<16x32xf32>
    %49 = tpu.matmul %48, %33, %cst_15 {dimension_numbers = #tpu.dot_dimension_numbers<[1], [0], [0], [1], [0, 0, 1, 1], [], []>} : vector<16x16xbf16>, vector<16x32xbf16>, vector<16x32xf32> -> vector<16x32xf32>
    %50 = vector.extract_strided_slice %25 {offsets = [0, 32], sizes = [16, 32], strides = [1, 1]} : vector<16x128xf32> to vector<16x32xf32>
    %51 = arith.truncf %50 : vector<16x32xf32> to vector<16x32xbf16>
    %52 = vector.extract_strided_slice %26 {offsets = [0, 32], sizes = [16, 32], strides = [1, 1]} : vector<16x128xf32> to vector<16x32xf32>
    %53 = arith.truncf %52 : vector<16x32xf32> to vector<16x32xbf16>
    %54 = vector.extract_strided_slice %27 {offsets = [0, 32], sizes = [16, 32], strides = [1, 1]} : vector<16x128xf32> to vector<16x32xf32>
    %55 = arith.truncf %54 : vector<16x32xf32> to vector<16x32xbf16>
    %cst_16 = arith.constant dense<0.000000e+00> : vector<16x16xf32>
    %56 = tpu.matmul %51, %53, %cst_16 {dimension_numbers = #tpu.dot_dimension_numbers<[1], [1], [0], [0], [0, 0, 1, 0], [], []>} : vector<16x32xbf16>, vector<16x32xbf16>, vector<16x16xf32> -> vector<16x16xf32>
    %cst_17 = arith.constant 0.176776692 : f32
    %57 = vector.broadcast %cst_17 : f32 to vector<16x16xf32>
    %58 = arith.mulf %56, %57 : vector<16x16xf32>
    %59 = arith.addf %58, %16 : vector<16x16xf32>
    %cst_18 = arith.constant dense<0xFF800000> : vector<16xf32>
    %60 = vector.multi_reduction <maximumf>, %59, %cst_18 [1] : vector<16x16xf32> to vector<16xf32>
    %61 = vector.shape_cast %60 : vector<16xf32> to vector<16x1xf32>
    %62 = vector.broadcast %61 : vector<16x1xf32> to vector<16x16xf32>
    %63 = arith.subf %59, %62 : vector<16x16xf32>
    %64 = math.exp %63 : vector<16x16xf32>
    %cst_19 = arith.constant dense<0.000000e+00> : vector<16xf32>
    %65 = vector.multi_reduction <add>, %64, %cst_19 [1] : vector<16x16xf32> to vector<16xf32>
    %66 = vector.shape_cast %65 : vector<16xf32> to vector<16x1xf32>
    %67 = tpu.reciprocal %66 {approx = true} : vector<16x1xf32> -> vector<16x1xf32>
    %68 = vector.broadcast %67 : vector<16x1xf32> to vector<16x16xf32>
    %69 = arith.mulf %64, %68 : vector<16x16xf32>
    %70 = arith.truncf %69 : vector<16x16xf32> to vector<16x16xbf16>
    %cst_20 = arith.constant dense<0.000000e+00> : vector<16x32xf32>
    %71 = tpu.matmul %70, %55, %cst_20 {dimension_numbers = #tpu.dot_dimension_numbers<[1], [0], [0], [1], [0, 0, 1, 1], [], []>} : vector<16x16xbf16>, vector<16x32xbf16>, vector<16x32xf32> -> vector<16x32xf32>
    %72 = vector.extract_strided_slice %25 {offsets = [0, 64], sizes = [16, 32], strides = [1, 1]} : vector<16x128xf32> to vector<16x32xf32>
    %73 = arith.truncf %72 : vector<16x32xf32> to vector<16x32xbf16>
    %74 = vector.extract_strided_slice %26 {offsets = [0, 64], sizes = [16, 32], strides = [1, 1]} : vector<16x128xf32> to vector<16x32xf32>
    %75 = arith.truncf %74 : vector<16x32xf32> to vector<16x32xbf16>
    %76 = vector.extract_strided_slice %27 {offsets = [0, 64], sizes = [16, 32], strides = [1, 1]} : vector<16x128xf32> to vector<16x32xf32>
    %77 = arith.truncf %76 : vector<16x32xf32> to vector<16x32xbf16>
    %cst_21 = arith.constant dense<0.000000e+00> : vector<16x16xf32>
    %78 = tpu.matmul %73, %75, %cst_21 {dimension_numbers = #tpu.dot_dimension_numbers<[1], [1], [0], [0], [0, 0, 1, 0], [], []>} : vector<16x32xbf16>, vector<16x32xbf16>, vector<16x16xf32> -> vector<16x16xf32>
    %cst_22 = arith.constant 0.176776692 : f32
    %79 = vector.broadcast %cst_22 : f32 to vector<16x16xf32>
    %80 = arith.mulf %78, %79 : vector<16x16xf32>
    %81 = arith.addf %80, %16 : vector<16x16xf32>
    %cst_23 = arith.constant dense<0xFF800000> : vector<16xf32>
    %82 = vector.multi_reduction <maximumf>, %81, %cst_23 [1] : vector<16x16xf32> to vector<16xf32>
    %83 = vector.shape_cast %82 : vector<16xf32> to vector<16x1xf32>
    %84 = vector.broadcast %83 : vector<16x1xf32> to vector<16x16xf32>
    %85 = arith.subf %81, %84 : vector<16x16xf32>
    %86 = math.exp %85 : vector<16x16xf32>
    %cst_24 = arith.constant dense<0.000000e+00> : vector<16xf32>
    %87 = vector.multi_reduction <add>, %86, %cst_24 [1] : vector<16x16xf32> to vector<16xf32>
    %88 = vector.shape_cast %87 : vector<16xf32> to vector<16x1xf32>
    %89 = tpu.reciprocal %88 {approx = true} : vector<16x1xf32> -> vector<16x1xf32>
    %90 = vector.broadcast %89 : vector<16x1xf32> to vector<16x16xf32>
    %91 = arith.mulf %86, %90 : vector<16x16xf32>
    %92 = arith.truncf %91 : vector<16x16xf32> to vector<16x16xbf16>
    %cst_25 = arith.constant dense<0.000000e+00> : vector<16x32xf32>
    %93 = tpu.matmul %92, %77, %cst_25 {dimension_numbers = #tpu.dot_dimension_numbers<[1], [0], [0], [1], [0, 0, 1, 1], [], []>} : vector<16x16xbf16>, vector<16x32xbf16>, vector<16x32xf32> -> vector<16x32xf32>
    %94 = vector.extract_strided_slice %25 {offsets = [0, 96], sizes = [16, 32], strides = [1, 1]} : vector<16x128xf32> to vector<16x32xf32>
    %95 = arith.truncf %94 : vector<16x32xf32> to vector<16x32xbf16>
    %96 = vector.extract_strided_slice %26 {offsets = [0, 96], sizes = [16, 32], strides = [1, 1]} : vector<16x128xf32> to vector<16x32xf32>
    %97 = arith.truncf %96 : vector<16x32xf32> to vector<16x32xbf16>
    %98 = vector.extract_strided_slice %27 {offsets = [0, 96], sizes = [16, 32], strides = [1, 1]} : vector<16x128xf32> to vector<16x32xf32>
    %99 = arith.truncf %98 : vector<16x32xf32> to vector<16x32xbf16>
    %cst_26 = arith.constant dense<0.000000e+00> : vector<16x16xf32>
    %100 = tpu.matmul %95, %97, %cst_26 {dimension_numbers = #tpu.dot_dimension_numbers<[1], [1], [0], [0], [0, 0, 1, 0], [], []>} : vector<16x32xbf16>, vector<16x32xbf16>, vector<16x16xf32> -> vector<16x16xf32>
    %cst_27 = arith.constant 0.176776692 : f32
    %101 = vector.broadcast %cst_27 : f32 to vector<16x16xf32>
    %102 = arith.mulf %100, %101 : vector<16x16xf32>
    %103 = arith.addf %102, %16 : vector<16x16xf32>
    %cst_28 = arith.constant dense<0xFF800000> : vector<16xf32>
    %104 = vector.multi_reduction <maximumf>, %103, %cst_28 [1] : vector<16x16xf32> to vector<16xf32>
    %105 = vector.shape_cast %104 : vector<16xf32> to vector<16x1xf32>
    %106 = vector.broadcast %105 : vector<16x1xf32> to vector<16x16xf32>
    %107 = arith.subf %103, %106 : vector<16x16xf32>
    %108 = math.exp %107 : vector<16x16xf32>
    %cst_29 = arith.constant dense<0.000000e+00> : vector<16xf32>
    %109 = vector.multi_reduction <add>, %108, %cst_29 [1] : vector<16x16xf32> to vector<16xf32>
    %110 = vector.shape_cast %109 : vector<16xf32> to vector<16x1xf32>
    %111 = tpu.reciprocal %110 {approx = true} : vector<16x1xf32> -> vector<16x1xf32>
    %112 = vector.broadcast %111 : vector<16x1xf32> to vector<16x16xf32>
    %113 = arith.mulf %108, %112 : vector<16x16xf32>
    %114 = arith.truncf %113 : vector<16x16xf32> to vector<16x16xbf16>
    %cst_30 = arith.constant dense<0.000000e+00> : vector<16x32xf32>
    %115 = tpu.matmul %114, %99, %cst_30 {dimension_numbers = #tpu.dot_dimension_numbers<[1], [0], [0], [1], [0, 0, 1, 1], [], []>} : vector<16x16xbf16>, vector<16x32xbf16>, vector<16x32xf32> -> vector<16x32xf32>
    %116 = tpu.concatenate %49, %71, %93, %115 in 1 : vector<16x32xf32>, vector<16x32xf32>, vector<16x32xf32>, vector<16x32xf32> -> vector<16x128xf32>
    %117 = arith.truncf %116 : vector<16x128xf32> to vector<16x128xbf16>
    %c0_31 = arith.constant 0 : index
    %c0_32 = arith.constant 0 : index
    %c0_33 = arith.constant 0 : index
    %118 = vector.load %arg5[%c0_31, %c0_32, %c0_33] : memref<2x128x128xbf16, #tpu.memory_space<vmem>>, vector<1x128x128xbf16>
    %119 = vector.shape_cast %118 : vector<1x128x128xbf16> to vector<128x128xbf16>
    %cst_34 = arith.constant dense<0.000000e+00> : vector<16x128xf32>
    %120 = tpu.matmul %117, %119, %cst_34 {dimension_numbers = #tpu.dot_dimension_numbers<[1], [0], [0], [1], [0, 0, 1, 1], [], []>} : vector<16x128xbf16>, vector<128x128xbf16>, vector<16x128xf32> -> vector<16x128xf32>
    %c0_35 = arith.constant 0 : index
    %c0_36 = arith.constant 0 : index
    %c0_37 = arith.constant 0 : index
    %121 = vector.load %arg6[%c0_35, %c0_36, %c0_37] : memref<2x1x128xf32, #tpu.memory_space<vmem>>, vector<1x1x128xf32>
    %122 = vector.shape_cast %121 : vector<1x1x128xf32> to vector<1x128xf32>
    %123 = vector.broadcast %122 : vector<1x128xf32> to vector<16x128xf32>
    %124 = arith.addf %120, %123 : vector<16x128xf32>
    %125 = arith.addf %0, %124 : vector<16x128xf32>
    %c0_38 = arith.constant 0 : index
    %c0_39 = arith.constant 0 : index
    %c0_40 = arith.constant 0 : index
    %126 = vector.load %arg7[%c0_38, %c0_39, %c0_40] : memref<2x1x128xf32, #tpu.memory_space<vmem>>, vector<1x1x128xf32>
    %127 = vector.shape_cast %126 : vector<1x1x128xf32> to vector<1x128xf32>
    %c0_41 = arith.constant 0 : index
    %c0_42 = arith.constant 0 : index
    %c0_43 = arith.constant 0 : index
    %128 = vector.load %arg8[%c0_41, %c0_42, %c0_43] : memref<2x1x128xf32, #tpu.memory_space<vmem>>, vector<1x1x128xf32>
    %129 = vector.shape_cast %128 : vector<1x1x128xf32> to vector<1x128xf32>
    %cst_44 = arith.constant dense<0.000000e+00> : vector<16xf32>
    %130 = vector.multi_reduction <add>, %125, %cst_44 [1] : vector<16x128xf32> to vector<16xf32>
    %131 = vector.shape_cast %130 : vector<16xf32> to vector<16x1xf32>
    %cst_45 = arith.constant 1.280000e+02 : f32
    %132 = vector.broadcast %cst_45 : f32 to vector<16x1xf32>
    %133 = arith.divf %131, %132 : vector<16x1xf32>
    %134 = vector.broadcast %133 : vector<16x1xf32> to vector<16x128xf32>
    %135 = arith.subf %125, %134 : vector<16x128xf32>
    %136 = arith.mulf %135, %135 : vector<16x128xf32>
    %cst_46 = arith.constant dense<0.000000e+00> : vector<16xf32>
    %137 = vector.multi_reduction <add>, %136, %cst_46 [1] : vector<16x128xf32> to vector<16xf32>
    %138 = vector.shape_cast %137 : vector<16xf32> to vector<16x1xf32>
    %cst_47 = arith.constant 1.280000e+02 : f32
    %139 = vector.broadcast %cst_47 : f32 to vector<16x1xf32>
    %140 = arith.divf %138, %139 : vector<16x1xf32>
    %141 = vector.broadcast %133 : vector<16x1xf32> to vector<16x128xf32>
    %142 = arith.subf %125, %141 : vector<16x128xf32>
    %cst_48 = arith.constant 9.99999974E-6 : f32
    %143 = vector.broadcast %cst_48 : f32 to vector<16x1xf32>
    %144 = arith.addf %140, %143 : vector<16x1xf32>
    %145 = math.rsqrt %144 : vector<16x1xf32>
    %146 = vector.broadcast %145 : vector<16x1xf32> to vector<16x128xf32>
    %147 = arith.mulf %142, %146 : vector<16x128xf32>
    %148 = vector.broadcast %127 : vector<1x128xf32> to vector<16x128xf32>
    %149 = arith.mulf %147, %148 : vector<16x128xf32>
    %150 = vector.broadcast %129 : vector<1x128xf32> to vector<16x128xf32>
    %151 = arith.addf %149, %150 : vector<16x128xf32>
    %152 = arith.truncf %151 : vector<16x128xf32> to vector<16x128xbf16>
    %cst_49 = arith.constant 0.000000e+00 : f32
    %153 = vector.broadcast %cst_49 : f32 to vector<16x128xf32>
    %c0_50 = arith.constant 0 : index
    %c0_51 = arith.constant 0 : index
    %c0_52 = arith.constant 0 : index
    %154 = vector.load %arg9[%c0_50, %c0_51, %c0_52] : memref<2x128x2048xbf16, #tpu.memory_space<vmem>>, vector<1x128x512xbf16>
    %155 = vector.shape_cast %154 : vector<1x128x512xbf16> to vector<128x512xbf16>
    %cst_53 = arith.constant dense<0.000000e+00> : vector<16x512xf32>
    %156 = tpu.matmul %152, %155, %cst_53 {dimension_numbers = #tpu.dot_dimension_numbers<[1], [0], [0], [1], [0, 0, 1, 1], [], []>} : vector<16x128xbf16>, vector<128x512xbf16>, vector<16x512xf32> -> vector<16x512xf32>
    %c0_54 = arith.constant 0 : index
    %c0_55 = arith.constant 0 : index
    %c0_56 = arith.constant 0 : index
    %157 = vector.load %arg10[%c0_54, %c0_55, %c0_56] : memref<2x1x2048xf32, #tpu.memory_space<vmem>>, vector<1x1x512xf32>
    %158 = vector.shape_cast %157 : vector<1x1x512xf32> to vector<1x512xf32>
    %159 = vector.broadcast %158 : vector<1x512xf32> to vector<16x512xf32>
    %160 = arith.addf %156, %159 : vector<16x512xf32>
    %cst_57 = arith.constant 0.000000e+00 : f32
    %161 = vector.broadcast %cst_57 : f32 to vector<16x512xf32>
    %162 = arith.maximumf %160, %161 : vector<16x512xf32>
    %163 = arith.truncf %162 : vector<16x512xf32> to vector<16x512xbf16>
    %c0_58 = arith.constant 0 : index
    %c0_59 = arith.constant 0 : index
    %c0_60 = arith.constant 0 : index
    %164 = vector.load %arg11[%c0_58, %c0_59, %c0_60] : memref<2x2048x128xbf16, #tpu.memory_space<vmem>>, vector<1x512x128xbf16>
    %165 = vector.shape_cast %164 : vector<1x512x128xbf16> to vector<512x128xbf16>
    %cst_61 = arith.constant dense<0.000000e+00> : vector<16x128xf32>
    %166 = tpu.matmul %163, %165, %cst_61 {dimension_numbers = #tpu.dot_dimension_numbers<[1], [0], [0], [1], [0, 0, 1, 1], [], []>} : vector<16x512xbf16>, vector<512x128xbf16>, vector<16x128xf32> -> vector<16x128xf32>
    %167 = arith.addf %153, %166 : vector<16x128xf32>
    %c0_62 = arith.constant 0 : index
    %c0_63 = arith.constant 0 : index
    %c512 = arith.constant 512 : index
    %168 = vector.load %arg9[%c0_62, %c0_63, %c512] : memref<2x128x2048xbf16, #tpu.memory_space<vmem>>, vector<1x128x512xbf16>
    %169 = vector.shape_cast %168 : vector<1x128x512xbf16> to vector<128x512xbf16>
    %cst_64 = arith.constant dense<0.000000e+00> : vector<16x512xf32>
    %170 = tpu.matmul %152, %169, %cst_64 {dimension_numbers = #tpu.dot_dimension_numbers<[1], [0], [0], [1], [0, 0, 1, 1], [], []>} : vector<16x128xbf16>, vector<128x512xbf16>, vector<16x512xf32> -> vector<16x512xf32>
    %c0_65 = arith.constant 0 : index
    %c0_66 = arith.constant 0 : index
    %c512_67 = arith.constant 512 : index
    %171 = vector.load %arg10[%c0_65, %c0_66, %c512_67] : memref<2x1x2048xf32, #tpu.memory_space<vmem>>, vector<1x1x512xf32>
    %172 = vector.shape_cast %171 : vector<1x1x512xf32> to vector<1x512xf32>
    %173 = vector.broadcast %172 : vector<1x512xf32> to vector<16x512xf32>
    %174 = arith.addf %170, %173 : vector<16x512xf32>
    %cst_68 = arith.constant 0.000000e+00 : f32
    %175 = vector.broadcast %cst_68 : f32 to vector<16x512xf32>
    %176 = arith.maximumf %174, %175 : vector<16x512xf32>
    %177 = arith.truncf %176 : vector<16x512xf32> to vector<16x512xbf16>
    %c0_69 = arith.constant 0 : index
    %c512_70 = arith.constant 512 : index
    %c0_71 = arith.constant 0 : index
    %178 = vector.load %arg11[%c0_69, %c512_70, %c0_71] : memref<2x2048x128xbf16, #tpu.memory_space<vmem>>, vector<1x512x128xbf16>
    %179 = vector.shape_cast %178 : vector<1x512x128xbf16> to vector<512x128xbf16>
    %cst_72 = arith.constant dense<0.000000e+00> : vector<16x128xf32>
    %180 = tpu.matmul %177, %179, %cst_72 {dimension_numbers = #tpu.dot_dimension_numbers<[1], [0], [0], [1], [0, 0, 1, 1], [], []>} : vector<16x512xbf16>, vector<512x128xbf16>, vector<16x128xf32> -> vector<16x128xf32>
    %181 = arith.addf %167, %180 : vector<16x128xf32>
    %c0_73 = arith.constant 0 : index
    %c0_74 = arith.constant 0 : index
    %c1024 = arith.constant 1024 : index
    %182 = vector.load %arg9[%c0_73, %c0_74, %c1024] : memref<2x128x2048xbf16, #tpu.memory_space<vmem>>, vector<1x128x512xbf16>
    %183 = vector.shape_cast %182 : vector<1x128x512xbf16> to vector<128x512xbf16>
    %cst_75 = arith.constant dense<0.000000e+00> : vector<16x512xf32>
    %184 = tpu.matmul %152, %183, %cst_75 {dimension_numbers = #tpu.dot_dimension_numbers<[1], [0], [0], [1], [0, 0, 1, 1], [], []>} : vector<16x128xbf16>, vector<128x512xbf16>, vector<16x512xf32> -> vector<16x512xf32>
    %c0_76 = arith.constant 0 : index
    %c0_77 = arith.constant 0 : index
    %c1024_78 = arith.constant 1024 : index
    %185 = vector.load %arg10[%c0_76, %c0_77, %c1024_78] : memref<2x1x2048xf32, #tpu.memory_space<vmem>>, vector<1x1x512xf32>
    %186 = vector.shape_cast %185 : vector<1x1x512xf32> to vector<1x512xf32>
    %187 = vector.broadcast %186 : vector<1x512xf32> to vector<16x512xf32>
    %188 = arith.addf %184, %187 : vector<16x512xf32>
    %cst_79 = arith.constant 0.000000e+00 : f32
    %189 = vector.broadcast %cst_79 : f32 to vector<16x512xf32>
    %190 = arith.maximumf %188, %189 : vector<16x512xf32>
    %191 = arith.truncf %190 : vector<16x512xf32> to vector<16x512xbf16>
    %c0_80 = arith.constant 0 : index
    %c1024_81 = arith.constant 1024 : index
    %c0_82 = arith.constant 0 : index
    %192 = vector.load %arg11[%c0_80, %c1024_81, %c0_82] : memref<2x2048x128xbf16, #tpu.memory_space<vmem>>, vector<1x512x128xbf16>
    %193 = vector.shape_cast %192 : vector<1x512x128xbf16> to vector<512x128xbf16>
    %cst_83 = arith.constant dense<0.000000e+00> : vector<16x128xf32>
    %194 = tpu.matmul %191, %193, %cst_83 {dimension_numbers = #tpu.dot_dimension_numbers<[1], [0], [0], [1], [0, 0, 1, 1], [], []>} : vector<16x512xbf16>, vector<512x128xbf16>, vector<16x128xf32> -> vector<16x128xf32>
    %195 = arith.addf %181, %194 : vector<16x128xf32>
    %c0_84 = arith.constant 0 : index
    %c0_85 = arith.constant 0 : index
    %c1536 = arith.constant 1536 : index
    %196 = vector.load %arg9[%c0_84, %c0_85, %c1536] : memref<2x128x2048xbf16, #tpu.memory_space<vmem>>, vector<1x128x512xbf16>
    %197 = vector.shape_cast %196 : vector<1x128x512xbf16> to vector<128x512xbf16>
    %cst_86 = arith.constant dense<0.000000e+00> : vector<16x512xf32>
    %198 = tpu.matmul %152, %197, %cst_86 {dimension_numbers = #tpu.dot_dimension_numbers<[1], [0], [0], [1], [0, 0, 1, 1], [], []>} : vector<16x128xbf16>, vector<128x512xbf16>, vector<16x512xf32> -> vector<16x512xf32>
    %c0_87 = arith.constant 0 : index
    %c0_88 = arith.constant 0 : index
    %c1536_89 = arith.constant 1536 : index
    %199 = vector.load %arg10[%c0_87, %c0_88, %c1536_89] : memref<2x1x2048xf32, #tpu.memory_space<vmem>>, vector<1x1x512xf32>
    %200 = vector.shape_cast %199 : vector<1x1x512xf32> to vector<1x512xf32>
    %201 = vector.broadcast %200 : vector<1x512xf32> to vector<16x512xf32>
    %202 = arith.addf %198, %201 : vector<16x512xf32>
    %cst_90 = arith.constant 0.000000e+00 : f32
    %203 = vector.broadcast %cst_90 : f32 to vector<16x512xf32>
    %204 = arith.maximumf %202, %203 : vector<16x512xf32>
    %205 = arith.truncf %204 : vector<16x512xf32> to vector<16x512xbf16>
    %c0_91 = arith.constant 0 : index
    %c1536_92 = arith.constant 1536 : index
    %c0_93 = arith.constant 0 : index
    %206 = vector.load %arg11[%c0_91, %c1536_92, %c0_93] : memref<2x2048x128xbf16, #tpu.memory_space<vmem>>, vector<1x512x128xbf16>
    %207 = vector.shape_cast %206 : vector<1x512x128xbf16> to vector<512x128xbf16>
    %cst_94 = arith.constant dense<0.000000e+00> : vector<16x128xf32>
    %208 = tpu.matmul %205, %207, %cst_94 {dimension_numbers = #tpu.dot_dimension_numbers<[1], [0], [0], [1], [0, 0, 1, 1], [], []>} : vector<16x512xbf16>, vector<512x128xbf16>, vector<16x128xf32> -> vector<16x128xf32>
    %209 = arith.addf %195, %208 : vector<16x128xf32>
    %210 = arith.addf %151, %209 : vector<16x128xf32>
    %c0_95 = arith.constant 0 : index
    %c0_96 = arith.constant 0 : index
    %c0_97 = arith.constant 0 : index
    %211 = vector.load %arg12[%c0_95, %c0_96, %c0_97] : memref<2x1x128xf32, #tpu.memory_space<vmem>>, vector<1x1x128xf32>
    %212 = vector.shape_cast %211 : vector<1x1x128xf32> to vector<1x128xf32>
    %213 = vector.broadcast %212 : vector<1x128xf32> to vector<16x128xf32>
    %214 = arith.addf %210, %213 : vector<16x128xf32>
    %c0_98 = arith.constant 0 : index
    %c0_99 = arith.constant 0 : index
    %c0_100 = arith.constant 0 : index
    %215 = vector.load %arg13[%c0_98, %c0_99, %c0_100] : memref<2x1x128xf32, #tpu.memory_space<vmem>>, vector<1x1x128xf32>
    %216 = vector.shape_cast %215 : vector<1x1x128xf32> to vector<1x128xf32>
    %c0_101 = arith.constant 0 : index
    %c0_102 = arith.constant 0 : index
    %c0_103 = arith.constant 0 : index
    %217 = vector.load %arg14[%c0_101, %c0_102, %c0_103] : memref<2x1x128xf32, #tpu.memory_space<vmem>>, vector<1x1x128xf32>
    %218 = vector.shape_cast %217 : vector<1x1x128xf32> to vector<1x128xf32>
    %cst_104 = arith.constant dense<0.000000e+00> : vector<16xf32>
    %219 = vector.multi_reduction <add>, %214, %cst_104 [1] : vector<16x128xf32> to vector<16xf32>
    %220 = vector.shape_cast %219 : vector<16xf32> to vector<16x1xf32>
    %cst_105 = arith.constant 1.280000e+02 : f32
    %221 = vector.broadcast %cst_105 : f32 to vector<16x1xf32>
    %222 = arith.divf %220, %221 : vector<16x1xf32>
    %223 = vector.broadcast %222 : vector<16x1xf32> to vector<16x128xf32>
    %224 = arith.subf %214, %223 : vector<16x128xf32>
    %225 = arith.mulf %224, %224 : vector<16x128xf32>
    %cst_106 = arith.constant dense<0.000000e+00> : vector<16xf32>
    %226 = vector.multi_reduction <add>, %225, %cst_106 [1] : vector<16x128xf32> to vector<16xf32>
    %227 = vector.shape_cast %226 : vector<16xf32> to vector<16x1xf32>
    %cst_107 = arith.constant 1.280000e+02 : f32
    %228 = vector.broadcast %cst_107 : f32 to vector<16x1xf32>
    %229 = arith.divf %227, %228 : vector<16x1xf32>
    %230 = vector.broadcast %222 : vector<16x1xf32> to vector<16x128xf32>
    %231 = arith.subf %214, %230 : vector<16x128xf32>
    %cst_108 = arith.constant 9.99999974E-6 : f32
    %232 = vector.broadcast %cst_108 : f32 to vector<16x1xf32>
    %233 = arith.addf %229, %232 : vector<16x1xf32>
    %234 = math.rsqrt %233 : vector<16x1xf32>
    %235 = vector.broadcast %234 : vector<16x1xf32> to vector<16x128xf32>
    %236 = arith.mulf %231, %235 : vector<16x128xf32>
    %237 = vector.broadcast %216 : vector<1x128xf32> to vector<16x128xf32>
    %238 = arith.mulf %236, %237 : vector<16x128xf32>
    %239 = vector.broadcast %218 : vector<1x128xf32> to vector<16x128xf32>
    %240 = arith.addf %238, %239 : vector<16x128xf32>
    %241 = arith.truncf %240 : vector<16x128xf32> to vector<16x128xbf16>
    %c1 = arith.constant 1 : index
    %c0_109 = arith.constant 0 : index
    %c0_110 = arith.constant 0 : index
    %242 = vector.load %arg3[%c1, %c0_109, %c0_110] : memref<2x128x384xbf16, #tpu.memory_space<vmem>>, vector<1x128x384xbf16>
    %243 = vector.shape_cast %242 : vector<1x128x384xbf16> to vector<128x384xbf16>
    %cst_111 = arith.constant dense<0.000000e+00> : vector<16x384xf32>
    %244 = tpu.matmul %241, %243, %cst_111 {dimension_numbers = #tpu.dot_dimension_numbers<[1], [0], [0], [1], [0, 0, 1, 1], [], []>} : vector<16x128xbf16>, vector<128x384xbf16>, vector<16x384xf32> -> vector<16x384xf32>
    %c1_112 = arith.constant 1 : index
    %c0_113 = arith.constant 0 : index
    %c0_114 = arith.constant 0 : index
    %245 = vector.load %arg4[%c1_112, %c0_113, %c0_114] : memref<2x1x384xf32, #tpu.memory_space<vmem>>, vector<1x1x384xf32>
    %246 = vector.shape_cast %245 : vector<1x1x384xf32> to vector<1x384xf32>
    %247 = vector.broadcast %246 : vector<1x384xf32> to vector<16x384xf32>
    %248 = arith.addf %244, %247 : vector<16x384xf32>
    %249 = vector.extract_strided_slice %248 {offsets = [0, 0], sizes = [16, 128], strides = [1, 1]} : vector<16x384xf32> to vector<16x128xf32>
    %250 = vector.extract_strided_slice %248 {offsets = [0, 128], sizes = [16, 128], strides = [1, 1]} : vector<16x384xf32> to vector<16x128xf32>
    %251 = vector.extract_strided_slice %248 {offsets = [0, 256], sizes = [16, 128], strides = [1, 1]} : vector<16x384xf32> to vector<16x128xf32>
    %252 = vector.extract_strided_slice %249 {offsets = [0, 0], sizes = [16, 32], strides = [1, 1]} : vector<16x128xf32> to vector<16x32xf32>
    %253 = arith.truncf %252 : vector<16x32xf32> to vector<16x32xbf16>
    %254 = vector.extract_strided_slice %250 {offsets = [0, 0], sizes = [16, 32], strides = [1, 1]} : vector<16x128xf32> to vector<16x32xf32>
    %255 = arith.truncf %254 : vector<16x32xf32> to vector<16x32xbf16>
    %256 = vector.extract_strided_slice %251 {offsets = [0, 0], sizes = [16, 32], strides = [1, 1]} : vector<16x128xf32> to vector<16x32xf32>
    %257 = arith.truncf %256 : vector<16x32xf32> to vector<16x32xbf16>
    %cst_115 = arith.constant dense<0.000000e+00> : vector<16x16xf32>
    %258 = tpu.matmul %253, %255, %cst_115 {dimension_numbers = #tpu.dot_dimension_numbers<[1], [1], [0], [0], [0, 0, 1, 0], [], []>} : vector<16x32xbf16>, vector<16x32xbf16>, vector<16x16xf32> -> vector<16x16xf32>
    %cst_116 = arith.constant 0.176776692 : f32
    %259 = vector.broadcast %cst_116 : f32 to vector<16x16xf32>
    %260 = arith.mulf %258, %259 : vector<16x16xf32>
    %261 = arith.addf %260, %16 : vector<16x16xf32>
    %cst_117 = arith.constant dense<0xFF800000> : vector<16xf32>
    %262 = vector.multi_reduction <maximumf>, %261, %cst_117 [1] : vector<16x16xf32> to vector<16xf32>
    %263 = vector.shape_cast %262 : vector<16xf32> to vector<16x1xf32>
    %264 = vector.broadcast %263 : vector<16x1xf32> to vector<16x16xf32>
    %265 = arith.subf %261, %264 : vector<16x16xf32>
    %266 = math.exp %265 : vector<16x16xf32>
    %cst_118 = arith.constant dense<0.000000e+00> : vector<16xf32>
    %267 = vector.multi_reduction <add>, %266, %cst_118 [1] : vector<16x16xf32> to vector<16xf32>
    %268 = vector.shape_cast %267 : vector<16xf32> to vector<16x1xf32>
    %269 = tpu.reciprocal %268 {approx = true} : vector<16x1xf32> -> vector<16x1xf32>
    %270 = vector.broadcast %269 : vector<16x1xf32> to vector<16x16xf32>
    %271 = arith.mulf %266, %270 : vector<16x16xf32>
    %272 = arith.truncf %271 : vector<16x16xf32> to vector<16x16xbf16>
    %cst_119 = arith.constant dense<0.000000e+00> : vector<16x32xf32>
    %273 = tpu.matmul %272, %257, %cst_119 {dimension_numbers = #tpu.dot_dimension_numbers<[1], [0], [0], [1], [0, 0, 1, 1], [], []>} : vector<16x16xbf16>, vector<16x32xbf16>, vector<16x32xf32> -> vector<16x32xf32>
    %274 = vector.extract_strided_slice %249 {offsets = [0, 32], sizes = [16, 32], strides = [1, 1]} : vector<16x128xf32> to vector<16x32xf32>
    %275 = arith.truncf %274 : vector<16x32xf32> to vector<16x32xbf16>
    %276 = vector.extract_strided_slice %250 {offsets = [0, 32], sizes = [16, 32], strides = [1, 1]} : vector<16x128xf32> to vector<16x32xf32>
    %277 = arith.truncf %276 : vector<16x32xf32> to vector<16x32xbf16>
    %278 = vector.extract_strided_slice %251 {offsets = [0, 32], sizes = [16, 32], strides = [1, 1]} : vector<16x128xf32> to vector<16x32xf32>
    %279 = arith.truncf %278 : vector<16x32xf32> to vector<16x32xbf16>
    %cst_120 = arith.constant dense<0.000000e+00> : vector<16x16xf32>
    %280 = tpu.matmul %275, %277, %cst_120 {dimension_numbers = #tpu.dot_dimension_numbers<[1], [1], [0], [0], [0, 0, 1, 0], [], []>} : vector<16x32xbf16>, vector<16x32xbf16>, vector<16x16xf32> -> vector<16x16xf32>
    %cst_121 = arith.constant 0.176776692 : f32
    %281 = vector.broadcast %cst_121 : f32 to vector<16x16xf32>
    %282 = arith.mulf %280, %281 : vector<16x16xf32>
    %283 = arith.addf %282, %16 : vector<16x16xf32>
    %cst_122 = arith.constant dense<0xFF800000> : vector<16xf32>
    %284 = vector.multi_reduction <maximumf>, %283, %cst_122 [1] : vector<16x16xf32> to vector<16xf32>
    %285 = vector.shape_cast %284 : vector<16xf32> to vector<16x1xf32>
    %286 = vector.broadcast %285 : vector<16x1xf32> to vector<16x16xf32>
    %287 = arith.subf %283, %286 : vector<16x16xf32>
    %288 = math.exp %287 : vector<16x16xf32>
    %cst_123 = arith.constant dense<0.000000e+00> : vector<16xf32>
    %289 = vector.multi_reduction <add>, %288, %cst_123 [1] : vector<16x16xf32> to vector<16xf32>
    %290 = vector.shape_cast %289 : vector<16xf32> to vector<16x1xf32>
    %291 = tpu.reciprocal %290 {approx = true} : vector<16x1xf32> -> vector<16x1xf32>
    %292 = vector.broadcast %291 : vector<16x1xf32> to vector<16x16xf32>
    %293 = arith.mulf %288, %292 : vector<16x16xf32>
    %294 = arith.truncf %293 : vector<16x16xf32> to vector<16x16xbf16>
    %cst_124 = arith.constant dense<0.000000e+00> : vector<16x32xf32>
    %295 = tpu.matmul %294, %279, %cst_124 {dimension_numbers = #tpu.dot_dimension_numbers<[1], [0], [0], [1], [0, 0, 1, 1], [], []>} : vector<16x16xbf16>, vector<16x32xbf16>, vector<16x32xf32> -> vector<16x32xf32>
    %296 = vector.extract_strided_slice %249 {offsets = [0, 64], sizes = [16, 32], strides = [1, 1]} : vector<16x128xf32> to vector<16x32xf32>
    %297 = arith.truncf %296 : vector<16x32xf32> to vector<16x32xbf16>
    %298 = vector.extract_strided_slice %250 {offsets = [0, 64], sizes = [16, 32], strides = [1, 1]} : vector<16x128xf32> to vector<16x32xf32>
    %299 = arith.truncf %298 : vector<16x32xf32> to vector<16x32xbf16>
    %300 = vector.extract_strided_slice %251 {offsets = [0, 64], sizes = [16, 32], strides = [1, 1]} : vector<16x128xf32> to vector<16x32xf32>
    %301 = arith.truncf %300 : vector<16x32xf32> to vector<16x32xbf16>
    %cst_125 = arith.constant dense<0.000000e+00> : vector<16x16xf32>
    %302 = tpu.matmul %297, %299, %cst_125 {dimension_numbers = #tpu.dot_dimension_numbers<[1], [1], [0], [0], [0, 0, 1, 0], [], []>} : vector<16x32xbf16>, vector<16x32xbf16>, vector<16x16xf32> -> vector<16x16xf32>
    %cst_126 = arith.constant 0.176776692 : f32
    %303 = vector.broadcast %cst_126 : f32 to vector<16x16xf32>
    %304 = arith.mulf %302, %303 : vector<16x16xf32>
    %305 = arith.addf %304, %16 : vector<16x16xf32>
    %cst_127 = arith.constant dense<0xFF800000> : vector<16xf32>
    %306 = vector.multi_reduction <maximumf>, %305, %cst_127 [1] : vector<16x16xf32> to vector<16xf32>
    %307 = vector.shape_cast %306 : vector<16xf32> to vector<16x1xf32>
    %308 = vector.broadcast %307 : vector<16x1xf32> to vector<16x16xf32>
    %309 = arith.subf %305, %308 : vector<16x16xf32>
    %310 = math.exp %309 : vector<16x16xf32>
    %cst_128 = arith.constant dense<0.000000e+00> : vector<16xf32>
    %311 = vector.multi_reduction <add>, %310, %cst_128 [1] : vector<16x16xf32> to vector<16xf32>
    %312 = vector.shape_cast %311 : vector<16xf32> to vector<16x1xf32>
    %313 = tpu.reciprocal %312 {approx = true} : vector<16x1xf32> -> vector<16x1xf32>
    %314 = vector.broadcast %313 : vector<16x1xf32> to vector<16x16xf32>
    %315 = arith.mulf %310, %314 : vector<16x16xf32>
    %316 = arith.truncf %315 : vector<16x16xf32> to vector<16x16xbf16>
    %cst_129 = arith.constant dense<0.000000e+00> : vector<16x32xf32>
    %317 = tpu.matmul %316, %301, %cst_129 {dimension_numbers = #tpu.dot_dimension_numbers<[1], [0], [0], [1], [0, 0, 1, 1], [], []>} : vector<16x16xbf16>, vector<16x32xbf16>, vector<16x32xf32> -> vector<16x32xf32>
    %318 = vector.extract_strided_slice %249 {offsets = [0, 96], sizes = [16, 32], strides = [1, 1]} : vector<16x128xf32> to vector<16x32xf32>
    %319 = arith.truncf %318 : vector<16x32xf32> to vector<16x32xbf16>
    %320 = vector.extract_strided_slice %250 {offsets = [0, 96], sizes = [16, 32], strides = [1, 1]} : vector<16x128xf32> to vector<16x32xf32>
    %321 = arith.truncf %320 : vector<16x32xf32> to vector<16x32xbf16>
    %322 = vector.extract_strided_slice %251 {offsets = [0, 96], sizes = [16, 32], strides = [1, 1]} : vector<16x128xf32> to vector<16x32xf32>
    %323 = arith.truncf %322 : vector<16x32xf32> to vector<16x32xbf16>
    %cst_130 = arith.constant dense<0.000000e+00> : vector<16x16xf32>
    %324 = tpu.matmul %319, %321, %cst_130 {dimension_numbers = #tpu.dot_dimension_numbers<[1], [1], [0], [0], [0, 0, 1, 0], [], []>} : vector<16x32xbf16>, vector<16x32xbf16>, vector<16x16xf32> -> vector<16x16xf32>
    %cst_131 = arith.constant 0.176776692 : f32
    %325 = vector.broadcast %cst_131 : f32 to vector<16x16xf32>
    %326 = arith.mulf %324, %325 : vector<16x16xf32>
    %327 = arith.addf %326, %16 : vector<16x16xf32>
    %cst_132 = arith.constant dense<0xFF800000> : vector<16xf32>
    %328 = vector.multi_reduction <maximumf>, %327, %cst_132 [1] : vector<16x16xf32> to vector<16xf32>
    %329 = vector.shape_cast %328 : vector<16xf32> to vector<16x1xf32>
    %330 = vector.broadcast %329 : vector<16x1xf32> to vector<16x16xf32>
    %331 = arith.subf %327, %330 : vector<16x16xf32>
    %332 = math.exp %331 : vector<16x16xf32>
    %cst_133 = arith.constant dense<0.000000e+00> : vector<16xf32>
    %333 = vector.multi_reduction <add>, %332, %cst_133 [1] : vector<16x16xf32> to vector<16xf32>
    %334 = vector.shape_cast %333 : vector<16xf32> to vector<16x1xf32>
    %335 = tpu.reciprocal %334 {approx = true} : vector<16x1xf32> -> vector<16x1xf32>
    %336 = vector.broadcast %335 : vector<16x1xf32> to vector<16x16xf32>
    %337 = arith.mulf %332, %336 : vector<16x16xf32>
    %338 = arith.truncf %337 : vector<16x16xf32> to vector<16x16xbf16>
    %cst_134 = arith.constant dense<0.000000e+00> : vector<16x32xf32>
    %339 = tpu.matmul %338, %323, %cst_134 {dimension_numbers = #tpu.dot_dimension_numbers<[1], [0], [0], [1], [0, 0, 1, 1], [], []>} : vector<16x16xbf16>, vector<16x32xbf16>, vector<16x32xf32> -> vector<16x32xf32>
    %340 = tpu.concatenate %273, %295, %317, %339 in 1 : vector<16x32xf32>, vector<16x32xf32>, vector<16x32xf32>, vector<16x32xf32> -> vector<16x128xf32>
    %341 = arith.truncf %340 : vector<16x128xf32> to vector<16x128xbf16>
    %c1_135 = arith.constant 1 : index
    %c0_136 = arith.constant 0 : index
    %c0_137 = arith.constant 0 : index
    %342 = vector.load %arg5[%c1_135, %c0_136, %c0_137] : memref<2x128x128xbf16, #tpu.memory_space<vmem>>, vector<1x128x128xbf16>
    %343 = vector.shape_cast %342 : vector<1x128x128xbf16> to vector<128x128xbf16>
    %cst_138 = arith.constant dense<0.000000e+00> : vector<16x128xf32>
    %344 = tpu.matmul %341, %343, %cst_138 {dimension_numbers = #tpu.dot_dimension_numbers<[1], [0], [0], [1], [0, 0, 1, 1], [], []>} : vector<16x128xbf16>, vector<128x128xbf16>, vector<16x128xf32> -> vector<16x128xf32>
    %c1_139 = arith.constant 1 : index
    %c0_140 = arith.constant 0 : index
    %c0_141 = arith.constant 0 : index
    %345 = vector.load %arg6[%c1_139, %c0_140, %c0_141] : memref<2x1x128xf32, #tpu.memory_space<vmem>>, vector<1x1x128xf32>
    %346 = vector.shape_cast %345 : vector<1x1x128xf32> to vector<1x128xf32>
    %347 = vector.broadcast %346 : vector<1x128xf32> to vector<16x128xf32>
    %348 = arith.addf %344, %347 : vector<16x128xf32>
    %349 = arith.addf %240, %348 : vector<16x128xf32>
    %c1_142 = arith.constant 1 : index
    %c0_143 = arith.constant 0 : index
    %c0_144 = arith.constant 0 : index
    %350 = vector.load %arg7[%c1_142, %c0_143, %c0_144] : memref<2x1x128xf32, #tpu.memory_space<vmem>>, vector<1x1x128xf32>
    %351 = vector.shape_cast %350 : vector<1x1x128xf32> to vector<1x128xf32>
    %c1_145 = arith.constant 1 : index
    %c0_146 = arith.constant 0 : index
    %c0_147 = arith.constant 0 : index
    %352 = vector.load %arg8[%c1_145, %c0_146, %c0_147] : memref<2x1x128xf32, #tpu.memory_space<vmem>>, vector<1x1x128xf32>
    %353 = vector.shape_cast %352 : vector<1x1x128xf32> to vector<1x128xf32>
    %cst_148 = arith.constant dense<0.000000e+00> : vector<16xf32>
    %354 = vector.multi_reduction <add>, %349, %cst_148 [1] : vector<16x128xf32> to vector<16xf32>
    %355 = vector.shape_cast %354 : vector<16xf32> to vector<16x1xf32>
    %cst_149 = arith.constant 1.280000e+02 : f32
    %356 = vector.broadcast %cst_149 : f32 to vector<16x1xf32>
    %357 = arith.divf %355, %356 : vector<16x1xf32>
    %358 = vector.broadcast %357 : vector<16x1xf32> to vector<16x128xf32>
    %359 = arith.subf %349, %358 : vector<16x128xf32>
    %360 = arith.mulf %359, %359 : vector<16x128xf32>
    %cst_150 = arith.constant dense<0.000000e+00> : vector<16xf32>
    %361 = vector.multi_reduction <add>, %360, %cst_150 [1] : vector<16x128xf32> to vector<16xf32>
    %362 = vector.shape_cast %361 : vector<16xf32> to vector<16x1xf32>
    %cst_151 = arith.constant 1.280000e+02 : f32
    %363 = vector.broadcast %cst_151 : f32 to vector<16x1xf32>
    %364 = arith.divf %362, %363 : vector<16x1xf32>
    %365 = vector.broadcast %357 : vector<16x1xf32> to vector<16x128xf32>
    %366 = arith.subf %349, %365 : vector<16x128xf32>
    %cst_152 = arith.constant 9.99999974E-6 : f32
    %367 = vector.broadcast %cst_152 : f32 to vector<16x1xf32>
    %368 = arith.addf %364, %367 : vector<16x1xf32>
    %369 = math.rsqrt %368 : vector<16x1xf32>
    %370 = vector.broadcast %369 : vector<16x1xf32> to vector<16x128xf32>
    %371 = arith.mulf %366, %370 : vector<16x128xf32>
    %372 = vector.broadcast %351 : vector<1x128xf32> to vector<16x128xf32>
    %373 = arith.mulf %371, %372 : vector<16x128xf32>
    %374 = vector.broadcast %353 : vector<1x128xf32> to vector<16x128xf32>
    %375 = arith.addf %373, %374 : vector<16x128xf32>
    %376 = arith.truncf %375 : vector<16x128xf32> to vector<16x128xbf16>
    %cst_153 = arith.constant 0.000000e+00 : f32
    %377 = vector.broadcast %cst_153 : f32 to vector<16x128xf32>
    %c1_154 = arith.constant 1 : index
    %c0_155 = arith.constant 0 : index
    %c0_156 = arith.constant 0 : index
    %378 = vector.load %arg9[%c1_154, %c0_155, %c0_156] : memref<2x128x2048xbf16, #tpu.memory_space<vmem>>, vector<1x128x512xbf16>
    %379 = vector.shape_cast %378 : vector<1x128x512xbf16> to vector<128x512xbf16>
    %cst_157 = arith.constant dense<0.000000e+00> : vector<16x512xf32>
    %380 = tpu.matmul %376, %379, %cst_157 {dimension_numbers = #tpu.dot_dimension_numbers<[1], [0], [0], [1], [0, 0, 1, 1], [], []>} : vector<16x128xbf16>, vector<128x512xbf16>, vector<16x512xf32> -> vector<16x512xf32>
    %c1_158 = arith.constant 1 : index
    %c0_159 = arith.constant 0 : index
    %c0_160 = arith.constant 0 : index
    %381 = vector.load %arg10[%c1_158, %c0_159, %c0_160] : memref<2x1x2048xf32, #tpu.memory_space<vmem>>, vector<1x1x512xf32>
    %382 = vector.shape_cast %381 : vector<1x1x512xf32> to vector<1x512xf32>
    %383 = vector.broadcast %382 : vector<1x512xf32> to vector<16x512xf32>
    %384 = arith.addf %380, %383 : vector<16x512xf32>
    %cst_161 = arith.constant 0.000000e+00 : f32
    %385 = vector.broadcast %cst_161 : f32 to vector<16x512xf32>
    %386 = arith.maximumf %384, %385 : vector<16x512xf32>
    %387 = arith.truncf %386 : vector<16x512xf32> to vector<16x512xbf16>
    %c1_162 = arith.constant 1 : index
    %c0_163 = arith.constant 0 : index
    %c0_164 = arith.constant 0 : index
    %388 = vector.load %arg11[%c1_162, %c0_163, %c0_164] : memref<2x2048x128xbf16, #tpu.memory_space<vmem>>, vector<1x512x128xbf16>
    %389 = vector.shape_cast %388 : vector<1x512x128xbf16> to vector<512x128xbf16>
    %cst_165 = arith.constant dense<0.000000e+00> : vector<16x128xf32>
    %390 = tpu.matmul %387, %389, %cst_165 {dimension_numbers = #tpu.dot_dimension_numbers<[1], [0], [0], [1], [0, 0, 1, 1], [], []>} : vector<16x512xbf16>, vector<512x128xbf16>, vector<16x128xf32> -> vector<16x128xf32>
    %391 = arith.addf %377, %390 : vector<16x128xf32>
    %c1_166 = arith.constant 1 : index
    %c0_167 = arith.constant 0 : index
    %c512_168 = arith.constant 512 : index
    %392 = vector.load %arg9[%c1_166, %c0_167, %c512_168] : memref<2x128x2048xbf16, #tpu.memory_space<vmem>>, vector<1x128x512xbf16>
    %393 = vector.shape_cast %392 : vector<1x128x512xbf16> to vector<128x512xbf16>
    %cst_169 = arith.constant dense<0.000000e+00> : vector<16x512xf32>
    %394 = tpu.matmul %376, %393, %cst_169 {dimension_numbers = #tpu.dot_dimension_numbers<[1], [0], [0], [1], [0, 0, 1, 1], [], []>} : vector<16x128xbf16>, vector<128x512xbf16>, vector<16x512xf32> -> vector<16x512xf32>
    %c1_170 = arith.constant 1 : index
    %c0_171 = arith.constant 0 : index
    %c512_172 = arith.constant 512 : index
    %395 = vector.load %arg10[%c1_170, %c0_171, %c512_172] : memref<2x1x2048xf32, #tpu.memory_space<vmem>>, vector<1x1x512xf32>
    %396 = vector.shape_cast %395 : vector<1x1x512xf32> to vector<1x512xf32>
    %397 = vector.broadcast %396 : vector<1x512xf32> to vector<16x512xf32>
    %398 = arith.addf %394, %397 : vector<16x512xf32>
    %cst_173 = arith.constant 0.000000e+00 : f32
    %399 = vector.broadcast %cst_173 : f32 to vector<16x512xf32>
    %400 = arith.maximumf %398, %399 : vector<16x512xf32>
    %401 = arith.truncf %400 : vector<16x512xf32> to vector<16x512xbf16>
    %c1_174 = arith.constant 1 : index
    %c512_175 = arith.constant 512 : index
    %c0_176 = arith.constant 0 : index
    %402 = vector.load %arg11[%c1_174, %c512_175, %c0_176] : memref<2x2048x128xbf16, #tpu.memory_space<vmem>>, vector<1x512x128xbf16>
    %403 = vector.shape_cast %402 : vector<1x512x128xbf16> to vector<512x128xbf16>
    %cst_177 = arith.constant dense<0.000000e+00> : vector<16x128xf32>
    %404 = tpu.matmul %401, %403, %cst_177 {dimension_numbers = #tpu.dot_dimension_numbers<[1], [0], [0], [1], [0, 0, 1, 1], [], []>} : vector<16x512xbf16>, vector<512x128xbf16>, vector<16x128xf32> -> vector<16x128xf32>
    %405 = arith.addf %391, %404 : vector<16x128xf32>
    %c1_178 = arith.constant 1 : index
    %c0_179 = arith.constant 0 : index
    %c1024_180 = arith.constant 1024 : index
    %406 = vector.load %arg9[%c1_178, %c0_179, %c1024_180] : memref<2x128x2048xbf16, #tpu.memory_space<vmem>>, vector<1x128x512xbf16>
    %407 = vector.shape_cast %406 : vector<1x128x512xbf16> to vector<128x512xbf16>
    %cst_181 = arith.constant dense<0.000000e+00> : vector<16x512xf32>
    %408 = tpu.matmul %376, %407, %cst_181 {dimension_numbers = #tpu.dot_dimension_numbers<[1], [0], [0], [1], [0, 0, 1, 1], [], []>} : vector<16x128xbf16>, vector<128x512xbf16>, vector<16x512xf32> -> vector<16x512xf32>
    %c1_182 = arith.constant 1 : index
    %c0_183 = arith.constant 0 : index
    %c1024_184 = arith.constant 1024 : index
    %409 = vector.load %arg10[%c1_182, %c0_183, %c1024_184] : memref<2x1x2048xf32, #tpu.memory_space<vmem>>, vector<1x1x512xf32>
    %410 = vector.shape_cast %409 : vector<1x1x512xf32> to vector<1x512xf32>
    %411 = vector.broadcast %410 : vector<1x512xf32> to vector<16x512xf32>
    %412 = arith.addf %408, %411 : vector<16x512xf32>
    %cst_185 = arith.constant 0.000000e+00 : f32
    %413 = vector.broadcast %cst_185 : f32 to vector<16x512xf32>
    %414 = arith.maximumf %412, %413 : vector<16x512xf32>
    %415 = arith.truncf %414 : vector<16x512xf32> to vector<16x512xbf16>
    %c1_186 = arith.constant 1 : index
    %c1024_187 = arith.constant 1024 : index
    %c0_188 = arith.constant 0 : index
    %416 = vector.load %arg11[%c1_186, %c1024_187, %c0_188] : memref<2x2048x128xbf16, #tpu.memory_space<vmem>>, vector<1x512x128xbf16>
    %417 = vector.shape_cast %416 : vector<1x512x128xbf16> to vector<512x128xbf16>
    %cst_189 = arith.constant dense<0.000000e+00> : vector<16x128xf32>
    %418 = tpu.matmul %415, %417, %cst_189 {dimension_numbers = #tpu.dot_dimension_numbers<[1], [0], [0], [1], [0, 0, 1, 1], [], []>} : vector<16x512xbf16>, vector<512x128xbf16>, vector<16x128xf32> -> vector<16x128xf32>
    %419 = arith.addf %405, %418 : vector<16x128xf32>
    %c1_190 = arith.constant 1 : index
    %c0_191 = arith.constant 0 : index
    %c1536_192 = arith.constant 1536 : index
    %420 = vector.load %arg9[%c1_190, %c0_191, %c1536_192] : memref<2x128x2048xbf16, #tpu.memory_space<vmem>>, vector<1x128x512xbf16>
    %421 = vector.shape_cast %420 : vector<1x128x512xbf16> to vector<128x512xbf16>
    %cst_193 = arith.constant dense<0.000000e+00> : vector<16x512xf32>
    %422 = tpu.matmul %376, %421, %cst_193 {dimension_numbers = #tpu.dot_dimension_numbers<[1], [0], [0], [1], [0, 0, 1, 1], [], []>} : vector<16x128xbf16>, vector<128x512xbf16>, vector<16x512xf32> -> vector<16x512xf32>
    %c1_194 = arith.constant 1 : index
    %c0_195 = arith.constant 0 : index
    %c1536_196 = arith.constant 1536 : index
    %423 = vector.load %arg10[%c1_194, %c0_195, %c1536_196] : memref<2x1x2048xf32, #tpu.memory_space<vmem>>, vector<1x1x512xf32>
    %424 = vector.shape_cast %423 : vector<1x1x512xf32> to vector<1x512xf32>
    %425 = vector.broadcast %424 : vector<1x512xf32> to vector<16x512xf32>
    %426 = arith.addf %422, %425 : vector<16x512xf32>
    %cst_197 = arith.constant 0.000000e+00 : f32
    %427 = vector.broadcast %cst_197 : f32 to vector<16x512xf32>
    %428 = arith.maximumf %426, %427 : vector<16x512xf32>
    %429 = arith.truncf %428 : vector<16x512xf32> to vector<16x512xbf16>
    %c1_198 = arith.constant 1 : index
    %c1536_199 = arith.constant 1536 : index
    %c0_200 = arith.constant 0 : index
    %430 = vector.load %arg11[%c1_198, %c1536_199, %c0_200] : memref<2x2048x128xbf16, #tpu.memory_space<vmem>>, vector<1x512x128xbf16>
    %431 = vector.shape_cast %430 : vector<1x512x128xbf16> to vector<512x128xbf16>
    %cst_201 = arith.constant dense<0.000000e+00> : vector<16x128xf32>
    %432 = tpu.matmul %429, %431, %cst_201 {dimension_numbers = #tpu.dot_dimension_numbers<[1], [0], [0], [1], [0, 0, 1, 1], [], []>} : vector<16x512xbf16>, vector<512x128xbf16>, vector<16x128xf32> -> vector<16x128xf32>
    %433 = arith.addf %419, %432 : vector<16x128xf32>
    %434 = arith.addf %375, %433 : vector<16x128xf32>
    %c1_202 = arith.constant 1 : index
    %c0_203 = arith.constant 0 : index
    %c0_204 = arith.constant 0 : index
    %435 = vector.load %arg12[%c1_202, %c0_203, %c0_204] : memref<2x1x128xf32, #tpu.memory_space<vmem>>, vector<1x1x128xf32>
    %436 = vector.shape_cast %435 : vector<1x1x128xf32> to vector<1x128xf32>
    %437 = vector.broadcast %436 : vector<1x128xf32> to vector<16x128xf32>
    %438 = arith.addf %434, %437 : vector<16x128xf32>
    %c1_205 = arith.constant 1 : index
    %c0_206 = arith.constant 0 : index
    %c0_207 = arith.constant 0 : index
    %439 = vector.load %arg13[%c1_205, %c0_206, %c0_207] : memref<2x1x128xf32, #tpu.memory_space<vmem>>, vector<1x1x128xf32>
    %440 = vector.shape_cast %439 : vector<1x1x128xf32> to vector<1x128xf32>
    %c1_208 = arith.constant 1 : index
    %c0_209 = arith.constant 0 : index
    %c0_210 = arith.constant 0 : index
    %441 = vector.load %arg14[%c1_208, %c0_209, %c0_210] : memref<2x1x128xf32, #tpu.memory_space<vmem>>, vector<1x1x128xf32>
    %442 = vector.shape_cast %441 : vector<1x1x128xf32> to vector<1x128xf32>
    %cst_211 = arith.constant dense<0.000000e+00> : vector<16xf32>
    %443 = vector.multi_reduction <add>, %438, %cst_211 [1] : vector<16x128xf32> to vector<16xf32>
    %444 = vector.shape_cast %443 : vector<16xf32> to vector<16x1xf32>
    %cst_212 = arith.constant 1.280000e+02 : f32
    %445 = vector.broadcast %cst_212 : f32 to vector<16x1xf32>
    %446 = arith.divf %444, %445 : vector<16x1xf32>
    %447 = vector.broadcast %446 : vector<16x1xf32> to vector<16x128xf32>
    %448 = arith.subf %438, %447 : vector<16x128xf32>
    %449 = arith.mulf %448, %448 : vector<16x128xf32>
    %cst_213 = arith.constant dense<0.000000e+00> : vector<16xf32>
    %450 = vector.multi_reduction <add>, %449, %cst_213 [1] : vector<16x128xf32> to vector<16xf32>
    %451 = vector.shape_cast %450 : vector<16xf32> to vector<16x1xf32>
    %cst_214 = arith.constant 1.280000e+02 : f32
    %452 = vector.broadcast %cst_214 : f32 to vector<16x1xf32>
    %453 = arith.divf %451, %452 : vector<16x1xf32>
    %454 = vector.broadcast %446 : vector<16x1xf32> to vector<16x128xf32>
    %455 = arith.subf %438, %454 : vector<16x128xf32>
    %cst_215 = arith.constant 9.99999974E-6 : f32
    %456 = vector.broadcast %cst_215 : f32 to vector<16x1xf32>
    %457 = arith.addf %453, %456 : vector<16x1xf32>
    %458 = math.rsqrt %457 : vector<16x1xf32>
    %459 = vector.broadcast %458 : vector<16x1xf32> to vector<16x128xf32>
    %460 = arith.mulf %455, %459 : vector<16x128xf32>
    %461 = vector.broadcast %440 : vector<1x128xf32> to vector<16x128xf32>
    %462 = arith.mulf %460, %461 : vector<16x128xf32>
    %463 = vector.broadcast %442 : vector<1x128xf32> to vector<16x128xf32>
    %464 = arith.addf %462, %463 : vector<16x128xf32>
    %c0_216 = arith.constant 0 : index
    %c0_217 = arith.constant 0 : index
    %465 = vector.load %arg20[%c0_216, %c0_217] : memref<16x128xf32, #tpu.memory_space<vmem>>, vector<16x128xf32>
    tpu.vector_store %arg20[%c0_216, %c0_217], %464 {strides = array<i32>} : memref<16x128xf32, #tpu.memory_space<vmem>>, vector<16x128xf32>,
    %c0_218 = arith.constant 0 : index
    %466 = memref.load %arg1[%c0_218] : memref<2xi32, #tpu.memory_space<smem>>
    %c0_i32 = arith.constant 0 : i32
    %467 = arith.addi %c0_i32, %466 : i32
    %468 = arith.index_cast %467 : i32 to index
    %c0_219 = arith.constant 0 : index
    %469 = vector.load %arg20[%468, %c0_219] : memref<16x128xf32, #tpu.memory_space<vmem>>, vector<1x128xf32>
    %c1_220 = arith.constant 1 : index
    %470 = memref.load %arg1[%c1_220] : memref<2xi32, #tpu.memory_space<smem>>
    %c8_i32 = arith.constant 8 : i32
    %471 = arith.addi %c8_i32, %470 : i32
    %472 = arith.index_cast %471 : i32 to index
    %c0_221 = arith.constant 0 : index
    %473 = vector.load %arg20[%472, %c0_221] : memref<16x128xf32, #tpu.memory_space<vmem>>, vector<1x128xf32>
    %474 = tpu.concatenate %469, %473 in 0 : vector<1x128xf32>, vector<1x128xf32> -> vector<2x128xf32>
    %475 = arith.truncf %474 : vector<2x128xf32> to vector<2x128xbf16>
    %c0_222 = arith.constant 0 : index
    %c0_223 = arith.constant 0 : index
    %476 = vector.load %arg15[%c0_222, %c0_223] : memref<128x128xbf16, #tpu.memory_space<vmem>>, vector<128x128xbf16>
    %cst_224 = arith.constant dense<0.000000e+00> : vector<2x128xf32>
    %477 = tpu.matmul %475, %476, %cst_224 {dimension_numbers = #tpu.dot_dimension_numbers<[1], [0], [0], [1], [0, 0, 1, 1], [], []>} : vector<2x128xbf16>, vector<128x128xbf16>, vector<2x128xf32> -> vector<2x128xf32>
    %c0_225 = arith.constant 0 : index
    %c0_226 = arith.constant 0 : index
    %478 = vector.load %arg16[%c0_225, %c0_226] : memref<1x128xf32, #tpu.memory_space<vmem>>, vector<1x128xf32>
    %479 = vector.broadcast %478 : vector<1x128xf32> to vector<2x128xf32>
    %480 = arith.addf %477, %479 : vector<2x128xf32>
    %481 = math.tanh %480 : vector<2x128xf32>
    %482 = arith.truncf %481 : vector<2x128xf32> to vector<2x128xbf16>
    %c0_227 = arith.constant 0 : index
    %c0_228 = arith.constant 0 : index
    %483 = vector.load %arg17[%c0_227, %c0_228] : memref<128x128xbf16, #tpu.memory_space<vmem>>, vector<128x128xbf16>
    %cst_229 = arith.constant dense<0.000000e+00> : vector<2x128xf32>
    %484 = tpu.matmul %482, %483, %cst_229 {dimension_numbers = #tpu.dot_dimension_numbers<[1], [0], [0], [1], [0, 0, 1, 1], [], []>} : vector<2x128xbf16>, vector<128x128xbf16>, vector<2x128xf32> -> vector<2x128xf32>
    %c0_230 = arith.constant 0 : index
    %c0_231 = arith.constant 0 : index
    %485 = vector.load %arg18[%c0_230, %c0_231] : memref<1x128xf32, #tpu.memory_space<vmem>>, vector<1x128xf32>
    %486 = vector.broadcast %485 : vector<1x128xf32> to vector<2x128xf32>
    %487 = arith.addf %484, %486 : vector<2x128xf32>
    %488 = tpu.iota {dimensions = array<i32: 1>} : vector<2x128xi32>
    %c7_i32_232 = arith.constant 7 : i32
    %489 = vector.broadcast %c7_i32_232 : i32 to vector<2x128xi32>
    %490 = arith.cmpi slt, %488, %489 : vector<2x128xi32>
    %cst_233 = arith.constant -1.000000e+30 : f32
    %491 = vector.broadcast %cst_233 : f32 to vector<2x128xf32>
    %492 = arith.select %490, %487, %491 : vector<2x128xi1>, vector<2x128xf32>
    %cst_234 = arith.constant dense<0xFF800000> : vector<2xf32>
    %493 = vector.multi_reduction <maximumf>, %492, %cst_234 [1] : vector<2x128xf32> to vector<2xf32>
    %494 = vector.shape_cast %493 : vector<2xf32> to vector<2x1xf32>
    %495 = vector.broadcast %494 : vector<2x1xf32> to vector<2x128xf32>
    %496 = arith.subf %487, %495 : vector<2x128xf32>
    %497 = math.exp %496 : vector<2x128xf32>
    %cst_235 = arith.constant 0.000000e+00 : f32
    %498 = vector.broadcast %cst_235 : f32 to vector<2x128xf32>
    %499 = arith.select %490, %497, %498 : vector<2x128xi1>, vector<2x128xf32>
    %cst_236 = arith.constant dense<0.000000e+00> : vector<2xf32>
    %500 = vector.multi_reduction <add>, %499, %cst_236 [1] : vector<2x128xf32> to vector<2xf32>
    %501 = vector.shape_cast %500 : vector<2xf32> to vector<2x1xf32>
    %502 = math.log %501 : vector<2x1xf32>
    %503 = arith.addf %494, %502 : vector<2x1xf32>
    %504 = vector.broadcast %503 : vector<2x1xf32> to vector<2x128xf32>
    %505 = arith.subf %487, %504 : vector<2x128xf32>
    %506 = arith.select %490, %505, %487 : vector<2x128xi1>, vector<2x128xf32>
    %c0_237 = arith.constant 0 : index
    %c0_238 = arith.constant 0 : index
    %507 = vector.load %arg19[%c0_237, %c0_238] : memref<2x128xf32, #tpu.memory_space<vmem>>, vector<2x128xf32>
    tpu.vector_store %arg19[%c0_237, %c0_238], %506 {strides = array<i32>} : memref<2x128xf32, #tpu.memory_space<vmem>>, vector<2x128xf32>,
    return
  }
  func.func @transform_0(%arg0: i32, %arg1: memref<2xi32, #tpu.memory_space<smem>>) -> (i32, i32) {
    %c0_i32 = arith.constant 0 : i32
    %c0_i32_0 = arith.constant 0 : i32
    %c0_i32_1 = arith.constant 0 : i32
    return %c0_i32, %c0_i32_0 : i32, i32
  }
  func.func @transform_1(%arg0: i32, %arg1: memref<2xi32, #tpu.memory_space<smem>>) -> (i32, i32, i32) {
    %c0_i32 = arith.constant 0 : i32
    %c0_i32_0 = arith.constant 0 : i32
    %c0_i32_1 = arith.constant 0 : i32
    %c0_i32_2 = arith.constant 0 : i32
    return %c0_i32, %c0_i32_0, %c0_i32_1 : i32, i32, i32
  }
  func.func @transform_2(%arg0: i32, %arg1: memref<2xi32, #tpu.memory_space<smem>>) -> (i32, i32, i32) {
    %c0_i32 = arith.constant 0 : i32
    %c0_i32_0 = arith.constant 0 : i32
    %c0_i32_1 = arith.constant 0 : i32
    %c0_i32_2 = arith.constant 0 : i32
    return %c0_i32, %c0_i32_0, %c0_i32_1 : i32, i32, i32
  }
  func.func @transform_3(%arg0: i32, %arg1: memref<2xi32, #tpu.memory_space<smem>>) -> (i32, i32, i32) {
    %c0_i32 = arith.constant 0 : i32
    %c0_i32_0 = arith.constant 0 : i32
    %c0_i32_1 = arith.constant 0 : i32
    %c0_i32_2 = arith.constant 0 : i32
    return %c0_i32, %c0_i32_0, %c0_i32_1 : i32, i32, i32
  }
  func.func @transform_4(%arg0: i32, %arg1: memref<2xi32, #tpu.memory_space<smem>>) -> (i32, i32, i32) {
    %c0_i32 = arith.constant 0 : i32
    %c0_i32_0 = arith.constant 0 : i32
    %c0_i32_1 = arith.constant 0 : i32
    %c0_i32_2 = arith.constant 0 : i32
    return %c0_i32, %c0_i32_0, %c0_i32_1 : i32, i32, i32
  }
  func.func @transform_5(%arg0: i32, %arg1: memref<2xi32, #tpu.memory_space<smem>>) -> (i32, i32, i32) {
    %c0_i32 = arith.constant 0 : i32
    %c0_i32_0 = arith.constant 0 : i32
    %c0_i32_1 = arith.constant 0 : i32
    %c0_i32_2 = arith.constant 0 : i32
    return %c0_i32, %c0_i32_0, %c0_i32_1 : i32, i32, i32
  }
  func.func @transform_6(%arg0: i32, %arg1: memref<2xi32, #tpu.memory_space<smem>>) -> (i32, i32, i32) {
    %c0_i32 = arith.constant 0 : i32
    %c0_i32_0 = arith.constant 0 : i32
    %c0_i32_1 = arith.constant 0 : i32
    %c0_i32_2 = arith.constant 0 : i32
    return %c0_i32, %c0_i32_0, %c0_i32_1 : i32, i32, i32
  }
  func.func @transform_7(%arg0: i32, %arg1: memref<2xi32, #tpu.memory_space<smem>>) -> (i32, i32, i32) {
    %c0_i32 = arith.constant 0 : i32
    %c0_i32_0 = arith.constant 0 : i32
    %c0_i32_1 = arith.constant 0 : i32
    %c0_i32_2 = arith.constant 0 : i32
    return %c0_i32, %c0_i32_0, %c0_i32_1 : i32, i32, i32
  }
  func.func @transform_8(%arg0: i32, %arg1: memref<2xi32, #tpu.memory_space<smem>>) -> (i32, i32, i32) {
    %c0_i32 = arith.constant 0 : i32
    %c0_i32_0 = arith.constant 0 : i32
    %c0_i32_1 = arith.constant 0 : i32
    %c0_i32_2 = arith.constant 0 : i32
    return %c0_i32, %c0_i32_0, %c0_i32_1 : i32, i32, i32
  }
  func.func @transform_9(%arg0: i32, %arg1: memref<2xi32, #tpu.memory_space<smem>>) -> (i32, i32, i32) {
    %c0_i32 = arith.constant 0 : i32
    %c0_i32_0 = arith.constant 0 : i32
    %c0_i32_1 = arith.constant 0 : i32
    %c0_i32_2 = arith.constant 0 : i32
    return %c0_i32, %c0_i32_0, %c0_i32_1 : i32, i32, i32
  }
  func.func @transform_10(%arg0: i32, %arg1: memref<2xi32, #tpu.memory_space<smem>>) -> (i32, i32, i32) {
    %c0_i32 = arith.constant 0 : i32
    %c0_i32_0 = arith.constant 0 : i32
    %c0_i32_1 = arith.constant 0 : i32
    %c0_i32_2 = arith.constant 0 : i32
    return %c0_i32, %c0_i32_0, %c0_i32_1 : i32, i32, i32
  }
  func.func @transform_11(%arg0: i32, %arg1: memref<2xi32, #tpu.memory_space<smem>>) -> (i32, i32, i32) {
    %c0_i32 = arith.constant 0 : i32
    %c0_i32_0 = arith.constant 0 : i32
    %c0_i32_1 = arith.constant 0 : i32
    %c0_i32_2 = arith.constant 0 : i32
    return %c0_i32, %c0_i32_0, %c0_i32_1 : i32, i32, i32
  }
  func.func @transform_12(%arg0: i32, %arg1: memref<2xi32, #tpu.memory_space<smem>>) -> (i32, i32, i32) {
    %c0_i32 = arith.constant 0 : i32
    %c0_i32_0 = arith.constant 0 : i32
    %c0_i32_1 = arith.constant 0 : i32
    %c0_i32_2 = arith.constant 0 : i32
    return %c0_i32, %c0_i32_0, %c0_i32_1 : i32, i32, i32
  }
  func.func @transform_13(%arg0: i32, %arg1: memref<2xi32, #tpu.memory_space<smem>>) -> (i32, i32) {
    %c0_i32 = arith.constant 0 : i32
    %c0_i32_0 = arith.constant 0 : i32
    %c0_i32_1 = arith.constant 0 : i32
    return %c0_i32, %c0_i32_0 : i32, i32
  }
  func.func @transform_14(%arg0: i32, %arg1: memref<2xi32, #tpu.memory_space<smem>>) -> (i32, i32) {
    %c0_i32 = arith.constant 0 : i32
    %c0_i32_0 = arith.constant 0 : i32
    %c0_i32_1 = arith.constant 0 : i32
    return %c0_i32, %c0_i32_0 : i32, i32
  }
  func.func @transform_15(%arg0: i32, %arg1: memref<2xi32, #tpu.memory_space<smem>>) -> (i32, i32) {
    %c0_i32 = arith.constant 0 : i32
    %c0_i32_0 = arith.constant 0 : i32
    %c0_i32_1 = arith.constant 0 : i32
    return %c0_i32, %c0_i32_0 : i32, i32
  }
  func.func @transform_16(%arg0: i32, %arg1: memref<2xi32, #tpu.memory_space<smem>>) -> (i32, i32) {
    %c0_i32 = arith.constant 0 : i32
    %c0_i32_0 = arith.constant 0 : i32
    %c0_i32_1 = arith.constant 0 : i32
    return %c0_i32, %c0_i32_0 : i32, i32
  }
  func.func @transform_17(%arg0: i32, %arg1: memref<2xi32, #tpu.memory_space<smem>>) -> (i32, i32) {
    %c0_i32 = arith.constant 0 : i32
    %c0_i32_0 = arith.constant 0 : i32
    %c0_i32_1 = arith.constant 0 : i32
    return %c0_i32, %c0_i32_0 : i32, i32
  }
}

</mosaic_0001>

<bundles_post_ra>
// kernel: forward.2
= control target key start
LH: loop header
LB: loop body
LE: loop exit
PB: predicated region body
PF: predicated region fallthrough
CT: control target
= control target key end

     0   :  { %vm161_vm0 = vcmask 523264   ;;  %vm261_vm1 = vcmask 1046528   ;;  %vm306_vm2 = vcmask 1041408   ;;  %vm352_vm3 = vcmask 1040384   ;;  %s1553_s1 = inlined_call_operand.vmem [shape: bf16[192,64], index: 1, kind: input, shape index: {}]   ;;  %s1554_s0 = inlined_call_operand.vmem [shape: f32[72,192], index: 0, kind: input, shape index: {}]   ;;  %s1555_s2 = inlined_call_operand.vmem [shape: f32[1,64], index: 2, kind: input, shape index: {}]   ;;  %s1556_s4 = inlined_call_operand.vmem [shape: bf16[4,64,64], index: 4, kind: input, shape index: {}]   ;;  %s1557_s3 = inlined_call_operand.vmem [shape: bf16[4,8,65], index: 3, kind: input, shape index: {}]   ;;  %s1558_s5 = inlined_call_operand.vmem [shape: f32[1,64], index: 5, kind: input, shape index: {}]   ;;  %s1559_s7 = inlined_call_operand.vmem [shape: bf16[4,64,128], index: 7, kind: input, shape index: {}]   ;;  %s1560_s6 = inlined_call_operand.vmem [shape: bf16[4,2,8], index: 6, kind: input, shape index: {}]   ;;  %s1561_s8 = inlined_call_operand.vmem [shape: f32[1,128], index: 8, kind: input, shape index: {}]   ;;  %s1562_s9 = inlined_call_operand.vmem [shape: f32[2,128], index: 9, kind: output, shape index: {}]  }
   0x1   :  { %v1179_v0 = vld [vmem:[%s1553_s1 + $0x38] sm:$0xff]  ;;  %v1178_v2 = vld [vmem:[%s1553_s1 + $0x30] sm:$0xff]  ;;  %v1177_v4 = vld [vmem:[%s1553_s1 + $0x28] sm:$0xff]  ;;  %vm348_vm4 = vcmask 531456   ;;  %vm638_vm5 = vcmask 1043456   ;;  %vm634_vm6 = vcmask 64512  }
   0x2   :  { %v1183_v1 = vld [vmem:[%s1553_s1 + $0x58] sm:$0xff]  ;;  %177 = vmatpush.bf16.msra.mxu0 %v1179_v0  ;;  %v1182_v3 = vld [vmem:[%s1553_s1 + $0x50] sm:$0xff]  ;;  %v1181_v5 = vld [vmem:[%s1553_s1 + $0x48] sm:$0xff] }
   0x3   :  { %214 = vmatpush.bf16.msra.mxu1 %v1183_v1  ;;  %v1176_v6 = vld [vmem:[%s1553_s1 + $0x20] sm:$0xff]  ;;  %v34_v8 = vld [vmem:[%s1554_s0 + $0x8] sm:$0xff]  ;;  %v36_v9 = vld [vmem:[%s1554_s0 + $0x18] sm:$0xff] }
   0x4   :  { %v1180_v7 = vld [vmem:[%s1553_s1 + $0x40] sm:$0xff]  ;;  %v1175_v10 = vld [vmem:[%s1553_s1 + $0x18] sm:$0xff]  ;;  %v52_v11 = vpack.c.bf16 %v36_v9, %v34_v8  ;;  %v1174_v12 = vld [vmem:[%s1553_s1 + $0x10] sm:$0xff] }
   0x5   :  { %v1173_v13 = vld [vmem:[%s1553_s1 + $0x8] sm:$0xff]  ;;  %v1172_v14 = vld [vmem:[%s1553_s1] sm:$0xff]  ;;  %v35_v16 = vld [vmem:[%s1554_s0 + $0x10] sm:$0xff] }
   0x6   :  { %178 = vmatpush.bf16.msra.mxu0 %v1178_v2  ;;  %v33_v15 = vld [vmem:[%s1554_s0] sm:$0xff]  ;;  %v38_v17 = vld [vmem:[%s1554_s0 + $0x28] sm:$0xff]  ;;  %v40_v18 = vld [vmem:[%s1554_s0 + $0x38] sm:$0xff] }
   0x7   :  { %215 = vmatpush.bf16.msra.mxu1 %v1182_v3  ;;  %v51_v19 = vpack.c.bf16 %v35_v16, %v33_v15  ;;  %v54_v20 = vpack.c.bf16 %v40_v18, %v38_v17  ;;  %v37_v21 = vld [vmem:[%s1554_s0 + $0x20] sm:$0xff]  ;;  %v39_v22 = vld [vmem:[%s1554_s0 + $0x30] sm:$0xff]  ;;  %v42_v23 = vld [vmem:[%s1554_s0 + $0x48] sm:$0xff] }
   0x8   :  { %v44_v24 = vld [vmem:[%s1554_s0 + $0x58] sm:$0xff]  ;;  %v53_v25 = vpack.c.bf16 %v39_v22, %v37_v21  ;;  %v41_v27 = vld [vmem:[%s1554_s0 + $0x40] sm:$0xff]  ;;  %v43_v28 = vld [vmem:[%s1554_s0 + $0x50] sm:$0xff] }
   0x9   :  { %v56_v26 = vpack.c.bf16 %v44_v24, %v42_v23  ;;  %v46_v29 = vld [vmem:[%s1554_s0 + $0x68] sm:$0xff]  ;;  %v48_v30 = vld [vmem:[%s1554_s0 + $0x78] sm:$0xff]  ;;  %v55_v31 = vpack.c.bf16 %v43_v28, %v41_v27  ;;  %v45_v33 = vld [vmem:[%s1554_s0 + $0x60] sm:$0xff] }
   0xa   :  { %179 = vmatpush.bf16.msra.mxu0 %v1177_v4  ;;  %v58_v32 = vpack.c.bf16 %v48_v30, %v46_v29  ;;  %v47_v34 = vld [vmem:[%s1554_s0 + $0x70] sm:$0xff]  ;;  %v50_v35 = vld [vmem:[%s1554_s0 + $0x88] sm:$0xff]  ;;  %v49_v38 = vld [vmem:[%s1554_s0 + $0x80] sm:$0xff] }
   0xb   :  { %216 = vmatpush.bf16.msra.mxu1 %v1181_v5  ;;  %v57_v36 = vpack.c.bf16 %v47_v34, %v45_v33  ;;  %v60_v37 = vpack.c.bf16 %v50_v35, %v50_v35  ;;  %v59_v39 = vpack.c.bf16 %v49_v38, %v49_v38  ;;  %v1369_v42 = vld [vmem:[%s1555_s2] ss:$0 sm:$0xff] }
   0xe   :  { %180 = vmatpush.bf16.msra.mxu0 %v1176_v6 }
   0xf   :  { %217 = vmatpush.bf16.msra.mxu1 %v1180_v7 }
  0x12   :  { %181 = vmatpush.bf16.msra.mxu0 %v1175_v10  ;;  %969 = vmatmul.msk.bf16.vlgmr.msra.gmra.mxu1 %vm161_vm0, %v52_v11 }
  0x16   :  { %182 = vmatpush.bf16.msra.mxu0 %v1174_v12 }
  0x1a   :  { %183 = vmatpush.bf16.msra.mxu0 %v1173_v13 }
  0x1e   :  { %184 = vmatpush.bf16.msra.mxu0 %v1172_v14 }
  0x21   :  { %185 = vmatmul.bf16.vlgmr.msra.gmra.mxu0 %v51_v19 }
  0x22   :  { %970 = vmatmul.msk.bf16.gmra.mxu1 %vm161_vm0, %v54_v20 }
  0x31   :  { %190 = vmatmul.bf16.gmra.mxu0 %v53_v25 }
  0x32   :  { %971 = vmatmul.msk.bf16.gmra.mxu1 %vm161_vm0, %v56_v26 }
  0x41   :  { %195 = vmatmul.bf16.gmra.mxu0 %v55_v31 }
  0x42   :  { %972 = vmatmul.msk.bf16.gmra.mxu1 %vm161_vm0, %v58_v32 }
  0x51   :  { %200 = vmatmul.bf16.gmra.mxu0 %v57_v36 }
  0x52   :  { %973 = vmatmul.msk.bf16.gmra.mxu1 %vm161_vm0, %v60_v37 }
  0x61   :  { %205 = vmatmul.bf16.gmra.mxu0 %v59_v39 }
  0x8f   :  { %v219_v40 = vpop.f32.mrf.mxu1 }
  0x97   :  { %v221_v41 = vpop.f32.mrf.mxu1 }
  0x9e   :  { %v186_v43 = vpop.f32.mrf.mxu0 }
  0x9f   :  { %v187_v44 = vadd.f32 %v1369_v42, %v186_v43  ;;  %v224_v45 = vpop.f32.mrf.mxu1 }
  0xa1   :  { %v220_v46 = vadd.f32 %v219_v40, %v187_v44 }
  0xa3   :  { %v243_v50 = vmax.f32 %v220_v46, 0.0 }
  0xa5   :  { %v262_v53 = vrot.slane %v243_v50, 1 }
  0xa6   :  { %v188_v47 = vpop.f32.mrf.mxu0 }
  0xa7   :  { %v189_v48 = vadd.f32 %v1369_v42, %v188_v47  ;;  %v226_v49 = vpop.f32.mrf.mxu1 }
  0xa9   :  { %v222_v51 = vadd.f32 %v221_v41, %v189_v48 }
  0xab   :  { %v244_v52 = vmax.f32 %v222_v51, 0.0 }
  0xad   :  { %v263_v54 = vrot.slane %v244_v52, 1 }
  0xae   :  { %v191_v55 = vpop.f32.mrf.mxu0 }
  0xaf   :  { %v264_v56 = vsel %vm261_vm1, %v262_v53, %v263_v54  ;;  %v192_v57 = vadd.f32 %v1369_v42, %v191_v55  ;;  %v229_v58 = vpop.f32.mrf.mxu1 }
  0xb0   :  { %v288_v59 = vmax.f32 %v243_v50, %v264_v56 }
  0xb1   :  { %v225_v60 = vadd.f32 %v224_v45, %v192_v57 }
  0xb2   :  { %v307_v5 = vrot.slane %v288_v59, 6 }
  0xb3   :  { %v245_v61 = vmax.f32 %v225_v60, 0.0 }
  0xb5   :  { %v265_v62 = vrot.slane %v245_v61, 1 }
  0xb6   :  { %v193_v63 = vpop.f32.mrf.mxu0 }
  0xb7   :  { %v266_v0 = vsel %vm261_vm1, %v263_v54, %v265_v62  ;;  %v194_v1 = vadd.f32 %v1369_v42, %v193_v63  ;;  %v231_v2 = vpop.f32.mrf.mxu1 }
  0xb8   :  { %v289_v3 = vmax.f32 %v244_v52, %v266_v0 }
  0xb9   :  { %v227_v4 = vadd.f32 %v226_v49, %v194_v1 }
  0xba   :  { %v308_v6 = vrot.slane %v289_v3, 6 }
  0xbb   :  { %v246_v7 = vmax.f32 %v227_v4, 0.0 }
  0xbc   :  { %v309_v8 = vsel %vm306_vm2, %v307_v5, %v308_v6  ;;  %v1220_v5 = vmov 0  }
  0xbd   :  { %v267_v9 = vrot.slane %v246_v7, 1  ;;  %v333_v10 = vmax.f32 %v288_v59, %v309_v8 }
  0xbe   :  { %v196_v11 = vpop.f32.mrf.mxu0 }
  0xbf   :  { %v268_v12 = vsel %vm261_vm1, %v265_v62, %v267_v9  ;;  %v197_v13 = vadd.f32 %v1369_v42, %v196_v11  ;;  %v234_v14 = vpop.f32.mrf.mxu1 }
  0xc0   :  { %v290_v15 = vmax.f32 %v245_v61, %v268_v12 }
  0xc1   :  { %v230_v16 = vadd.f32 %v229_v58, %v197_v13 }
  0xc2   :  { %v310_v17 = vrot.slane %v290_v15, 6 }
  0xc3   :  { %v247_v18 = vmax.f32 %v230_v16, 0.0 }
  0xc4   :  { %v311_v19 = vsel %vm306_vm2, %v308_v6, %v310_v17  ;;  %v354_v6 = vsel %vm352_vm3, 65535, %v1220_v5 }
  0xc5   :  { %v269_v20 = vrot.slane %v247_v18, 1  ;;  %v334_v21 = vmax.f32 %v289_v3, %v311_v19 }
  0xc6   :  { %v198_v22 = vpop.f32.mrf.mxu0 }
  0xc7   :  { %v270_v23 = vsel %vm261_vm1, %v267_v9, %v269_v20  ;;  %v199_v24 = vadd.f32 %v1369_v42, %v198_v22  ;;  %v236_v25 = vpop.f32.mrf.mxu1  ;;  %v1383_v26 = vpack.c.bf16 %v334_v21, %v333_v10  ;;  %v1187_v21 = vld [vmem:[%s1556_s4 + $0x18] sm:$0xff]  ;;  %v347_v22 = vld [vmem:[%s1557_s3] sm:$0xf] }
  0xc8   :  { %v291_v27 = vmax.f32 %v246_v7, %v270_v23  ;;  %v975_v23 = vld [vmem:[%s1557_s3 + $0x4] sm:$0xf] }
  0xc9   :  { %v232_v28 = vadd.f32 %v231_v2, %v199_v24  ;;  %v1190_v24 = vld [vmem:[%s1556_s4 + $0x30] sm:$0xff] }
  0xca   :  { %v312_v29 = vrot.slane %v291_v27, 6 }
  0xcb   :  { %v248_v30 = vmax.f32 %v232_v28, 0.0  ;;  %v1185_v28 = vld [vmem:[%s1556_s4 + $0x8] sm:$0xff] }
  0xcc   :  { %v313_v31 = vsel %vm306_vm2, %v310_v17, %v312_v29 }
  0xcd   :  { %v271_v32 = vrot.slane %v248_v30, 1  ;;  %v335_v33 = vmax.f32 %v290_v15, %v313_v31  ;;  %v1195_v31 = vld [vmem:[%s1556_s4 + $0x58] sm:$0xff] }
  0xce   :  { %v201_v34 = vpop.f32.mrf.mxu0 }
  0xcf   :  { %v272_v35 = vsel %vm261_vm1, %v269_v20, %v271_v32  ;;  %v239_v36 = vpop.f32.mrf.mxu1  ;;  %v202_v40 = vadd.f32 %v1369_v42, %v201_v34  ;;  %v1191_v20 = vld [vmem:[%s1556_s4 + $0x38] sm:$0xff]  ;;  %v1192_v34 = vld [vmem:[%s1556_s4 + $0x40] sm:$0xff] }
  0xd0   :  { %v292_v37 = vmax.f32 %v247_v18, %v272_v35 }
  0xd1   :  { %v235_v47 = vadd.f32 %v234_v14, %v202_v40 }
  0xd2   :  { %v314_v38 = vrot.slane %v292_v37, 6 }
  0xd3   :  { %v249_v50 = vmax.f32 %v235_v47, 0.0 }
  0xd4   :  { %v315_v39 = vsel %vm306_vm2, %v312_v29, %v314_v38  ;;  %v1188_v29 = vld [vmem:[%s1556_s4 + $0x20] sm:$0xff] }
  0xd5   :  { %v336_v41 = vmax.f32 %v291_v27, %v315_v39  ;;  %v273_v54 = vrot.slane %v249_v50, 1  ;;  %v1189_v27 = vld [vmem:[%s1556_s4 + $0x28] sm:$0xff] }
  0xd6   :  { %v203_v43 = vpop.f32.mrf.mxu0 }
  0xd7   :  { %v204_v44 = vadd.f32 %v1369_v42, %v203_v43  ;;  %v241_v45 = vpop.f32.mrf.mxu1  ;;  %v1390_v46 = vpack.c.bf16 %v336_v41, %v335_v33  ;;  %v274_v61 = vsel %vm261_vm1, %v271_v32, %v273_v54  ;;  %v1194_v32 = vld [vmem:[%s1556_s4 + $0x50] sm:$0xff]  ;;  %v1193_v33 = vld [vmem:[%s1556_s4 + $0x48] sm:$0xff] }
  0xd8   :  { %v293_v2 = vmax.f32 %v248_v30, %v274_v61  ;;  %v1184_v30 = vld [vmem:[%s1556_s4] sm:$0xff]  ;;  %v1019_v41 = vld [vmem:[%s1557_s3 + $0x8] sm:$0xf] }
  0xd9   :  { %v237_v48 = vadd.f32 %v236_v25, %v204_v44  ;;  %v1186_v25 = vld [vmem:[%s1556_s4 + $0x10] sm:$0xff] }
  0xda   :  { %v316_v10 = vrot.slane %v293_v2, 6 }
  0xdb   :  { %v250_v49 = vmax.f32 %v237_v48, 0.0 }
  0xdc   :  { %v317_v15 = vsel %vm306_vm2, %v314_v38, %v316_v10 }
  0xdd   :  { %v275_v52 = vrot.slane %v250_v49, 1  ;;  %v337_v18 = vmax.f32 %v292_v37, %v317_v15  ;;  %v1211_v15 = vld [vmem:[%s1559_s7 + $0x58] sm:$0xff] }
  0xde   :  { %v206_v51 = vpop.f32.mrf.mxu0  ;;  %831 = vmatpush.bf16.msrb.mxu0 %v1211_v15 }
  0xdf   :  { %v207_v53 = vadd.f32 %v1369_v42, %v206_v51  ;;  %v276_v56 = vsel %vm261_vm1, %v273_v54, %v275_v52  ;;  %v1196_v54 = vld [vmem:[%s1556_s4 + $0x60] sm:$0xff] }
  0xe0   :  { %v294_v59 = vmax.f32 %v249_v50, %v276_v56 }
  0xe1   :  { %v240_v55 = vadd.f32 %v239_v36, %v207_v53  ;;  %v1197_v53 = vld [vmem:[%s1556_s4 + $0x68] sm:$0xff] }
  0xe2   :  { %v318_v3 = vrot.slane %v294_v59, 6 }
  0xe3   :  { %v251_v57 = vmax.f32 %v240_v55, 0.0  ;;  %v1207_v55 = vld [vmem:[%s1559_s7 + $0x38] sm:$0xff] }
  0xe4   :  { %v319_v14 = vsel %vm306_vm2, %v316_v10, %v318_v3  ;;  %723 = vmatpush.bf16.msrb.mxu1 %v1207_v55  ;;  %v633_v10 = vld [vmem:[%s1560_s6] sm:$0x1] }
  0xe5   :  { %v277_v58 = vrot.slane %v251_v57, 1  ;;  %v338_v17 = vmax.f32 %v293_v2, %v319_v14  ;;  %v1200_v14 = vld [vmem:[%s1559_s7] sm:$0xff] }
  0xe6   :  { %v208_v60 = vpop.f32.mrf.mxu0 }
  0xe7   :  { %v278_v62 = vsel %vm261_vm1, %v275_v52, %v277_v58  ;;  %v296_v63 = vmax.f32 %v251_v57, %v277_v58  ;;  %v344_v19 = vpack.c.bf16 %v338_v17, %v337_v18  ;;  %v1198_v52 = vld [vmem:[%s1556_s4 + $0x70] sm:$0xff]  ;;  %v1209_v17 = vld [vmem:[%s1559_s7 + $0x48] sm:$0xff]  ;;  %v1208_v18 = vld [vmem:[%s1559_s7 + $0x40] sm:$0xff] }
  0xe8   :  { %v295_v0 = vmax.f32 %v250_v49, %v278_v62  ;;  %v1206_v62 = vld [vmem:[%s1559_s7 + $0x30] sm:$0xff] }
  0xe9   :  { %v322_v1 = vrot.slane %v296_v63, 6  ;;  %724 = vmatpush.bf16.msrb.mxu1 %v1206_v62 }
  0xea   :  { %v320_v4 = vrot.slane %v295_v0, 6 }
  0xeb   :  { %v341_v42 = vmax.f32 %v296_v63, %v322_v1  ;;  %v1205_v63 = vld [vmem:[%s1559_s7 + $0x28] sm:$0xff] }
  0xec   :  { %v321_v7 = vsel %vm306_vm2, %v318_v3, %v320_v4  ;;  %v323_v8 = vsel %vm306_vm2, %v320_v4, %v322_v1  ;;  %v1218_v1 = vld [vmem:[%s1558_s5] ss:$0 sm:$0xff] }
  0xed   :  { %v346_v9 = vpack.c.bf16 %v341_v42, %v341_v42  ;;  %v339_v12 = vmax.f32 %v294_v59, %v321_v7  ;;  %v340_v13 = vmax.f32 %v295_v0, %v323_v8  ;;  %725 = vmatpush.bf16.msrb.mxu1 %v1205_v63  ;;  %v1204_v0 = vld [vmem:[%s1559_s7 + $0x20] sm:$0xff]  ;;  %v1203_v7 = vld [vmem:[%s1559_s7 + $0x18] sm:$0xff] }
  0xef   :  { %v356_v11 = vand.u32 %v354_v6, %v346_v9  ;;  %v345_v16 = vpack.c.bf16 %v340_v13, %v339_v12  ;;  %v1074_v9 = vld [vmem:[%s1560_s6 + $0x1] sm:$0x1]  ;;  %v1118_v12 = vld [vmem:[%s1560_s6 + $0x2] sm:$0x1]  ;;  %v1201_v13 = vld [vmem:[%s1559_s7 + $0x8] sm:$0xff] }
  0xf1   :  { %361 = vmatpush.bf16.msra.mxu2 %v356_v11  ;;  %388 = vmatpush.bf16.msra.mxu3 %v356_v11 }
  0xf2   :  { %726 = vmatpush.bf16.msrb.mxu1 %v1204_v0 }
  0xf5   :  { %362 = vmatpush.bf16.msra.mxu2 %v345_v16  ;;  %389 = vmatpush.bf16.msra.mxu3 %v345_v16 }
  0xf9   :  { %363 = vmatpush.bf16.msra.mxu2 %v344_v19  ;;  %390 = vmatpush.bf16.msra.mxu3 %v344_v19 }
  0xfd   :  { %364 = vmatpush.bf16.msra.mxu2 %v1390_v46  ;;  %391 = vmatpush.bf16.msra.mxu3 %v1390_v46 }
 0x101   :  { %365 = vmatpush.bf16.msra.mxu2 %v1383_v26  ;;  %392 = vmatpush.bf16.msra.mxu3 %v1383_v26 }
 0x104   :  { %974 = vmatmul.msk.bf16.vlgmr.msra.gmra.mxu2 %vm348_vm4, %v347_v22  ;;  %976 = vmatmul.msk.bf16.vlgmr.msra.gmra.mxu3 %vm348_vm4, %v975_v23 }
 0x105   :  { %439 = vmatpush.bf16.msrb.mxu2 %v1191_v20  ;;  %479 = vmatpush.bf16.msrb.mxu3 %v1187_v21 }
 0x109   :  { %440 = vmatpush.bf16.msrb.mxu2 %v1190_v24  ;;  %480 = vmatpush.bf16.msrb.mxu3 %v1186_v25 }
 0x10d   :  { %441 = vmatpush.bf16.msrb.mxu2 %v1189_v27  ;;  %481 = vmatpush.bf16.msrb.mxu3 %v1185_v28  ;;  %v1145_v27 = vld [vmem:[%s1560_s6 + $0x3] sm:$0x1] }
 0x111   :  { %442 = vmatpush.bf16.msrb.mxu2 %v1188_v29  ;;  %482 = vmatpush.bf16.msrb.mxu3 %v1184_v30  ;;  %v1215_v30 = vld [vmem:[%s1559_s7 + $0x78] sm:$0xff] }
 0x115   :  { %496 = vmatpush.bf16.msra.mxu2 %v356_v11  ;;  %547 = vmatpush.bf16.msra.mxu3 %v1195_v31  ;;  %v1214_v31 = vld [vmem:[%s1559_s7 + $0x70] sm:$0xff] }
 0x119   :  { %497 = vmatpush.bf16.msra.mxu2 %v345_v16  ;;  %548 = vmatpush.bf16.msra.mxu3 %v1194_v32  ;;  %v1213_v32 = vld [vmem:[%s1559_s7 + $0x68] sm:$0xff] }
 0x11d   :  { %498 = vmatpush.bf16.msra.mxu2 %v344_v19  ;;  %549 = vmatpush.bf16.msra.mxu3 %v1193_v33  ;;  %v1212_v33 = vld [vmem:[%s1559_s7 + $0x60] sm:$0xff] }
 0x121   :  { %499 = vmatpush.bf16.msra.mxu2 %v1390_v46  ;;  %550 = vmatpush.bf16.msra.mxu3 %v1192_v34 }
 0x125   :  { %500 = vmatpush.bf16.msra.mxu2 %v1383_v26 }
 0x187   :  { %v367_v35 = vpop.f32.mrf.mxu2  ;;  %v394_v36 = vpop.f32.mrf.mxu3 }
 0x188   :  { %v371_v37 = vpack.c.bf16 %v367_v35, %v367_v35  ;;  %v398_v38 = vpack.c.bf16 %v394_v36, %v394_v36 }
 0x18a   :  { %1001 = vmatmul.msk.bf16.vlgmr.msrb.gmra.mxu2 %vm161_vm0, %v398_v38  ;;  %1018 = vmatmul.msk.bf16.vlgmr.msrb.gmra.mxu3 %vm161_vm0, %v371_v37 }
 0x18b   :  { %565 = vmatpush.bf16.msrb.mxu3 %v356_v11  ;;  %v1202_v11 = vld [vmem:[%s1559_s7 + $0x10] sm:$0xff] }
 0x18f   :  { %566 = vmatpush.bf16.msrb.mxu3 %v345_v16  ;;  %v396_v39 = vpop.f32.mrf.mxu3  ;;  %v369_v40 = vpop.f32.mrf.mxu2  ;;  %v1210_v16 = vld [vmem:[%s1559_s7 + $0x50] sm:$0xff] }
 0x190   :  { %832 = vmatpush.bf16.msrb.mxu0 %v1210_v16 }
 0x193   :  { %567 = vmatpush.bf16.msrb.mxu3 %v344_v19 }
 0x194   :  { %833 = vmatpush.bf16.msrb.mxu0 %v1209_v17 }
 0x197   :  { %568 = vmatpush.bf16.msrb.mxu3 %v1390_v46  ;;  %v1046_v46 = vld [vmem:[%s1557_s3 + $0xc] sm:$0xf] }
 0x198   :  { %834 = vmatpush.bf16.msrb.mxu0 %v1208_v18 }
 0x19a   :  { %1020 = vmatmul.msk.bf16.vlgmr.msra.gmra.mxu2 %vm348_vm4, %v1019_v41 }
 0x19b   :  { %569 = vmatpush.bf16.msrb.mxu3 %v1383_v26  ;;  %v1199_v26 = vld [vmem:[%s1556_s4 + $0x78] sm:$0xff] }
 0x19c   :  { %616 = vmatpush.bf16.msrb.mxu2 %v1199_v26 }
 0x1a0   :  { %617 = vmatpush.bf16.msrb.mxu2 %v1198_v52 }
 0x1a4   :  { %618 = vmatpush.bf16.msrb.mxu2 %v1197_v53 }
 0x1a8   :  { %619 = vmatpush.bf16.msrb.mxu2 %v1196_v54 }
 0x20d   :  { %v444_v43 = vpop.f32.mrf.mxu2  ;;  %v484_v44 = vpop.f32.mrf.mxu3 }
 0x20e   :  { %v485_v45 = vadd.f32 %v484_v44, %v444_v43 }
 0x215   :  { %v446_v47 = vpop.f32.mrf.mxu2  ;;  %v486_v48 = vpop.f32.mrf.mxu3 }
 0x216   :  { %v1219_v47 = vld [vmem:[%s1561_s8] ss:$0 sm:$0xff] }
 0x21d   :  { %v502_v49 = vpop.f32.mrf.mxu2 }
 0x21e   :  { %v506_v50 = vpack.c.bf16 %v502_v49, %v502_v49 }
 0x220   :  { %1045 = vmatmul.msk.bf16.vlgmr.msra.gmra.mxu3 %vm161_vm0, %v506_v50 }
 0x225   :  { %v504_v51 = vpop.f32.mrf.mxu2 }
 0x230   :  { %1047 = vmatmul.msk.bf16.vlgmr.msrb.gmra.mxu3 %vm348_vm4, %v1046_v46 }
 0x2a3   :  { %v552_v56 = vpop.f32.mrf.mxu3 }
 0x2a4   :  { %v556_v57 = vadd.f32 %v552_v56, %v485_v45 }
 0x2ab   :  { %v554_v58 = vpop.f32.mrf.mxu3 }
 0x2b3   :  { %v571_v59 = vpop.f32.mrf.mxu3 }
 0x2b4   :  { %v575_v60 = vpack.c.bf16 %v571_v59, %v571_v59 }
 0x2b6   :  { %1072 = vmatmul.msk.bf16.vlgmr.msrb.gmra.mxu2 %vm161_vm0, %v575_v60 }
 0x2bb   :  { %v573_v61 = vpop.f32.mrf.mxu3 }
 0x339   :  { %v621_v2 = vpop.f32.mrf.mxu2 }
 0x33a   :  { %v625_v3 = vadd.f32 %v621_v2, %v556_v57 }
 0x33c   :  { %v630_v4 = vadd.f32 %v1218_v1, %v625_v3 }
 0x33e   :  { %v631_v42 = vmax.f32 %v630_v4, 0.0 }
 0x340   :  { %v632_v5 = vpack.c.bf16 %v631_v42, %v631_v42 }
 0x341   :  { %v623_v6 = vpop.f32.mrf.mxu2 }
 0x342   :  { %v640_v8 = vsel %vm638_vm5, %v632_v5, 0 }
 0x343   :  { %649 = vmatpush.bf16.msra.mxu2 %v640_v8  ;;  %676 = vmatpush.bf16.msra.mxu3 %v640_v8 }
 0x344   :  { %853 = vmatpush.bf16.msra.mxu1 %v640_v8 }
 0x346   :  { %1075 = vmatmul.msk.bf16.vlgmr.msra.gmra.mxu3 %vm634_vm6, %v1074_v9  ;;  %1073 = vmatmul.msk.bf16.vlgmr.msra.gmra.mxu2 %vm634_vm6, %v633_v10 }
 0x347   :  { %784 = vmatpush.bf16.msrb.mxu3 %v640_v8  ;;  %763 = vmatpush.bf16.msrb.mxu2 %v1203_v7 }
 0x34b   :  { %764 = vmatpush.bf16.msrb.mxu2 %v1202_v11 }
 0x34f   :  { %765 = vmatpush.bf16.msrb.mxu2 %v1201_v13 }
 0x353   :  { %766 = vmatpush.bf16.msrb.mxu2 %v1200_v14 }
 0x356   :  { %1119 = vmatmul.msk.bf16.vlgmr.msrb.gmra.mxu3 %vm634_vm6, %v1118_v12 }
 0x357   :  { %900 = vmatpush.bf16.msra.mxu2 %v1215_v30 }
 0x35b   :  { %901 = vmatpush.bf16.msra.mxu2 %v1214_v31 }
 0x35f   :  { %902 = vmatpush.bf16.msra.mxu2 %v1213_v32 }
 0x363   :  { %903 = vmatpush.bf16.msra.mxu2 %v1212_v33 }
 0x3c9   :  { %v678_v19 = vpop.f32.mrf.mxu3  ;;  %v651_v20 = vpop.f32.mrf.mxu2 }
 0x3ca   :  { %v682_v21 = vpack.c.bf16 %v678_v19, %v678_v19  ;;  %v655_v22 = vpack.c.bf16 %v651_v20, %v651_v20 }
 0x3cc   :  { %1100 = vmatmul.msk.bf16.vlgmr.msrb.gmra.mxu1 %vm161_vm0, %v682_v21  ;;  %1117 = vmatmul.msk.bf16.vlgmr.msrb.gmra.mxu2 %vm161_vm0, %v655_v22 }
 0x3d1   :  { %v680_v23 = vpop.f32.mrf.mxu3  ;;  %v653_v24 = vpop.f32.mrf.mxu2 }
 0x3d9   :  { %v786_v25 = vpop.f32.mrf.mxu3 }
 0x3da   :  { %v790_v28 = vpack.c.bf16 %v786_v25, %v786_v25 }
 0x3dc   :  { %1144 = vmatmul.msk.bf16.vlgmr.msrb.gmra.mxu0 %vm161_vm0, %v790_v28  ;;  %1146 = vmatmul.msk.bf16.vlgmr.msra.gmra.mxu1 %vm634_vm6, %v1145_v27 }
 0x3e1   :  { %v788_v29 = vpop.f32.mrf.mxu3 }
 0x449   :  { %v728_v34 = vpop.f32.mrf.mxu1 }
 0x44f   :  { %v768_v35 = vpop.f32.mrf.mxu2 }
 0x450   :  { %v769_v36 = vadd.f32 %v768_v35, %v728_v34 }
 0x451   :  { %v730_v37 = vpop.f32.mrf.mxu1 }
 0x457   :  { %v770_v38 = vpop.f32.mrf.mxu2 }
 0x459   :  { %v836_v39 = vpop.f32.mrf.mxu0  ;;  %v855_v40 = vpop.f32.mrf.mxu1 }
 0x45a   :  { %v840_v41 = vadd.f32 %v836_v39, %v769_v36  ;;  %v859_v43 = vpack.c.bf16 %v855_v40, %v855_v40 }
 0x45c   :  { %1171 = vmatmul.msk.bf16.vlgmr.msra.gmra.mxu2 %vm161_vm0, %v859_v43 }
 0x461   :  { %v857_v44 = vpop.f32.mrf.mxu1  ;;  %v838_v45 = vpop.f32.mrf.mxu0 }
 0x4df   :  { %v905_v48 = vpop.f32.mrf.mxu2 }
 0x4e0   :  { %v909_v49 = vadd.f32 %v905_v48, %v840_v41 }
 0x4e2   :  { %v914_v50 = vadd.f32 %v1219_v47, %v909_v49 }
 0x4e4   :  { %v915_v51 = vmax.f32 %v914_v50, 0.0 }
 0x4e6   :  { %916 = vst [vmem:[%s1562_s9] sm:$0x3] %v915_v51 }
 0x4e7   :  { %v907_v46 = vpop.f32.mrf.mxu2 }

// kernel: forward.3
= control target key start
LH: loop header
LB: loop body
LE: loop exit
PB: predicated region body
PF: predicated region fallthrough
CT: control target
= control target key end

     0   :  { %s9785_s30 = smov [#allocation4]   ;;  %s12341_s0 = inlined_call_operand.vmem [shape: s32[2], index: 0, kind: input, shape index: {}]   ;;  %s12342_s1 = inlined_call_operand.vmem [shape: f32[16,128], index: 1, kind: input, shape index: {}]   ;;  %s12343_s2 = inlined_call_operand.vmem [shape: bf16[2,128,384], index: 2, kind: input, shape index: {}]   ;;  %s12344_s3 = inlined_call_operand.vmem [shape: f32[2,1,384], index: 3, kind: input, shape index: {}]   ;;  %s12345_s4 = inlined_call_operand.vmem [shape: bf16[2,128,128], index: 4, kind: input, shape index: {}]   ;;  %s12346_s5 = inlined_call_operand.vmem [shape: f32[2,1,128], index: 5, kind: input, shape index: {}]   ;;  %s12347_s6 = inlined_call_operand.vmem [shape: f32[2,1,128], index: 6, kind: input, shape index: {}]   ;;  %s12348_s7 = inlined_call_operand.vmem [shape: f32[2,1,128], index: 7, kind: input, shape index: {}]   ;;  %s12349_s8 = inlined_call_operand.vmem [shape: bf16[2,128,2048], index: 8, kind: input, shape index: {}]   ;;  %s12350_s9 = inlined_call_operand.vmem [shape: f32[2,1,2048], index: 9, kind: input, shape index: {}]   ;;  %s12351_s10 = inlined_call_operand.hbm [shape: bf16[2,2048,128], index: 10, kind: input, shape index: {}]   ;;  %s12352_s11 = inlined_call_operand.vmem [shape: f32[2,1,128], index: 11, kind: input, shape index: {}]   ;;  %s12353_s12 = inlined_call_operand.vmem [shape: f32[2,1,128], index: 12, kind: input, shape index: {}]   ;;  %s12354_s13 = inlined_call_operand.vmem [shape: f32[2,1,128], index: 13, kind: input, shape index: {}]   ;;  %s12355_s14 = inlined_call_operand.vmem [shape: bf16[128,128], index: 14, kind: input, shape index: {}]   ;;  %s12356_s15 = inlined_call_operand.vmem [shape: f32[1,128], index: 15, kind: input, shape index: {}]   ;;  %s12357_s16 = inlined_call_operand.vmem [shape: bf16[128,128], index: 16, kind: input, shape index: {}]   ;;  %s12358_s17 = inlined_call_operand.vmem [shape: f32[1,128], index: 17, kind: input, shape index: {}]   ;;  %s12359_s18 = inlined_call_operand.vmem [shape: f32[2,128], index: 18, kind: output, shape index: {}]  }
   0x1   :  { %12363 = sst [smem:[#allocation9_spill]] %s12341_s0 }
   0x2   :  { %12364 = sst [smem:[#allocation10_spill]] %s12342_s1 }
   0x3   :  { %12365 = sst [smem:[#allocation11_spill]] %s12343_s2 }
   0x4   :  { %12366 = sst [smem:[#allocation12_spill]] %s12353_s12 }
   0x5   :  { %s12367_s29 = sld [smem:[#allocation9_spill]] }
   0xb   :  { %s24_s12 = sshll.u32 %s12367_s29, 4  ;;  %s25_s12 = int_to_ptr.vmem [resolvable:$true] %s24_s12 }
   0xc   :  { %27 = dma.vmem_to_smem %s25_s12, 16, %s9785_s30, [#allocation3] }
   0xd   :  { %9781 = dma.done.wait [#allocation3], 16 }
   0xe   :  { %9782 = vsyncadd [#allocation3], 4294967280 }
   0xf   :  { %30 = sfence }
  0x10   :  { %31 = vsyncpa [#allocation6], 0  ;;  %s54_s1 = sshll.u32 %s12351_s10, 4  ;;  %s9786_s20 = smov [#allocation5]   ;;  %s55_s1 = int_to_ptr.hbm [resolvable:$true] %s54_s1 }
  0x11   :  { %s56_s21 = sshll.u32 %s9786_s20, 4  ;;  %s9787_s22 = smov 64   ;;  %s57_s21 = int_to_ptr.vmem [resolvable:$true] %s56_s21 }
  0x12   :  { %s9788_s2 = smov 4  }
  0x13   :  { %62 = dma.hbm_to_vmem [thread:$0]  %s55_s1, 32768, %s57_s21, [#allocation6], %s9787_s22, %s9787_s22, %s9788_s2  }
  0x14   :  { %9783 = dma.done.wait [#allocation6], 32768  }
  0x15   :  { %9784 = vsyncadd [#allocation6], 4294934528  ;;  %s12368_s24 = sld [smem:[#allocation11_spill]]  ;;  %vm317_vm0 = vcmask 261120   ;;  %s9789_s21 = smov 96   ;;  %vm342_vm4 = vcmask 130048  }
  0x16   :  { %s12369_s1 = sld [smem:[#allocation10_spill]]  ;;  %s9790_s2 = smov 32   ;;  %vm625_vm8 = vcmask 523264   ;;  %vm628_vm9 = vcmask 785408  }
  0x17   :  { %s12370_s10 = sld [smem:[#allocation12_spill]] }
  0x18   :  { %s8947_s12 = sld [smem:[#allocation4 + $0x1]] }
  0x1b   :  { %v6526_v0 = vld [vmem:[%s12368_s24 + $0xa8] sm:$0xf]  ;;  %v9035_v1 = vld [vmem:[%s12368_s24 + $0xb0] sm:$0xf0]  ;;  %v9034_v2 = vld [vmem:[%s12368_s24 + $0xac] sm:$0xf] }
  0x1c   :  { %v6527_v3 = vor.u32 %v9035_v1, %v6526_v0  ;;  %v6528_v4 = vld [vmem:[%s12368_s24 + $0xb4] sm:$0xf0]  ;;  %v6514_v5 = vld [vmem:[%s12368_s24 + $0x90] sm:$0xf]  ;;  %v9032_v6 = vld [vmem:[%s12368_s24 + $0x98] sm:$0xf0] }
  0x1d   :  { %v6531_v7 = vor.u32 %v9034_v2, %v6528_v4  ;;  %v9031_v8 = vld [vmem:[%s12368_s24 + $0x94] sm:$0xf]  ;;  %v6516_v9 = vld [vmem:[%s12368_s24 + $0x9c] sm:$0xf0]  ;;  %v6515_v10 = vor.u32 %v9032_v6, %v6514_v5  ;;  %v6502_v12 = vld [vmem:[%s12368_s24 + $0x78] sm:$0xf] }
  0x1e   :  { %272 = vmatpush.bf16.msra.mxu0 %v6527_v3  ;;  %v6519_v11 = vor.u32 %v9031_v8, %v6516_v9  ;;  %v9029_v13 = vld [vmem:[%s12368_s24 + $0x80] sm:$0xf0]  ;;  %v9028_v14 = vld [vmem:[%s12368_s24 + $0x7c] sm:$0xf]  ;;  %v6504_v15 = vld [vmem:[%s12368_s24 + $0x84] sm:$0xf0] }
  0x1f   :  { %286 = vmatpush.bf16.msra.mxu1 %v6531_v7  ;;  %v6503_v16 = vor.u32 %v9029_v13, %v6502_v12  ;;  %v6507_v17 = vor.u32 %v9028_v14, %v6504_v15  ;;  %v6490_v18 = vld [vmem:[%s12368_s24 + $0x60] sm:$0xf]  ;;  %v9026_v19 = vld [vmem:[%s12368_s24 + $0x68] sm:$0xf0]  ;;  %v9025_v20 = vld [vmem:[%s12368_s24 + $0x64] sm:$0xf] }
  0x20   :  { %v6492_v21 = vld [vmem:[%s12368_s24 + $0x6c] sm:$0xf0]  ;;  %v6491_v22 = vor.u32 %v9026_v19, %v6490_v18  ;;  %v6478_v23 = vld [vmem:[%s12368_s24 + $0x48] sm:$0xf]  ;;  %v9036_v25 = vld [vmem:[%s12368_s24 + $0xb8] sm:$0xf0] }
  0x21   :  { %v6534_v24 = vld [vmem:[%s12368_s24 + $0xb0] sm:$0xf]  ;;  %v6495_v26 = vor.u32 %v9025_v20, %v6492_v21  ;;  %v9023_v27 = vld [vmem:[%s12368_s24 + $0x50] sm:$0xf0]  ;;  %v6522_v29 = vld [vmem:[%s12368_s24 + $0x98] sm:$0xf] }
  0x22   :  { %273 = vmatpush.bf16.msra.mxu0 %v6515_v10  ;;  %v6535_v28 = vor.u32 %v9036_v25, %v6534_v24  ;;  %v9033_v30 = vld [vmem:[%s12368_s24 + $0xa0] sm:$0xf0]  ;;  %v9022_v31 = vld [vmem:[%s12368_s24 + $0x4c] sm:$0xf]  ;;  %v6480_v32 = vld [vmem:[%s12368_s24 + $0x54] sm:$0xf0]  ;;  %v6479_v34 = vor.u32 %v9023_v27, %v6478_v23 }
  0x23   :  { %287 = vmatpush.bf16.msra.mxu1 %v6519_v11  ;;  %v6523_v33 = vor.u32 %v9033_v30, %v6522_v29  ;;  %v6466_v35 = vld [vmem:[%s12368_s24 + $0x30] sm:$0xf]  ;;  %v6510_v36 = vld [vmem:[%s12368_s24 + $0x80] sm:$0xf]  ;;  %v9030_v37 = vld [vmem:[%s12368_s24 + $0x88] sm:$0xf0]  ;;  %v6483_v38 = vor.u32 %v9022_v31, %v6480_v32 }
  0x24   :  { %300 = vmatpush.bf16.msra.mxu2 %v6535_v28  ;;  %v9020_v39 = vld [vmem:[%s12368_s24 + $0x38] sm:$0xf0]  ;;  %v9019_v40 = vld [vmem:[%s12368_s24 + $0x34] sm:$0xf]  ;;  %v6468_v41 = vld [vmem:[%s12368_s24 + $0x3c] sm:$0xf0]  ;;  %v6511_v46 = vor.u32 %v9030_v37, %v6510_v36 }
  0x25   :  { %v6498_v42 = vld [vmem:[%s12368_s24 + $0x68] sm:$0xf]  ;;  %v9027_v43 = vld [vmem:[%s12368_s24 + $0x70] sm:$0xf0]  ;;  %v6454_v44 = vld [vmem:[%s12368_s24 + $0x18] sm:$0xf]  ;;  %v6467_v47 = vor.u32 %v9020_v39, %v6466_v35  ;;  %v6471_v50 = vor.u32 %v9019_v40, %v6468_v41 }
  0x26   :  { %274 = vmatpush.bf16.msra.mxu0 %v6503_v16  ;;  %v9017_v45 = vld [vmem:[%s12368_s24 + $0x20] sm:$0xf0]  ;;  %v9016_v48 = vld [vmem:[%s12368_s24 + $0x1c] sm:$0xf]  ;;  %v6456_v49 = vld [vmem:[%s12368_s24 + $0x24] sm:$0xf0]  ;;  %v6499_v51 = vor.u32 %v9027_v43, %v6498_v42 }
  0x27   :  { %288 = vmatpush.bf16.msra.mxu1 %v6507_v17  ;;  %v6455_v52 = vor.u32 %v9017_v45, %v6454_v44  ;;  %v6486_v53 = vld [vmem:[%s12368_s24 + $0x50] sm:$0xf]  ;;  %v9024_v54 = vld [vmem:[%s12368_s24 + $0x58] sm:$0xf0]  ;;  %v6459_v55 = vor.u32 %v9016_v48, %v6456_v49  ;;  %v6442_v56 = vld [vmem:[%s12368_s24] sm:$0xf] }
  0x28   :  { %301 = vmatpush.bf16.msra.mxu2 %v6523_v33  ;;  %v9014_v57 = vld [vmem:[%s12368_s24 + $0x8] sm:$0xf0]  ;;  %v9013_v58 = vld [vmem:[%s12368_s24 + $0x4] sm:$0xf]  ;;  %v6444_v59 = vld [vmem:[%s12368_s24 + $0xc] sm:$0xf0]  ;;  %v6487_v61 = vor.u32 %v9024_v54, %v6486_v53  ;;  %v84_v33 = vlaneseq }
  0x29   :  { %v10025_v60 = vld [vmem:[%s12369_s1] sm:$0xff]  ;;  %v6443_v62 = vor.u32 %v9014_v57, %v6442_v56  ;;  %v10030_v63 = vld [vmem:[%s12369_s1 + $0x8] sm:$0xff]  ;;  %v6474_v0 = vld [vmem:[%s12368_s24 + $0x38] sm:$0xf]  ;;  %v6447_v2 = vor.u32 %v9013_v58, %v6444_v59  ;;  %v9791_v44 = vmov -1e+30  }
  0x2a   :  { %275 = vmatpush.bf16.msra.mxu0 %v6491_v22  ;;  %v9021_v1 = vld [vmem:[%s12368_s24 + $0x40] sm:$0xf0]  ;;  %v103_v3 = vpack.c.bf16 %v10030_v63, %v10025_v60  ;;  %v6462_v5 = vld [vmem:[%s12368_s24 + $0x20] sm:$0xf]  ;;  %v9018_v6 = vld [vmem:[%s12368_s24 + $0x28] sm:$0xf0] }
  0x2b   :  { %289 = vmatpush.bf16.msra.mxu1 %v6495_v26  ;;  %v6475_v4 = vor.u32 %v9021_v1, %v6474_v0  ;;  %v6463_v7 = vor.u32 %v9018_v6, %v6462_v5  ;;  %v6450_v8 = vld [vmem:[%s12368_s24 + $0x8] sm:$0xf]  ;;  %v9015_v9 = vld [vmem:[%s12368_s24 + $0x10] sm:$0xf0]  ;;  %v136_v12 = vld [vmem:[%s12344_s3] sm:$0x7] }
  0x2c   :  { %302 = vmatpush.bf16.msra.mxu2 %v6511_v46  ;;  %v6451_v10 = vor.u32 %v9015_v9, %v6450_v8  ;;  %v139_v14 = vperm.slane %v136_v12, 1  ;;  %v138_v18 = vperm.slane %v136_v12, 0  ;;  %v140_v26 = vperm.slane %v136_v12, 2  ;;  %s6438_s23 = scalar_lea.vmem [#allocation2], %s8947_s12 }
  0x2d   :  { %v10069_v35 = vand.u32 127, %v84_v33 }
  0x2e   :  { %276 = vmatpush.bf16.msra.mxu0 %v6479_v34  ;;  %v85_v34 = vshrl.u32 %v84_v33, 7 }
  0x2f   :  { %290 = vmatpush.bf16.msra.mxu1 %v6483_v38  ;;  %v91_v37 = vshra.s32 %v10069_v35, 3  ;;  %v94_v38 = vand.u32 7, %v10069_v35 }
  0x30   :  { %303 = vmatpush.bf16.msra.mxu2 %v6499_v51  ;;  %v89_v36 = vshra.s32 %v85_v34, 3  ;;  %v95_v39 = vand.u32 7, %v85_v34  ;;  %v86_v40 = vadd.s32 8, %v85_v34 }
  0x32   :  { %277 = vmatpush.bf16.msra.mxu0 %v6467_v47  ;;  %vm92_vm1 = vcmp.eq.s32.totalorder %v89_v36, %v91_v37  ;;  %vm97_vm2 = vcmp.le.s32.totalorder %v94_v38, %v95_v39  ;;  %v90_v41 = vshra.s32 %v86_v40, 3  ;;  %v96_v42 = vand.u32 7, %v86_v40 }
  0x33   :  { %291 = vmatpush.bf16.msra.mxu1 %v6471_v50  ;;  %vm99_vm3 = vmand %vm92_vm1, %vm97_vm2 }
  0x34   :  { %304 = vmatpush.bf16.msra.mxu2 %v6487_v61  ;;  %v10073_v45 = vsel %vm99_vm3, 0.0, %v9791_v44  ;;  %vm93_vm5 = vcmp.eq.s32.totalorder %v90_v41, %v91_v37  ;;  %vm98_vm6 = vcmp.le.s32.totalorder %v94_v38, %v96_v42 }
  0x35   :  { %vm100_vm7 = vmand %vm93_vm5, %vm98_vm6 }
  0x36   :  { %278 = vmatpush.bf16.msra.mxu0 %v6455_v52  ;;  %v10077_v50 = vsel %vm100_vm7, 0.0, %v9791_v44 }
  0x37   :  { %292 = vmatpush.bf16.msra.mxu1 %v6459_v55 }
  0x38   :  { %305 = vmatpush.bf16.msra.mxu2 %v6475_v4 }
  0x3a   :  { %279 = vmatpush.bf16.msra.mxu0 %v6443_v62 }
  0x3b   :  { %293 = vmatpush.bf16.msra.mxu1 %v6447_v2 }
  0x3c   :  { %306 = vmatpush.bf16.msra.mxu2 %v6463_v7 }
  0x3d   :  { %280 = vmatmul.bf16.vlgmr.msra.gmra.mxu0 %v103_v3 }
  0x3e   :  { %294 = vmatmul.bf16.vlgmr.msra.gmra.mxu1 %v103_v3 }
  0x40   :  { %307 = vmatpush.bf16.msra.mxu2 %v6451_v10 }
  0x43   :  { %308 = vmatmul.bf16.vlgmr.msra.gmra.mxu2 %v103_v3 }
  0xba   :  { %v281_v13 = vpop.f32.mrf.mxu0 }
  0xbb   :  { %v295_v11 = vpop.f32.mrf.mxu1  ;;  %v282_v22 = vadd.f32 %v281_v13, %v138_v18 }
  0xbc   :  { %v296_v16 = vadd.f32 %v295_v11, %v139_v14 }
  0xc2   :  { %v283_v20 = vpop.f32.mrf.mxu0 }
  0xc3   :  { %v297_v15 = vpop.f32.mrf.mxu1  ;;  %v284_v23 = vadd.f32 %v283_v20, %v138_v18 }
  0xc4   :  { %v298_v17 = vadd.f32 %v297_v15, %v139_v14 }
  0xc5   :  { %v314_v25 = vpack.c.bf16 %v284_v23, %v282_v22 }
  0xc6   :  { %v10055_v19 = vpack.c.bf16 %v298_v17, %v296_v16  ;;  %v309_v24 = vpop.f32.mrf.mxu2 }
  0xc7   :  { %v310_v27 = vadd.f32 %v309_v24, %v140_v26 }
  0xc8   :  { %387 = vrot.lane.b32.xlu2 %v10055_v19, %s9789_s21  ;;  %v322_v21 = vsel %vm317_vm0, %v10055_v19, 0 }
  0xc9   :  { %331 = vmatpush.bf16.xpose.msrb.mxu0 %v322_v21 }
  0xce   :  { %v311_v28 = vpop.f32.mrf.mxu2 }
  0xcf   :  { %v312_v29 = vadd.f32 %v311_v28, %v140_v26 }
  0xd0   :  { %384 = vrot.lane.b32.xlu2 %v314_v25, %s9789_s21  ;;  %6536 = vmatmul.msk.bf16.vlgmr.msrb.gmra.mxu0 %vm317_vm0, %v314_v25 }
  0xd1   :  { %v10063_v30 = vpack.c.bf16 %v312_v29, %v310_v27 }
  0xd3   :  { %376 = vmatpush.bf16.msra.mxu3 %v10063_v30 }
  0xd8   :  { %457 = vrot.lane.b32.xlu2 %v314_v25, %s9787_s22 }
  0xe0   :  { %528 = vrot.lane.b32.xlu2 %v314_v25, %s9790_s2 }
 0x122   :  { %v388_v31 = vpop.permute.xlu2 %387 }
 0x123   :  { %v393_v32 = vsel %vm317_vm0, %v388_v31, 0 }
 0x124   :  { %402 = vmatpush.bf16.xpose.msrb.mxu3 %v393_v32 }
 0x12a   :  { %v385_v2 = vpop.permute.xlu2 %384 }
 0x132   :  { %v458_v5 = vpop.permute.xlu2 %457 }
 0x14d   :  { %v333_v43 = vpop.f32.mrf.mxu0 }
 0x14e   :  { %v338_v46 = vmul.f32 0.17677669, %v333_v43 }
 0x150   :  { %v340_v47 = vadd.f32 %v338_v46, %v10073_v45 }
 0x152   :  { %v343_v48 = vsel %vm342_vm4, %v340_v47, -inf }
 0x153   :  { %344 = vmax.xlane.f32.xlu0 %v343_v48 }
 0x155   :  { %v335_v49 = vpop.f32.mrf.mxu0 }
 0x156   :  { %v339_v51 = vmul.f32 0.17677669, %v335_v49 }
 0x158   :  { %v341_v52 = vadd.f32 %v339_v51, %v10077_v50 }
 0x15a   :  { %v346_v53 = vsel %vm342_vm4, %v341_v52, -inf }
 0x15b   :  { %347 = vmax.xlane.f32.xlu0 %v346_v53 }
 0x16f   :  { %459 = vrot.lane.b32.xlu0 %v10055_v19, %s9787_s22 }
 0x1c6   :  { %v345_v54 = vpop.xlane.xlu0 %344 }
 0x1c7   :  { %v349_v55 = vsub.f32 %v340_v47, %v345_v54 }
 0x1c9   :  { %v351_v56 = vmul.f32 1.442695, %v349_v55 }
 0x1cb   :  { %9657 = vpow2.f32 %v351_v56 }
 0x1ce   :  { %v348_v57 = vpop.xlane.xlu0 %347 }
 0x1cf   :  { %v350_v58 = vsub.f32 %v341_v52, %v348_v57 }
 0x1d1   :  { %v9658_v59 = vpop.eup %9657  ;;  %v353_v61 = vmul.f32 1.442695, %v350_v58 }
 0x1d2   :  { %v355_v62 = vsel %vm342_vm4, %v9658_v59, 0.0 }
 0x1d3   :  { %9659 = vpow2.f32 %v353_v61  ;;  %356 = vadd.xlane.f32.xlu1 %v355_v62 }
 0x1d9   :  { %v9660_v0 = vpop.eup %9659 }
 0x1da   :  { %v358_v1 = vsel %vm342_vm4, %v9660_v0, 0.0 }
 0x1db   :  { %359 = vadd.xlane.f32.xlu1 %v358_v1 }
 0x1e1   :  { %v460_v3 = vpop.permute.xlu0 %459 }
 0x1e2   :  { %v465_v4 = vsel %vm317_vm0, %v460_v3, 0 }
 0x1e3   :  { %474 = vmatpush.bf16.xpose.msrb.mxu1 %v465_v4 }
 0x1ea   :  { %6540 = vmatmul.msk.bf16.vlgmr.msrb.gmra.mxu1 %vm317_vm0, %v458_v5 }
 0x1f4   :  { %530 = vrot.lane.b32.xlu1 %v10055_v19, %s9790_s2  ;;  %v529_v19 = vpop.permute.xlu2 %528 }
 0x246   :  { %v357_v6 = vpop.xlane.xlu1 %356 }
 0x247   :  { %9661 = vrcp.f32 %v357_v6 }
 0x24d   :  { %v9662_v8 = vpop.eup %9661 }
 0x24e   :  { %v360_v7 = vpop.xlane.xlu1 %359  ;;  %v363_v10 = vmul.f32 %v9662_v8, %v9658_v59 }
 0x24f   :  { %9663 = vrcp.f32 %v360_v7 }
 0x255   :  { %v9664_v9 = vpop.eup %9663 }
 0x256   :  { %v364_v11 = vmul.f32 %v9664_v9, %v9660_v0 }
 0x258   :  { %v365_v12 = vpack.c.bf16 %v364_v11, %v363_v10 }
 0x25a   :  { %6537 = vmatmul.msk.bf16.vlgmr.msra.gmra.mxu3 %vm342_vm4, %v365_v12 }
 0x266   :  { %v531_v13 = vpop.permute.xlu1 %530 }
 0x267   :  { %v536_v14 = vsel %vm317_vm0, %v531_v13, 0  ;;  %v476_v15 = vpop.f32.mrf.mxu1 }
 0x268   :  { %v481_v16 = vmul.f32 0.17677669, %v476_v15  ;;  %545 = vmatpush.bf16.xpose.msra.mxu3 %v536_v14 }
 0x26a   :  { %6538 = vmatmul.msk.bf16.vlgmr.msrb.gmra.mxu3 %vm317_vm0, %v385_v2  ;;  %v483_v17 = vadd.f32 %v481_v16, %v10073_v45 }
 0x26c   :  { %v485_v18 = vsel %vm342_vm4, %v483_v17, -inf }
 0x26d   :  { %486 = vmax.xlane.f32.xlu1 %v485_v18 }
 0x26f   :  { %v478_v29 = vpop.f32.mrf.mxu1 }
 0x270   :  { %v482_v32 = vmul.f32 0.17677669, %v478_v29 }
 0x272   :  { %v484_v37 = vadd.f32 %v482_v32, %v10077_v50 }
 0x274   :  { %v488_v40 = vsel %vm342_vm4, %v484_v37, -inf }
 0x27a   :  { %6542 = vmatmul.msk.bf16.vlgmr.msra.gmra.mxu3 %vm317_vm0, %v529_v19 }
 0x2dd   :  { %v10095_v20 = vpop.f32.mrf.mxu3 }
 0x2e0   :  { %v487_v21 = vpop.xlane.xlu1 %486 }
 0x2e1   :  { %v491_v22 = vsub.f32 %v483_v17, %v487_v21 }
 0x2e3   :  { %v493_v23 = vmul.f32 1.442695, %v491_v22 }
 0x2e5   :  { %9665 = vpow2.f32 %v493_v23  ;;  %v10097_v24 = vpop.f32.mrf.mxu3 }
 0x2eb   :  { %v10099_v25 = vpop.eup %9665 }
 0x2ec   :  { %v497_v26 = vsel %vm342_vm4, %v10099_v25, 0.0 }
 0x2ed   :  { %v404_v27 = vpop.f32.mrf.mxu3  ;;  %498 = vadd.xlane.f32.xlu1 %v497_v26 }
 0x2ee   :  { %v409_v28 = vmul.f32 0.17677669, %v404_v27 }
 0x2f0   :  { %v411_v31 = vadd.f32 %v409_v28, %v10073_v45 }
 0x2f2   :  { %v413_v33 = vsel %vm342_vm4, %v411_v31, -inf }
 0x2f3   :  { %414 = vmax.xlane.f32.xlu2 %v413_v33 }
 0x2f5   :  { %v406_v34 = vpop.f32.mrf.mxu3 }
 0x2f6   :  { %v410_v36 = vmul.f32 0.17677669, %v406_v34 }
 0x2f8   :  { %v412_v38 = vadd.f32 %v410_v36, %v10077_v50 }
 0x2fa   :  { %v416_v39 = vsel %vm342_vm4, %v412_v38, -inf }
 0x2fb   :  { %417 = vmax.xlane.f32.xlu0 %v416_v39  ;;  %489 = vmax.xlane.f32.xlu2 %v488_v40 }
 0x2fd   :  { %v547_v41 = vpop.f32.mrf.mxu3 }
 0x2fe   :  { %v552_v42 = vmul.f32 0.17677669, %v547_v41 }
 0x300   :  { %v554_v43 = vadd.f32 %v552_v42, %v10073_v45 }
 0x302   :  { %v556_v44 = vsel %vm342_vm4, %v554_v43, -inf }
 0x303   :  { %557 = vmax.xlane.f32.xlu0 %v556_v44 }
 0x305   :  { %v549_v46 = vpop.f32.mrf.mxu3 }
 0x306   :  { %v553_v47 = vmul.f32 0.17677669, %v549_v46  ;;  %v9042_v46 = vld [vmem:[%s12345_s4 + $0x28] sm:$0xff] }
 0x308   :  { %v555_v48 = vadd.f32 %v553_v47, %v10077_v50 }
 0x30a   :  { %v559_v49 = vsel %vm342_vm4, %v555_v48, -inf }
 0x30b   :  { %560 = vmax.xlane.f32.xlu2 %v559_v49 }
 0x323   :  { %437 = vrot.lane.b32.xlu2 %v10063_v30, %s9789_s21 }
 0x360   :  { %v499_v15 = vpop.xlane.xlu1 %498 }
 0x366   :  { %v415_v51 = vpop.xlane.xlu2 %414 }
 0x367   :  { %v419_v52 = vsub.f32 %v411_v31, %v415_v51 }
 0x369   :  { %v421_v53 = vmul.f32 1.442695, %v419_v52 }
 0x36b   :  { %9667 = vpow2.f32 %v421_v53 }
 0x36e   :  { %v490_v54 = vpop.xlane.xlu2 %489  ;;  %v418_v55 = vpop.xlane.xlu0 %417 }
 0x36f   :  { %v492_v56 = vsub.f32 %v484_v37, %v490_v54  ;;  %v420_v59 = vsub.f32 %v412_v38, %v418_v55  ;;  %v9041_v55 = vld [vmem:[%s12345_s4 + $0x20] sm:$0xff] }
 0x371   :  { %v9668_v57 = vpop.eup %9667  ;;  %v495_v58 = vmul.f32 1.442695, %v492_v56  ;;  %v423_v62 = vmul.f32 1.442695, %v420_v59  ;;  %v9040_v56 = vld [vmem:[%s12345_s4 + $0x18] sm:$0xff]  ;;  %v9037_v59 = vld [vmem:[%s12345_s4] sm:$0xff] }
 0x372   :  { %v425_v61 = vsel %vm342_vm4, %v9668_v57, 0.0 }
 0x373   :  { %9669 = vpow2.f32 %v495_v58  ;;  %426 = vadd.xlane.f32.xlu1 %v425_v61  ;;  %v9038_v58 = vld [vmem:[%s12345_s4 + $0x8] sm:$0xff] }
 0x374   :  { %9671 = vpow2.f32 %v423_v62 }
 0x376   :  { %v558_v0 = vpop.xlane.xlu0 %557 }
 0x377   :  { %v562_v1 = vsub.f32 %v554_v43, %v558_v0  ;;  %v9044_v43 = vld [vmem:[%s12345_s4 + $0x38] sm:$0xff] }
 0x378   :  { %700 = vmatpush.bf16.msra.mxu1 %v9044_v43  ;;  %v6682_v43 = vld [vmem:[%s12349_s8 + $0x308] sm:$0xf] }
 0x379   :  { %v9670_v2 = vpop.eup %9669  ;;  %v564_v3 = vmul.f32 1.442695, %v562_v1 }
 0x37a   :  { %v500_v4 = vsel %vm342_vm4, %v9670_v2, 0.0  ;;  %v9672_v6 = vpop.eup %9671 }
 0x37b   :  { %9673 = vpow2.f32 %v564_v3  ;;  %501 = vadd.xlane.f32.xlu0 %v500_v4  ;;  %v428_v10 = vsel %vm342_vm4, %v9672_v6, 0.0 }
 0x37e   :  { %v561_v5 = vpop.xlane.xlu2 %560 }
 0x37f   :  { %v563_v7 = vsub.f32 %v555_v48, %v561_v5 }
 0x381   :  { %v9674_v8 = vpop.eup %9673  ;;  %v566_v9 = vmul.f32 1.442695, %v563_v7 }
 0x382   :  { %v568_v11 = vsel %vm342_vm4, %v9674_v8, 0.0 }
 0x383   :  { %9675 = vpow2.f32 %v566_v9  ;;  %429 = vadd.xlane.f32.xlu0 %v428_v10  ;;  %569 = vadd.xlane.f32.xlu1 %v568_v11 }
 0x386   :  { %v438_v12 = vpop.permute.xlu2 %437 }
 0x387   :  { %450 = vmatpush.bf16.msra.mxu0 %v438_v12 }
 0x389   :  { %v9676_v13 = vpop.eup %9675 }
 0x38a   :  { %v571_v14 = vsel %vm342_vm4, %v9676_v13, 0.0 }
 0x38b   :  { %572 = vadd.xlane.f32.xlu0 %v571_v14 }
 0x39c   :  { %508 = vrot.lane.b32.xlu1 %v10063_v30, %s9787_s22 }
 0x39f   :  { %579 = vrot.lane.b32.xlu0 %v10063_v30, %s9790_s2 }
 0x3e6   :  { %v427_v17 = vpop.xlane.xlu1 %426 }
 0x3e7   :  { %9677 = vrcp.f32 %v427_v17 }
 0x3ed   :  { %v9678_v19 = vpop.eup %9677 }
 0x3ee   :  { %v502_v16 = vpop.xlane.xlu0 %501  ;;  %v433_v22 = vmul.f32 %v9678_v19, %v9668_v57  ;;  %v9039_v57 = vld [vmem:[%s12345_s4 + $0x10] sm:$0xff]  ;;  %v9792_v19 = vmov 128.0  }
 0x3f6   :  { %v430_v18 = vpop.xlane.xlu0 %429  ;;  %v570_v28 = vpop.xlane.xlu1 %569 }
 0x3f7   :  { %9679 = vrcp.f32 %v430_v18 }
 0x3f8   :  { %9681 = vrcp.f32 %v502_v16 }
 0x3f9   :  { %9683 = vrcp.f32 %v499_v15 }
 0x3fd   :  { %v9680_v21 = vpop.eup %9679 }
 0x3fe   :  { %v434_v23 = vmul.f32 %v9680_v21, %v9672_v6  ;;  %v573_v27 = vpop.xlane.xlu0 %572  ;;  %v9682_v30 = vpop.eup %9681 }
 0x3ff   :  { %9685 = vrcp.f32 %v573_v27  ;;  %v9684_v29 = vpop.eup %9683  ;;  %v506_v32 = vmul.f32 %v9682_v30, %v9670_v2  ;;  %v9075_v27 = vld [vmem:[%s12349_s8 + $0x3bc] sm:$0xf0]  ;;  %v6698_v30 = vld [vmem:[%s12349_s8 + $0x388] sm:$0xf] }
 0x400   :  { %v435_v26 = vpack.c.bf16 %v434_v23, %v433_v22  ;;  %9687 = vrcp.f32 %v570_v28  ;;  %v505_v34 = vmul.f32 %v9684_v29, %v10099_v25  ;;  %v9043_v25 = vld [vmem:[%s12345_s4 + $0x30] sm:$0xff]  ;;  %v9076_v29 = vld [vmem:[%s12349_s8 + $0x3c4] sm:$0xf0] }
 0x401   :  { %701 = vmatpush.bf16.msra.mxu1 %v9043_v25  ;;  %9689 = vrcp.f32 %v9792_v19  ;;  %v9072_v25 = vld [vmem:[%s12349_s8 + $0x344] sm:$0xf0]  ;;  %v6652_v19 = vld [vmem:[%s12349_s8 + $0x248] sm:$0xf0] }
 0x402   :  { %6539 = vmatmul.msk.bf16.vlgmr.msra.gmra.mxu0 %vm342_vm4, %v435_v26  ;;  %v507_v38 = vpack.c.bf16 %v506_v32, %v505_v34  ;;  %v6690_v26 = vld [vmem:[%s12349_s8 + $0x380] sm:$0xf]  ;;  %v6699_v32 = vor.u32 %v9076_v29, %v6698_v30  ;;  %v6700_v34 = vld [vmem:[%s12349_s8 + $0x3c8] sm:$0xf0] }
 0x403   :  { %v6691_v28 = vor.u32 %v9075_v27, %v6690_v26  ;;  %v9057_v26 = vld [vmem:[%s12349_s8 + $0x184] sm:$0xf] }
 0x405   :  { %v9686_v31 = vpop.eup %9685  ;;  %702 = vmatpush.bf16.msra.mxu1 %v9042_v46  ;;  %v6683_v46 = vor.u32 %v9072_v25, %v6682_v43  ;;  %v9054_v25 = vld [vmem:[%s12349_s8 + $0x10c] sm:$0xf] }
 0x406   :  { %v9688_v33 = vpop.eup %9687  ;;  %v577_v37 = vmul.f32 %v9686_v31, %v9676_v13 }
 0x407   :  { %v576_v39 = vmul.f32 %v9688_v33, %v9674_v8  ;;  %v9690_v21 = vpop.eup %9689  ;;  %v9074_v33 = vld [vmem:[%s12349_s8 + $0x38c] sm:$0xf] }
 0x408   :  { %v723_v22 = vmul.f32 128.0, %v9690_v21  ;;  %vm727_vm10 = vweird.f32 %v9690_v21 }
 0x409   :  { %v578_v41 = vpack.c.bf16 %v577_v37, %v576_v39  ;;  %703 = vmatpush.bf16.msra.mxu1 %v9041_v55  ;;  %v6703_v37 = vor.u32 %v9074_v33, %v6700_v34  ;;  %v9069_v39 = vld [vmem:[%s12349_s8 + $0x304] sm:$0xf]  ;;  %v6610_v34 = vld [vmem:[%s12349_s8 + $0x100] sm:$0xf] }
 0x40a   :  { %v724_v23 = vsub.f32 1.0, %v723_v22  ;;  %v6626_v22 = vld [vmem:[%s12349_s8 + $0x180] sm:$0xf] }
 0x40d   :  { %704 = vmatpush.bf16.msra.mxu1 %v9040_v56 }
 0x40e   :  { %v509_v36 = vpop.permute.xlu1 %508 }
 0x40f   :  { %521 = vmatpush.bf16.msrb.mxu2 %v509_v36  ;;  %v6674_v36 = vld [vmem:[%s12349_s8 + $0x300] sm:$0xf] }
 0x411   :  { %v580_v40 = vpop.permute.xlu0 %579  ;;  %705 = vmatpush.bf16.msra.mxu1 %v9039_v57 }
 0x412   :  { %6541 = vmatmul.msk.bf16.vlgmr.msrb.gmra.mxu2 %vm342_vm4, %v507_v38  ;;  %592 = vmatpush.bf16.msrb.mxu0 %v580_v40  ;;  %v9071_v38 = vld [vmem:[%s12349_s8 + $0x33c] sm:$0xf0]  ;;  %v6676_v40 = vld [vmem:[%s12349_s8 + $0x340] sm:$0xf0] }
 0x413   :  { %978 = vmatpush.bf16.msra.mxu2 %v6691_v28  ;;  %v6634_v28 = vld [vmem:[%s12349_s8 + $0x188] sm:$0xf] }
 0x415   :  { %6543 = vmatmul.msk.bf16.vlgmr.msrb.gmra.mxu0 %vm342_vm4, %v578_v41  ;;  %706 = vmatpush.bf16.msra.mxu1 %v9038_v58  ;;  %v6675_v41 = vor.u32 %v9071_v38, %v6674_v36  ;;  %v9055_v36 = vld [vmem:[%s12349_s8 + $0x13c] sm:$0xf0] }
 0x416   :  { %1006 = vmatpush.bf16.msra.mxu0 %v6699_v32  ;;  %v6636_v32 = vld [vmem:[%s12349_s8 + $0x1c8] sm:$0xf0]  ;;  %v6611_v38 = vor.u32 %v9055_v36, %v6610_v34 }
 0x417   :  { %979 = vmatpush.bf16.msra.mxu2 %v6675_v41  ;;  %v9056_v41 = vld [vmem:[%s12349_s8 + $0x144] sm:$0xf0] }
 0x419   :  { %707 = vmatpush.bf16.msra.mxu1 %v9037_v59 }
 0x41a   :  { %1007 = vmatpush.bf16.msra.mxu0 %v6683_v46 }
 0x41d   :  { %1020 = vmatpush.bf16.msrb.mxu1 %v6703_v37  ;;  %v9053_v37 = vld [vmem:[%s12349_s8 + $0x104] sm:$0xf] }
 0x47f   :  { %v452_v42 = vpop.f32.mrf.mxu0 }
 0x487   :  { %v454_v47 = vpop.f32.mrf.mxu0 }
 0x488   :  { %v9618_v52 = vpack.i.bf16 %v454_v47, %v452_v42  ;;  %v6679_v42 = vor.u32 %v9069_v39, %v6676_v40  ;;  %v6684_v47 = vld [vmem:[%s12349_s8 + $0x348] sm:$0xf0]  ;;  %v6612_v39 = vld [vmem:[%s12349_s8 + $0x140] sm:$0xf0]  ;;  %v6618_v40 = vld [vmem:[%s12349_s8 + $0x108] sm:$0xf] }
 0x489   :  { %v6619_v43 = vor.u32 %v9056_v41, %v6618_v40  ;;  %v6788_v41 = vld [vmem:[%s12349_s8 + $0x2d0] sm:$0xf0] }
 0x492   :  { %v594_v51 = vpop.f32.mrf.mxu0 }
 0x495   :  { %v523_v44 = vpop.f32.mrf.mxu2 }
 0x49a   :  { %v596_v53 = vpop.f32.mrf.mxu0 }
 0x49b   :  { %v9623_v54 = vpack.i.bf16 %v596_v53, %v594_v51 }
 0x49d   :  { %v525_v48 = vpop.f32.mrf.mxu2 }
 0x49e   :  { %v9613_v49 = vpack.i.bf16 %v525_v48, %v523_v44  ;;  %v9070_v44 = vld [vmem:[%s12349_s8 + $0x30c] sm:$0xf] }
 0x49f   :  { %v6687_v48 = vor.u32 %v9070_v44, %v6684_v47  ;;  %v6620_v44 = vld [vmem:[%s12349_s8 + $0x148] sm:$0xf0]  ;;  %v6594_v47 = vld [vmem:[%s12349_s8 + $0x80] sm:$0xf] }
 0x4a0   :  { %9614 = vrot.lane.b32.xlu2 %v9613_v49, %s9787_s22  ;;  %v725_v49 = vmul.f32 %v9690_v21, %v724_v23  ;;  %v9059_v23 = vld [vmem:[%s12349_s8 + $0x1bc] sm:$0xf0]  ;;  %v6623_v46 = vor.u32 %v9054_v25, %v6620_v44 }
 0x4a1   :  { %1021 = vmatpush.bf16.msrb.mxu1 %v6687_v48  ;;  %v6627_v27 = vor.u32 %v9059_v23, %v6626_v22  ;;  %v9051_v48 = vld [vmem:[%s12349_s8 + $0xbc] sm:$0xf0]  ;;  %v6828_v22 = vld [vmem:[%s12349_s8 + $0x3d8] sm:$0xf0]  ;;  %v6802_v23 = vld [vmem:[%s12349_s8 + $0x310] sm:$0xf] }
 0x4a2   :  { %v726_v51 = vadd.f32 %v9690_v21, %v725_v49  ;;  %v9049_v49 = vld [vmem:[%s12349_s8 + $0x84] sm:$0xf] }
 0x4a8   :  { %9619 = vrot.lane.b32.xlu2 %v9618_v52, %s9790_s2  ;;  %v10216_v52 = vsel %vm727_vm10, %v9690_v21, %v726_v51  ;;  %v6595_v51 = vor.u32 %v9051_v48, %v6594_v47  ;;  %v9130_v47 = vld [vmem:[%s12349_s8 + $0x29c] sm:$0xf] }
 0x4a9   :  { %v6796_v48 = vld [vmem:[%s12349_s8 + $0x2d8] sm:$0xf0] }
 0x4b0   :  { %9624 = vrot.lane.b32.xlu2 %v9623_v54, %s9789_s21 }
 0x4fa   :  { %v9615_v61 = vpop.permute.xlu2 %9614 }
 0x4fb   :  { %v9617_v4 = vunpack.i.h.bf16 %v9615_v61  ;;  %v9616_v5 = vunpack.i.l.bf16 %v9615_v61 }
 0x502   :  { %v9620_v62 = vpop.permute.xlu2 %9619 }
 0x503   :  { %v9622_v0 = vunpack.i.h.bf16 %v9620_v62  ;;  %v9621_v1 = vunpack.i.l.bf16 %v9620_v62  ;;  %v6658_v62 = vld [vmem:[%s12349_s8 + $0x280] sm:$0xf] }
 0x505   :  { %v624_v2 = vsel %vm317_vm0, %v10097_v24, %v9622_v0  ;;  %v623_v3 = vsel %vm317_vm0, %v10095_v20, %v9621_v1  ;;  %v9643_v20 = vld [vmem:[%s12346_s5] ss:$0 sm:$0xff]  ;;  %v9065_v1 = vld [vmem:[%s12349_s8 + $0x284] sm:$0xf] }
 0x506   :  { %v626_v9 = vsel %vm625_vm8, %v623_v3, %v9616_v5  ;;  %v627_v10 = vsel %vm625_vm8, %v624_v2, %v9617_v4  ;;  %v9067_v0 = vld [vmem:[%s12349_s8 + $0x2bc] sm:$0xf0]  ;;  %v6660_v3 = vld [vmem:[%s12349_s8 + $0x2c0] sm:$0xf0]  ;;  %v6666_v4 = vld [vmem:[%s12349_s8 + $0x288] sm:$0xf] }
 0x507   :  { %v6659_v2 = vor.u32 %v9067_v0, %v6658_v62  ;;  %v9068_v5 = vld [vmem:[%s12349_s8 + $0x2c4] sm:$0xf0]  ;;  %v6604_v62 = vld [vmem:[%s12349_s8 + $0xc8] sm:$0xf0] }
 0x509   :  { %980 = vmatpush.bf16.msra.mxu2 %v6659_v2  ;;  %v9047_v2 = vld [vmem:[%s12349_s8 + $0x3c] sm:$0xf0] }
 0x50a   :  { %v9625_v6 = vpop.permute.xlu2 %9624 }
 0x50b   :  { %v9627_v7 = vunpack.i.h.bf16 %v9625_v6  ;;  %v9626_v8 = vunpack.i.l.bf16 %v9625_v6  ;;  %v6663_v6 = vor.u32 %v9065_v1, %v6660_v3  ;;  %v6578_v1 = vld [vmem:[%s12349_s8] sm:$0xf]  ;;  %v9045_v3 = vld [vmem:[%s12349_s8 + $0x4] sm:$0xf] }
 0x50d   :  { %v630_v11 = vsel %vm628_vm9, %v627_v10, %v9627_v7  ;;  %v629_v12 = vsel %vm628_vm9, %v626_v9, %v9626_v8  ;;  %v6667_v7 = vor.u32 %v9068_v5, %v6666_v4  ;;  %v9066_v8 = vld [vmem:[%s12349_s8 + $0x28c] sm:$0xf]  ;;  %v6579_v4 = vor.u32 %v9047_v2, %v6578_v1  ;;  %v6580_v5 = vld [vmem:[%s12349_s8 + $0x40] sm:$0xf0]  ;;  %v9128_v1 = vld [vmem:[%s12349_s8 + $0x254] sm:$0xf0] }
 0x50e   :  { %v631_v13 = vpack.c.bf16 %v630_v11, %v629_v12  ;;  %v6668_v9 = vld [vmem:[%s12349_s8 + $0x2c8] sm:$0xf0]  ;;  %v6642_v11 = vld [vmem:[%s12349_s8 + $0x200] sm:$0xf]  ;;  %v9126_v2 = vld [vmem:[%s12349_s8 + $0x21c] sm:$0xf] }
 0x50f   :  { %v6671_v10 = vor.u32 %v9066_v8, %v6668_v9  ;;  %1008 = vmatpush.bf16.msra.mxu0 %v6667_v7  ;;  %v9063_v12 = vld [vmem:[%s12349_s8 + $0x23c] sm:$0xf0]  ;;  %v9048_v7 = vld [vmem:[%s12349_s8 + $0x44] sm:$0xf0]  ;;  %v6583_v8 = vor.u32 %v9045_v3, %v6580_v5  ;;  %v6780_v3 = vld [vmem:[%s12349_s8 + $0x258] sm:$0xf0] }
 0x510   :  { %708 = vmatmul.bf16.vlgmr.msra.gmra.mxu1 %v631_v13  ;;  %v9061_v13 = vld [vmem:[%s12349_s8 + $0x204] sm:$0xf]  ;;  %v6783_v5 = vor.u32 %v9126_v2, %v6780_v3 }
 0x511   :  { %1022 = vmatpush.bf16.msrb.mxu1 %v6671_v10  ;;  %v9046_v10 = vld [vmem:[%s12349_s8 + $0xc] sm:$0xf] }
 0x58d   :  { %v709_v24 = vpop.f32.mrf.mxu1 }
 0x58e   :  { %v710_v14 = vadd.f32 %v9643_v20, %v709_v24  ;;  %v6644_v24 = vld [vmem:[%s12349_s8 + $0x240] sm:$0xf0] }
 0x590   :  { %v714_v15 = vadd.f32 %v710_v14, %v10025_v60  ;;  %v9073_v60 = vld [vmem:[%s12349_s8 + $0x384] sm:$0xf]  ;;  %v6650_v14 = vld [vmem:[%s12349_s8 + $0x208] sm:$0xf] }
 0x592   :  { %718 = vadd.xlane.f32.xlu0 %v714_v15 }
 0x595   :  { %v711_v16 = vpop.f32.mrf.mxu1 }
 0x596   :  { %v712_v17 = vadd.f32 %v9643_v20, %v711_v16  ;;  %v6643_v20 = vor.u32 %v9063_v12, %v6642_v11  ;;  %v6647_v16 = vor.u32 %v9061_v13, %v6644_v24  ;;  %v6588_v11 = vld [vmem:[%s12349_s8 + $0x48] sm:$0xf0]  ;;  %v6818_v12 = vld [vmem:[%s12349_s8 + $0x390] sm:$0xf]  ;;  %v9137_v24 = vld [vmem:[%s12349_s8 + $0x394] sm:$0xf] }
 0x597   :  { %v6591_v13 = vor.u32 %v9046_v10, %v6588_v11  ;;  %v6756_v10 = vld [vmem:[%s12349_s8 + $0x1d0] sm:$0xf0]  ;;  %v6762_v11 = vld [vmem:[%s12349_s8 + $0x198] sm:$0xf] }
 0x598   :  { %v715_v18 = vadd.f32 %v712_v17, %v10030_v63  ;;  %v6692_v63 = vld [vmem:[%s12349_s8 + $0x3c0] sm:$0xf0]  ;;  %981 = vmatpush.bf16.msra.mxu2 %v6643_v20  ;;  %v9139_v20 = vld [vmem:[%s12349_s8 + $0x3cc] sm:$0xf0] }
 0x599   :  { %v6695_v31 = vor.u32 %v9073_v60, %v6692_v63  ;;  %v6628_v60 = vld [vmem:[%s12349_s8 + $0x1c0] sm:$0xf0]  ;;  %v9060_v63 = vld [vmem:[%s12349_s8 + $0x1c4] sm:$0xf0] }
 0x59a   :  { %720 = vadd.xlane.f32.xlu1 %v715_v18  ;;  %v6631_v30 = vor.u32 %v9057_v26, %v6628_v60  ;;  %v6635_v29 = vor.u32 %v9060_v63, %v6634_v28  ;;  %v9135_v26 = vld [vmem:[%s12349_s8 + $0x34c] sm:$0xf0]  ;;  %v9133_v28 = vld [vmem:[%s12349_s8 + $0x314] sm:$0xf] }
 0x59b   :  { %992 = vmatpush.bf16.msrb.mxu3 %v6695_v31  ;;  %v9058_v31 = vld [vmem:[%s12349_s8 + $0x18c] sm:$0xf]  ;;  %v6803_v60 = vor.u32 %v9135_v26, %v6802_v23  ;;  %v6804_v63 = vld [vmem:[%s12349_s8 + $0x350] sm:$0xf0]  ;;  %v6746_v23 = vld [vmem:[%s12349_s8 + $0x118] sm:$0xf] }
 0x59c   :  { %982 = vmatpush.bf16.msra.mxu2 %v6627_v27  ;;  %v6639_v33 = vor.u32 %v9058_v31, %v6636_v32  ;;  %v9136_v31 = vld [vmem:[%s12349_s8 + $0x354] sm:$0xf0]  ;;  %v9134_v32 = vld [vmem:[%s12349_s8 + $0x31c] sm:$0xf] }
 0x59d   :  { %v9120_v26 = vld [vmem:[%s12349_s8 + $0x154] sm:$0xf0] }
 0x59f   :  { %993 = vmatpush.bf16.msrb.mxu3 %v6679_v42  ;;  %v6615_v42 = vor.u32 %v9053_v37, %v6612_v39  ;;  %v6786_v37 = vld [vmem:[%s12349_s8 + $0x290] sm:$0xf]  ;;  %v9129_v39 = vld [vmem:[%s12349_s8 + $0x294] sm:$0xf] }
 0x5a0   :  { %983 = vmatpush.bf16.msra.mxu2 %v6611_v38  ;;  %v9131_v38 = vld [vmem:[%s12349_s8 + $0x2cc] sm:$0xf0]  ;;  %v6791_v44 = vor.u32 %v9129_v39, %v6788_v41  ;;  %v6730_v39 = vld [vmem:[%s12349_s8 + $0x98] sm:$0xf] }
 0x5a1   :  { %v6787_v40 = vor.u32 %v9131_v38, %v6786_v37  ;;  %v6724_v37 = vld [vmem:[%s12349_s8 + $0xd0] sm:$0xf0] }
 0x5a3   :  { %994 = vmatpush.bf16.msrb.mxu3 %v6663_v6  ;;  %v6586_v6 = vld [vmem:[%s12349_s8 + $0x8] sm:$0xf] }
 0x5a4   :  { %984 = vmatpush.bf16.msra.mxu2 %v6595_v51  ;;  %v6587_v9 = vor.u32 %v9048_v7, %v6586_v6  ;;  %v6799_v51 = vor.u32 %v9130_v47, %v6796_v48  ;;  %v6754_v6 = vld [vmem:[%s12349_s8 + $0x190] sm:$0xf] }
 0x5a5   :  { %v9123_v7 = vld [vmem:[%s12349_s8 + $0x1cc] sm:$0xf0] }
 0x5a6   :  { %v9111_v47 = vld [vmem:[%s12349_s8 + $0x4c] sm:$0xf0] }
 0x5a7   :  { %995 = vmatpush.bf16.msrb.mxu3 %v6647_v16 }
 0x5a8   :  { %985 = vmatpush.bf16.msra.mxu2 %v6579_v4 }
 0x5ab   :  { %996 = vmatpush.bf16.msrb.mxu3 %v6631_v30  ;;  %v6810_v30 = vld [vmem:[%s12349_s8 + $0x318] sm:$0xf] }
 0x5ac   :  { %v6811_v34 = vor.u32 %v9136_v31, %v6810_v30  ;;  %v6722_v31 = vld [vmem:[%s12349_s8 + $0x90] sm:$0xf] }
 0x5af   :  { %997 = vmatpush.bf16.msrb.mxu3 %v6615_v42  ;;  %v6794_v42 = vld [vmem:[%s12349_s8 + $0x298] sm:$0xf] }
 0x605   :  { %v719_v53 = vpop.xlane.xlu0 %718 }
 0x606   :  { %v729_v54 = vmul.f32 %v10216_v52, %v719_v53  ;;  %v6596_v53 = vld [vmem:[%s12349_s8 + $0xc0] sm:$0xf0] }
 0x608   :  { %v10219_v55 = vsub.f32 %v714_v15, %v729_v54  ;;  %v9064_v15 = vld [vmem:[%s12349_s8 + $0x244] sm:$0xf0] }
 0x609   :  { %v6651_v17 = vor.u32 %v9064_v15, %v6650_v14  ;;  %v6602_v54 = vld [vmem:[%s12349_s8 + $0x88] sm:$0xf]  ;;  %v6820_v14 = vld [vmem:[%s12349_s8 + $0x3d0] sm:$0xf0]  ;;  %v6819_v15 = vor.u32 %v9139_v20, %v6818_v12  ;;  %v9124_v12 = vld [vmem:[%s12349_s8 + $0x1d4] sm:$0xf0] }
 0x60a   :  { %v733_v56 = vmul.f32 %v10219_v55, %v10219_v55  ;;  %v6823_v16 = vor.u32 %v9137_v24, %v6820_v14  ;;  %v6763_v24 = vor.u32 %v9124_v12, %v6762_v11  ;;  %v9122_v14 = vld [vmem:[%s12349_s8 + $0x19c] sm:$0xf]  ;;  %v9644_v12 = vld [vmem:[%s12347_s6] ss:$0 sm:$0xff] }
 0x60b   :  { %1009 = vmatpush.bf16.msra.mxu0 %v6651_v17  ;;  %v6826_v17 = vld [vmem:[%s12349_s8 + $0x398] sm:$0xf]  ;;  %1312 = vmatpush.bf16.msrb.mxu2 %v6819_v15  ;;  %v6764_v15 = vld [vmem:[%s12349_s8 + $0x1d8] sm:$0xf0] }
 0x60c   :  { %735 = vadd.xlane.f32.xlu2 %v733_v56  ;;  %v9052_v56 = vld [vmem:[%s12349_s8 + $0xc4] sm:$0xf0] }
 0x60d   :  { %v721_v57 = vpop.xlane.xlu1 %720 }
 0x60e   :  { %v730_v58 = vmul.f32 %v10216_v52, %v721_v57  ;;  %v6599_v57 = vor.u32 %v9049_v49, %v6596_v53  ;;  %v6770_v53 = vld [vmem:[%s12349_s8 + $0x210] sm:$0xf] }
 0x60f   :  { %1010 = vmatpush.bf16.msra.mxu0 %v6635_v29  ;;  %v6807_v29 = vor.u32 %v9133_v28, %v6804_v63  ;;  %1313 = vmatpush.bf16.msrb.mxu2 %v6803_v60 }
 0x610   :  { %v10224_v59 = vsub.f32 %v715_v18, %v730_v58  ;;  %v9062_v18 = vld [vmem:[%s12349_s8 + $0x20c] sm:$0xf]  ;;  %v6603_v58 = vor.u32 %v9052_v56, %v6602_v54  ;;  %998 = vmatpush.bf16.msrb.mxu3 %v6599_v57  ;;  %v9127_v54 = vld [vmem:[%s12349_s8 + $0x24c] sm:$0xf0]  ;;  %v9125_v56 = vld [vmem:[%s12349_s8 + $0x214] sm:$0xf] }
 0x611   :  { %v6655_v21 = vor.u32 %v9062_v18, %v6652_v19  ;;  %v9140_v18 = vld [vmem:[%s12349_s8 + $0x3d4] sm:$0xf0]  ;;  %v9138_v19 = vld [vmem:[%s12349_s8 + $0x39c] sm:$0xf] }
 0x612   :  { %v734_v61 = vmul.f32 %v10224_v59, %v10224_v59  ;;  %v6831_v27 = vor.u32 %v9138_v19, %v6828_v22  ;;  %v9119_v19 = vld [vmem:[%s12349_s8 + $0x14c] sm:$0xf0]  ;;  %v6740_v22 = vld [vmem:[%s12349_s8 + $0x150] sm:$0xf0] }
 0x613   :  { %1023 = vmatpush.bf16.msrb.mxu1 %v6655_v21  ;;  %1011 = vmatpush.bf16.msra.mxu0 %v6619_v43  ;;  %v6827_v21 = vor.u32 %v9140_v18, %v6826_v17  ;;  %v9132_v43 = vld [vmem:[%s12349_s8 + $0x2d4] sm:$0xf0]  ;;  %v6767_v18 = vor.u32 %v9122_v14, %v6764_v15 }
 0x614   :  { %737 = vadd.xlane.f32.xlu0 %v734_v61  ;;  %v9050_v61 = vld [vmem:[%s12349_s8 + $0x8c] sm:$0xf]  ;;  %999 = vmatpush.bf16.msrb.mxu3 %v6583_v8  ;;  %v9121_v8 = vld [vmem:[%s12349_s8 + $0x194] sm:$0xf] }
 0x615   :  { %v6607_v0 = vor.u32 %v9050_v61, %v6604_v62  ;;  %1314 = vmatpush.bf16.msrb.mxu2 %v6787_v40  ;;  %v6772_v61 = vld [vmem:[%s12349_s8 + $0x250] sm:$0xf0]  ;;  %v6778_v62 = vld [vmem:[%s12349_s8 + $0x218] sm:$0xf]  ;;  %v6759_v20 = vor.u32 %v9121_v8, %v6756_v10 }
 0x616   :  { %v6779_v4 = vor.u32 %v9128_v1, %v6778_v62  ;;  %v9116_v40 = vld [vmem:[%s12349_s8 + $0xd4] sm:$0xf0]  ;;  %v9110_v62 = vld [vmem:[%s12349_s8 + $0x1c] sm:$0xf] }
 0x617   :  { %1024 = vmatpush.bf16.msrb.mxu1 %v6639_v33  ;;  %1012 = vmatpush.bf16.msra.mxu0 %v6603_v58  ;;  %v6812_v33 = vld [vmem:[%s12349_s8 + $0x358] sm:$0xf0]  ;;  %v6771_v58 = vor.u32 %v9127_v54, %v6770_v53  ;;  %v6708_v53 = vld [vmem:[%s12349_s8 + $0x50] sm:$0xf0] }
 0x618   :  { %1326 = vmatpush.bf16.msra.mxu3 %v6823_v16  ;;  %v6815_v36 = vor.u32 %v9134_v32, %v6812_v33  ;;  %v6738_v16 = vld [vmem:[%s12349_s8 + $0x110] sm:$0xf]  ;;  %v6747_v33 = vor.u32 %v9120_v26, %v6746_v23  ;;  %v9156_v23 = vld [vmem:[#allocation5 + $0x178] sm:$0xff]  ;;  %v9171_v26 = vld [vmem:[#allocation5 + $0x1f0] sm:$0xff] }
 0x619   :  { %1315 = vmatpush.bf16.msrb.mxu2 %v6771_v58  ;;  %v6739_v63 = vor.u32 %v9119_v19, %v6738_v16  ;;  %v9112_v58 = vld [vmem:[%s12349_s8 + $0x54] sm:$0xf0]  ;;  %v9164_v19 = vld [vmem:[#allocation5 + $0x1b8] sm:$0xff] }
 0x61b   :  { %1025 = vmatpush.bf16.msrb.mxu1 %v6623_v46  ;;  %1013 = vmatpush.bf16.msra.mxu0 %v6587_v9  ;;  %v6795_v46 = vor.u32 %v9132_v43, %v6794_v42  ;;  %v6755_v9 = vor.u32 %v9123_v7, %v6754_v6  ;;  %v9114_v42 = vld [vmem:[%s12349_s8 + $0x9c] sm:$0xf] }
 0x61c   :  { %1327 = vmatpush.bf16.msra.mxu3 %v6807_v29  ;;  %v6748_v29 = vld [vmem:[%s12349_s8 + $0x158] sm:$0xf0] }
 0x61d   :  { %1316 = vmatpush.bf16.msrb.mxu2 %v6755_v9  ;;  %v6732_v43 = vld [vmem:[%s12349_s8 + $0xd8] sm:$0xf0] }
 0x61e   :  { %v6735_v54 = vor.u32 %v9114_v42, %v6732_v43  ;;  %v9158_v42 = vld [vmem:[#allocation5 + $0x188] sm:$0xff] }
 0x61f   :  { %1026 = vmatpush.bf16.msrb.mxu1 %v6607_v0  ;;  %1340 = vmatpush.bf16.msrb.mxu0 %v6827_v21  ;;  %v6775_v0 = vor.u32 %v9125_v56, %v6772_v61  ;;  %v9117_v21 = vld [vmem:[%s12349_s8 + $0x114] sm:$0xf]  ;;  %v6714_v56 = vld [vmem:[%s12349_s8 + $0x18] sm:$0xf] }
 0x620   :  { %1328 = vmatpush.bf16.msra.mxu3 %v6791_v44  ;;  %v6743_v30 = vor.u32 %v9117_v21, %v6740_v22  ;;  %v6715_v6 = vor.u32 %v9112_v58, %v6714_v56  ;;  %v9172_v21 = vld [vmem:[#allocation5 + $0x1f8] sm:$0xff]  ;;  %v9166_v43 = vld [vmem:[#allocation5 + $0x1c8] sm:$0xff]  ;;  %v9107_v56 = vld [vmem:[#allocation5 + $0xf0] sm:$0xff] }
 0x621   :  { %1317 = vmatpush.bf16.msrb.mxu2 %v6739_v63  ;;  %v9148_v22 = vld [vmem:[#allocation5 + $0x138] sm:$0xff]  ;;  %v9170_v63 = vld [vmem:[#allocation5 + $0x1e8] sm:$0xff]  ;;  %v9141_v58 = vld [vmem:[#allocation5 + $0x100] sm:$0xff] }
 0x623   :  { %1027 = vmatpush.bf16.msrb.mxu1 %v6591_v13  ;;  %1341 = vmatpush.bf16.msrb.mxu0 %v6811_v34  ;;  %v9115_v34 = vld [vmem:[%s12349_s8 + $0xcc] sm:$0xf0] }
 0x624   :  { %1329 = vmatpush.bf16.msra.mxu3 %v6775_v0  ;;  %v6716_v0 = vld [vmem:[%s12349_s8 + $0x58] sm:$0xf0] }
 0x625   :  { %v6719_v7 = vor.u32 %v9110_v62, %v6716_v0  ;;  %v9084_v62 = vld [vmem:[#allocation5 + $0x38] sm:$0xff] }
 0x626   :  { %v9092_v0 = vld [vmem:[#allocation5 + $0x78] sm:$0xff] }
 0x627   :  { %1354 = vmatpush.bf16.msra.mxu1 %v6831_v27  ;;  %1342 = vmatpush.bf16.msrb.mxu0 %v6795_v46  ;;  %v9118_v27 = vld [vmem:[%s12349_s8 + $0x11c] sm:$0xf]  ;;  %v6706_v46 = vld [vmem:[%s12349_s8 + $0x10] sm:$0xf] }
 0x628   :  { %1330 = vmatpush.bf16.msra.mxu3 %v6759_v20  ;;  %v6751_v38 = vor.u32 %v9118_v27, %v6748_v29  ;;  %v6707_v2 = vor.u32 %v9111_v47, %v6706_v46  ;;  %v9147_v27 = vld [vmem:[#allocation5 + $0x130] sm:$0xff]  ;;  %v9154_v29 = vld [vmem:[#allocation5 + $0x168] sm:$0xff]  ;;  %v9157_v46 = vld [vmem:[#allocation5 + $0x180] sm:$0xff] }
 0x629   :  { %v9165_v47 = vld [vmem:[#allocation5 + $0x1c0] sm:$0xff] }
 0x62b   :  { %1355 = vmatpush.bf16.msra.mxu1 %v6815_v36  ;;  %1343 = vmatpush.bf16.msrb.mxu0 %v6779_v4  ;;  %v9113_v36 = vld [vmem:[%s12349_s8 + $0x94] sm:$0xf] }
 0x62c   :  { %1331 = vmatpush.bf16.msra.mxu3 %v6743_v30  ;;  %v6727_v44 = vor.u32 %v9113_v36, %v6724_v37  ;;  %v9146_v30 = vld [vmem:[#allocation5 + $0x128] sm:$0xff]  ;;  %v9160_v36 = vld [vmem:[#allocation5 + $0x198] sm:$0xff] }
 0x62d   :  { %v9168_v37 = vld [vmem:[#allocation5 + $0x1d8] sm:$0xff] }
 0x62f   :  { %1356 = vmatpush.bf16.msra.mxu1 %v6799_v51  ;;  %1344 = vmatpush.bf16.msrb.mxu0 %v6763_v24  ;;  %v9109_v51 = vld [vmem:[%s12349_s8 + $0x14] sm:$0xf]  ;;  %v9645_v24 = vld [vmem:[%s12348_s7] ss:$0 sm:$0xff] }
 0x630   :  { %1332 = vmatpush.bf16.msra.mxu3 %v6727_v44  ;;  %v6711_v3 = vor.u32 %v9109_v51, %v6708_v53  ;;  %v9151_v44 = vld [vmem:[#allocation5 + $0x150] sm:$0xff]  ;;  %v9142_v51 = vld [vmem:[#allocation5 + $0x108] sm:$0xff] }
 0x631   :  { %v9150_v53 = vld [vmem:[#allocation5 + $0x148] sm:$0xff] }
 0x633   :  { %1357 = vmatpush.bf16.msra.mxu1 %v6783_v5  ;;  %1345 = vmatpush.bf16.msrb.mxu0 %v6747_v33  ;;  %v9145_v33 = vld [vmem:[#allocation5 + $0x120] sm:$0xff] }
 0x634   :  { %1333 = vmatpush.bf16.msra.mxu3 %v6711_v3  ;;  %v9083_v3 = vld [vmem:[#allocation5 + $0x30] sm:$0xff] }
 0x637   :  { %1358 = vmatpush.bf16.msra.mxu1 %v6767_v18 }
 0x63b   :  { %1359 = vmatpush.bf16.msra.mxu1 %v6751_v38  ;;  %v9144_v38 = vld [vmem:[#allocation5 + $0x118] sm:$0xff] }
 0x63f   :  { %1360 = vmatpush.bf16.msra.mxu1 %v6735_v54  ;;  %v9099_v54 = vld [vmem:[#allocation5 + $0xb0] sm:$0xff] }
 0x643   :  { %1361 = vmatpush.bf16.msra.mxu1 %v6719_v7  ;;  %v9082_v7 = vld [vmem:[#allocation5 + $0x28] sm:$0xff] }
 0x67f   :  { %v736_v25 = vpop.xlane.xlu2 %735 }
 0x680   :  { %v739_v49 = vmul.f32 %v736_v25, %v10216_v52  ;;  %v6723_v25 = vor.u32 %v9115_v34, %v6722_v31  ;;  %v9161_v31 = vld [vmem:[#allocation5 + $0x1a0] sm:$0xff] }
 0x681   :  { %v9153_v34 = vld [vmem:[#allocation5 + $0x160] sm:$0xff] }
 0x682   :  { %v10454_v57 = vadd.f32 1e-05, %v739_v49  ;;  %v6731_v49 = vor.u32 %v9116_v40, %v6730_v39  ;;  %1318 = vmatpush.bf16.msrb.mxu2 %v6723_v25  ;;  %v9152_v39 = vld [vmem:[#allocation5 + $0x158] sm:$0xff]  ;;  %v9159_v40 = vld [vmem:[#allocation5 + $0x190] sm:$0xff] }
 0x683   :  { %v9143_v25 = vld [vmem:[#allocation5 + $0x110] sm:$0xff] }
 0x684   :  { %9691 = vrsqrt.f32 %v10454_v57  ;;  %1346 = vmatpush.bf16.msrb.mxu0 %v6731_v49  ;;  %vm749_vm12 = vweird.f32 %v10454_v57  ;;  %v9108_v49 = vld [vmem:[#allocation5 + $0xf8] sm:$0xff] }
 0x686   :  { %1319 = vmatpush.bf16.msrb.mxu2 %v6707_v2  ;;  %v9106_v2 = vld [vmem:[#allocation5 + $0xe8] sm:$0xff] }
 0x687   :  { %v738_v13 = vpop.xlane.xlu0 %737 }
 0x688   :  { %v740_v17 = vmul.f32 %v738_v13, %v10216_v52  ;;  %1347 = vmatpush.bf16.msrb.mxu0 %v6715_v6  ;;  %v9105_v6 = vld [vmem:[#allocation5 + $0xe0] sm:$0xff] }
 0x68a   :  { %v10518_v60 = vpop.eup %9691  ;;  %v10520_v28 = vadd.f32 1e-05, %v740_v17 }
 0x68b   :  { %v744_v32 = vmul.f32 %v10518_v60, %v10454_v57  ;;  %vm750_vm11 = vweird.f32 %v10518_v60 }
 0x68c   :  { %9693 = vrsqrt.f32 %v10520_v28  ;;  %vm751_vm13 = vmor %vm749_vm12, %vm750_vm11  ;;  %vm759_vm15 = vweird.f32 %v10520_v28 }
 0x68d   :  { %v745_v41 = vmul.f32 %v10518_v60, %v744_v32  ;;  %v9169_v32 = vld [vmem:[#allocation5 + $0x1e0] sm:$0xff] }
 0x68f   :  { %v746_v48 = vmul.f32 0.5, %v745_v41  ;;  %v9167_v41 = vld [vmem:[#allocation5 + $0x1d0] sm:$0xff] }
 0x691   :  { %v747_v61 = vsub.f32 1.5, %v746_v48  ;;  %v9100_v48 = vld [vmem:[#allocation5 + $0xb8] sm:$0xff] }
 0x692   :  { %v9694_v1 = vpop.eup %9693 }
 0x693   :  { %v748_v4 = vmul.f32 %v10518_v60, %v747_v61  ;;  %v754_v5 = vmul.f32 %v9694_v1, %v10520_v28  ;;  %vm760_vm14 = vweird.f32 %v9694_v1  ;;  %v9162_v28 = vld [vmem:[#allocation5 + $0x1a8] sm:$0xff]  ;;  %v9149_v61 = vld [vmem:[#allocation5 + $0x140] sm:$0xff] }
 0x694   :  { %vm761_vm1 = vmor %vm759_vm15, %vm760_vm14 }
 0x695   :  { %v755_v8 = vmul.f32 %v9694_v1, %v754_v5  ;;  %v752_v9 = vsel %vm751_vm13, %v10518_v60, %v748_v4  ;;  %v9155_v60 = vld [vmem:[#allocation5 + $0x170] sm:$0xff]  ;;  %v9097_v5 = vld [vmem:[#allocation5 + $0xa0] sm:$0xff] }
 0x696   :  { %v763_v13 = vmul.f32 %v752_v9, %v10219_v55  ;;  %v9091_v4 = vld [vmem:[#allocation5 + $0x70] sm:$0xff]  ;;  %v9096_v9 = vld [vmem:[#allocation5 + $0x98] sm:$0xff] }
 0x697   :  { %v756_v10 = vmul.f32 0.5, %v755_v8  ;;  %v9090_v8 = vld [vmem:[#allocation5 + $0x68] sm:$0xff] }
 0x698   :  { %v768_v14 = vmul.f32 %v9644_v12, %v763_v13  ;;  %v9095_v13 = vld [vmem:[#allocation5 + $0x90] sm:$0xff] }
 0x699   :  { %v757_v11 = vsub.f32 1.5, %v756_v10  ;;  %v9104_v10 = vld [vmem:[#allocation5 + $0xd8] sm:$0xff] }
 0x69a   :  { %v10591_v17 = vadd.f32 %v9645_v24, %v768_v14  ;;  %v9094_v14 = vld [vmem:[#allocation5 + $0x88] sm:$0xff] }
 0x69b   :  { %v758_v20 = vmul.f32 %v9694_v1, %v757_v11  ;;  %v9081_v11 = vld [vmem:[#allocation5 + $0x20] sm:$0xff] }
 0x69d   :  { %v762_v57 = vsel %vm761_vm1, %v9694_v1, %v758_v20  ;;  %v9098_v1 = vld [vmem:[#allocation5 + $0xa8] sm:$0xff]  ;;  %v9103_v20 = vld [vmem:[#allocation5 + $0xd0] sm:$0xff] }
 0x69e   :  { %v764_v15 = vmul.f32 %v762_v57, %v10224_v59  ;;  %v9163_v59 = vld [vmem:[#allocation5 + $0x1b0] sm:$0xff]  ;;  %v9080_v57 = vld [vmem:[#allocation5 + $0x18] sm:$0xff] }
 0x6a0   :  { %v769_v16 = vmul.f32 %v9644_v12, %v764_v15  ;;  %v9089_v12 = vld [vmem:[#allocation5 + $0x60] sm:$0xff]  ;;  %v9102_v15 = vld [vmem:[#allocation5 + $0xc8] sm:$0xff] }
 0x6a2   :  { %v10593_v18 = vadd.f32 %v9645_v24, %v769_v16  ;;  %v9088_v24 = vld [vmem:[#allocation5 + $0x58] sm:$0xff]  ;;  %v9079_v16 = vld [vmem:[#allocation5 + $0x10] sm:$0xff] }
 0x6a4   :  { %v10597_v55 = vpack.c.bf16 %v10593_v18, %v10591_v17 }
 0x6a6   :  { %986 = vmatmul.bf16.vlgmr.msra.gmra.mxu2 %v10597_v55  ;;  %1000 = vmatmul.bf16.vlgmr.msrb.gmra.mxu3 %v10597_v55 }
 0x6a7   :  { %1014 = vmatmul.bf16.vlgmr.msra.gmra.mxu0 %v10597_v55  ;;  %1028 = vmatmul.bf16.vlgmr.msrb.gmra.mxu1 %v10597_v55 }
 0x6a8   :  { %1664 = vmatpush.bf16.msra.mxu0 %v9164_v19  ;;  %1678 = vmatpush.bf16.msrb.mxu1 %v9172_v21  ;;  %v9087_v19 = vld [vmem:[#allocation5 + $0x50] sm:$0xff]  ;;  %v9093_v21 = vld [vmem:[#allocation5 + $0x80] sm:$0xff] }
 0x6a9   :  { %1636 = vmatpush.bf16.msra.mxu2 %v9148_v22  ;;  %1650 = vmatpush.bf16.msrb.mxu3 %v9156_v23  ;;  %v9101_v22 = vld [vmem:[#allocation5 + $0xc0] sm:$0xff]  ;;  %v9078_v23 = vld [vmem:[#allocation5 + $0x8] sm:$0xff] }
 0x6ac   :  { %1665 = vmatpush.bf16.msra.mxu0 %v9163_v59  ;;  %1679 = vmatpush.bf16.msrb.mxu1 %v9171_v26  ;;  %v9086_v59 = vld [vmem:[#allocation5 + $0x48] sm:$0xff] }
 0x6ad   :  { %1637 = vmatpush.bf16.msra.mxu2 %v9147_v27  ;;  %1651 = vmatpush.bf16.msrb.mxu3 %v9155_v60  ;;  %v9077_v60 = vld [vmem:[#allocation5] sm:$0xff] }
 0x6b0   :  { %1666 = vmatpush.bf16.msra.mxu0 %v9162_v28  ;;  %1680 = vmatpush.bf16.msrb.mxu1 %v9170_v63  ;;  %v9085_v28 = vld [vmem:[#allocation5 + $0x40] sm:$0xff] }
 0x6b1   :  { %1638 = vmatpush.bf16.msra.mxu2 %v9146_v30  ;;  %1652 = vmatpush.bf16.msrb.mxu3 %v9154_v29 }
 0x6b4   :  { %1667 = vmatpush.bf16.msra.mxu0 %v9161_v31  ;;  %1681 = vmatpush.bf16.msrb.mxu1 %v9169_v32 }
 0x6b5   :  { %1639 = vmatpush.bf16.msra.mxu2 %v9145_v33  ;;  %1653 = vmatpush.bf16.msrb.mxu3 %v9153_v34  ;;  %v1142_v34 = vld [vmem:[%s12350_s9 + $0x4] sm:$0xf] }
 0x6b6   :  { %1320 = vmatmul.bf16.vlgmr.msrb.gmra.mxu2 %v10597_v55  ;;  %1334 = vmatmul.bf16.vlgmr.msra.gmra.mxu3 %v10597_v55 }
 0x6b7   :  { %1348 = vmatmul.bf16.vlgmr.msrb.gmra.mxu0 %v10597_v55  ;;  %1362 = vmatmul.bf16.vlgmr.msra.gmra.mxu1 %v10597_v55 }
 0x6b8   :  { %1668 = vmatpush.bf16.msra.mxu0 %v9160_v36  ;;  %1682 = vmatpush.bf16.msrb.mxu1 %v9168_v37 }
 0x6b9   :  { %1640 = vmatpush.bf16.msra.mxu2 %v9144_v38  ;;  %1654 = vmatpush.bf16.msrb.mxu3 %v9152_v39  ;;  %v1146_v38 = vperm.slane %v1142_v34, 2  ;;  %v1147_v39 = vperm.slane %v1142_v34, 3 }
 0x6bc   :  { %1669 = vmatpush.bf16.msra.mxu0 %v9159_v40  ;;  %1683 = vmatpush.bf16.msrb.mxu1 %v9167_v41 }
 0x6bd   :  { %1641 = vmatpush.bf16.msra.mxu2 %v9143_v25  ;;  %1655 = vmatpush.bf16.msrb.mxu3 %v9151_v44  ;;  %v1144_v25 = vperm.slane %v1142_v34, 0  ;;  %v1145_v44 = vperm.slane %v1142_v34, 1 }
 0x6c0   :  { %1670 = vmatpush.bf16.msra.mxu0 %v9158_v42  ;;  %1684 = vmatpush.bf16.msrb.mxu1 %v9166_v43 }
 0x6c1   :  { %1642 = vmatpush.bf16.msra.mxu2 %v9142_v51  ;;  %1656 = vmatpush.bf16.msrb.mxu3 %v9150_v53  ;;  %v9204_v53 = vld [vmem:[%s12349_s8 + $0x3e4] sm:$0xf0] }
 0x6c4   :  { %1671 = vmatpush.bf16.msra.mxu0 %v9157_v46  ;;  %1685 = vmatpush.bf16.msrb.mxu1 %v9165_v47 }
 0x6c5   :  { %1643 = vmatpush.bf16.msra.mxu2 %v9141_v58  ;;  %1657 = vmatpush.bf16.msrb.mxu3 %v9149_v61  ;;  %v10641_v58 = vld [vmem:[%s12350_s9] sm:$0xf] }
 0x6c8   :  { %1912 = vmatpush.bf16.msrb.mxu0 %v9100_v48  ;;  %1926 = vmatpush.bf16.msra.mxu1 %v9108_v49  ;;  %v7210_v48 = vld [vmem:[%s12349_s8 + $0x3a8] sm:$0xf] }
 0x6c9   :  { %1884 = vmatpush.bf16.msrb.mxu2 %v9084_v62  ;;  %1898 = vmatpush.bf16.msra.mxu3 %v9092_v0 }
 0x6cc   :  { %1913 = vmatpush.bf16.msrb.mxu0 %v9099_v54  ;;  %1927 = vmatpush.bf16.msra.mxu1 %v9107_v56  ;;  %v9202_v54 = vld [vmem:[%s12349_s8 + $0x3ac] sm:$0xf] }
 0x6cd   :  { %1885 = vmatpush.bf16.msrb.mxu2 %v9083_v3  ;;  %1899 = vmatpush.bf16.msra.mxu3 %v9091_v4  ;;  %v7212_v56 = vld [vmem:[%s12349_s8 + $0x3e8] sm:$0xf0] }
 0x6d0   :  { %1914 = vmatpush.bf16.msrb.mxu0 %v9098_v1  ;;  %1928 = vmatpush.bf16.msra.mxu1 %v9106_v2  ;;  %v7194_v2 = vld [vmem:[%s12349_s8 + $0x328] sm:$0xf] }
 0x6d1   :  { %1886 = vmatpush.bf16.msrb.mxu2 %v9082_v7  ;;  %1900 = vmatpush.bf16.msra.mxu3 %v9090_v8  ;;  %v9200_v7 = vld [vmem:[%s12349_s8 + $0x364] sm:$0xf0]  ;;  %v9198_v8 = vld [vmem:[%s12349_s8 + $0x32c] sm:$0xf] }
 0x6d4   :  { %1915 = vmatpush.bf16.msrb.mxu0 %v9097_v5  ;;  %1929 = vmatpush.bf16.msra.mxu1 %v9105_v6  ;;  %v7211_v5 = vor.u32 %v9204_v53, %v7210_v48  ;;  %v7215_v6 = vor.u32 %v9202_v54, %v7212_v56  ;;  %v9197_v48 = vld [vmem:[%s12349_s8 + $0x324] sm:$0xf]  ;;  %v7162_v54 = vld [vmem:[%s12349_s8 + $0x228] sm:$0xf] }
 0x6d5   :  { %1887 = vmatpush.bf16.msrb.mxu2 %v9081_v11  ;;  %1901 = vmatpush.bf16.msra.mxu3 %v9089_v12  ;;  %v9192_v56 = vld [vmem:[%s12349_s8 + $0x264] sm:$0xf0] }
 0x6d8   :  { %1916 = vmatpush.bf16.msrb.mxu0 %v9096_v9  ;;  %1930 = vmatpush.bf16.msra.mxu1 %v9104_v10  ;;  %v7196_v9 = vld [vmem:[%s12349_s8 + $0x368] sm:$0xf0] }
 0x6d9   :  { %1888 = vmatpush.bf16.msrb.mxu2 %v9080_v57  ;;  %1902 = vmatpush.bf16.msra.mxu3 %v9088_v24 }
 0x6dc   :  { %1917 = vmatpush.bf16.msrb.mxu0 %v9095_v13  ;;  %1931 = vmatpush.bf16.msra.mxu1 %v9103_v20  ;;  %v812_v20 = vperm.slane %v10641_v58, 2 }
 0x6dd   :  { %1889 = vmatpush.bf16.msrb.mxu2 %v9079_v16  ;;  %1903 = vmatpush.bf16.msra.mxu3 %v9087_v19  ;;  %v7195_v16 = vor.u32 %v9200_v7, %v7194_v2  ;;  %v7199_v19 = vor.u32 %v9198_v8, %v7196_v9  ;;  %v7170_v2 = vld [vmem:[%s12349_s8 + $0x2a0] sm:$0xf]  ;;  %v7163_v9 = vor.u32 %v9192_v56, %v7162_v54 }
 0x6e0   :  { %1918 = vmatpush.bf16.msrb.mxu0 %v9094_v14  ;;  %1932 = vmatpush.bf16.msra.mxu1 %v9102_v15  ;;  %v7202_v14 = vld [vmem:[%s12349_s8 + $0x3a0] sm:$0xf] }
 0x6e1   :  { %1890 = vmatpush.bf16.msrb.mxu2 %v9078_v23  ;;  %1904 = vmatpush.bf16.msra.mxu3 %v9086_v59  ;;  %v9203_v15 = vld [vmem:[%s12349_s8 + $0x3dc] sm:$0xf0]  ;;  %v7178_v23 = vld [vmem:[%s12349_s8 + $0x2a8] sm:$0xf] }
 0x6e4   :  { %1919 = vmatpush.bf16.msrb.mxu0 %v9093_v21  ;;  %1933 = vmatpush.bf16.msra.mxu1 %v9101_v22  ;;  %v9201_v21 = vld [vmem:[%s12349_s8 + $0x3a4] sm:$0xf] }
 0x6e5   :  { %1891 = vmatpush.bf16.msrb.mxu2 %v9077_v60  ;;  %1905 = vmatpush.bf16.msra.mxu3 %v9085_v28  ;;  %v7204_v22 = vld [vmem:[%s12349_s8 + $0x3e0] sm:$0xf0] }
 0x724   :  { %v10607_v26 = vpop.f32.mrf.mxu0  ;;  %v10609_v27 = vpop.f32.mrf.mxu1 }
 0x729   :  { %v10611_v63 = vpop.f32.mrf.mxu2  ;;  %v10613_v30 = vpop.f32.mrf.mxu3 }
 0x72c   :  { %v10615_v29 = vpop.f32.mrf.mxu0  ;;  %v10617_v31 = vpop.f32.mrf.mxu1 }
 0x731   :  { %v10619_v32 = vpop.f32.mrf.mxu2  ;;  %v10621_v33 = vpop.f32.mrf.mxu3 }
 0x734   :  { %v1349_v36 = vpop.f32.mrf.mxu0  ;;  %v1363_v37 = vpop.f32.mrf.mxu1 }
 0x735   :  { %v1350_v42 = vadd.f32 %v1349_v36, %v1146_v38  ;;  %v1364_v43 = vadd.f32 %v1363_v37, %v1147_v39  ;;  %v9196_v36 = vld [vmem:[%s12349_s8 + $0x2e4] sm:$0xf0]  ;;  %v813_v37 = vperm.slane %v10641_v58, 3 }
 0x737   :  { %v1370_v61 = vmax.f32 %v1350_v42, 0.0  ;;  %v1371_v62 = vmax.f32 %v1364_v43, 0.0  ;;  %v7203_v42 = vor.u32 %v9203_v15, %v7202_v14  ;;  %v7207_v43 = vor.u32 %v9201_v21, %v7204_v22  ;;  %v9191_v21 = vld [vmem:[%s12349_s8 + $0x25c] sm:$0xf0]  ;;  %v9189_v22 = vld [vmem:[%s12349_s8 + $0x224] sm:$0xf] }
 0x738   :  { %v1032_v53 = vadd.f32 %v10617_v31, %v813_v37  ;;  %v1030_v31 = vadd.f32 %v10609_v27, %v813_v37  ;;  %v9193_v27 = vld [vmem:[%s12349_s8 + $0x2a4] sm:$0xf] }
 0x739   :  { %v1321_v40 = vpop.f32.mrf.mxu2  ;;  %v1335_v41 = vpop.f32.mrf.mxu3 }
 0x73a   :  { %v1322_v3 = vadd.f32 %v1321_v40, %v1144_v25  ;;  %v1336_v4 = vadd.f32 %v1335_v41, %v1145_v44  ;;  %v1041_v8 = vmax.f32 %v1032_v53, 0.0  ;;  %v9178_v53 = vld [vmem:[%s12349_s8 + $0xac] sm:$0xf] }
 0x73c   :  { %v1351_v46 = vpop.f32.mrf.mxu0  ;;  %v1365_v47 = vpop.f32.mrf.mxu1  ;;  %v1368_v59 = vmax.f32 %v1322_v3, 0.0  ;;  %v1369_v60 = vmax.f32 %v1336_v4, 0.0  ;;  %v9195_v3 = vld [vmem:[%s12349_s8 + $0x2dc] sm:$0xf0] }
 0x73d   :  { %v1352_v49 = vadd.f32 %v1351_v46, %v1146_v38  ;;  %v1366_v51 = vadd.f32 %v1365_v47, %v1147_v39  ;;  %v9194_v38 = vld [vmem:[%s12349_s8 + $0x2ac] sm:$0xf]  ;;  %v7179_v46 = vor.u32 %v9196_v36, %v7178_v23  ;;  %v9199_v47 = vld [vmem:[%s12349_s8 + $0x35c] sm:$0xf0] }
 0x73e   :  { %v7180_v39 = vld [vmem:[%s12349_s8 + $0x2e8] sm:$0xf0] }
 0x73f   :  { %v1374_v0 = vmax.f32 %v1352_v49, 0.0  ;;  %v1375_v1 = vmax.f32 %v1366_v51, 0.0  ;;  %v7188_v49 = vld [vmem:[%s12349_s8 + $0x360] sm:$0xf0]  ;;  %v1018_v51 = vadd.f32 %v10615_v29, %v812_v20  ;;  %v7164_v29 = vld [vmem:[%s12349_s8 + $0x268] sm:$0xf0] }
 0x740   :  { %v9182_v36 = vld [vmem:[%s12349_s8 + $0x12c] sm:$0xf] }
 0x741   :  { %v1378_v10 = vpack.c.bf16 %v1374_v0, %v1370_v61  ;;  %v1379_v11 = vpack.c.bf16 %v1375_v1, %v1371_v62  ;;  %v1323_v12 = vpop.f32.mrf.mxu2  ;;  %v1337_v13 = vpop.f32.mrf.mxu3  ;;  %v9190_v61 = vld [vmem:[%s12349_s8 + $0x22c] sm:$0xf]  ;;  %v810_v62 = vperm.slane %v10641_v58, 0  ;;  %v7191_v1 = vor.u32 %v9197_v48, %v7188_v49  ;;  %v7114_v49 = vld [vmem:[%s12349_s8 + $0xa8] sm:$0xf] }
 0x742   :  { %v1324_v57 = vadd.f32 %v1323_v12, %v1144_v25  ;;  %v1338_v24 = vadd.f32 %v1337_v13, %v1145_v44  ;;  %v7186_v25 = vld [vmem:[%s12349_s8 + $0x320] sm:$0xf]  ;;  %v1016_v44 = vadd.f32 %v10607_v26, %v812_v20  ;;  %v7183_v26 = vor.u32 %v9194_v38, %v7180_v39  ;;  %v9186_v13 = vld [vmem:[%s12349_s8 + $0x1ac] sm:$0xf] }
 0x743   :  { %1672 = vmatmul.bf16.vlgmr.msra.gmra.mxu0 %v1378_v10  ;;  %1686 = vmatmul.bf16.vlgmr.msrb.gmra.mxu1 %v1379_v11  ;;  %v7187_v0 = vor.u32 %v9199_v47, %v7186_v25  ;;  %v1040_v7 = vmax.f32 %v1018_v51, 0.0  ;;  %v7167_v10 = vor.u32 %v9190_v61, %v7164_v29  ;;  %v7146_v11 = vld [vmem:[%s12349_s8 + $0x1a8] sm:$0xf]  ;;  %v7171_v12 = vor.u32 %v9195_v3, %v7170_v2  ;;  %v7148_v20 = vld [vmem:[%s12349_s8 + $0x1e8] sm:$0xf0] }
 0x744   :  { %v1372_v28 = vmax.f32 %v1324_v57, 0.0  ;;  %v1373_v34 = vmax.f32 %v1338_v24, 0.0  ;;  %2170 = vmatpush.bf16.msra.mxu0 %v7211_v5  ;;  %2184 = vmatpush.bf16.msrb.mxu1 %v7215_v6  ;;  %v1036_v4 = vmax.f32 %v1016_v44, 0.0  ;;  %v811_v5 = vperm.slane %v10641_v58, 1  ;;  %v7172_v6 = vld [vmem:[%s12349_s8 + $0x2e0] sm:$0xf0] }
 0x745   :  { %v9188_v58 = vld [vmem:[%s12349_s8 + $0x1e4] sm:$0xf0]  ;;  %v1037_v57 = vmax.f32 %v1030_v31, 0.0  ;;  %v990_v24 = vadd.f32 %v10619_v32, %v810_v62  ;;  %v7175_v15 = vor.u32 %v9193_v27, %v7172_v6  ;;  %v7156_v32 = vld [vmem:[%s12349_s8 + $0x260] sm:$0xf0] }
 0x746   :  { %v1376_v40 = vpack.c.bf16 %v1372_v28, %v1368_v59  ;;  %v1377_v41 = vpack.c.bf16 %v1373_v34, %v1369_v60  ;;  %v1004_v14 = vadd.f32 %v10621_v33, %v811_v5  ;;  %v1002_v33 = vadd.f32 %v10613_v30, %v811_v5  ;;  %v9184_v34 = vld [vmem:[%s12349_s8 + $0x164] sm:$0xf0]  ;;  %v7132_v30 = vld [vmem:[%s12349_s8 + $0x168] sm:$0xf0]  ;;  %v7140_v25 = vld [vmem:[%s12349_s8 + $0x1e0] sm:$0xf0] }
 0x747   :  { %v7147_v23 = vor.u32 %v9188_v58, %v7146_v11  ;;  %v7151_v59 = vor.u32 %v9186_v13, %v7148_v20  ;;  %v1044_v60 = vpack.c.bf16 %v1040_v7, %v1036_v4  ;;  %v1045_v28 = vpack.c.bf16 %v1041_v8, %v1037_v57  ;;  %v9180_v51 = vld [vmem:[%s12349_s8 + $0xe4] sm:$0xf0]  ;;  %v7122_v61 = vld [vmem:[%s12349_s8 + $0x120] sm:$0xf]  ;;  %v9174_v27 = vld [vmem:[%s12349_s8 + $0x2c] sm:$0xf] }
 0x748   :  { %2171 = vmatpush.bf16.msra.mxu0 %v7195_v16  ;;  %2185 = vmatpush.bf16.msrb.mxu1 %v7199_v19  ;;  %v7154_v16 = vld [vmem:[%s12349_s8 + $0x220] sm:$0xf]  ;;  %v988_v19 = vadd.f32 %v10611_v63, %v810_v62  ;;  %v7130_v63 = vld [vmem:[%s12349_s8 + $0x128] sm:$0xf]  ;;  %v1038_v37 = vmax.f32 %v990_v24, 0.0  ;;  %v1039_v38 = vmax.f32 %v1004_v14, 0.0  ;;  %v7135_v48 = vor.u32 %v9182_v36, %v7132_v30 }
 0x749   :  { %1644 = vmatmul.bf16.vlgmr.msra.gmra.mxu2 %v1376_v40  ;;  %1658 = vmatmul.bf16.vlgmr.msrb.gmra.mxu3 %v1377_v41  ;;  %v7155_v39 = vor.u32 %v9191_v21, %v7154_v16  ;;  %v7159_v40 = vor.u32 %v9189_v22, %v7156_v32  ;;  %v7138_v41 = vld [vmem:[%s12349_s8 + $0x1a0] sm:$0xf]  ;;  %v7131_v47 = vor.u32 %v9184_v34, %v7130_v63  ;;  %v7098_v4 = vld [vmem:[%s12349_s8 + $0x28] sm:$0xf]  ;;  %v7100_v6 = vld [vmem:[%s12349_s8 + $0x68] sm:$0xf0] }
 0x74a   :  { %2142 = vmatpush.bf16.msra.mxu2 %v7203_v42  ;;  %2156 = vmatpush.bf16.msrb.mxu3 %v7207_v43  ;;  %v9187_v42 = vld [vmem:[%s12349_s8 + $0x1dc] sm:$0xf0]  ;;  %v9185_v43 = vld [vmem:[%s12349_s8 + $0x1a4] sm:$0xf]  ;;  %v1034_v44 = vmax.f32 %v988_v19, 0.0  ;;  %v7115_v2 = vor.u32 %v9180_v51, %v7114_v49  ;;  %v7103_v13 = vor.u32 %v9174_v27, %v7100_v6  ;;  %v9228_v22 = vld [vmem:[#allocation5 + $0x2b8] sm:$0xff] }
 0x74b   :  { %v7139_v54 = vor.u32 %v9187_v42, %v7138_v41  ;;  %v7143_v56 = vor.u32 %v9185_v43, %v7140_v25  ;;  %v9183_v62 = vld [vmem:[%s12349_s8 + $0x15c] sm:$0xf0]  ;;  %v9176_v5 = vld [vmem:[%s12349_s8 + $0x64] sm:$0xf0]  ;;  %v9177_v11 = vld [vmem:[%s12349_s8 + $0xa4] sm:$0xf] }
 0x74c   :  { %2172 = vmatpush.bf16.msra.mxu0 %v7179_v46  ;;  %2186 = vmatpush.bf16.msrb.mxu1 %v7183_v26  ;;  %v1035_v46 = vmax.f32 %v1002_v33, 0.0  ;;  %v7116_v26 = vld [vmem:[%s12349_s8 + $0xe8] sm:$0xf0]  ;;  %v1042_v29 = vpack.c.bf16 %v1038_v37, %v1034_v44  ;;  %v7123_v7 = vor.u32 %v9183_v62, %v7122_v61  ;;  %v7099_v58 = vor.u32 %v9176_v5, %v7098_v4  ;;  %v7090_v24 = vld [vmem:[%s12349_s8 + $0x20] sm:$0xf]  ;;  %v9234_v63 = vld [vmem:[#allocation5 + $0x2e8] sm:$0xff] }
 0x74d   :  { %v7119_v3 = vor.u32 %v9178_v53, %v7116_v26  ;;  %v9175_v14 = vld [vmem:[%s12349_s8 + $0x5c] sm:$0xf0]  ;;  %v7092_v16 = vld [vmem:[%s12349_s8 + $0x60] sm:$0xf0]  ;;  %v9236_v32 = vld [vmem:[#allocation5 + $0x2f8] sm:$0xff] }
 0x74e   :  { %2143 = vmatpush.bf16.msra.mxu2 %v7187_v0  ;;  %2157 = vmatpush.bf16.msrb.mxu3 %v7191_v1  ;;  %v1043_v31 = vpack.c.bf16 %v1039_v38, %v1035_v46  ;;  %v9181_v0 = vld [vmem:[%s12349_s8 + $0x124] sm:$0xf]  ;;  %v7091_v19 = vor.u32 %v9175_v14, %v7090_v24  ;;  %v9225_v34 = vld [vmem:[#allocation5 + $0x2a0] sm:$0xff]  ;;  %v9224_v38 = vld [vmem:[#allocation5 + $0x298] sm:$0xff] }
 0x74f   :  { %v7124_v1 = vld [vmem:[%s12349_s8 + $0x160] sm:$0xf0]  ;;  %v9233_v36 = vld [vmem:[#allocation5 + $0x2e0] sm:$0xff]  ;;  %v9218_v41 = vld [vmem:[#allocation5 + $0x268] sm:$0xff] }
 0x750   :  { %2173 = vmatpush.bf16.msra.mxu0 %v7163_v9  ;;  %2187 = vmatpush.bf16.msrb.mxu1 %v7167_v10  ;;  %v7127_v8 = vor.u32 %v9181_v0, %v7124_v1  ;;  %v7106_v9 = vld [vmem:[%s12349_s8 + $0xa0] sm:$0xf]  ;;  %v9209_v25 = vld [vmem:[#allocation5 + $0x220] sm:$0xff]  ;;  %v9222_v46 = vld [vmem:[#allocation5 + $0x288] sm:$0xff] }
 0x751   :  { %v9179_v10 = vld [vmem:[%s12349_s8 + $0xdc] sm:$0xf0]  ;;  %v9217_v44 = vld [vmem:[#allocation5 + $0x260] sm:$0xff]  ;;  %v9216_v49 = vld [vmem:[#allocation5 + $0x258] sm:$0xff] }
 0x752   :  { %2144 = vmatpush.bf16.msra.mxu2 %v7171_v12  ;;  %2158 = vmatpush.bf16.msrb.mxu3 %v7175_v15  ;;  %v7108_v12 = vld [vmem:[%s12349_s8 + $0xe0] sm:$0xf0]  ;;  %v7107_v20 = vor.u32 %v9179_v10, %v7106_v9  ;;  %v9221_v51 = vld [vmem:[#allocation5 + $0x280] sm:$0xff]  ;;  %v7466_v26 = vld [vmem:[%s12349_s8 + $0x3b8] sm:$0xf] }
 0x753   :  { %1920 = vmatmul.bf16.vlgmr.msrb.gmra.mxu0 %v1044_v60  ;;  %1934 = vmatmul.bf16.vlgmr.msra.gmra.mxu1 %v1045_v28  ;;  %v7111_v57 = vor.u32 %v9177_v11, %v7108_v12  ;;  %v9173_v15 = vld [vmem:[%s12349_s8 + $0x24] sm:$0xf]  ;;  %v9212_v60 = vld [vmem:[#allocation5 + $0x238] sm:$0xff]  ;;  %v9229_v53 = vld [vmem:[#allocation5 + $0x2c0] sm:$0xff] }
 0x754   :  { %2174 = vmatpush.bf16.msra.mxu0 %v7147_v23  ;;  %2188 = vmatpush.bf16.msrb.mxu1 %v7151_v59  ;;  %v7095_v21 = vor.u32 %v9173_v15, %v7092_v16  ;;  %v9227_v33 = vld [vmem:[#allocation5 + $0x2b0] sm:$0xff]  ;;  %v9226_v59 = vld [vmem:[#allocation5 + $0x2a8] sm:$0xff]  ;;  %v9220_v28 = vld [vmem:[#allocation5 + $0x278] sm:$0xff] }
 0x755   :  { %v9235_v23 = vld [vmem:[#allocation5 + $0x2f0] sm:$0xff]  ;;  %v7468_v62 = vld [vmem:[%s12349_s8 + $0x3f8] sm:$0xf0]  ;;  %v9264_v4 = vld [vmem:[%s12349_s8 + $0x374] sm:$0xf0] }
 0x756   :  { %2145 = vmatpush.bf16.msra.mxu2 %v7155_v39  ;;  %2159 = vmatpush.bf16.msrb.mxu3 %v7159_v40  ;;  %v9211_v30 = vld [vmem:[#allocation5 + $0x230] sm:$0xff]  ;;  %v9232_v39 = vld [vmem:[#allocation5 + $0x2d8] sm:$0xff]  ;;  %v9210_v40 = vld [vmem:[#allocation5 + $0x228] sm:$0xff] }
 0x757   :  { %v9219_v37 = vld [vmem:[#allocation5 + $0x270] sm:$0xff]  ;;  %v9262_v5 = vld [vmem:[%s12349_s8 + $0x33c] sm:$0xf]  ;;  %v7434_v10 = vld [vmem:[%s12349_s8 + $0x2b8] sm:$0xf] }
 0x758   :  { %2175 = vmatpush.bf16.msra.mxu0 %v7131_v47  ;;  %2189 = vmatpush.bf16.msrb.mxu1 %v7135_v48  ;;  %v9223_v42 = vld [vmem:[#allocation5 + $0x290] sm:$0xff]  ;;  %v9230_v47 = vld [vmem:[#allocation5 + $0x2c8] sm:$0xff]  ;;  %v9208_v48 = vld [vmem:[#allocation5 + $0x218] sm:$0xff] }
 0x759   :  { %1892 = vmatmul.bf16.vlgmr.msrb.gmra.mxu2 %v1042_v29  ;;  %1906 = vmatmul.bf16.vlgmr.msra.gmra.mxu3 %v1043_v31  ;;  %v9231_v43 = vld [vmem:[#allocation5 + $0x2d0] sm:$0xff]  ;;  %v7452_v27 = vld [vmem:[%s12349_s8 + $0x378] sm:$0xf0]  ;;  %v9260_v11 = vld [vmem:[%s12349_s8 + $0x2f4] sm:$0xf0] }
 0x75a   :  { %2146 = vmatpush.bf16.msra.mxu2 %v7139_v54  ;;  %2160 = vmatpush.bf16.msrb.mxu3 %v7143_v56  ;;  %v9268_v54 = vld [vmem:[%s12349_s8 + $0x3f4] sm:$0xf0]  ;;  %v9266_v56 = vld [vmem:[%s12349_s8 + $0x3bc] sm:$0xf]  ;;  %v9207_v1 = vld [vmem:[#allocation5 + $0x210] sm:$0xff] }
 0x75b   :  { %v7467_v31 = vor.u32 %v9268_v54, %v7466_v26  ;;  %v7471_v0 = vor.u32 %v9266_v56, %v7468_v62  ;;  %v9214_v9 = vld [vmem:[#allocation5 + $0x248] sm:$0xff]  ;;  %v9205_v14 = vld [vmem:[#allocation5 + $0x200] sm:$0xff] }
 0x75c   :  { %2176 = vmatpush.bf16.msra.mxu0 %v7115_v2  ;;  %2190 = vmatpush.bf16.msrb.mxu1 %v7119_v3  ;;  %v9215_v2 = vld [vmem:[#allocation5 + $0x250] sm:$0xff]  ;;  %v7450_v3 = vld [vmem:[%s12349_s8 + $0x338] sm:$0xf]  ;;  %v9258_v12 = vld [vmem:[%s12349_s8 + $0x2bc] sm:$0xf] }
 0x75d   :  { %v7451_v6 = vor.u32 %v9264_v4, %v7450_v3  ;;  %v9213_v15 = vld [vmem:[#allocation5 + $0x240] sm:$0xff]  ;;  %v9246_v4 = vld [vmem:[%s12349_s8 + $0x13c] sm:$0xf] }
 0x75e   :  { %2147 = vmatpush.bf16.msra.mxu2 %v7123_v7  ;;  %2161 = vmatpush.bf16.msrb.mxu3 %v7127_v8  ;;  %v7455_v7 = vor.u32 %v9262_v5, %v7452_v27  ;;  %v9206_v8 = vld [vmem:[#allocation5 + $0x208] sm:$0xff]  ;;  %v7458_v16 = vld [vmem:[%s12349_s8 + $0x3b0] sm:$0xf] }
 0x75f   :  { %v7426_v56 = vld [vmem:[%s12349_s8 + $0x2b0] sm:$0xf]  ;;  %v7388_v5 = vld [vmem:[%s12349_s8 + $0x178] sm:$0xf0] }
 0x760   :  { %2177 = vmatpush.bf16.msra.mxu0 %v7099_v58  ;;  %2191 = vmatpush.bf16.msrb.mxu1 %v7103_v13  ;;  %v7436_v58 = vld [vmem:[%s12349_s8 + $0x2f8] sm:$0xf0]  ;;  %v7435_v13 = vor.u32 %v9260_v11, %v7434_v10  ;;  %v9253_v10 = vld [vmem:[%s12349_s8 + $0x234] sm:$0xf] }
 0x762   :  { %2148 = vmatpush.bf16.msra.mxu2 %v7107_v20  ;;  %2162 = vmatpush.bf16.msrb.mxu3 %v7111_v57  ;;  %v7439_v20 = vor.u32 %v9258_v12, %v7436_v58  ;;  %v7412_v12 = vld [vmem:[%s12349_s8 + $0x270] sm:$0xf0]  ;;  %v7370_v58 = vld [vmem:[%s12349_s8 + $0xb8] sm:$0xf] }
 0x763   :  { %2178 = vmatmul.bf16.vlgmr.msra.gmra.mxu0 %v10597_v55  ;;  %2192 = vmatmul.bf16.vlgmr.msrb.gmra.mxu1 %v10597_v55 }
 0x764   :  { %2494 = vmatpush.bf16.msrb.mxu0 %v9228_v22  ;;  %2508 = vmatpush.bf16.msra.mxu1 %v9236_v32  ;;  %v7460_v22 = vld [vmem:[%s12349_s8 + $0x3f0] sm:$0xf0] }
 0x766   :  { %2149 = vmatpush.bf16.msra.mxu2 %v7091_v19  ;;  %2163 = vmatpush.bf16.msrb.mxu3 %v7095_v21  ;;  %v9267_v19 = vld [vmem:[%s12349_s8 + $0x3ec] sm:$0xf0]  ;;  %v9265_v21 = vld [vmem:[%s12349_s8 + $0x3b4] sm:$0xf] }
 0x767   :  { %v7459_v32 = vor.u32 %v9267_v19, %v7458_v16  ;;  %v7372_v16 = vld [vmem:[%s12349_s8 + $0xf8] sm:$0xf0] }
 0x768   :  { %2495 = vmatpush.bf16.msrb.mxu0 %v9227_v33  ;;  %2509 = vmatpush.bf16.msra.mxu1 %v9235_v23  ;;  %v7463_v33 = vor.u32 %v9265_v21, %v7460_v22  ;;  %v7418_v23 = vld [vmem:[%s12349_s8 + $0x238] sm:$0xf] }
 0x769   :  { %2150 = vmatmul.bf16.vlgmr.msra.gmra.mxu2 %v10597_v55  ;;  %2164 = vmatmul.bf16.vlgmr.msrb.gmra.mxu3 %v10597_v55 }
 0x76a   :  { %2466 = vmatpush.bf16.msrb.mxu2 %v9212_v60  ;;  %2480 = vmatpush.bf16.msra.mxu3 %v9220_v28 }
 0x76c   :  { %2496 = vmatpush.bf16.msrb.mxu0 %v9226_v59  ;;  %2510 = vmatpush.bf16.msra.mxu1 %v9234_v63  ;;  %v9256_v59 = vld [vmem:[%s12349_s8 + $0x274] sm:$0xf0] }
 0x76d   :  { %v7419_v28 = vor.u32 %v9256_v59, %v7418_v23  ;;  %v9249_v23 = vld [vmem:[%s12349_s8 + $0x1b4] sm:$0xf] }
 0x76e   :  { %2467 = vmatpush.bf16.msrb.mxu2 %v9211_v30  ;;  %2481 = vmatpush.bf16.msra.mxu3 %v9219_v37 }
 0x770   :  { %2497 = vmatpush.bf16.msrb.mxu0 %v9225_v34  ;;  %2511 = vmatpush.bf16.msra.mxu1 %v9233_v36  ;;  %v9254_v34 = vld [vmem:[%s12349_s8 + $0x23c] sm:$0xf] }
 0x771   :  { %v7420_v36 = vld [vmem:[%s12349_s8 + $0x278] sm:$0xf0] }
 0x772   :  { %2468 = vmatpush.bf16.msrb.mxu2 %v9210_v40  ;;  %2482 = vmatpush.bf16.msra.mxu3 %v9218_v41  ;;  %v7423_v37 = vor.u32 %v9254_v34, %v7420_v36  ;;  %v9261_v40 = vld [vmem:[%s12349_s8 + $0x334] sm:$0xf] }
 0x774   :  { %2498 = vmatpush.bf16.msrb.mxu0 %v9224_v38  ;;  %2512 = vmatpush.bf16.msra.mxu1 %v9232_v39  ;;  %v7442_v38 = vld [vmem:[%s12349_s8 + $0x330] sm:$0xf] }
 0x775   :  { %v9263_v39 = vld [vmem:[%s12349_s8 + $0x36c] sm:$0xf0] }
 0x776   :  { %2469 = vmatpush.bf16.msrb.mxu2 %v9209_v25  ;;  %2483 = vmatpush.bf16.msra.mxu3 %v9217_v44  ;;  %v7443_v41 = vor.u32 %v9263_v39, %v7442_v38  ;;  %v9252_v25 = vld [vmem:[%s12349_s8 + $0x1f4] sm:$0xf0] }
 0x778   :  { %2499 = vmatpush.bf16.msrb.mxu0 %v9223_v42  ;;  %2513 = vmatpush.bf16.msra.mxu1 %v9231_v43  ;;  %v7444_v42 = vld [vmem:[%s12349_s8 + $0x370] sm:$0xf0]  ;;  %v7402_v43 = vld [vmem:[%s12349_s8 + $0x1b8] sm:$0xf] }
 0x77a   :  { %2470 = vmatpush.bf16.msrb.mxu2 %v9208_v48  ;;  %2484 = vmatpush.bf16.msra.mxu3 %v9216_v49  ;;  %v9250_v48 = vld [vmem:[%s12349_s8 + $0x1bc] sm:$0xf] }
 0x77b   :  { %v7404_v49 = vld [vmem:[%s12349_s8 + $0x1f8] sm:$0xf0] }
 0x77c   :  { %2500 = vmatpush.bf16.msrb.mxu0 %v9222_v46  ;;  %2514 = vmatpush.bf16.msra.mxu1 %v9230_v47  ;;  %v7447_v46 = vor.u32 %v9261_v40, %v7444_v42  ;;  %v7403_v47 = vor.u32 %v9252_v25, %v7402_v43  ;;  %v7407_v26 = vor.u32 %v9250_v48, %v7404_v49  ;;  %v7378_v42 = vld [vmem:[%s12349_s8 + $0x130] sm:$0xf]  ;;  %v9245_v25 = vld [vmem:[%s12349_s8 + $0x134] sm:$0xf] }
 0x77d   :  { %v9247_v43 = vld [vmem:[%s12349_s8 + $0x16c] sm:$0xf0] }
 0x77e   :  { %2471 = vmatpush.bf16.msrb.mxu2 %v9207_v1  ;;  %2485 = vmatpush.bf16.msra.mxu3 %v9215_v2  ;;  %v9248_v1 = vld [vmem:[%s12349_s8 + $0x174] sm:$0xf0]  ;;  %v7362_v49 = vld [vmem:[%s12349_s8 + $0xb0] sm:$0xf] }
 0x780   :  { %2501 = vmatpush.bf16.msrb.mxu0 %v9221_v51  ;;  %2515 = vmatpush.bf16.msra.mxu1 %v9229_v53 }
 0x782   :  { %2472 = vmatpush.bf16.msrb.mxu2 %v9206_v8  ;;  %2486 = vmatpush.bf16.msra.mxu3 %v9214_v9  ;;  %v7410_v8 = vld [vmem:[%s12349_s8 + $0x230] sm:$0xf] }
 0x783   :  { %v9255_v9 = vld [vmem:[%s12349_s8 + $0x26c] sm:$0xf0] }
 0x784   :  { %2754 = vmatpush.bf16.msra.mxu0 %v7467_v31  ;;  %2768 = vmatpush.bf16.msrb.mxu1 %v7471_v0  ;;  %v9257_v31 = vld [vmem:[%s12349_s8 + $0x2b4] sm:$0xf]  ;;  %v7386_v0 = vld [vmem:[%s12349_s8 + $0x138] sm:$0xf]  ;;  %v7411_v11 = vor.u32 %v9255_v9, %v7410_v8 }
 0x785   :  { %v7387_v3 = vor.u32 %v9248_v1, %v7386_v0  ;;  %v7346_v1 = vld [vmem:[%s12349_s8 + $0x30] sm:$0xf] }
 0x786   :  { %2473 = vmatpush.bf16.msrb.mxu2 %v9205_v14  ;;  %2487 = vmatpush.bf16.msra.mxu3 %v9213_v15  ;;  %v9242_v15 = vld [vmem:[%s12349_s8 + $0xbc] sm:$0xf] }
 0x787   :  { %v7375_v22 = vor.u32 %v9242_v15, %v7372_v16 }
 0x788   :  { %2755 = vmatpush.bf16.msra.mxu0 %v7451_v6  ;;  %2769 = vmatpush.bf16.msrb.mxu1 %v7455_v7  ;;  %v7391_v7 = vor.u32 %v9246_v4, %v7388_v5  ;;  %v9237_v4 = vld [vmem:[%s12349_s8 + $0x34] sm:$0xf] }
 0x78a   :  { %2726 = vmatpush.bf16.msra.mxu2 %v7459_v32  ;;  %2740 = vmatpush.bf16.msrb.mxu3 %v7463_v33  ;;  %v7394_v32 = vld [vmem:[%s12349_s8 + $0x1b0] sm:$0xf] }
 0x78b   :  { %v9251_v33 = vld [vmem:[%s12349_s8 + $0x1ec] sm:$0xf0] }
 0x78c   :  { %2756 = vmatpush.bf16.msra.mxu0 %v7435_v13  ;;  %2770 = vmatpush.bf16.msrb.mxu1 %v7439_v20  ;;  %v9244_v13 = vld [vmem:[%s12349_s8 + $0xf4] sm:$0xf0]  ;;  %v7415_v20 = vor.u32 %v9253_v10, %v7412_v12  ;;  %v7395_v59 = vor.u32 %v9251_v33, %v7394_v32 }
 0x78d   :  { %v7371_v14 = vor.u32 %v9244_v13, %v7370_v58 }
 0x78e   :  { %2727 = vmatpush.bf16.msra.mxu2 %v7443_v41  ;;  %2741 = vmatpush.bf16.msrb.mxu3 %v7447_v46  ;;  %v7380_v46 = vld [vmem:[%s12349_s8 + $0x170] sm:$0xf0] }
 0x78f   :  { %v7383_v48 = vor.u32 %v9245_v25, %v7380_v46 }
 0x790   :  { %2757 = vmatpush.bf16.msra.mxu0 %v7419_v28  ;;  %2771 = vmatpush.bf16.msrb.mxu1 %v7423_v37  ;;  %v9240_v28 = vld [vmem:[%s12349_s8 + $0x74] sm:$0xf0]  ;;  %v7356_v37 = vld [vmem:[%s12349_s8 + $0x78] sm:$0xf0] }
 0x794   :  { %2758 = vmatpush.bf16.msra.mxu0 %v7403_v47  ;;  %2772 = vmatpush.bf16.msrb.mxu1 %v7407_v26  ;;  %v9243_v26 = vld [vmem:[%s12349_s8 + $0xec] sm:$0xf0] }
 0x795   :  { %v7363_v0 = vor.u32 %v9243_v26, %v7362_v49  ;;  %v9291_v49 = vld [vmem:[#allocation5 + $0x3b0] sm:$0xff] }
 0x796   :  { %v9299_v26 = vld [vmem:[#allocation5 + $0x3f0] sm:$0xff] }
 0x798   :  { %2759 = vmatpush.bf16.msra.mxu0 %v7387_v3  ;;  %2773 = vmatpush.bf16.msrb.mxu1 %v7391_v7  ;;  %v9239_v3 = vld [vmem:[%s12349_s8 + $0x6c] sm:$0xf0] }
 0x79c   :  { %2760 = vmatpush.bf16.msra.mxu0 %v7371_v14  ;;  %2774 = vmatpush.bf16.msrb.mxu1 %v7375_v22 }
 0x7c0   :  { %v10848_v61 = vpop.f32.mrf.mxu0  ;;  %v10850_v29 = vpop.f32.mrf.mxu1 }
 0x7c8   :  { %v10879_v57 = vpop.f32.mrf.mxu0  ;;  %v10881_v24 = vpop.f32.mrf.mxu1 }
 0x7cc   :  { %v1645_v63 = vpop.f32.mrf.mxu2  ;;  %v1659_v60 = vpop.f32.mrf.mxu3 }
 0x7cd   :  { %v1660_v30 = vadd.f32 %v1659_v60, %v1645_v63  ;;  %v7396_v63 = vld [vmem:[%s12349_s8 + $0x1f0] sm:$0xf0]  ;;  %v7354_v60 = vld [vmem:[%s12349_s8 + $0x38] sm:$0xf] }
 0x7ce   :  { %v7399_v34 = vor.u32 %v9249_v23, %v7396_v63  ;;  %v7355_v36 = vor.u32 %v9240_v28, %v7354_v60 }
 0x7cf   :  { %v1674_v44 = vadd.f32 %v10848_v61, %v1660_v30  ;;  %v9259_v61 = vld [vmem:[%s12349_s8 + $0x2ec] sm:$0xf0]  ;;  %v9238_v30 = vld [vmem:[%s12349_s8 + $0x3c] sm:$0xf] }
 0x7d0   :  { %v10932_v51 = vpop.f32.mrf.mxu0  ;;  %v10934_v53 = vpop.f32.mrf.mxu1  ;;  %v7427_v62 = vor.u32 %v9259_v61, %v7426_v56  ;;  %v7359_v40 = vor.u32 %v9238_v30, %v7356_v37  ;;  %2761 = vmatpush.bf16.msra.mxu0 %v7355_v36  ;;  %v1972_v56 = vld [vmem:[%s12350_s9 + $0x8] sm:$0xf] }
 0x7d1   :  { %v1688_v54 = vadd.f32 %v10850_v29, %v1674_v44  ;;  %v7428_v29 = vld [vmem:[%s12349_s8 + $0x2f0] sm:$0xf0]  ;;  %v7379_v44 = vor.u32 %v9247_v43, %v7378_v42  ;;  %v1976_v7 = vperm.slane %v1972_v56, 2  ;;  %v1977_v8 = vperm.slane %v1972_v56, 3 }
 0x7d2   :  { %v7431_v2 = vor.u32 %v9257_v31, %v7428_v29  ;;  %2728 = vmatpush.bf16.msra.mxu2 %v7427_v62  ;;  %2775 = vmatpush.bf16.msrb.mxu1 %v7359_v40  ;;  %v7364_v62 = vld [vmem:[%s12349_s8 + $0xf0] sm:$0xf0]  ;;  %v1974_v28 = vperm.slane %v1972_v56, 0 }
 0x7d4   :  { %v10961_v27 = vpop.f32.mrf.mxu2  ;;  %v10963_v6 = vpop.f32.mrf.mxu3  ;;  %2742 = vmatpush.bf16.msrb.mxu3 %v7431_v2 }
 0x7d6   :  { %2729 = vmatpush.bf16.msra.mxu2 %v7411_v11  ;;  %v7347_v11 = vor.u32 %v9239_v3, %v7346_v1  ;;  %v9287_v1 = vld [vmem:[#allocation5 + $0x390] sm:$0xff] }
 0x7d7   :  { %v9275_v3 = vld [vmem:[#allocation5 + $0x330] sm:$0xff] }
 0x7d8   :  { %v10989_v19 = vpop.f32.mrf.mxu0  ;;  %v10991_v21 = vpop.f32.mrf.mxu1  ;;  %2743 = vmatpush.bf16.msrb.mxu3 %v7415_v20 }
 0x7da   :  { %2730 = vmatpush.bf16.msra.mxu2 %v7395_v59 }
 0x7dc   :  { %v1893_v38 = vpop.f32.mrf.mxu2  ;;  %v1907_v39 = vpop.f32.mrf.mxu3  ;;  %2744 = vmatpush.bf16.msrb.mxu3 %v7399_v34  ;;  %v1975_v34 = vperm.slane %v1972_v56, 1  ;;  %v9298_v56 = vld [vmem:[#allocation5 + $0x3e8] sm:$0xff] }
 0x7dd   :  { %v1894_v41 = vadd.f32 %v1893_v38, %v1688_v54  ;;  %v9241_v54 = vld [vmem:[%s12349_s8 + $0xb4] sm:$0xf] }
 0x7de   :  { %2731 = vmatpush.bf16.msra.mxu2 %v7379_v44  ;;  %v7367_v2 = vor.u32 %v9241_v54, %v7364_v62  ;;  %v9290_v54 = vld [vmem:[#allocation5 + $0x3a8] sm:$0xff]  ;;  %v9288_v62 = vld [vmem:[#allocation5 + $0x398] sm:$0xff] }
 0x7df   :  { %v1908_v47 = vadd.f32 %v1907_v39, %v1894_v41 }
 0x7e0   :  { %v2179_v61 = vpop.f32.mrf.mxu0  ;;  %v2193_v31 = vpop.f32.mrf.mxu1  ;;  %2745 = vmatpush.bf16.msrb.mxu3 %v7383_v48  ;;  %v9300_v48 = vld [vmem:[#allocation5 + $0x3f8] sm:$0xff] }
 0x7e1   :  { %v1922_v29 = vadd.f32 %v10932_v51, %v1908_v47  ;;  %v7348_v51 = vld [vmem:[%s12349_s8 + $0x70] sm:$0xf0]  ;;  %v2180_v58 = vadd.f32 %v2179_v61, %v1976_v7  ;;  %v2194_v13 = vadd.f32 %v2193_v31, %v1977_v8  ;;  %v9292_v47 = vld [vmem:[#allocation5 + $0x3b8] sm:$0xff] }
 0x7e2   :  { %2732 = vmatpush.bf16.msra.mxu2 %v7363_v0  ;;  %v7351_v12 = vor.u32 %v9237_v4, %v7348_v51  ;;  %v9289_v61 = vld [vmem:[#allocation5 + $0x3a0] sm:$0xff]  ;;  %v9284_v0 = vld [vmem:[#allocation5 + $0x378] sm:$0xff]  ;;  %v9283_v4 = vld [vmem:[#allocation5 + $0x370] sm:$0xff] }
 0x7e3   :  { %v11058_v5 = vadd.f32 %v10934_v53, %v1922_v29  ;;  %v2200_v53 = vmax.f32 %v2180_v58, 0.0  ;;  %v2201_v22 = vmax.f32 %v2194_v13, 0.0  ;;  %v9297_v31 = vld [vmem:[#allocation5 + $0x3e0] sm:$0xff]  ;;  %v9296_v29 = vld [vmem:[#allocation5 + $0x3d8] sm:$0xff]  ;;  %v9286_v51 = vld [vmem:[#allocation5 + $0x388] sm:$0xff] }
 0x7e4   :  { %v11060_v9 = vpop.f32.mrf.mxu2  ;;  %v11062_v10 = vpop.f32.mrf.mxu3  ;;  %2746 = vmatpush.bf16.msrb.mxu3 %v7367_v2  ;;  %v9295_v2 = vld [vmem:[#allocation5 + $0x3d0] sm:$0xff]  ;;  %v9293_v58 = vld [vmem:[#allocation5 + $0x3c0] sm:$0xff] }
 0x7e5   :  { %v9273_v13 = vld [vmem:[#allocation5 + $0x320] sm:$0xff] }
 0x7e6   :  { %2733 = vmatpush.bf16.msra.mxu2 %v7347_v11  ;;  %v9282_v11 = vld [vmem:[#allocation5 + $0x368] sm:$0xff] }
 0x7e8   :  { %v2181_v20 = vpop.f32.mrf.mxu0  ;;  %v2195_v14 = vpop.f32.mrf.mxu1  ;;  %2747 = vmatpush.bf16.msrb.mxu3 %v7351_v12  ;;  %v9285_v12 = vld [vmem:[#allocation5 + $0x380] sm:$0xff] }
 0x7e9   :  { %v2182_v15 = vadd.f32 %v2181_v20, %v1976_v7  ;;  %v2196_v16 = vadd.f32 %v2195_v14, %v1977_v8  ;;  %v9294_v7 = vld [vmem:[#allocation5 + $0x3c8] sm:$0xff]  ;;  %v9281_v20 = vld [vmem:[#allocation5 + $0x360] sm:$0xff] }
 0x7ea   :  { %v9274_v8 = vld [vmem:[#allocation5 + $0x328] sm:$0xff] }
 0x7eb   :  { %v2204_v32 = vmax.f32 %v2182_v15, 0.0  ;;  %v2205_v33 = vmax.f32 %v2196_v16, 0.0  ;;  %v9272_v16 = vld [vmem:[#allocation5 + $0x318] sm:$0xff] }
 0x7ec   :  { %v2151_v23 = vpop.f32.mrf.mxu2  ;;  %v2165_v59 = vpop.f32.mrf.mxu3 }
 0x7ed   :  { %v2208_v63 = vpack.c.bf16 %v2204_v32, %v2200_v53  ;;  %v2209_v60 = vpack.c.bf16 %v2205_v33, %v2201_v22  ;;  %v2152_v36 = vadd.f32 %v2151_v23, %v1974_v28  ;;  %v2166_v30 = vadd.f32 %v2165_v59, %v1975_v34  ;;  %v9280_v53 = vld [vmem:[#allocation5 + $0x358] sm:$0xff]  ;;  %v9271_v22 = vld [vmem:[#allocation5 + $0x310] sm:$0xff]  ;;  %v9270_v59 = vld [vmem:[#allocation5 + $0x308] sm:$0xff] }
 0x7ee   :  { %v9279_v32 = vld [vmem:[#allocation5 + $0x350] sm:$0xff] }
 0x7ef   :  { %2502 = vmatmul.bf16.vlgmr.msrb.gmra.mxu0 %v2208_v63  ;;  %2516 = vmatmul.bf16.vlgmr.msra.gmra.mxu1 %v2209_v60  ;;  %v2198_v41 = vmax.f32 %v2152_v36, 0.0  ;;  %v2199_v42 = vmax.f32 %v2166_v30, 0.0  ;;  %v9278_v63 = vld [vmem:[#allocation5 + $0x348] sm:$0xff]  ;;  %v9269_v60 = vld [vmem:[#allocation5 + $0x300] sm:$0xff] }
 0x7f0   :  { %3078 = vmatpush.bf16.msrb.mxu0 %v9292_v47  ;;  %3092 = vmatpush.bf16.msra.mxu1 %v9300_v48 }
 0x7f4   :  { %v2153_v37 = vpop.f32.mrf.mxu2  ;;  %v2167_v38 = vpop.f32.mrf.mxu3  ;;  %3079 = vmatpush.bf16.msrb.mxu0 %v9291_v49  ;;  %3093 = vmatpush.bf16.msra.mxu1 %v9299_v26 }
 0x7f5   :  { %v2154_v39 = vadd.f32 %v2153_v37, %v1974_v28  ;;  %v2168_v40 = vadd.f32 %v2167_v38, %v1975_v34  ;;  %v9277_v28 = vld [vmem:[#allocation5 + $0x340] sm:$0xff]  ;;  %v2556_v34 = vld [vmem:[%s12350_s9 + $0xc] sm:$0xf] }
 0x7f7   :  { %v2202_v43 = vmax.f32 %v2154_v39, 0.0  ;;  %v2203_v25 = vmax.f32 %v2168_v40, 0.0  ;;  %v2560_v39 = vperm.slane %v2556_v34, 2  ;;  %v2561_v40 = vperm.slane %v2556_v34, 3 }
 0x7f8   :  { %3080 = vmatpush.bf16.msrb.mxu0 %v9290_v54  ;;  %3094 = vmatpush.bf16.msra.mxu1 %v9298_v56 }
 0x7f9   :  { %v2206_v44 = vpack.c.bf16 %v2202_v43, %v2198_v41  ;;  %v2207_v46 = vpack.c.bf16 %v2203_v25, %v2199_v42 }
 0x7fb   :  { %2474 = vmatmul.bf16.vlgmr.msrb.gmra.mxu2 %v2206_v44  ;;  %2488 = vmatmul.bf16.vlgmr.msra.gmra.mxu3 %v2207_v46 }
 0x7fc   :  { %3081 = vmatpush.bf16.msrb.mxu0 %v9289_v61  ;;  %3095 = vmatpush.bf16.msra.mxu1 %v9297_v31 }
 0x7fd   :  { %3064 = vmatpush.bf16.msra.mxu3 %v9284_v0 }
 0x7ff   :  { %2762 = vmatmul.bf16.vlgmr.msra.gmra.mxu0 %v10597_v55  ;;  %2776 = vmatmul.bf16.vlgmr.msrb.gmra.mxu1 %v10597_v55 }
 0x800   :  { %3082 = vmatpush.bf16.msrb.mxu0 %v9288_v62  ;;  %3096 = vmatpush.bf16.msra.mxu1 %v9296_v29 }
 0x801   :  { %3065 = vmatpush.bf16.msra.mxu3 %v9283_v4  ;;  %v2559_v4 = vperm.slane %v2556_v34, 1 }
 0x804   :  { %3083 = vmatpush.bf16.msrb.mxu0 %v9287_v1  ;;  %3097 = vmatpush.bf16.msra.mxu1 %v9295_v2 }
 0x805   :  { %3066 = vmatpush.bf16.msra.mxu3 %v9282_v11 }
 0x808   :  { %3084 = vmatpush.bf16.msrb.mxu0 %v9286_v51  ;;  %3098 = vmatpush.bf16.msra.mxu1 %v9294_v7 }
 0x809   :  { %3067 = vmatpush.bf16.msra.mxu3 %v9281_v20 }
 0x80b   :  { %2734 = vmatmul.bf16.vlgmr.msra.gmra.mxu2 %v10597_v55  ;;  %2748 = vmatmul.bf16.vlgmr.msrb.gmra.mxu3 %v10597_v55  ;;  %v9276_v55 = vld [vmem:[#allocation5 + $0x338] sm:$0xff] }
 0x80c   :  { %3050 = vmatpush.bf16.msrb.mxu2 %v9276_v55  ;;  %3085 = vmatpush.bf16.msrb.mxu0 %v9285_v12 }
 0x80d   :  { %3099 = vmatpush.bf16.msra.mxu1 %v9293_v58  ;;  %3068 = vmatpush.bf16.msra.mxu3 %v9280_v53  ;;  %v1662_v53 = vadd.f32 %v10963_v6, %v10961_v27 }
 0x810   :  { %3051 = vmatpush.bf16.msrb.mxu2 %v9275_v3  ;;  %v2558_v3 = vperm.slane %v2556_v34, 0 }
 0x811   :  { %3069 = vmatpush.bf16.msra.mxu3 %v9279_v32 }
 0x814   :  { %3052 = vmatpush.bf16.msrb.mxu2 %v9274_v8 }
 0x815   :  { %3070 = vmatpush.bf16.msra.mxu3 %v9278_v63 }
 0x818   :  { %3053 = vmatpush.bf16.msrb.mxu2 %v9273_v13 }
 0x819   :  { %3071 = vmatpush.bf16.msra.mxu3 %v9277_v28 }
 0x81c   :  { %3054 = vmatpush.bf16.msrb.mxu2 %v9272_v16 }
 0x820   :  { %3055 = vmatpush.bf16.msrb.mxu2 %v9271_v22  ;;  %v1676_v22 = vadd.f32 %v10879_v57, %v1662_v53  ;;  %v9646_v57 = vld [vmem:[%s12352_s11] ss:$0 sm:$0xff]  ;;  %v9316_v53 = vld [vmem:[%s12368_s24 + $0x13c] sm:$0xf] }
 0x822   :  { %v1690_v32 = vadd.f32 %v10881_v24, %v1676_v22 }
 0x824   :  { %3056 = vmatpush.bf16.msrb.mxu2 %v9270_v59  ;;  %v1896_v59 = vadd.f32 %v11060_v9, %v1690_v32  ;;  %v7697_v32 = vld [vmem:[%s12368_s24 + $0x144] sm:$0xf0] }
 0x828   :  { %3057 = vmatpush.bf16.msrb.mxu2 %v9269_v60 }
 0x86c   :  { %v2503_v14 = vpop.f32.mrf.mxu0  ;;  %v2517_v15 = vpop.f32.mrf.mxu1 }
 0x874   :  { %v11068_v33 = vpop.f32.mrf.mxu0  ;;  %v11070_v23 = vpop.f32.mrf.mxu1 }
 0x87c   :  { %v2763_v36 = vpop.f32.mrf.mxu0  ;;  %v2777_v30 = vpop.f32.mrf.mxu1 }
 0x87d   :  { %v2764_v43 = vadd.f32 %v2763_v36, %v2560_v39  ;;  %v2778_v25 = vadd.f32 %v2777_v30, %v2561_v40 }
 0x87e   :  { %v2475_v37 = vpop.f32.mrf.mxu2  ;;  %v2489_v38 = vpop.f32.mrf.mxu3 }
 0x87f   :  { %v2490_v41 = vadd.f32 %v2489_v38, %v2475_v37  ;;  %v2784_v61 = vmax.f32 %v2764_v43, 0.0  ;;  %v2785_v31 = vmax.f32 %v2778_v25, 0.0  ;;  %v1910_v37 = vadd.f32 %v11062_v10, %v1896_v59  ;;  %v7703_v59 = vld [vmem:[%s12368_s24 + $0x140] sm:$0xf] }
 0x881   :  { %v2504_v42 = vadd.f32 %v2503_v14, %v2490_v41  ;;  %v1924_v27 = vadd.f32 %v10989_v19, %v1910_v37 }
 0x883   :  { %v2518_v44 = vadd.f32 %v2517_v15, %v2504_v42  ;;  %v1938_v10 = vadd.f32 %v10991_v21, %v1924_v27 }
 0x884   :  { %v2765_v46 = vpop.f32.mrf.mxu0  ;;  %v2779_v47 = vpop.f32.mrf.mxu1 }
 0x885   :  { %v2522_v48 = vadd.f32 %v2518_v44, %v11058_v5  ;;  %v2766_v49 = vadd.f32 %v2765_v46, %v2560_v39  ;;  %v2780_v26 = vadd.f32 %v2779_v47, %v2561_v40 }
 0x886   :  { %v2477_v54 = vpop.f32.mrf.mxu2  ;;  %v2491_v56 = vpop.f32.mrf.mxu3 }
 0x887   :  { %v2788_v62 = vmax.f32 %v2766_v49, 0.0  ;;  %v2789_v29 = vmax.f32 %v2780_v26, 0.0  ;;  %v2492_v34 = vadd.f32 %v2491_v56, %v2477_v54 }
 0x889   :  { %v2792_v55 = vpack.c.bf16 %v2788_v62, %v2784_v61  ;;  %v2793_v0 = vpack.c.bf16 %v2789_v29, %v2785_v31  ;;  %v2506_v39 = vadd.f32 %v11068_v33, %v2492_v34  ;;  %v9323_v29 = vld [vmem:[%s12368_s24 + $0x170] sm:$0xf0]  ;;  %v7683_v34 = vld [vmem:[%s12368_s24 + $0x120] sm:$0xf] }
 0x88b   :  { %3086 = vmatmul.bf16.vlgmr.msrb.gmra.mxu0 %v2792_v55  ;;  %3100 = vmatmul.bf16.vlgmr.msra.gmra.mxu1 %v2793_v0  ;;  %v2520_v41 = vadd.f32 %v11070_v23, %v2506_v39  ;;  %v9322_v55 = vld [vmem:[%s12368_s24 + $0x16c] sm:$0xf]  ;;  %v7691_v39 = vld [vmem:[%s12368_s24 + $0x128] sm:$0xf] }
 0x88d   :  { %v2523_v19 = vadd.f32 %v2520_v41, %v1938_v10 }
 0x88e   :  { %v2735_v1 = vpop.f32.mrf.mxu2  ;;  %v2749_v2 = vpop.f32.mrf.mxu3 }
 0x88f   :  { %v2736_v51 = vadd.f32 %v2735_v1, %v2558_v3  ;;  %v2750_v7 = vadd.f32 %v2749_v2, %v2559_v4  ;;  %v7721_v1 = vld [vmem:[%s12368_s24 + $0x174] sm:$0xf0]  ;;  %v7727_v2 = vld [vmem:[%s12368_s24 + $0x170] sm:$0xf] }
 0x891   :  { %v2782_v58 = vmax.f32 %v2736_v51, 0.0  ;;  %v2783_v13 = vmax.f32 %v2750_v7, 0.0  ;;  %v7707_v7 = vld [vmem:[%s12368_s24 + $0x150] sm:$0xf] }
 0x896   :  { %v2737_v8 = vpop.f32.mrf.mxu2  ;;  %v2751_v5 = vpop.f32.mrf.mxu3 }
 0x897   :  { %v2738_v11 = vadd.f32 %v2737_v8, %v2558_v3  ;;  %v2752_v12 = vadd.f32 %v2751_v5, %v2559_v4  ;;  %v9324_v3 = vld [vmem:[%s12368_s24 + $0x178] sm:$0xf0]  ;;  %v7724_v4 = vor.u32 %v9322_v55, %v7721_v1  ;;  %v9319_v5 = vld [vmem:[%s12368_s24 + $0x154] sm:$0xf]  ;;  %v9306_v55 = vld [vmem:[%s12368_s24 + $0xe8] sm:$0xf0] }
 0x898   :  { %v7728_v51 = vor.u32 %v9324_v3, %v7727_v2  ;;  %v9320_v8 = vld [vmem:[%s12368_s24 + $0x158] sm:$0xf0]  ;;  %v7635_v2 = vld [vmem:[%s12368_s24 + $0xc0] sm:$0xf]  ;;  %v9302_v3 = vld [vmem:[%s12368_s24 + $0xc8] sm:$0xf0] }
 0x899   :  { %v2786_v20 = vmax.f32 %v2738_v11, 0.0  ;;  %v2787_v14 = vmax.f32 %v2752_v12, 0.0  ;;  %3353 = vmatpush.bf16.msrb.mxu3 %v7724_v4  ;;  %v7708_v11 = vor.u32 %v9320_v8, %v7707_v7  ;;  %v7709_v12 = vld [vmem:[%s12368_s24 + $0x15c] sm:$0xf0]  ;;  %v9301_v4 = vld [vmem:[%s12368_s24 + $0xc4] sm:$0xf]  ;;  %v7636_v7 = vor.u32 %v9302_v3, %v7635_v2 }
 0x89a   :  { %3367 = vmatpush.bf16.msra.mxu0 %v7728_v51  ;;  %v7637_v8 = vld [vmem:[%s12368_s24 + $0xcc] sm:$0xf0] }
 0x89b   :  { %v2790_v15 = vpack.c.bf16 %v2786_v20, %v2782_v58  ;;  %v2791_v16 = vpack.c.bf16 %v2787_v14, %v2783_v13  ;;  %v7715_v58 = vld [vmem:[%s12368_s24 + $0x158] sm:$0xf]  ;;  %v9321_v13 = vld [vmem:[%s12368_s24 + $0x160] sm:$0xf0]  ;;  %v7712_v20 = vor.u32 %v9319_v5, %v7709_v12  ;;  %v7643_v5 = vld [vmem:[%s12368_s24 + $0xc8] sm:$0xf] }
 0x89c   :  { %v7716_v14 = vor.u32 %v9321_v13, %v7715_v58  ;;  %v7640_v58 = vor.u32 %v9301_v4, %v7637_v8 }
 0x89d   :  { %3058 = vmatmul.bf16.vlgmr.msrb.gmra.mxu2 %v2790_v15  ;;  %3072 = vmatmul.bf16.vlgmr.msra.gmra.mxu3 %v2791_v16  ;;  %v7695_v15 = vld [vmem:[%s12368_s24 + $0x138] sm:$0xf]  ;;  %v9317_v16 = vld [vmem:[%s12368_s24 + $0x140] sm:$0xf0] }
 0x89e   :  { %3354 = vmatpush.bf16.msrb.mxu3 %v7712_v20  ;;  %3368 = vmatpush.bf16.msra.mxu0 %v7716_v14  ;;  %v7696_v22 = vor.u32 %v9317_v16, %v7695_v15 }
 0x908   :  { %v3087_v63 = vpop.f32.mrf.mxu0  ;;  %v3101_v30 = vpop.f32.mrf.mxu1 }
 0x910   :  { %v3089_v25 = vpop.f32.mrf.mxu0  ;;  %v3103_v46 = vpop.f32.mrf.mxu1 }
 0x920   :  { %v3059_v60 = vpop.f32.mrf.mxu2  ;;  %v3073_v28 = vpop.f32.mrf.mxu3 }
 0x921   :  { %v3074_v36 = vadd.f32 %v3073_v28, %v3059_v60  ;;  %v7700_v60 = vor.u32 %v9316_v53, %v7697_v32 }
 0x923   :  { %v3088_v38 = vadd.f32 %v3087_v63, %v3074_v36  ;;  %v9318_v63 = vld [vmem:[%s12368_s24 + $0x148] sm:$0xf0]  ;;  %3355 = vmatpush.bf16.msrb.mxu3 %v7700_v60 }
 0x924   :  { %v7704_v28 = vor.u32 %v9318_v63, %v7703_v59  ;;  %v9314_v36 = vld [vmem:[%s12368_s24 + $0x128] sm:$0xf0] }
 0x925   :  { %v3102_v40 = vadd.f32 %v3101_v30, %v3088_v38  ;;  %v9313_v30 = vld [vmem:[%s12368_s24 + $0x124] sm:$0xf]  ;;  %v7684_v37 = vor.u32 %v9314_v36, %v7683_v34  ;;  %v7685_v38 = vld [vmem:[%s12368_s24 + $0x12c] sm:$0xf0] }
 0x926   :  { %3369 = vmatpush.bf16.msra.mxu0 %v7704_v28  ;;  %v7688_v27 = vor.u32 %v9313_v30, %v7685_v38 }
 0x927   :  { %v3106_v6 = vadd.f32 %v3102_v40, %v2522_v48  ;;  %v9315_v40 = vld [vmem:[%s12368_s24 + $0x130] sm:$0xf0] }
 0x928   :  { %v3061_v24 = vpop.f32.mrf.mxu2  ;;  %v3075_v9 = vpop.f32.mrf.mxu3  ;;  %3356 = vmatpush.bf16.msrb.mxu3 %v7688_v27 }
 0x929   :  { %v3076_v42 = vadd.f32 %v3075_v9, %v3061_v24  ;;  %v3108_v43 = vadd.f32 %v3106_v6, %v10591_v17  ;;  %v7692_v6 = vor.u32 %v9315_v40, %v7691_v39  ;;  %v9311_v24 = vld [vmem:[%s12368_s24 + $0x110] sm:$0xf0]  ;;  %v9310_v9 = vld [vmem:[%s12368_s24 + $0x10c] sm:$0xf]  ;;  %v9647_v40 = vld [vmem:[%s12370_s10] ss:$0 sm:$0xff] }
 0x92b   :  { %v3090_v44 = vadd.f32 %v3089_v25, %v3076_v42  ;;  %v3114_v33 = vadd.f32 %v9646_v57, %v3108_v43  ;;  %3370 = vmatpush.bf16.msra.mxu0 %v7692_v6  ;;  %v7673_v42 = vld [vmem:[%s12368_s24 + $0x114] sm:$0xf0]  ;;  %v7679_v43 = vld [vmem:[%s12368_s24 + $0x110] sm:$0xf]  ;;  %v9312_v25 = vld [vmem:[%s12368_s24 + $0x118] sm:$0xf0] }
 0x92c   :  { %v7676_v10 = vor.u32 %v9310_v9, %v7673_v42  ;;  %v9648_v9 = vld [vmem:[%s12354_s13] ss:$0 sm:$0xff] }
 0x92d   :  { %v3104_v47 = vadd.f32 %v3103_v46, %v3090_v44  ;;  %3118 = vadd.xlane.f32.xlu1 %v3114_v33  ;;  %v7680_v44 = vor.u32 %v9312_v25, %v7679_v43  ;;  %v9308_v46 = vld [vmem:[%s12368_s24 + $0xf8] sm:$0xf0] }
 0x92e   :  { %3357 = vmatpush.bf16.msrb.mxu3 %v7676_v10 }
 0x92f   :  { %v3107_v48 = vadd.f32 %v3104_v47, %v2523_v19  ;;  %3371 = vmatpush.bf16.msra.mxu0 %v7680_v44  ;;  %v9307_v47 = vld [vmem:[%s12368_s24 + $0xf4] sm:$0xf] }
 0x931   :  { %v3109_v49 = vadd.f32 %v3107_v48, %v10593_v18  ;;  %v7719_v18 = vld [vmem:[%s12368_s24 + $0x168] sm:$0xf]  ;;  %v7661_v48 = vld [vmem:[%s12368_s24 + $0xfc] sm:$0xf0] }
 0x932   :  { %v7720_v0 = vor.u32 %v9323_v29, %v7719_v18  ;;  %v7649_v18 = vld [vmem:[%s12368_s24 + $0xe4] sm:$0xf0]  ;;  %v7655_v29 = vld [vmem:[%s12368_s24 + $0xe0] sm:$0xf] }
 0x933   :  { %v3115_v26 = vadd.f32 %v9646_v57, %v3109_v49  ;;  %v7671_v57 = vld [vmem:[%s12368_s24 + $0x108] sm:$0xf]  ;;  %v7667_v49 = vld [vmem:[%s12368_s24 + $0xf8] sm:$0xf]  ;;  %v7656_v1 = vor.u32 %v9306_v55, %v7655_v29 }
 0x934   :  { %3339 = vmatpush.bf16.msra.mxu2 %v7720_v0  ;;  %v7672_v41 = vor.u32 %v9311_v24, %v7671_v57 }
 0x935   :  { %3120 = vadd.xlane.f32.xlu2 %v3115_v26 }
 0x938   :  { %3340 = vmatpush.bf16.msra.mxu2 %v7708_v11  ;;  %v9303_v11 = vld [vmem:[%s12368_s24 + $0xd0] sm:$0xf0] }
 0x939   :  { %v7644_v13 = vor.u32 %v9303_v11, %v7643_v5 }
 0x93c   :  { %3341 = vmatpush.bf16.msra.mxu2 %v7696_v22 }
 0x940   :  { %3342 = vmatpush.bf16.msra.mxu2 %v7684_v37 }
 0x944   :  { %3343 = vmatpush.bf16.msra.mxu2 %v7672_v41 }
 0x9a0   :  { %v3119_v54 = vpop.xlane.xlu1 %3118 }
 0x9a1   :  { %v3122_v23 = vmul.f32 %v3119_v54, %v10216_v52  ;;  %v7664_v54 = vor.u32 %v9307_v47, %v7661_v48 }
 0x9a3   :  { %v11092_v56 = vsub.f32 %v3114_v33, %v3122_v23  ;;  %v7659_v33 = vld [vmem:[%s12368_s24 + $0xf0] sm:$0xf]  ;;  %3358 = vmatpush.bf16.msrb.mxu3 %v7664_v54 }
 0x9a4   :  { %v7660_v19 = vor.u32 %v9308_v46, %v7659_v33 }
 0x9a5   :  { %v3126_v17 = vmul.f32 %v11092_v56, %v11092_v56 }
 0x9a6   :  { %3344 = vmatpush.bf16.msra.mxu2 %v7660_v19 }
 0x9a7   :  { %3128 = vadd.xlane.f32.xlu0 %v3126_v17  ;;  %v7647_v17 = vld [vmem:[%s12368_s24 + $0xd8] sm:$0xf] }
 0x9a8   :  { %v3121_v21 = vpop.xlane.xlu2 %3120 }
 0x9a9   :  { %v3123_v61 = vmul.f32 %v3121_v21, %v10216_v52  ;;  %v9305_v21 = vld [vmem:[%s12368_s24 + $0xe0] sm:$0xf0] }
 0x9ab   :  { %v11097_v31 = vsub.f32 %v3115_v26, %v3123_v61  ;;  %v9309_v26 = vld [vmem:[%s12368_s24 + $0x100] sm:$0xf0]  ;;  %v9304_v61 = vld [vmem:[%s12368_s24 + $0xdc] sm:$0xf] }
 0x9ac   :  { %v7668_v23 = vor.u32 %v9309_v26, %v7667_v49  ;;  %v7652_v0 = vor.u32 %v9304_v61, %v7649_v18 }
 0x9ad   :  { %v3127_v62 = vmul.f32 %v11097_v31, %v11097_v31 }
 0x9ae   :  { %3372 = vmatpush.bf16.msra.mxu0 %v7668_v23  ;;  %3359 = vmatpush.bf16.msrb.mxu3 %v7652_v0 }
 0x9af   :  { %3130 = vadd.xlane.f32.xlu1 %v3127_v62  ;;  %v7648_v62 = vor.u32 %v9305_v21, %v7647_v17 }
 0x9b1   :  { %3345 = vmatpush.bf16.msra.mxu2 %v7648_v62 }
 0x9b2   :  { %3373 = vmatpush.bf16.msra.mxu0 %v7656_v1  ;;  %3360 = vmatpush.bf16.msrb.mxu3 %v7640_v58 }
 0x9b5   :  { %3346 = vmatpush.bf16.msra.mxu2 %v7636_v7 }
 0x9b6   :  { %3374 = vmatpush.bf16.msra.mxu0 %v7644_v13 }
 0xa1a   :  { %v3129_v51 = vpop.xlane.xlu0 %3128 }
 0xa1b   :  { %v3132_v12 = vmul.f32 %v3129_v51, %v10216_v52 }
 0xa1d   :  { %v3134_v20 = vadd.f32 1e-05, %v3132_v12 }
 0xa1f   :  { %9695 = vrsqrt.f32 %v3134_v20  ;;  %vm3142_vm3 = vweird.f32 %v3134_v20 }
 0xa22   :  { %v3131_v14 = vpop.xlane.xlu1 %3130 }
 0xa23   :  { %v3133_v15 = vmul.f32 %v3131_v14, %v10216_v52 }
 0xa25   :  { %v9696_v16 = vpop.eup %9695  ;;  %v3135_v53 = vadd.f32 1e-05, %v3133_v15 }
 0xa26   :  { %v3137_v22 = vmul.f32 %v9696_v16, %v3134_v20  ;;  %vm3143_vm2 = vweird.f32 %v9696_v16 }
 0xa27   :  { %9697 = vrsqrt.f32 %v3135_v53  ;;  %vm3144_vm5 = vmor %vm3142_vm3, %vm3143_vm2  ;;  %vm3152_vm7 = vweird.f32 %v3135_v53 }
 0xa28   :  { %v3138_v32 = vmul.f32 %v9696_v16, %v3137_v22 }
 0xa2a   :  { %v3139_v59 = vmul.f32 0.5, %v3138_v32 }
 0xa2c   :  { %v3140_v63 = vsub.f32 1.5, %v3139_v59 }
 0xa2d   :  { %v9698_v60 = vpop.eup %9697 }
 0xa2e   :  { %v3141_v28 = vmul.f32 %v9696_v16, %v3140_v63  ;;  %v3147_v34 = vmul.f32 %v9698_v60, %v3135_v53  ;;  %vm3153_vm6 = vweird.f32 %v9698_v60 }
 0xa2f   :  { %vm3154_vm10 = vmor %vm3152_vm7, %vm3153_vm6  ;;  %vm6413_vm6 = vcmp.lt.s32.totalorder %v10069_v35, 7  ;;  %vm6415_vm7 = vcmask 1041408  }
 0xa30   :  { %v3148_v36 = vmul.f32 %v9698_v60, %v3147_v34  ;;  %v3145_v30 = vsel %vm3144_vm5, %v9696_v16, %v3141_v28  ;;  %vm6246_vm5 = vcmask 1040384  }
 0xa31   :  { %v3156_v39 = vmul.f32 %v3145_v30, %v11092_v56 }
 0xa32   :  { %v3149_v37 = vmul.f32 0.5, %v3148_v36 }
 0xa33   :  { %v3161_v24 = vmul.f32 %v9647_v40, %v3156_v39 }
 0xa34   :  { %v3150_v38 = vsub.f32 1.5, %v3149_v37 }
 0xa35   :  { %v11255_v42 = vadd.f32 %v9648_v9, %v3161_v24 }
 0xa36   :  { %v3151_v27 = vmul.f32 %v9698_v60, %v3150_v38 }
 0xa38   :  { %v3155_v6 = vsel %vm3154_vm10, %v9698_v60, %v3151_v27 }
 0xa39   :  { %v3157_v57 = vmul.f32 %v3155_v6, %v11097_v31  ;;  %v7632_v31 = vld [vmem:[%s12344_s3 + $0x3] sm:$0x7] }
 0xa3a   :  { %v3207_v10 = vperm.slane %v7632_v31, 2  ;;  %v3205_v48 = vperm.slane %v7632_v31, 0  ;;  %v3206_v49 = vperm.slane %v7632_v31, 1 }
 0xa3b   :  { %v3162_v41 = vmul.f32 %v9647_v40, %v3157_v57 }
 0xa3d   :  { %v11257_v43 = vadd.f32 %v9648_v9, %v3162_v41 }
 0xa3f   :  { %v3168_v56 = vpack.c.bf16 %v11257_v43, %v11255_v42 }
 0xa41   :  { %3347 = vmatmul.bf16.vlgmr.msra.gmra.mxu2 %v3168_v56  ;;  %3361 = vmatmul.bf16.vlgmr.msrb.gmra.mxu3 %v3168_v56 }
 0xa42   :  { %3375 = vmatmul.bf16.vlgmr.msra.gmra.mxu0 %v3168_v56 }
 0xabf   :  { %v3376_v25 = vpop.f32.mrf.mxu0 }
 0xac0   :  { %v3377_v47 = vadd.f32 %v3376_v25, %v3207_v10 }
 0xac4   :  { %v3348_v44 = vpop.f32.mrf.mxu2  ;;  %v3362_v33 = vpop.f32.mrf.mxu3 }
 0xac5   :  { %v3349_v17 = vadd.f32 %v3348_v44, %v3205_v48  ;;  %v3363_v21 = vadd.f32 %v3362_v33, %v3206_v49 }
 0xac7   :  { %v3378_v46 = vpop.f32.mrf.mxu0 }
 0xac8   :  { %v3379_v19 = vadd.f32 %v3378_v46, %v3207_v10 }
 0xaca   :  { %v11264_v26 = vpack.c.bf16 %v3379_v19, %v3377_v47 }
 0xacc   :  { %3441 = vmatpush.bf16.msrb.mxu2 %v11264_v26  ;;  %v3350_v54 = vpop.f32.mrf.mxu2  ;;  %v3364_v23 = vpop.f32.mrf.mxu3 }
 0xacd   :  { %v3351_v61 = vadd.f32 %v3350_v54, %v3205_v48  ;;  %v3365_v62 = vadd.f32 %v3364_v23, %v3206_v49 }
 0xacf   :  { %v3381_v18 = vpack.c.bf16 %v3351_v61, %v3349_v17  ;;  %v3382_v29 = vpack.c.bf16 %v3365_v62, %v3363_v21 }
 0xad1   :  { %3524 = vrot.lane.b32.xlu1 %v3382_v29, %s9787_s22  ;;  %3452 = vrot.lane.b32.xlu2 %v3382_v29, %s9789_s21  ;;  %v3388_v55 = vsel %vm317_vm0, %v3382_v29, 0 }
 0xad2   :  { %3449 = vrot.lane.b32.xlu0 %v3381_v18, %s9789_s21  ;;  %3397 = vmatpush.bf16.xpose.msrb.mxu1 %v3388_v55 }
 0xad9   :  { %3593 = vrot.lane.b32.xlu1 %v3381_v18, %s9790_s2  ;;  %3522 = vrot.lane.b32.xlu2 %v3381_v18, %s9787_s22 }
 0xada   :  { %3595 = vrot.lane.b32.xlu0 %v3382_v29, %s9790_s2  ;;  %7729 = vmatmul.msk.bf16.vlgmr.msrb.gmra.mxu1 %vm317_vm0, %v3381_v18 }
 0xb2b   :  { %v3453_v0 = vpop.permute.xlu2 %3452 }
 0xb2c   :  { %v3458_v1 = vsel %vm317_vm0, %v3453_v0, 0 }
 0xb2d   :  { %3467 = vmatpush.bf16.xpose.msra.mxu3 %v3458_v1 }
 0xb33   :  { %v3523_v51 = vpop.permute.xlu2 %3522 }
 0xb43   :  { %v3525_v2 = vpop.permute.xlu1 %3524 }
 0xb44   :  { %v3530_v3 = vsel %vm317_vm0, %v3525_v2, 0  ;;  %v3450_v4 = vpop.permute.xlu0 %3449 }
 0xb45   :  { %7731 = vmatmul.msk.bf16.vlgmr.msra.gmra.mxu3 %vm317_vm0, %v3450_v4  ;;  %3539 = vmatpush.bf16.xpose.msra.mxu1 %v3530_v3 }
 0xb4b   :  { %v3594_v5 = vpop.permute.xlu1 %3593 }
 0xb4c   :  { %v3596_v7 = vpop.permute.xlu0 %3595  ;;  %7733 = vmatmul.msk.bf16.vlgmr.msra.gmra.mxu1 %vm317_vm0, %v3523_v51 }
 0xb4d   :  { %v3601_v8 = vsel %vm317_vm0, %v3596_v7, 0 }
 0xb4e   :  { %3610 = vmatpush.bf16.xpose.msrb.mxu3 %v3601_v8 }
 0xb55   :  { %7735 = vmatmul.msk.bf16.vlgmr.msrb.gmra.mxu3 %vm317_vm0, %v3594_v5 }
 0xb57   :  { %v3399_v11 = vpop.f32.mrf.mxu1 }
 0xb58   :  { %v3404_v12 = vmul.f32 0.17677669, %v3399_v11 }
 0xb5a   :  { %v3406_v58 = vadd.f32 %v3404_v12, %v10073_v45 }
 0xb5c   :  { %v3408_v13 = vsel %vm342_vm4, %v3406_v58, -inf }
 0xb5d   :  { %3409 = vmax.xlane.f32.xlu0 %v3408_v13 }
 0xb5f   :  { %v3401_v20 = vpop.f32.mrf.mxu1 }
 0xb60   :  { %v3405_v14 = vmul.f32 0.17677669, %v3401_v20 }
 0xb62   :  { %v3407_v15 = vadd.f32 %v3405_v14, %v10077_v50 }
 0xb64   :  { %v3411_v16 = vsel %vm342_vm4, %v3407_v15, -inf }
 0xb65   :  { %3412 = vmax.xlane.f32.xlu2 %v3411_v16 }
 0xbc8   :  { %v3469_v53 = vpop.f32.mrf.mxu3 }
 0xbc9   :  { %v3474_v22 = vmul.f32 0.17677669, %v3469_v53  ;;  %v3541_v32 = vpop.f32.mrf.mxu1 }
 0xbca   :  { %v3546_v59 = vmul.f32 0.17677669, %v3541_v32 }
 0xbcb   :  { %v3476_v63 = vadd.f32 %v3474_v22, %v10073_v45 }
 0xbcc   :  { %v3548_v60 = vadd.f32 %v3546_v59, %v10073_v45 }
 0xbcd   :  { %v3478_v28 = vsel %vm342_vm4, %v3476_v63, -inf }
 0xbce   :  { %3479 = vmax.xlane.f32.xlu1 %v3478_v28  ;;  %v3550_v34 = vsel %vm342_vm4, %v3548_v60, -inf }
 0xbcf   :  { %3551 = vmax.xlane.f32.xlu2 %v3550_v34 }
 0xbd0   :  { %v3471_v36 = vpop.f32.mrf.mxu3  ;;  %v3410_v30 = vpop.xlane.xlu0 %3409 }
 0xbd1   :  { %v3475_v37 = vmul.f32 0.17677669, %v3471_v36  ;;  %v3414_v38 = vsub.f32 %v3406_v58, %v3410_v30  ;;  %v3543_v39 = vpop.f32.mrf.mxu1 }
 0xbd2   :  { %v3547_v40 = vmul.f32 0.17677669, %v3543_v39 }
 0xbd3   :  { %v3416_v27 = vmul.f32 1.442695, %v3414_v38  ;;  %v3477_v6 = vadd.f32 %v3475_v37, %v10077_v50 }
 0xbd4   :  { %v3549_v57 = vadd.f32 %v3547_v40, %v10077_v50 }
 0xbd5   :  { %9699 = vpow2.f32 %v3416_v27  ;;  %v3481_v24 = vsel %vm342_vm4, %v3477_v6, -inf }
 0xbd6   :  { %3482 = vmax.xlane.f32.xlu0 %v3481_v24  ;;  %v3553_v9 = vsel %vm342_vm4, %v3549_v57, -inf }
 0xbd7   :  { %3554 = vmax.xlane.f32.xlu1 %v3553_v9 }
 0xbd8   :  { %v3612_v41 = vpop.f32.mrf.mxu3  ;;  %v3413_v56 = vpop.xlane.xlu2 %3412 }
 0xbd9   :  { %v3617_v25 = vmul.f32 0.17677669, %v3612_v41  ;;  %v3415_v31 = vsub.f32 %v3407_v15, %v3413_v56 }
 0xbdb   :  { %v11293_v10 = vpop.eup %9699  ;;  %v3418_v44 = vmul.f32 1.442695, %v3415_v31  ;;  %v3619_v33 = vadd.f32 %v3617_v25, %v10073_v45 }
 0xbdc   :  { %v3420_v47 = vsel %vm342_vm4, %v11293_v10, 0.0 }
 0xbdd   :  { %9701 = vpow2.f32 %v3418_v44  ;;  %v3621_v46 = vsel %vm342_vm4, %v3619_v33, -inf }
 0xbde   :  { %3622 = vmax.xlane.f32.xlu0 %v3621_v46 }
 0xbdf   :  { %3421 = vadd.xlane.f32.xlu1 %v3420_v47 }
 0xbe0   :  { %v3614_v19 = vpop.f32.mrf.mxu3 }
 0xbe1   :  { %v3618_v48 = vmul.f32 0.17677669, %v3614_v19 }
 0xbe3   :  { %v9702_v49 = vpop.eup %9701  ;;  %v3620_v54 = vadd.f32 %v3618_v48, %v10077_v50 }
 0xbe4   :  { %v3423_v23 = vsel %vm342_vm4, %v9702_v49, 0.0 }
 0xbe5   :  { %v3624_v17 = vsel %vm342_vm4, %v3620_v54, -inf }
 0xbe6   :  { %3625 = vmax.xlane.f32.xlu2 %v3624_v17  ;;  %3424 = vadd.xlane.f32.xlu0 %v3423_v23 }
 0xbfa   :  { %3502 = vrot.lane.b32.xlu0 %v11264_v26, %s9789_s21 }
 0xc02   :  { %3644 = vrot.lane.b32.xlu0 %v11264_v26, %s9790_s2 }
 0xc41   :  { %v3480_v45 = vpop.xlane.xlu1 %3479 }
 0xc42   :  { %v3552_v21 = vpop.xlane.xlu2 %3551  ;;  %v3484_v62 = vsub.f32 %v3476_v63, %v3480_v45 }
 0xc43   :  { %v3556_v61 = vsub.f32 %v3548_v60, %v3552_v21 }
 0xc44   :  { %v3486_v29 = vmul.f32 1.442695, %v3484_v62  ;;  %v9332_v62 = vld [vmem:[%s12345_s4 + $0x78] sm:$0xff] }
 0xc45   :  { %v3558_v18 = vmul.f32 1.442695, %v3556_v61  ;;  %3765 = vmatpush.bf16.msrb.mxu1 %v9332_v62  ;;  %v7929_v62 = vld [vmem:[%s12349_s8 + $0x748] sm:$0xf0] }
 0xc47   :  { %9703 = vpow2.f32 %v3558_v18 }
 0xc48   :  { %9705 = vpow2.f32 %v3486_v29 }
 0xc49   :  { %v3483_v50 = vpop.xlane.xlu0 %3482 }
 0xc4a   :  { %v3485_v55 = vsub.f32 %v3477_v6, %v3483_v50  ;;  %v3555_v0 = vpop.xlane.xlu1 %3554 }
 0xc4b   :  { %v3557_v2 = vsub.f32 %v3549_v57, %v3555_v0 }
 0xc4c   :  { %v3488_v1 = vmul.f32 1.442695, %v3485_v55 }
 0xc4d   :  { %v11306_v3 = vpop.eup %9703  ;;  %v3560_v51 = vmul.f32 1.442695, %v3557_v2 }
 0xc4e   :  { %9707 = vpow2.f32 %v3488_v1  ;;  %v3562_v4 = vsel %vm342_vm4, %v11306_v3, 0.0  ;;  %v9706_v5 = vpop.eup %9705 }
 0xc4f   :  { %3563 = vadd.xlane.f32.xlu2 %v3562_v4  ;;  %9709 = vpow2.f32 %v3560_v51  ;;  %v3490_v20 = vsel %vm342_vm4, %v9706_v5, 0.0  ;;  %v9331_v51 = vld [vmem:[%s12345_s4 + $0x70] sm:$0xff] }
 0xc50   :  { %3766 = vmatpush.bf16.msrb.mxu1 %v9331_v51  ;;  %v7903_v51 = vld [vmem:[%s12349_s8 + $0x680] sm:$0xf] }
 0xc51   :  { %v3623_v7 = vpop.xlane.xlu0 %3622 }
 0xc52   :  { %v3627_v8 = vsub.f32 %v3619_v33, %v3623_v7  ;;  %v3422_v58 = vpop.xlane.xlu1 %3421  ;;  %v9330_v7 = vld [vmem:[%s12345_s4 + $0x68] sm:$0xff] }
 0xc54   :  { %v9708_v11 = vpop.eup %9707  ;;  %v3629_v12 = vmul.f32 1.442695, %v3627_v8  ;;  %3767 = vmatpush.bf16.msrb.mxu1 %v9330_v7  ;;  %v9329_v8 = vld [vmem:[%s12345_s4 + $0x60] sm:$0xff] }
 0xc55   :  { %v3493_v13 = vsel %vm342_vm4, %v9708_v11, 0.0  ;;  %v9710_v16 = vpop.eup %9709  ;;  %v9355_v7 = vld [vmem:[%s12349_s8 + $0x6bc] sm:$0xf0] }
 0xc56   :  { %9711 = vpow2.f32 %v3629_v12  ;;  %3494 = vadd.xlane.f32.xlu1 %v3493_v13  ;;  %v3565_v59 = vsel %vm342_vm4, %v9710_v16, 0.0  ;;  %v9326_v12 = vld [vmem:[%s12345_s4 + $0x48] sm:$0xff] }
 0xc57   :  { %3491 = vadd.xlane.f32.xlu2 %v3490_v20  ;;  %9713 = vrcp.f32 %v3422_v58  ;;  %v9325_v58 = vld [vmem:[%s12345_s4 + $0x40] sm:$0xff] }
 0xc58   :  { %3768 = vmatpush.bf16.msrb.mxu1 %v9329_v8  ;;  %v9353_v8 = vld [vmem:[%s12349_s8 + $0x684] sm:$0xf] }
 0xc59   :  { %v3425_v14 = vpop.xlane.xlu0 %3424  ;;  %v3626_v15 = vpop.xlane.xlu2 %3625 }
 0xc5a   :  { %9715 = vrcp.f32 %v3425_v14  ;;  %v3628_v53 = vsub.f32 %v3620_v54, %v3626_v15 }
 0xc5c   :  { %v9712_v22 = vpop.eup %9711  ;;  %v3631_v32 = vmul.f32 1.442695, %v3628_v53 }
 0xc5d   :  { %v9714_v63 = vpop.eup %9713  ;;  %v3633_v60 = vsel %vm342_vm4, %v9712_v22, 0.0 }
 0xc5e   :  { %9717 = vpow2.f32 %v3631_v32  ;;  %3566 = vadd.xlane.f32.xlu1 %v3565_v59  ;;  %v3428_v34 = vmul.f32 %v9714_v63, %v11293_v10 }
 0xc5f   :  { %3634 = vadd.xlane.f32.xlu2 %v3633_v60 }
 0xc60   :  { %v9716_v28 = vpop.eup %9715 }
 0xc61   :  { %v3429_v36 = vmul.f32 %v9716_v28, %v9702_v49 }
 0xc63   :  { %v3430_v30 = vpack.c.bf16 %v3429_v36, %v3428_v34 }
 0xc64   :  { %v9718_v37 = vpop.eup %9717 }
 0xc65   :  { %7730 = vmatmul.msk.bf16.vlgmr.msrb.gmra.mxu2 %vm342_vm4, %v3430_v30  ;;  %v3636_v38 = vsel %vm342_vm4, %v9718_v37, 0.0 }
 0xc66   :  { %3637 = vadd.xlane.f32.xlu1 %v3636_v38  ;;  %v9649_v38 = vld [vmem:[%s12346_s5 + $0x1] ss:$0 sm:$0xff] }
 0xc6c   :  { %v3503_v39 = vpop.permute.xlu0 %3502 }
 0xc6d   :  { %3515 = vmatpush.bf16.msrb.mxu0 %v3503_v39 }
 0xc74   :  { %v3645_v40 = vpop.permute.xlu0 %3644 }
 0xc75   :  { %3657 = vmatpush.bf16.msra.mxu0 %v3645_v40 }
 0xc77   :  { %3573 = vrot.lane.b32.xlu2 %v11264_v26, %s9787_s22 }
 0xcc2   :  { %v3564_v27 = vpop.xlane.xlu2 %3563 }
 0xcc9   :  { %v3495_v6 = vpop.xlane.xlu1 %3494 }
 0xcca   :  { %9719 = vrcp.f32 %v3495_v6  ;;  %v3492_v57 = vpop.xlane.xlu2 %3491 }
 0xccb   :  { %9721 = vrcp.f32 %v3492_v57 }
 0xccc   :  { %9723 = vrcp.f32 %v3564_v27 }
 0xcd0   :  { %v9720_v24 = vpop.eup %9719 }
 0xcd1   :  { %v9722_v9 = vpop.eup %9721  ;;  %v3567_v41 = vpop.xlane.xlu1 %3566  ;;  %v3499_v56 = vmul.f32 %v9720_v24, %v9708_v11  ;;  %v9327_v11 = vld [vmem:[%s12345_s4 + $0x50] sm:$0xff] }
 0xcd2   :  { %v3498_v25 = vmul.f32 %v9722_v9, %v9706_v5  ;;  %9725 = vrcp.f32 %v3567_v41  ;;  %v3635_v31 = vpop.xlane.xlu2 %3634  ;;  %v9724_v44 = vpop.eup %9723  ;;  %v9328_v5 = vld [vmem:[%s12345_s4 + $0x58] sm:$0xff]  ;;  %v7935_v9 = vld [vmem:[%s12349_s8 + $0x780] sm:$0xf] }
 0xcd3   :  { %9727 = vrcp.f32 %v3635_v31  ;;  %v3570_v47 = vmul.f32 %v9724_v44, %v11306_v3  ;;  %3769 = vmatpush.bf16.msrb.mxu1 %v9328_v5  ;;  %v9363_v41 = vld [vmem:[%s12349_s8 + $0x7bc] sm:$0xf0]  ;;  %v9364_v31 = vld [vmem:[%s12349_s8 + $0x7c4] sm:$0xf0]  ;;  %v7904_v5 = vor.u32 %v9355_v7, %v7903_v51 }
 0xcd4   :  { %v3500_v10 = vpack.c.bf16 %v3499_v56, %v3498_v25  ;;  %v9361_v56 = vld [vmem:[%s12349_s8 + $0x784] sm:$0xf]  ;;  %v7936_v25 = vor.u32 %v9363_v41, %v7935_v9  ;;  %v9348_v9 = vld [vmem:[%s12349_s8 + $0x5c4] sm:$0xf0]  ;;  %v7823_v51 = vld [vmem:[%s12349_s8 + $0x400] sm:$0xf] }
 0xcd5   :  { %v9335_v7 = vld [vmem:[%s12349_s8 + $0x43c] sm:$0xf0] }
 0xcd6   :  { %7732 = vmatmul.msk.bf16.vlgmr.msrb.gmra.mxu0 %vm342_vm4, %v3500_v10 }
 0xcd7   :  { %3770 = vmatpush.bf16.msrb.mxu1 %v9327_v11  ;;  %v7905_v11 = vld [vmem:[%s12349_s8 + $0x6c0] sm:$0xf0] }
 0xcd8   :  { %v9726_v33 = vpop.eup %9725 }
 0xcd9   :  { %v3571_v46 = vmul.f32 %v9726_v33, %v9710_v16  ;;  %v3638_v26 = vpop.xlane.xlu1 %3637  ;;  %v9728_v49 = vpop.eup %9727  ;;  %v9362_v33 = vld [vmem:[%s12349_s8 + $0x78c] sm:$0xf] }
 0xcda   :  { %9729 = vrcp.f32 %v3638_v26  ;;  %v3574_v19 = vpop.permute.xlu2 %3573  ;;  %v3641_v17 = vmul.f32 %v9728_v49, %v9712_v22  ;;  %v7919_v26 = vld [vmem:[%s12349_s8 + $0x700] sm:$0xf]  ;;  %v7921_v49 = vld [vmem:[%s12349_s8 + $0x740] sm:$0xf0] }
 0xcdb   :  { %3586 = vmatpush.bf16.msra.mxu2 %v3574_v19  ;;  %v3572_v48 = vpack.c.bf16 %v3571_v46, %v3570_v47  ;;  %3771 = vmatpush.bf16.msrb.mxu1 %v9326_v12  ;;  %v7945_v46 = vld [vmem:[%s12349_s8 + $0x7c8] sm:$0xf0]  ;;  %v9359_v19 = vld [vmem:[%s12349_s8 + $0x73c] sm:$0xf0]  ;;  %v7911_v12 = vld [vmem:[%s12349_s8 + $0x688] sm:$0xf] }
 0xcdc   :  { %v7948_v47 = vor.u32 %v9362_v33, %v7945_v46  ;;  %v7857_v46 = vld [vmem:[%s12349_s8 + $0x540] sm:$0xf0] }
 0xcde   :  { %7734 = vmatmul.msk.bf16.vlgmr.msra.gmra.mxu2 %vm342_vm4, %v3572_v48  ;;  %v9357_v48 = vld [vmem:[%s12349_s8 + $0x704] sm:$0xf] }
 0xcdf   :  { %3772 = vmatpush.bf16.msrb.mxu1 %v9325_v58  ;;  %4040 = vmatpush.bf16.msrb.mxu2 %v7936_v25  ;;  %v9356_v58 = vld [vmem:[%s12349_s8 + $0x6c4] sm:$0xf0]  ;;  %v9346_v25 = vld [vmem:[%s12349_s8 + $0x58c] sm:$0xf] }
 0xce0   :  { %v9730_v54 = vpop.eup %9729 }
 0xce1   :  { %v3642_v23 = vmul.f32 %v9730_v54, %v9718_v37  ;;  %v7920_v54 = vor.u32 %v9359_v19, %v7919_v26  ;;  %v7863_v26 = vld [vmem:[%s12349_s8 + $0x508] sm:$0xf] }
 0xce3   :  { %v3643_v45 = vpack.c.bf16 %v3642_v23, %v3641_v17  ;;  %v7924_v23 = vor.u32 %v9357_v48, %v7921_v49  ;;  %v7927_v17 = vld [vmem:[%s12349_s8 + $0x708] sm:$0xf]  ;;  %4082 = vmatpush.bf16.msra.mxu1 %v7948_v47  ;;  %4041 = vmatpush.bf16.msrb.mxu2 %v7920_v54  ;;  %v9342_v49 = vld [vmem:[%s12349_s8 + $0x50c] sm:$0xf] }
 0xce4   :  { %v9344_v47 = vld [vmem:[%s12349_s8 + $0x544] sm:$0xf0]  ;;  %v7865_v54 = vld [vmem:[%s12349_s8 + $0x548] sm:$0xf0] }
 0xce5   :  { %v7864_v48 = vor.u32 %v9344_v47, %v7863_v26  ;;  %v8072_v26 = vld [vmem:[%s12349_s8 + $0x698] sm:$0xf] }
 0xce6   :  { %7736 = vmatmul.msk.bf16.vlgmr.msra.gmra.mxu0 %vm342_vm4, %v3643_v45  ;;  %v9360_v45 = vld [vmem:[%s12349_s8 + $0x744] sm:$0xf0]  ;;  %v9420_v47 = vld [vmem:[%s12349_s8 + $0x6d4] sm:$0xf0] }
 0xce7   :  { %4042 = vmatpush.bf16.msrb.mxu2 %v7904_v5  ;;  %v7824_v5 = vor.u32 %v9335_v7, %v7823_v51  ;;  %v8058_v51 = vld [vmem:[%s12349_s8 + $0x658] sm:$0xf0] }
 0xce8   :  { %v3443_v21 = vpop.f32.mrf.mxu2 }
 0xcf0   :  { %v3445_v18 = vpop.f32.mrf.mxu2 }
 0xd53   :  { %v3517_v61 = vpop.f32.mrf.mxu0 }
 0xd5b   :  { %v3519_v29 = vpop.f32.mrf.mxu0 }
 0xd5c   :  { %v9628_v50 = vpack.i.bf16 %v3519_v29, %v3517_v61  ;;  %v7928_v61 = vor.u32 %v9360_v45, %v7927_v17  ;;  %v7839_v17 = vld [vmem:[%s12349_s8 + $0x480] sm:$0xf] }
 0xd5d   :  { %v9339_v45 = vld [vmem:[%s12349_s8 + $0x4bc] sm:$0xf0] }
 0xd5e   :  { %9629 = vrot.lane.b32.xlu1 %v9628_v50, %s9790_s2  ;;  %s6236_s2 = sld [smem:[#allocation4]] }
 0xd61   :  { %v3588_v55 = vpop.f32.mrf.mxu2 }
 0xd63   :  { %v3659_v0 = vpop.f32.mrf.mxu0 }
 0xd69   :  { %v3590_v1 = vpop.f32.mrf.mxu2 }
 0xd6a   :  { %v9633_v2 = vpack.i.bf16 %v3590_v1, %v3588_v55 }
 0xd6b   :  { %v3661_v3 = vpop.f32.mrf.mxu0 }
 0xd6c   :  { %9634 = vrot.lane.b32.xlu0 %v9633_v2, %s9787_s22  ;;  %v9638_v4 = vpack.i.bf16 %v3661_v3, %v3659_v0  ;;  %s6237_s22 = scalar_lea.vmem [#allocation2], %s6236_s2 }
 0xd74   :  { %9639 = vrot.lane.b32.xlu0 %v9638_v4, %s9789_s21 }
 0xdd0   :  { %v9630_v20 = vpop.permute.xlu1 %9629 }
 0xdd1   :  { %v9632_v14 = vunpack.i.h.bf16 %v9630_v20  ;;  %v9631_v15 = vunpack.i.l.bf16 %v9630_v20  ;;  %v7912_v20 = vor.u32 %v9356_v58, %v7911_v12  ;;  %v7831_v12 = vld [vmem:[%s12349_s8 + $0x408] sm:$0xf] }
 0xdd2   :  { %v9336_v58 = vld [vmem:[%s12349_s8 + $0x444] sm:$0xf0] }
 0xdd3   :  { %v3689_v32 = vsel %vm317_vm0, %v3445_v18, %v9632_v14  ;;  %v3688_v59 = vsel %vm317_vm0, %v3443_v21, %v9631_v15  ;;  %v9358_v21 = vld [vmem:[%s12349_s8 + $0x70c] sm:$0xf] }
 0xdd4   :  { %v7932_v18 = vor.u32 %v9358_v21, %v7929_v62  ;;  %v9354_v14 = vld [vmem:[%s12349_s8 + $0x68c] sm:$0xf]  ;;  %v9337_v21 = vld [vmem:[%s12349_s8 + $0x484] sm:$0xf] }
 0xdd5   :  { %v7913_v15 = vld [vmem:[%s12349_s8 + $0x6c8] sm:$0xf0]  ;;  %v7841_v62 = vld [vmem:[%s12349_s8 + $0x4c0] sm:$0xf0] }
 0xdd6   :  { %4083 = vmatpush.bf16.msra.mxu1 %v7932_v18  ;;  %v7847_v18 = vld [vmem:[%s12349_s8 + $0x488] sm:$0xf] }
 0xdde   :  { %v9635_v13 = vpop.permute.xlu0 %9634 }
 0xddf   :  { %v9637_v16 = vunpack.i.h.bf16 %v9635_v13  ;;  %v9636_v53 = vunpack.i.l.bf16 %v9635_v13  ;;  %v7908_v13 = vor.u32 %v9353_v8, %v7905_v11  ;;  %v9333_v8 = vld [vmem:[%s12349_s8 + $0x404] sm:$0xf] }
 0xde0   :  { %v7825_v11 = vld [vmem:[%s12349_s8 + $0x440] sm:$0xf0] }
 0xde1   :  { %v3691_v28 = vsel %vm625_vm8, %v3689_v32, %v9637_v16  ;;  %v3690_v34 = vsel %vm625_vm8, %v3688_v59, %v9636_v53  ;;  %v7916_v16 = vor.u32 %v9354_v14, %v7913_v15  ;;  %v7887_v53 = vld [vmem:[%s12349_s8 + $0x600] sm:$0xf]  ;;  %v9349_v32 = vld [vmem:[%s12349_s8 + $0x604] sm:$0xf]  ;;  %v9334_v14 = vld [vmem:[%s12349_s8 + $0x40c] sm:$0xf] }
 0xde2   :  { %v7833_v15 = vld [vmem:[%s12349_s8 + $0x448] sm:$0xf0] }
 0xde3   :  { %4084 = vmatpush.bf16.msra.mxu1 %v7916_v16  ;;  %v8096_v16 = vld [vmem:[%s12349_s8 + $0x790] sm:$0xf] }
 0xde6   :  { %v9640_v22 = vpop.permute.xlu0 %9639 }
 0xde7   :  { %v9642_v63 = vunpack.i.h.bf16 %v9640_v22  ;;  %v9641_v60 = vunpack.i.l.bf16 %v9640_v22  ;;  %v9351_v22 = vld [vmem:[%s12349_s8 + $0x63c] sm:$0xf0] }
 0xde8   :  { %v7888_v59 = vor.u32 %v9351_v22, %v7887_v53  ;;  %v7836_v53 = vor.u32 %v9334_v14, %v7833_v15  ;;  %v9427_v22 = vld [vmem:[%s12349_s8 + $0x7cc] sm:$0xf0]  ;;  %v9412_v14 = vld [vmem:[%s12349_s8 + $0x5d4] sm:$0xf0] }
 0xde9   :  { %v3692_v36 = vsel %vm628_vm9, %v3690_v34, %v9641_v60  ;;  %v3693_v30 = vsel %vm628_vm9, %v3691_v28, %v9642_v63  ;;  %v7889_v63 = vld [vmem:[%s12349_s8 + $0x640] sm:$0xf0]  ;;  %v7895_v60 = vld [vmem:[%s12349_s8 + $0x608] sm:$0xf] }
 0xdea   :  { %v3694_v37 = vpack.c.bf16 %v3693_v30, %v3692_v36  ;;  %v9352_v28 = vld [vmem:[%s12349_s8 + $0x644] sm:$0xf0]  ;;  %v7892_v34 = vor.u32 %v9349_v32, %v7889_v63  ;;  %v9350_v30 = vld [vmem:[%s12349_s8 + $0x60c] sm:$0xf]  ;;  %4043 = vmatpush.bf16.msrb.mxu2 %v7888_v59  ;;  %v9425_v32 = vld [vmem:[%s12349_s8 + $0x794] sm:$0xf]  ;;  %v8097_v63 = vor.u32 %v9427_v22, %v8096_v16 }
 0xdeb   :  { %v7896_v36 = vor.u32 %v9352_v28, %v7895_v60  ;;  %v8098_v59 = vld [vmem:[%s12349_s8 + $0x7d0] sm:$0xf0]  ;;  %v8104_v28 = vld [vmem:[%s12349_s8 + $0x798] sm:$0xf]  ;;  %v9410_v22 = vld [vmem:[%s12349_s8 + $0x59c] sm:$0xf] }
 0xdec   :  { %3773 = vmatmul.bf16.vlgmr.msrb.gmra.mxu1 %v3694_v37  ;;  %v7897_v37 = vld [vmem:[%s12349_s8 + $0x648] sm:$0xf0]  ;;  %v8101_v60 = vor.u32 %v9425_v32, %v8098_v59  ;;  %v8042_v32 = vld [vmem:[%s12349_s8 + $0x5d8] sm:$0xf0]  ;;  %v8016_v59 = vld [vmem:[%s12349_s8 + $0x510] sm:$0xf] }
 0xe69   :  { %v3774_v39 = vpop.f32.mrf.mxu1 }
 0xe6a   :  { %v3775_v40 = vadd.f32 %v9649_v38, %v3774_v39  ;;  %v7871_v39 = vld [vmem:[%s12349_s8 + $0x580] sm:$0xf] }
 0xe6c   :  { %v3779_v27 = vadd.f32 %v3775_v40, %v11255_v42  ;;  %v7937_v42 = vld [vmem:[%s12349_s8 + $0x7c0] sm:$0xf0]  ;;  %v9347_v40 = vld [vmem:[%s12349_s8 + $0x5bc] sm:$0xf0] }
 0xe6d   :  { %v7940_v10 = vor.u32 %v9361_v56, %v7937_v42  ;;  %v7881_v42 = vld [vmem:[%s12349_s8 + $0x5c8] sm:$0xf0] }
 0xe6e   :  { %3785 = vadd.xlane.f32.xlu2 %v3779_v27 }
 0xe6f   :  { %4054 = vmatpush.bf16.msra.mxu3 %v7940_v10  ;;  %v9343_v10 = vld [vmem:[%s12349_s8 + $0x53c] sm:$0xf0] }
 0xe71   :  { %v3776_v6 = vpop.f32.mrf.mxu1 }
 0xe72   :  { %v3777_v57 = vadd.f32 %v9649_v38, %v3776_v6  ;;  %v7900_v38 = vor.u32 %v9350_v30, %v7897_v37  ;;  %v7872_v6 = vor.u32 %v9347_v40, %v7871_v39  ;;  %v8106_v37 = vld [vmem:[%s12349_s8 + $0x7d8] sm:$0xf0]  ;;  %v9423_v39 = vld [vmem:[%s12349_s8 + $0x74c] sm:$0xf0] }
 0xe73   :  { %4055 = vmatpush.bf16.msra.mxu3 %v7924_v23  ;;  %v7868_v23 = vor.u32 %v9342_v49, %v7865_v54  ;;  %v8073_v49 = vor.u32 %v9420_v47, %v8072_v26  ;;  %v9418_v54 = vld [vmem:[%s12349_s8 + $0x69c] sm:$0xf] }
 0xe74   :  { %v3780_v24 = vadd.f32 %v3777_v57, %v11257_v43  ;;  %v7943_v43 = vld [vmem:[%s12349_s8 + $0x788] sm:$0xf]  ;;  %4085 = vmatpush.bf16.msra.mxu1 %v7900_v38  ;;  %v7873_v57 = vld [vmem:[%s12349_s8 + $0x5c0] sm:$0xf0]  ;;  %4044 = vmatpush.bf16.msrb.mxu2 %v7872_v6  ;;  %v8080_v38 = vld [vmem:[%s12349_s8 + $0x710] sm:$0xf] }
 0xe75   :  { %v7944_v44 = vor.u32 %v9364_v31, %v7943_v43  ;;  %v7884_v43 = vor.u32 %v9346_v25, %v7881_v42  ;;  %v7855_v31 = vld [vmem:[%s12349_s8 + $0x500] sm:$0xf]  ;;  %v9421_v6 = vld [vmem:[%s12349_s8 + $0x714] sm:$0xf]  ;;  %v8090_v25 = vld [vmem:[%s12349_s8 + $0x758] sm:$0xf0] }
 0xe76   :  { %3787 = vadd.xlane.f32.xlu0 %v3780_v24  ;;  %v7856_v33 = vor.u32 %v9343_v10, %v7855_v31  ;;  %v8064_v31 = vld [vmem:[%s12349_s8 + $0x690] sm:$0xf] }
 0xe77   :  { %4068 = vmatpush.bf16.msrb.mxu0 %v7944_v44  ;;  %4056 = vmatpush.bf16.msra.mxu3 %v7908_v13  ;;  %v9341_v44 = vld [vmem:[%s12349_s8 + $0x504] sm:$0xf]  ;;  %v7828_v13 = vor.u32 %v9333_v8, %v7825_v11  ;;  %v9419_v10 = vld [vmem:[%s12349_s8 + $0x6cc] sm:$0xf0] }
 0xe78   :  { %4086 = vmatpush.bf16.msra.mxu1 %v7884_v43  ;;  %v7860_v19 = vor.u32 %v9341_v44, %v7857_v46  ;;  %4045 = vmatpush.bf16.msrb.mxu2 %v7856_v33  ;;  %v9417_v44 = vld [vmem:[%s12349_s8 + $0x694] sm:$0xf]  ;;  %v8065_v33 = vor.u32 %v9419_v10, %v8064_v31  ;;  %v9411_v11 = vld [vmem:[%s12349_s8 + $0x5cc] sm:$0xf0]  ;;  %v8008_v31 = vld [vmem:[%s12349_s8 + $0x498] sm:$0xf] }
 0xe79   :  { %v8066_v46 = vld [vmem:[%s12349_s8 + $0x6d0] sm:$0xf0]  ;;  %v9404_v10 = vld [vmem:[%s12349_s8 + $0x4d4] sm:$0xf0] }
 0xe7b   :  { %4069 = vmatpush.bf16.msrb.mxu0 %v7928_v61  ;;  %4057 = vmatpush.bf16.msra.mxu3 %v7892_v34  ;;  %v7840_v61 = vor.u32 %v9339_v45, %v7839_v17  ;;  %v9428_v34 = vld [vmem:[%s12349_s8 + $0x7d4] sm:$0xf0] }
 0xe7c   :  { %4087 = vmatpush.bf16.msra.mxu1 %v7868_v23  ;;  %v8105_v30 = vor.u32 %v9428_v34, %v8104_v28  ;;  %v8074_v23 = vld [vmem:[%s12349_s8 + $0x6d8] sm:$0xf0]  ;;  %v9407_v28 = vld [vmem:[%s12349_s8 + $0x54c] sm:$0xf0]  ;;  %v9405_v34 = vld [vmem:[%s12349_s8 + $0x514] sm:$0xf] }
 0xe7d   :  { %4046 = vmatpush.bf16.msrb.mxu2 %v7840_v61  ;;  %v8077_v45 = vor.u32 %v9418_v54, %v8074_v23  ;;  %v9415_v61 = vld [vmem:[%s12349_s8 + $0x64c] sm:$0xf0]  ;;  %v8009_v54 = vor.u32 %v9404_v10, %v8008_v31  ;;  %v9397_v23 = vld [vmem:[%s12349_s8 + $0x414] sm:$0xf]  ;;  %v9455_v31 = vld [vmem:[#allocation5 + $0x5d0] sm:$0xff] }
 0xe7e   :  { %v9446_v10 = vld [vmem:[#allocation5 + $0x588] sm:$0xff] }
 0xe7f   :  { %4070 = vmatpush.bf16.msrb.mxu0 %v7912_v20  ;;  %v7832_v20 = vor.u32 %v9336_v58, %v7831_v12  ;;  %v9409_v12 = vld [vmem:[%s12349_s8 + $0x594] sm:$0xf] }
 0xe81   :  { %4047 = vmatpush.bf16.msrb.mxu2 %v7824_v5  ;;  %v8032_v5 = vld [vmem:[%s12349_s8 + $0x590] sm:$0xf] }
 0xe82   :  { %v8033_v58 = vor.u32 %v9411_v11, %v8032_v5 }
 0xe83   :  { %4071 = vmatpush.bf16.msrb.mxu0 %v7896_v36  ;;  %v9426_v36 = vld [vmem:[%s12349_s8 + $0x79c] sm:$0xf] }
 0xe84   :  { %v8109_v40 = vor.u32 %v9426_v36, %v8106_v37  ;;  %v8018_v36 = vld [vmem:[%s12349_s8 + $0x550] sm:$0xf0]  ;;  %v9408_v37 = vld [vmem:[%s12349_s8 + $0x554] sm:$0xf0] }
 0xe85   :  { %4375 = vmatpush.bf16.msra.mxu2 %v8097_v63 }
 0xee1   :  { %v3786_v29 = vpop.xlane.xlu2 %3785 }
 0xee2   :  { %v3789_v50 = vmul.f32 %v3786_v29, %v10216_v52  ;;  %v9340_v29 = vld [vmem:[%s12349_s8 + $0x4c4] sm:$0xf0] }
 0xee4   :  { %v11410_v55 = vsub.f32 %v3779_v27, %v3789_v50  ;;  %v9345_v27 = vld [vmem:[%s12349_s8 + $0x584] sm:$0xf]  ;;  %v7844_v50 = vor.u32 %v9337_v21, %v7841_v62  ;;  %v8048_v21 = vld [vmem:[%s12349_s8 + $0x610] sm:$0xf]  ;;  %v9413_v62 = vld [vmem:[%s12349_s8 + $0x614] sm:$0xf] }
 0xee5   :  { %v7876_v41 = vor.u32 %v9345_v27, %v7873_v57  ;;  %v8081_v27 = vor.u32 %v9423_v39, %v8080_v38  ;;  %v8082_v57 = vld [vmem:[%s12349_s8 + $0x750] sm:$0xf0]  ;;  %v9406_v38 = vld [vmem:[%s12349_s8 + $0x51c] sm:$0xf] }
 0xee6   :  { %v3793_v0 = vmul.f32 %v11410_v55, %v11410_v55 }
 0xee7   :  { %4058 = vmatpush.bf16.msra.mxu3 %v7876_v41  ;;  %v9424_v41 = vld [vmem:[%s12349_s8 + $0x754] sm:$0xf0]  ;;  %4376 = vmatpush.bf16.msra.mxu2 %v8081_v27  ;;  %v8017_v27 = vor.u32 %v9407_v28, %v8016_v59  ;;  %v9436_v28 = vld [vmem:[#allocation5 + $0x538] sm:$0xff] }
 0xee8   :  { %3795 = vadd.xlane.f32.xlu1 %v3793_v0  ;;  %v7848_v0 = vor.u32 %v9340_v29, %v7847_v18  ;;  %v8049_v29 = vor.u32 %v9415_v61, %v8048_v21  ;;  %v7992_v21 = vld [vmem:[%s12349_s8 + $0x418] sm:$0xf] }
 0xee9   :  { %v3788_v1 = vpop.xlane.xlu0 %3787  ;;  %v9400_v61 = vld [vmem:[%s12349_s8 + $0x454] sm:$0xf0] }
 0xeea   :  { %v3790_v2 = vmul.f32 %v3788_v1, %v10216_v52  ;;  %v9338_v1 = vld [vmem:[%s12349_s8 + $0x48c] sm:$0xf] }
 0xeeb   :  { %4059 = vmatpush.bf16.msra.mxu3 %v7860_v19  ;;  %4377 = vmatpush.bf16.msra.mxu2 %v8065_v33  ;;  %v9402_v33 = vld [vmem:[%s12349_s8 + $0x49c] sm:$0xf] }
 0xeec   :  { %v11415_v3 = vsub.f32 %v3780_v24, %v3790_v2  ;;  %v7879_v24 = vld [vmem:[%s12349_s8 + $0x588] sm:$0xf]  ;;  %v7849_v2 = vld [vmem:[%s12349_s8 + $0x4c8] sm:$0xf0] }
 0xeed   :  { %v7880_v56 = vor.u32 %v9348_v9, %v7879_v24  ;;  %v8088_v24 = vld [vmem:[%s12349_s8 + $0x718] sm:$0xf]  ;;  %v8085_v9 = vor.u32 %v9421_v6, %v8082_v57  ;;  %v8021_v6 = vor.u32 %v9405_v34, %v8018_v36  ;;  %v8026_v57 = vld [vmem:[%s12349_s8 + $0x558] sm:$0xf0]  ;;  %v9444_v34 = vld [vmem:[#allocation5 + $0x578] sm:$0xff] }
 0xeee   :  { %v3794_v4 = vmul.f32 %v11415_v3, %v11415_v3  ;;  %v8089_v42 = vor.u32 %v9424_v41, %v8088_v24  ;;  %v8000_v24 = vld [vmem:[%s12349_s8 + $0x490] sm:$0xf]  ;;  %v9459_v36 = vld [vmem:[#allocation5 + $0x5f0] sm:$0xff] }
 0xeef   :  { %4072 = vmatpush.bf16.msrb.mxu0 %v7880_v56  ;;  %4060 = vmatpush.bf16.msra.mxu3 %v7844_v50  ;;  %v9422_v56 = vld [vmem:[%s12349_s8 + $0x71c] sm:$0xf]  ;;  %v8050_v50 = vld [vmem:[%s12349_s8 + $0x650] sm:$0xf0] }
 0xef0   :  { %3797 = vadd.xlane.f32.xlu2 %v3794_v4  ;;  %v7852_v4 = vor.u32 %v9338_v1, %v7849_v2  ;;  %v8093_v43 = vor.u32 %v9422_v56, %v8090_v25  ;;  %v8053_v1 = vor.u32 %v9413_v62, %v8050_v50  ;;  %v9416_v2 = vld [vmem:[%s12349_s8 + $0x654] sm:$0xf0]  ;;  %4378 = vmatpush.bf16.msra.mxu2 %v8049_v29  ;;  %v9403_v56 = vld [vmem:[%s12349_s8 + $0x4cc] sm:$0xf0]  ;;  %v9401_v25 = vld [vmem:[%s12349_s8 + $0x494] sm:$0xf] }
 0xef1   :  { %v8001_v26 = vor.u32 %v9403_v56, %v8000_v24  ;;  %v9398_v29 = vld [vmem:[%s12349_s8 + $0x41c] sm:$0xf]  ;;  %v9433_v24 = vld [vmem:[#allocation5 + $0x520] sm:$0xff]  ;;  %v9456_v56 = vld [vmem:[#allocation5 + $0x5d8] sm:$0xff] }
 0xef2   :  { %4088 = vmatpush.bf16.msra.mxu1 %v7852_v4  ;;  %v9414_v4 = vld [vmem:[%s12349_s8 + $0x61c] sm:$0xf] }
 0xef3   :  { %4073 = vmatpush.bf16.msrb.mxu0 %v7864_v48  ;;  %4061 = vmatpush.bf16.msra.mxu3 %v7828_v13  ;;  %v8069_v48 = vor.u32 %v9417_v44, %v8066_v46  ;;  %v8061_v8 = vor.u32 %v9414_v4, %v8058_v51  ;;  %v8034_v13 = vld [vmem:[%s12349_s8 + $0x5d0] sm:$0xf0]  ;;  %v8010_v46 = vld [vmem:[%s12349_s8 + $0x4d8] sm:$0xf0] }
 0xef4   :  { %v8037_v16 = vor.u32 %v9409_v12, %v8034_v13  ;;  %4379 = vmatpush.bf16.msra.mxu2 %v8033_v58  ;;  %v7994_v50 = vld [vmem:[%s12349_s8 + $0x458] sm:$0xf0]  ;;  %v9650_v13 = vld [vmem:[%s12347_s6 + $0x1] ss:$0 sm:$0xff] }
 0xef6   :  { %4089 = vmatpush.bf16.msra.mxu1 %v7836_v53 }
 0xef7   :  { %4074 = vmatpush.bf16.msrb.mxu0 %v7848_v0  ;;  %4389 = vmatpush.bf16.msrb.mxu3 %v8101_v60  ;;  %v8056_v0 = vld [vmem:[%s12349_s8 + $0x618] sm:$0xf]  ;;  %v8045_v60 = vor.u32 %v9410_v22, %v8042_v32 }
 0xef8   :  { %v8057_v7 = vor.u32 %v9416_v2, %v8056_v0  ;;  %4380 = vmatpush.bf16.msra.mxu2 %v8017_v27  ;;  %v9442_v27 = vld [vmem:[#allocation5 + $0x568] sm:$0xff] }
 0xefa   :  { %4417 = vmatpush.bf16.msrb.mxu1 %v8109_v40 }
 0xefb   :  { %4075 = vmatpush.bf16.msrb.mxu0 %v7832_v20  ;;  %4390 = vmatpush.bf16.msrb.mxu3 %v8085_v9  ;;  %v8040_v20 = vld [vmem:[%s12349_s8 + $0x598] sm:$0xf] }
 0xefc   :  { %v8041_v53 = vor.u32 %v9412_v14, %v8040_v20  ;;  %4381 = vmatpush.bf16.msra.mxu2 %v8001_v26  ;;  %v9445_v26 = vld [vmem:[#allocation5 + $0x580] sm:$0xff] }
 0xefe   :  { %4418 = vmatpush.bf16.msrb.mxu1 %v8093_v43  ;;  %v8029_v43 = vor.u32 %v9406_v38, %v8026_v57  ;;  %v9450_v38 = vld [vmem:[#allocation5 + $0x5a8] sm:$0xff]  ;;  %v9457_v57 = vld [vmem:[#allocation5 + $0x5e0] sm:$0xff] }
 0xeff   :  { %4403 = vmatpush.bf16.msra.mxu0 %v8105_v30  ;;  %4391 = vmatpush.bf16.msrb.mxu3 %v8069_v48  ;;  %v8024_v30 = vld [vmem:[%s12349_s8 + $0x518] sm:$0xf]  ;;  %v9399_v48 = vld [vmem:[%s12349_s8 + $0x44c] sm:$0xf0] }
 0xf00   :  { %v8025_v41 = vor.u32 %v9408_v37, %v8024_v30  ;;  %v9435_v30 = vld [vmem:[#allocation5 + $0x530] sm:$0xff] }
 0xf01   :  { %v9443_v37 = vld [vmem:[#allocation5 + $0x570] sm:$0xff] }
 0xf02   :  { %4419 = vmatpush.bf16.msrb.mxu1 %v8077_v45  ;;  %v8013_v45 = vor.u32 %v9402_v33, %v8010_v46  ;;  %v9431_v33 = vld [vmem:[#allocation5 + $0x510] sm:$0xff] }
 0xf03   :  { %4404 = vmatpush.bf16.msra.mxu0 %v8089_v42  ;;  %4392 = vmatpush.bf16.msrb.mxu3 %v8053_v1  ;;  %v8002_v42 = vld [vmem:[%s12349_s8 + $0x4d0] sm:$0xf0]  ;;  %v9439_v46 = vld [vmem:[#allocation5 + $0x550] sm:$0xff] }
 0xf04   :  { %v8005_v47 = vor.u32 %v9401_v25, %v8002_v42  ;;  %v9432_v25 = vld [vmem:[#allocation5 + $0x518] sm:$0xff] }
 0xf05   :  { %v9440_v42 = vld [vmem:[#allocation5 + $0x558] sm:$0xff] }
 0xf06   :  { %4420 = vmatpush.bf16.msrb.mxu1 %v8061_v8  ;;  %v7997_v8 = vor.u32 %v9398_v29, %v7994_v50  ;;  %v9386_v29 = vld [vmem:[#allocation5 + $0x4a8] sm:$0xff] }
 0xf07   :  { %4405 = vmatpush.bf16.msra.mxu0 %v8073_v49  ;;  %4393 = vmatpush.bf16.msrb.mxu3 %v8037_v16  ;;  %v9394_v50 = vld [vmem:[#allocation5 + $0x4e8] sm:$0xff] }
 0xf0a   :  { %4421 = vmatpush.bf16.msrb.mxu1 %v8045_v60  ;;  %v9460_v60 = vld [vmem:[#allocation5 + $0x5f8] sm:$0xff] }
 0xf0b   :  { %4406 = vmatpush.bf16.msra.mxu0 %v8057_v7  ;;  %4394 = vmatpush.bf16.msrb.mxu3 %v8021_v6  ;;  %v7993_v7 = vor.u32 %v9400_v61, %v7992_v21  ;;  %v9449_v6 = vld [vmem:[#allocation5 + $0x5a0] sm:$0xff]  ;;  %v9372_v61 = vld [vmem:[#allocation5 + $0x438] sm:$0xff] }
 0xf0c   :  { %v9437_v21 = vld [vmem:[#allocation5 + $0x540] sm:$0xff] }
 0xf0e   :  { %4422 = vmatpush.bf16.msrb.mxu1 %v8029_v43  ;;  %v9447_v43 = vld [vmem:[#allocation5 + $0x590] sm:$0xff] }
 0xf0f   :  { %4407 = vmatpush.bf16.msra.mxu0 %v8041_v53  ;;  %4395 = vmatpush.bf16.msrb.mxu3 %v8005_v47  ;;  %v9453_v47 = vld [vmem:[#allocation5 + $0x5c0] sm:$0xff] }
 0xf12   :  { %4423 = vmatpush.bf16.msrb.mxu1 %v8013_v45  ;;  %v9429_v45 = vld [vmem:[#allocation5 + $0x500] sm:$0xff] }
 0xf13   :  { %4408 = vmatpush.bf16.msra.mxu0 %v8025_v41  ;;  %v9448_v41 = vld [vmem:[#allocation5 + $0x598] sm:$0xff] }
 0xf16   :  { %4424 = vmatpush.bf16.msrb.mxu1 %v7997_v8  ;;  %v9384_v8 = vld [vmem:[#allocation5 + $0x498] sm:$0xff] }
 0xf17   :  { %4409 = vmatpush.bf16.msra.mxu0 %v8009_v54  ;;  %v9438_v54 = vld [vmem:[#allocation5 + $0x548] sm:$0xff] }
 0xf1b   :  { %4410 = vmatpush.bf16.msra.mxu0 %v7993_v7  ;;  %v9378_v7 = vld [vmem:[#allocation5 + $0x468] sm:$0xff] }
 0xf5b   :  { %v3796_v19 = vpop.xlane.xlu1 %3795 }
 0xf5c   :  { %v3799_v17 = vmul.f32 %v3796_v19, %v10216_v52  ;;  %v7984_v19 = vld [vmem:[%s12349_s8 + $0x410] sm:$0xf] }
 0xf5d   :  { %v7985_v1 = vor.u32 %v9399_v48, %v7984_v19  ;;  %v9388_v19 = vld [vmem:[#allocation5 + $0x4b8] sm:$0xff] }
 0xf5e   :  { %v11645_v18 = vadd.f32 1e-05, %v3799_v17  ;;  %v7986_v17 = vld [vmem:[%s12349_s8 + $0x450] sm:$0xf0]  ;;  %v9396_v48 = vld [vmem:[#allocation5 + $0x4f8] sm:$0xff] }
 0xf5f   :  { %v7989_v2 = vor.u32 %v9397_v23, %v7986_v17  ;;  %4382 = vmatpush.bf16.msra.mxu2 %v7985_v1  ;;  %v9387_v23 = vld [vmem:[#allocation5 + $0x4b0] sm:$0xff] }
 0xf60   :  { %9731 = vrsqrt.f32 %v11645_v18  ;;  %vm3809_vm4 = vweird.f32 %v11645_v18  ;;  %v9395_v17 = vld [vmem:[#allocation5 + $0x4f0] sm:$0xff] }
 0xf61   :  { %4396 = vmatpush.bf16.msrb.mxu3 %v7989_v2  ;;  %v9379_v1 = vld [vmem:[#allocation5 + $0x470] sm:$0xff]  ;;  %v9385_v2 = vld [vmem:[#allocation5 + $0x4a0] sm:$0xff] }
 0xf63   :  { %v3798_v15 = vpop.xlane.xlu2 %3797 }
 0xf64   :  { %v3800_v63 = vmul.f32 %v3798_v15, %v10216_v52  ;;  %v9651_v15 = vld [vmem:[%s12348_s7 + $0x1] ss:$0 sm:$0xff] }
 0xf66   :  { %v11709_v39 = vpop.eup %9731  ;;  %v11711_v40 = vadd.f32 1e-05, %v3800_v63  ;;  %v9452_v63 = vld [vmem:[#allocation5 + $0x5b8] sm:$0xff] }
 0xf67   :  { %v3804_v9 = vmul.f32 %v11709_v39, %v11645_v18  ;;  %vm3810_vm0 = vweird.f32 %v11709_v39 }
 0xf68   :  { %9733 = vrsqrt.f32 %v11711_v40  ;;  %vm3811_vm8 = vmor %vm3809_vm4, %vm3810_vm0  ;;  %vm3819_vm11 = vweird.f32 %v11711_v40 }
 0xf69   :  { %v3805_v44 = vmul.f32 %v11709_v39, %v3804_v9  ;;  %v9441_v9 = vld [vmem:[#allocation5 + $0x560] sm:$0xff] }
 0xf6b   :  { %v3806_v49 = vmul.f32 0.5, %v3805_v44  ;;  %v9454_v44 = vld [vmem:[#allocation5 + $0x5c8] sm:$0xff] }
 0xf6d   :  { %v3807_v62 = vsub.f32 1.5, %v3806_v49  ;;  %v9430_v49 = vld [vmem:[#allocation5 + $0x508] sm:$0xff] }
 0xf6e   :  { %v9734_v0 = vpop.eup %9733 }
 0xf6f   :  { %v3808_v4 = vmul.f32 %v11709_v39, %v3807_v62  ;;  %v3814_v51 = vmul.f32 %v9734_v0, %v11711_v40  ;;  %vm3820_vm9 = vweird.f32 %v9734_v0  ;;  %v9434_v40 = vld [vmem:[#allocation5 + $0x528] sm:$0xff]  ;;  %v9380_v62 = vld [vmem:[#allocation5 + $0x478] sm:$0xff] }
 0xf70   :  { %vm3821_vm12 = vmor %vm3819_vm11, %vm3820_vm9 }
 0xf71   :  { %v3815_v5 = vmul.f32 %v9734_v0, %v3814_v51  ;;  %v3812_v11 = vsel %vm3811_vm8, %v11709_v39, %v3808_v4  ;;  %v9458_v39 = vld [vmem:[#allocation5 + $0x5e8] sm:$0xff]  ;;  %v9393_v4 = vld [vmem:[#allocation5 + $0x4e0] sm:$0xff] }
 0xf72   :  { %v3823_v20 = vmul.f32 %v3812_v11, %v11410_v55  ;;  %v9370_v51 = vld [vmem:[#allocation5 + $0x428] sm:$0xff]  ;;  %v9369_v11 = vld [vmem:[#allocation5 + $0x420] sm:$0xff] }
 0xf73   :  { %v3816_v12 = vmul.f32 0.5, %v3815_v5  ;;  %v9392_v5 = vld [vmem:[#allocation5 + $0x4d8] sm:$0xff] }
 0xf74   :  { %v3828_v16 = vmul.f32 %v9650_v13, %v3823_v20  ;;  %v9368_v20 = vld [vmem:[#allocation5 + $0x418] sm:$0xff] }
 0xf75   :  { %v3817_v58 = vsub.f32 1.5, %v3816_v12  ;;  %v9377_v12 = vld [vmem:[#allocation5 + $0x460] sm:$0xff] }
 0xf76   :  { %v11782_v32 = vadd.f32 %v9651_v15, %v3828_v16  ;;  %v9367_v16 = vld [vmem:[#allocation5 + $0x410] sm:$0xff] }
 0xf77   :  { %v3818_v14 = vmul.f32 %v9734_v0, %v3817_v58  ;;  %v9383_v58 = vld [vmem:[#allocation5 + $0x490] sm:$0xff] }
 0xf79   :  { %v3822_v18 = vsel %vm3821_vm12, %v9734_v0, %v3818_v14  ;;  %v9371_v0 = vld [vmem:[#allocation5 + $0x430] sm:$0xff]  ;;  %v9376_v14 = vld [vmem:[#allocation5 + $0x458] sm:$0xff] }
 0xf7a   :  { %v3824_v53 = vmul.f32 %v3822_v18, %v11415_v3  ;;  %v9451_v3 = vld [vmem:[#allocation5 + $0x5b0] sm:$0xff]  ;;  %v9382_v18 = vld [vmem:[#allocation5 + $0x488] sm:$0xff] }
 0xf7c   :  { %v3829_v22 = vmul.f32 %v9650_v13, %v3824_v53  ;;  %v9391_v13 = vld [vmem:[#allocation5 + $0x4d0] sm:$0xff] }
 0xf7d   :  { %v9375_v53 = vld [vmem:[#allocation5 + $0x450] sm:$0xff] }
 0xf7e   :  { %v11784_v59 = vadd.f32 %v9651_v15, %v3829_v22  ;;  %v9390_v15 = vld [vmem:[#allocation5 + $0x4c8] sm:$0xff]  ;;  %v9381_v22 = vld [vmem:[#allocation5 + $0x480] sm:$0xff] }
 0xf80   :  { %v11788_v55 = vpack.c.bf16 %v11784_v59, %v11782_v32 }
 0xf82   :  { %4048 = vmatmul.bf16.vlgmr.msrb.gmra.mxu2 %v11788_v55  ;;  %4062 = vmatmul.bf16.vlgmr.msra.gmra.mxu3 %v11788_v55 }
 0xf83   :  { %4076 = vmatmul.bf16.vlgmr.msrb.gmra.mxu0 %v11788_v55  ;;  %4090 = vmatmul.bf16.vlgmr.msra.gmra.mxu1 %v11788_v55 }
 0xf84   :  { %4727 = vmatpush.bf16.msrb.mxu0 %v9452_v63  ;;  %4741 = vmatpush.bf16.msra.mxu1 %v9460_v60  ;;  %v9389_v63 = vld [vmem:[#allocation5 + $0x4c0] sm:$0xff]  ;;  %v9366_v60 = vld [vmem:[#allocation5 + $0x408] sm:$0xff] }
 0xf85   :  { %4699 = vmatpush.bf16.msrb.mxu2 %v9436_v28  ;;  %4713 = vmatpush.bf16.msra.mxu3 %v9444_v34  ;;  %v9374_v28 = vld [vmem:[#allocation5 + $0x448] sm:$0xff] }
 0xf88   :  { %4728 = vmatpush.bf16.msrb.mxu0 %v9451_v3  ;;  %4742 = vmatpush.bf16.msra.mxu1 %v9459_v36  ;;  %v9365_v36 = vld [vmem:[#allocation5 + $0x400] sm:$0xff] }
 0xf89   :  { %4700 = vmatpush.bf16.msrb.mxu2 %v9435_v30  ;;  %4714 = vmatpush.bf16.msra.mxu3 %v9443_v37  ;;  %v9373_v30 = vld [vmem:[#allocation5 + $0x440] sm:$0xff] }
 0xf8c   :  { %4729 = vmatpush.bf16.msrb.mxu0 %v9450_v38  ;;  %4743 = vmatpush.bf16.msra.mxu1 %v9458_v39 }
 0xf8d   :  { %4701 = vmatpush.bf16.msrb.mxu2 %v9434_v40  ;;  %4715 = vmatpush.bf16.msra.mxu3 %v9442_v27 }
 0xf90   :  { %4730 = vmatpush.bf16.msrb.mxu0 %v9449_v6  ;;  %4744 = vmatpush.bf16.msra.mxu1 %v9457_v57  ;;  %v7981_v57 = vld [vmem:[%s12350_s9 + $0x14] sm:$0xf] }
 0xf91   :  { %4702 = vmatpush.bf16.msrb.mxu2 %v9433_v24  ;;  %4716 = vmatpush.bf16.msra.mxu3 %v9441_v9 }
 0xf92   :  { %4383 = vmatmul.bf16.vlgmr.msra.gmra.mxu2 %v11788_v55  ;;  %4397 = vmatmul.bf16.vlgmr.msrb.gmra.mxu3 %v11788_v55 }
 0xf93   :  { %4411 = vmatmul.bf16.vlgmr.msra.gmra.mxu0 %v11788_v55  ;;  %4425 = vmatmul.bf16.vlgmr.msrb.gmra.mxu1 %v11788_v55 }
 0xf94   :  { %4731 = vmatpush.bf16.msrb.mxu0 %v9448_v41  ;;  %4745 = vmatpush.bf16.msra.mxu1 %v9456_v56  ;;  %v4209_v41 = vperm.slane %v7981_v57, 2  ;;  %v4210_v56 = vperm.slane %v7981_v57, 3 }
 0xf95   :  { %4703 = vmatpush.bf16.msrb.mxu2 %v9432_v25  ;;  %4717 = vmatpush.bf16.msra.mxu3 %v9440_v42 }
 0xf98   :  { %4732 = vmatpush.bf16.msrb.mxu0 %v9447_v43  ;;  %4746 = vmatpush.bf16.msra.mxu1 %v9455_v31 }
 0xf99   :  { %4704 = vmatpush.bf16.msrb.mxu2 %v9431_v33  ;;  %4718 = vmatpush.bf16.msra.mxu3 %v9439_v46 }
 0xf9c   :  { %4733 = vmatpush.bf16.msrb.mxu0 %v9446_v10  ;;  %4747 = vmatpush.bf16.msra.mxu1 %v9454_v44  ;;  %v4207_v10 = vperm.slane %v7981_v57, 0  ;;  %v4208_v44 = vperm.slane %v7981_v57, 1 }
 0xf9d   :  { %4705 = vmatpush.bf16.msrb.mxu2 %v9430_v49  ;;  %4719 = vmatpush.bf16.msra.mxu3 %v9438_v54  ;;  %v9490_v49 = vld [vmem:[%s12349_s8 + $0x7ac] sm:$0xf] }
 0xf9e   :  { %v8523_v54 = vld [vmem:[%s12349_s8 + $0x7e8] sm:$0xf0] }
 0xfa0   :  { %4734 = vmatpush.bf16.msrb.mxu0 %v9445_v26  ;;  %4748 = vmatpush.bf16.msra.mxu1 %v9453_v47  ;;  %v8521_v26 = vld [vmem:[%s12349_s8 + $0x7a8] sm:$0xf] }
 0xfa1   :  { %4706 = vmatpush.bf16.msrb.mxu2 %v9429_v45  ;;  %4720 = vmatpush.bf16.msra.mxu3 %v9437_v21 }
 0xfa4   :  { %4975 = vmatpush.bf16.msra.mxu0 %v9388_v19  ;;  %4989 = vmatpush.bf16.msrb.mxu1 %v9396_v48  ;;  %v9492_v48 = vld [vmem:[%s12349_s8 + $0x7e4] sm:$0xf0] }
 0xfa5   :  { %4947 = vmatpush.bf16.msra.mxu2 %v9372_v61  ;;  %4961 = vmatpush.bf16.msrb.mxu3 %v9380_v62  ;;  %v8505_v62 = vld [vmem:[%s12349_s8 + $0x728] sm:$0xf] }
 0xfa8   :  { %4976 = vmatpush.bf16.msra.mxu0 %v9387_v23  ;;  %4990 = vmatpush.bf16.msrb.mxu1 %v9395_v17  ;;  %v11832_v23 = vld [vmem:[%s12350_s9 + $0x10] sm:$0xf] }
 0xfa9   :  { %4948 = vmatpush.bf16.msra.mxu2 %v9371_v0  ;;  %4962 = vmatpush.bf16.msrb.mxu3 %v9379_v1  ;;  %v8522_v0 = vor.u32 %v9492_v48, %v8521_v26  ;;  %v8526_v1 = vor.u32 %v9490_v49, %v8523_v54  ;;  %v3875_v57 = vperm.slane %v11832_v23, 3  ;;  %v9480_v48 = vld [vmem:[%s12349_s8 + $0x664] sm:$0xf0]  ;;  %v9478_v49 = vld [vmem:[%s12349_s8 + $0x62c] sm:$0xf]  ;;  %v3872_v54 = vperm.slane %v11832_v23, 0 }
 0xfac   :  { %4977 = vmatpush.bf16.msra.mxu0 %v9386_v29  ;;  %4991 = vmatpush.bf16.msrb.mxu1 %v9394_v50 }
 0xfad   :  { %4949 = vmatpush.bf16.msra.mxu2 %v9370_v51  ;;  %4963 = vmatpush.bf16.msrb.mxu3 %v9378_v7  ;;  %v8507_v51 = vld [vmem:[%s12349_s8 + $0x768] sm:$0xf0] }
 0xfb0   :  { %4978 = vmatpush.bf16.msra.mxu0 %v9385_v2  ;;  %4992 = vmatpush.bf16.msrb.mxu1 %v9393_v4  ;;  %v9488_v2 = vld [vmem:[%s12349_s8 + $0x764] sm:$0xf0]  ;;  %v9486_v4 = vld [vmem:[%s12349_s8 + $0x72c] sm:$0xf] }
 0xfb1   :  { %4950 = vmatpush.bf16.msra.mxu2 %v9369_v11  ;;  %4964 = vmatpush.bf16.msrb.mxu3 %v9377_v12  ;;  %v3874_v12 = vperm.slane %v11832_v23, 2 }
 0xfb4   :  { %4979 = vmatpush.bf16.msra.mxu0 %v9384_v8  ;;  %4993 = vmatpush.bf16.msrb.mxu1 %v9392_v5 }
 0xfb5   :  { %4951 = vmatpush.bf16.msra.mxu2 %v9368_v20  ;;  %4965 = vmatpush.bf16.msrb.mxu3 %v9376_v14  ;;  %v8513_v20 = vld [vmem:[%s12349_s8 + $0x7a0] sm:$0xf] }
 0xfb6   :  { %v9491_v14 = vld [vmem:[%s12349_s8 + $0x7dc] sm:$0xf0] }
 0xfb8   :  { %4980 = vmatpush.bf16.msra.mxu0 %v9383_v58  ;;  %4994 = vmatpush.bf16.msrb.mxu1 %v9391_v13 }
 0xfb9   :  { %4952 = vmatpush.bf16.msra.mxu2 %v9367_v16  ;;  %4966 = vmatpush.bf16.msrb.mxu3 %v9375_v53  ;;  %v9489_v16 = vld [vmem:[%s12349_s8 + $0x7a4] sm:$0xf] }
 0xfba   :  { %v8515_v53 = vld [vmem:[%s12349_s8 + $0x7e0] sm:$0xf0] }
 0xfbc   :  { %4981 = vmatpush.bf16.msra.mxu0 %v9382_v18  ;;  %4995 = vmatpush.bf16.msrb.mxu1 %v9390_v15  ;;  %v8506_v18 = vor.u32 %v9488_v2, %v8505_v62  ;;  %v8510_v15 = vor.u32 %v9486_v4, %v8507_v51  ;;  %v8457_v51 = vld [vmem:[%s12349_s8 + $0x5a8] sm:$0xf] }
 0xfbd   :  { %4953 = vmatpush.bf16.msra.mxu2 %v9366_v60  ;;  %4967 = vmatpush.bf16.msrb.mxu3 %v9374_v28 }
 0xfc0   :  { %4982 = vmatpush.bf16.msra.mxu0 %v9381_v22  ;;  %4996 = vmatpush.bf16.msrb.mxu1 %v9389_v63  ;;  %v8489_v22 = vld [vmem:[%s12349_s8 + $0x6a8] sm:$0xf] }
 0xfc1   :  { %4954 = vmatpush.bf16.msra.mxu2 %v9365_v36  ;;  %4968 = vmatpush.bf16.msrb.mxu3 %v9373_v30  ;;  %v9484_v30 = vld [vmem:[%s12349_s8 + $0x6e4] sm:$0xf0] }
0x1000   :  { %v11798_v34 = vpop.f32.mrf.mxu0  ;;  %v11800_v3 = vpop.f32.mrf.mxu1 }
0x1005   :  { %v11802_v37 = vpop.f32.mrf.mxu2  ;;  %v11804_v38 = vpop.f32.mrf.mxu3 }
0x1008   :  { %v11806_v39 = vpop.f32.mrf.mxu0  ;;  %v11808_v40 = vpop.f32.mrf.mxu1 }
0x1009   :  { %v4080_v26 = vadd.f32 %v11806_v39, %v3874_v12  ;;  %v8475_v39 = vld [vmem:[%s12349_s8 + $0x668] sm:$0xf0] }
0x100a   :  { %v8478_v4 = vor.u32 %v9478_v49, %v8475_v39  ;;  %v9471_v39 = vld [vmem:[%s12349_s8 + $0x55c] sm:$0xf0] }
0x100d   :  { %v11810_v27 = vpop.f32.mrf.mxu2  ;;  %v11812_v6 = vpop.f32.mrf.mxu3 }
0x1010   :  { %v4412_v24 = vpop.f32.mrf.mxu0  ;;  %v4426_v9 = vpop.f32.mrf.mxu1 }
0x1011   :  { %v4413_v43 = vadd.f32 %v4412_v24, %v4209_v41  ;;  %v4427_v31 = vadd.f32 %v4426_v9, %v4210_v56  ;;  %v9482_v24 = vld [vmem:[%s12349_s8 + $0x6ac] sm:$0xf] }
0x1012   :  { %v8491_v9 = vld [vmem:[%s12349_s8 + $0x6e8] sm:$0xf0] }
0x1013   :  { %v4433_v17 = vmax.f32 %v4413_v43, 0.0  ;;  %v4434_v45 = vmax.f32 %v4427_v31, 0.0  ;;  %v8497_v43 = vld [vmem:[%s12349_s8 + $0x720] sm:$0xf]  ;;  %v4078_v31 = vadd.f32 %v11798_v34, %v3874_v12  ;;  %v8494_v34 = vor.u32 %v9482_v24, %v8491_v9 }
0x1014   :  { %v4052_v12 = vadd.f32 %v11810_v27, %v3872_v54  ;;  %v8467_v27 = vld [vmem:[%s12349_s8 + $0x660] sm:$0xf0]  ;;  %v8449_v9 = vld [vmem:[%s12349_s8 + $0x5a0] sm:$0xf] }
0x1015   :  { %v4384_v25 = vpop.f32.mrf.mxu2  ;;  %v4398_v42 = vpop.f32.mrf.mxu3  ;;  %v4098_v62 = vmax.f32 %v4078_v31, 0.0 }
0x1016   :  { %v4385_v29 = vadd.f32 %v4384_v25, %v4207_v10  ;;  %v4399_v50 = vadd.f32 %v4398_v42, %v4208_v44  ;;  %v8514_v25 = vor.u32 %v9491_v14, %v8513_v20  ;;  %v8518_v42 = vor.u32 %v9489_v16, %v8515_v53  ;;  %v8465_v20 = vld [vmem:[%s12349_s8 + $0x620] sm:$0xf] }
0x1017   :  { %v4050_v14 = vadd.f32 %v11802_v37, %v3872_v54  ;;  %v8441_v37 = vld [vmem:[%s12349_s8 + $0x528] sm:$0xf]  ;;  %v8435_v54 = vld [vmem:[%s12349_s8 + $0x560] sm:$0xf0] }
0x1018   :  { %v4414_v33 = vpop.f32.mrf.mxu0  ;;  %v4428_v46 = vpop.f32.mrf.mxu1  ;;  %v4431_v63 = vmax.f32 %v4385_v29, 0.0  ;;  %v4432_v60 = vmax.f32 %v4399_v50, 0.0  ;;  %v3873_v29 = vperm.slane %v11832_v23, 1  ;;  %v8483_v50 = vld [vmem:[%s12349_s8 + $0x6e0] sm:$0xf0] }
0x1019   :  { %v4415_v47 = vadd.f32 %v4414_v33, %v4209_v41  ;;  %v4429_v19 = vadd.f32 %v4428_v46, %v4210_v56  ;;  %v9485_v33 = vld [vmem:[%s12349_s8 + $0x724] sm:$0xf]  ;;  %v9476_v23 = vld [vmem:[%s12349_s8 + $0x5e4] sm:$0xf0] }
0x101a   :  { %v8499_v46 = vld [vmem:[%s12349_s8 + $0x760] sm:$0xf0]  ;;  %v8458_v16 = vor.u32 %v9476_v23, %v8457_v51 }
0x101b   :  { %v4437_v21 = vmax.f32 %v4415_v47, 0.0  ;;  %v4438_v61 = vmax.f32 %v4429_v19, 0.0  ;;  %v4094_v47 = vadd.f32 %v11808_v40, %v3875_v57  ;;  %v8473_v19 = vld [vmem:[%s12349_s8 + $0x628] sm:$0xf]  ;;  %v4092_v40 = vadd.f32 %v11800_v3, %v3875_v57  ;;  %v9481_v3 = vld [vmem:[%s12349_s8 + $0x6a4] sm:$0xf] }
0x101c   :  { %v8474_v2 = vor.u32 %v9480_v48, %v8473_v19  ;;  %v8433_v19 = vld [vmem:[%s12349_s8 + $0x520] sm:$0xf] }
0x101d   :  { %v4441_v7 = vpack.c.bf16 %v4437_v21, %v4433_v17  ;;  %v4442_v8 = vpack.c.bf16 %v4438_v61, %v4434_v45  ;;  %v4386_v5 = vpop.f32.mrf.mxu2  ;;  %v4400_v11 = vpop.f32.mrf.mxu3  ;;  %v8502_v45 = vor.u32 %v9485_v33, %v8499_v46  ;;  %v8481_v21 = vld [vmem:[%s12349_s8 + $0x6a0] sm:$0xf]  ;;  %v9468_v33 = vld [vmem:[%s12349_s8 + $0x4e4] sm:$0xf0]  ;;  %v9466_v46 = vld [vmem:[%s12349_s8 + $0x4ac] sm:$0xf] }
0x101e   :  { %v4387_v58 = vadd.f32 %v4386_v5, %v4207_v10  ;;  %v4401_v13 = vadd.f32 %v4400_v11, %v4208_v44  ;;  %v8490_v10 = vor.u32 %v9484_v30, %v8489_v22  ;;  %v9487_v44 = vld [vmem:[%s12349_s8 + $0x75c] sm:$0xf0]  ;;  %v8459_v5 = vld [vmem:[%s12349_s8 + $0x5e8] sm:$0xf0]  ;;  %v4099_v11 = vmax.f32 %v4092_v40, 0.0 }
0x101f   :  { %4735 = vmatmul.bf16.vlgmr.msrb.gmra.mxu0 %v4441_v7  ;;  %4749 = vmatmul.bf16.vlgmr.msra.gmra.mxu1 %v4442_v8  ;;  %v8498_v17 = vor.u32 %v9487_v44, %v8497_v43  ;;  %v9483_v61 = vld [vmem:[%s12349_s8 + $0x6dc] sm:$0xf0]  ;;  %v9474_v8 = vld [vmem:[%s12349_s8 + $0x5ac] sm:$0xf]  ;;  %v8425_v44 = vld [vmem:[%s12349_s8 + $0x4a8] sm:$0xf] }
0x1020   :  { %v4435_v28 = vmax.f32 %v4387_v58, 0.0  ;;  %v4436_v36 = vmax.f32 %v4401_v13, 0.0  ;;  %5233 = vmatpush.bf16.msrb.mxu0 %v8522_v0  ;;  %5247 = vmatpush.bf16.msra.mxu1 %v8526_v1  ;;  %v4102_v0 = vmax.f32 %v4080_v26, 0.0  ;;  %v4103_v1 = vmax.f32 %v4094_v47, 0.0  ;;  %v8427_v26 = vld [vmem:[%s12349_s8 + $0x4e8] sm:$0xf0] }
0x1021   :  { %v8482_v7 = vor.u32 %v9483_v61, %v8481_v21  ;;  %v4066_v58 = vadd.f32 %v11812_v6, %v3873_v29  ;;  %v8486_v13 = vor.u32 %v9481_v3, %v8483_v50  ;;  %v4064_v6 = vadd.f32 %v11804_v38, %v3873_v29  ;;  %v8443_v38 = vld [vmem:[%s12349_s8 + $0x568] sm:$0xf0]  ;;  %v9469_v40 = vld [vmem:[%s12349_s8 + $0x524] sm:$0xf]  ;;  %v8409_v21 = vld [vmem:[%s12349_s8 + $0x428] sm:$0xf] }
0x1022   :  { %v4439_v41 = vpack.c.bf16 %v4435_v28, %v4431_v63  ;;  %v4440_v56 = vpack.c.bf16 %v4436_v36, %v4432_v60  ;;  %v8462_v53 = vor.u32 %v9474_v8, %v8459_v5  ;;  %v4106_v22 = vpack.c.bf16 %v4102_v0, %v4098_v62  ;;  %v9472_v60 = vld [vmem:[%s12349_s8 + $0x564] sm:$0xf0]  ;;  %v9470_v28 = vld [vmem:[%s12349_s8 + $0x52c] sm:$0xf]  ;;  %v8417_v0 = vld [vmem:[%s12349_s8 + $0x4a0] sm:$0xf] }
0x1023   :  { %v4107_v63 = vpack.c.bf16 %v4103_v1, %v4099_v11  ;;  %v4100_v36 = vmax.f32 %v4052_v12, 0.0  ;;  %v4101_v30 = vmax.f32 %v4066_v58, 0.0  ;;  %v4097_v43 = vmax.f32 %v4064_v6, 0.0  ;;  %v9464_v61 = vld [vmem:[%s12349_s8 + $0x464] sm:$0xf0]  ;;  %v9514_v6 = vld [vmem:[#allocation5 + $0x6a8] sm:$0xff] }
0x1024   :  { %5234 = vmatpush.bf16.msrb.mxu0 %v8506_v18  ;;  %5248 = vmatpush.bf16.msra.mxu1 %v8510_v15  ;;  %v9479_v18 = vld [vmem:[%s12349_s8 + $0x65c] sm:$0xf0]  ;;  %v9477_v15 = vld [vmem:[%s12349_s8 + $0x624] sm:$0xf]  ;;  %v8442_v31 = vor.u32 %v9472_v60, %v8441_v37  ;;  %v9462_v62 = vld [vmem:[%s12349_s8 + $0x42c] sm:$0xf]  ;;  %v8434_v3 = vor.u32 %v9471_v39, %v8433_v19  ;;  %v8438_v50 = vor.u32 %v9469_v40, %v8435_v54 }
0x1025   :  { %4707 = vmatmul.bf16.vlgmr.msrb.gmra.mxu2 %v4439_v41  ;;  %4721 = vmatmul.bf16.vlgmr.msra.gmra.mxu3 %v4440_v56  ;;  %v8466_v57 = vor.u32 %v9479_v18, %v8465_v20  ;;  %v8470_v24 = vor.u32 %v9477_v15, %v8467_v27  ;;  %v9475_v41 = vld [vmem:[%s12349_s8 + $0x5dc] sm:$0xf0]  ;;  %v9473_v56 = vld [vmem:[%s12349_s8 + $0x5a4] sm:$0xf]  ;;  %v4105_v49 = vpack.c.bf16 %v4101_v30, %v4097_v43  ;;  %v8411_v29 = vld [vmem:[%s12349_s8 + $0x468] sm:$0xf0] }
0x1026   :  { %5205 = vmatpush.bf16.msrb.mxu2 %v8514_v25  ;;  %5219 = vmatpush.bf16.msra.mxu3 %v8518_v42  ;;  %v8451_v25 = vld [vmem:[%s12349_s8 + $0x5e0] sm:$0xf0]  ;;  %v4096_v42 = vmax.f32 %v4050_v14, 0.0  ;;  %v8450_v47 = vor.u32 %v9475_v41, %v8449_v9  ;;  %v9467_v1 = vld [vmem:[%s12349_s8 + $0x4dc] sm:$0xf0]  ;;  %v8410_v51 = vor.u32 %v9464_v61, %v8409_v21  ;;  %v9516_v14 = vld [vmem:[#allocation5 + $0x6b8] sm:$0xff] }
0x1027   :  { %v8418_v23 = vor.u32 %v9467_v1, %v8417_v0  ;;  %v8401_v5 = vld [vmem:[%s12349_s8 + $0x420] sm:$0xf]  ;;  %v9461_v12 = vld [vmem:[%s12349_s8 + $0x424] sm:$0xf]  ;;  %v9524_v18 = vld [vmem:[#allocation5 + $0x6f8] sm:$0xff] }
0x1028   :  { %5235 = vmatpush.bf16.msrb.mxu0 %v8490_v10  ;;  %5249 = vmatpush.bf16.msra.mxu1 %v8494_v34  ;;  %v8446_v10 = vor.u32 %v9470_v28, %v8443_v38  ;;  %v8454_v34 = vor.u32 %v9473_v56, %v8451_v25  ;;  %v4104_v48 = vpack.c.bf16 %v4100_v36, %v4096_v42  ;;  %v9463_v11 = vld [vmem:[%s12349_s8 + $0x45c] sm:$0xf0]  ;;  %v8403_v58 = vld [vmem:[%s12349_s8 + $0x460] sm:$0xf0]  ;;  %v9508_v37 = vld [vmem:[#allocation5 + $0x678] sm:$0xff] }
0x1029   :  { %v8406_v20 = vor.u32 %v9461_v12, %v8403_v58  ;;  %v9515_v15 = vld [vmem:[#allocation5 + $0x6b0] sm:$0xff]  ;;  %v9512_v38 = vld [vmem:[#allocation5 + $0x698] sm:$0xff]  ;;  %v9498_v30 = vld [vmem:[#allocation5 + $0x628] sm:$0xff] }
0x102a   :  { %5206 = vmatpush.bf16.msrb.mxu2 %v8498_v17  ;;  %5220 = vmatpush.bf16.msra.mxu3 %v8502_v45  ;;  %v8426_v17 = vor.u32 %v9468_v33, %v8425_v44  ;;  %v8430_v45 = vor.u32 %v9466_v46, %v8427_v26  ;;  %v9523_v27 = vld [vmem:[#allocation5 + $0x6f0] sm:$0xff]  ;;  %v9520_v36 = vld [vmem:[#allocation5 + $0x6d8] sm:$0xff]  ;;  %v9497_v41 = vld [vmem:[#allocation5 + $0x620] sm:$0xff] }
0x102b   :  { %v9499_v60 = vld [vmem:[#allocation5 + $0x630] sm:$0xff]  ;;  %v9505_v56 = vld [vmem:[#allocation5 + $0x660] sm:$0xff]  ;;  %v9510_v25 = vld [vmem:[#allocation5 + $0x688] sm:$0xff] }
0x102c   :  { %5236 = vmatpush.bf16.msrb.mxu0 %v8474_v2  ;;  %5250 = vmatpush.bf16.msra.mxu1 %v8478_v4  ;;  %v9465_v2 = vld [vmem:[%s12349_s8 + $0x4a4] sm:$0xf]  ;;  %v9518_v42 = vld [vmem:[#allocation5 + $0x6c8] sm:$0xff]  ;;  %v9496_v43 = vld [vmem:[#allocation5 + $0x618] sm:$0xff] }
0x102d   :  { %v8419_v4 = vld [vmem:[%s12349_s8 + $0x4e0] sm:$0xf0]  ;;  %v9517_v44 = vld [vmem:[#allocation5 + $0x6c0] sm:$0xff]  ;;  %v8810_v33 = vld [vmem:[%s12349_s8 + $0x7b8] sm:$0xf] }
0x102e   :  { %5207 = vmatpush.bf16.msrb.mxu2 %v8482_v7  ;;  %5221 = vmatpush.bf16.msra.mxu3 %v8486_v13  ;;  %v8414_v7 = vor.u32 %v9462_v62, %v8411_v29  ;;  %v8422_v8 = vor.u32 %v9465_v2, %v8419_v4  ;;  %v8402_v13 = vor.u32 %v9463_v11, %v8401_v5  ;;  %v9507_v28 = vld [vmem:[#allocation5 + $0x670] sm:$0xff]  ;;  %v9556_v46 = vld [vmem:[%s12349_s8 + $0x7f4] sm:$0xf0]  ;;  %v9554_v26 = vld [vmem:[%s12349_s8 + $0x7bc] sm:$0xf] }
0x102f   :  { %4983 = vmatmul.bf16.vlgmr.msra.gmra.mxu0 %v4106_v22  ;;  %4997 = vmatmul.bf16.vlgmr.msrb.gmra.mxu1 %v4107_v63  ;;  %v9513_v22 = vld [vmem:[#allocation5 + $0x6a0] sm:$0xff]  ;;  %v9519_v9 = vld [vmem:[#allocation5 + $0x6d0] sm:$0xff]  ;;  %v8811_v19 = vor.u32 %v9556_v46, %v8810_v33  ;;  %v8794_v54 = vld [vmem:[%s12349_s8 + $0x738] sm:$0xf] }
0x1030   :  { %5237 = vmatpush.bf16.msrb.mxu0 %v8458_v16  ;;  %5251 = vmatpush.bf16.msra.mxu1 %v8462_v53  ;;  %v9522_v16 = vld [vmem:[#allocation5 + $0x6e8] sm:$0xff]  ;;  %v9500_v53 = vld [vmem:[#allocation5 + $0x638] sm:$0xff]  ;;  %v9521_v63 = vld [vmem:[#allocation5 + $0x6e0] sm:$0xff] }
0x1031   :  { %v9495_v39 = vld [vmem:[#allocation5 + $0x610] sm:$0xff]  ;;  %v8796_v21 = vld [vmem:[%s12349_s8 + $0x778] sm:$0xf0]  ;;  %v9548_v0 = vld [vmem:[%s12349_s8 + $0x6f4] sm:$0xf0] }
0x1032   :  { %5208 = vmatpush.bf16.msrb.mxu2 %v8466_v57  ;;  %5222 = vmatpush.bf16.msra.mxu3 %v8470_v24  ;;  %v9506_v57 = vld [vmem:[#allocation5 + $0x668] sm:$0xff]  ;;  %v9511_v24 = vld [vmem:[#allocation5 + $0x690] sm:$0xff]  ;;  %v9501_v5 = vld [vmem:[#allocation5 + $0x640] sm:$0xff] }
0x1033   :  { %v9503_v40 = vld [vmem:[#allocation5 + $0x650] sm:$0xff]  ;;  %v9494_v29 = vld [vmem:[#allocation5 + $0x608] sm:$0xff]  ;;  %v8802_v11 = vld [vmem:[%s12349_s8 + $0x7b0] sm:$0xf] }
0x1034   :  { %5238 = vmatpush.bf16.msrb.mxu0 %v8442_v31  ;;  %5252 = vmatpush.bf16.msra.mxu1 %v8446_v10  ;;  %v9504_v31 = vld [vmem:[#allocation5 + $0x658] sm:$0xff]  ;;  %v9509_v10 = vld [vmem:[#allocation5 + $0x680] sm:$0xff]  ;;  %v9546_v1 = vld [vmem:[%s12349_s8 + $0x6bc] sm:$0xf] }
0x1035   :  { %4955 = vmatmul.bf16.vlgmr.msra.gmra.mxu2 %v4104_v48  ;;  %4969 = vmatmul.bf16.vlgmr.msrb.gmra.mxu3 %v4105_v49  ;;  %v8812_v48 = vld [vmem:[%s12349_s8 + $0x7f8] sm:$0xf0]  ;;  %v9555_v12 = vld [vmem:[%s12349_s8 + $0x7ec] sm:$0xf0]  ;;  %v9553_v58 = vld [vmem:[%s12349_s8 + $0x7b4] sm:$0xf] }
0x1036   :  { %5209 = vmatpush.bf16.msrb.mxu2 %v8450_v47  ;;  %5223 = vmatpush.bf16.msra.mxu3 %v8454_v34  ;;  %v8815_v49 = vor.u32 %v9554_v26, %v8812_v48  ;;  %v8780_v2 = vld [vmem:[%s12349_s8 + $0x6f8] sm:$0xf0]  ;;  %v8770_v33 = vld [vmem:[%s12349_s8 + $0x6b0] sm:$0xf]  ;;  %v9545_v26 = vld [vmem:[%s12349_s8 + $0x6b4] sm:$0xf] }
0x1037   :  { %v9547_v46 = vld [vmem:[%s12349_s8 + $0x6ec] sm:$0xf0]  ;;  %v9536_v48 = vld [vmem:[%s12349_s8 + $0x574] sm:$0xf0] }
0x1038   :  { %5239 = vmatpush.bf16.msrb.mxu0 %v8426_v17  ;;  %5253 = vmatpush.bf16.msra.mxu1 %v8430_v45  ;;  %v9552_v17 = vld [vmem:[%s12349_s8 + $0x774] sm:$0xf0]  ;;  %v9550_v45 = vld [vmem:[%s12349_s8 + $0x73c] sm:$0xf] }
0x1039   :  { %v8795_v61 = vor.u32 %v9552_v17, %v8794_v54  ;;  %v8799_v62 = vor.u32 %v9550_v45, %v8796_v21  ;;  %v8732_v54 = vld [vmem:[%s12349_s8 + $0x578] sm:$0xf0] }
0x103a   :  { %5210 = vmatpush.bf16.msrb.mxu2 %v8434_v3  ;;  %5224 = vmatpush.bf16.msra.mxu3 %v8438_v50  ;;  %v9502_v3 = vld [vmem:[#allocation5 + $0x648] sm:$0xff] }
0x103b   :  { %v8778_v50 = vld [vmem:[%s12349_s8 + $0x6b8] sm:$0xf] }
0x103c   :  { %5240 = vmatpush.bf16.msrb.mxu0 %v8410_v51  ;;  %5254 = vmatpush.bf16.msra.mxu1 %v8414_v7  ;;  %v8779_v4 = vor.u32 %v9548_v0, %v8778_v50  ;;  %v8783_v51 = vor.u32 %v9546_v1, %v8780_v2  ;;  %v8756_v0 = vld [vmem:[%s12349_s8 + $0x670] sm:$0xf0]  ;;  %v8714_v1 = vld [vmem:[%s12349_s8 + $0x4b8] sm:$0xf] }
0x103d   :  { %v9532_v2 = vld [vmem:[%s12349_s8 + $0x4f4] sm:$0xf0] }
0x103e   :  { %5211 = vmatpush.bf16.msrb.mxu2 %v8418_v23  ;;  %5225 = vmatpush.bf16.msra.mxu3 %v8422_v8  ;;  %v9493_v8 = vld [vmem:[#allocation5 + $0x600] sm:$0xff] }
0x103f   :  { %5241 = vmatmul.bf16.vlgmr.msrb.gmra.mxu0 %v11788_v55  ;;  %5255 = vmatmul.bf16.vlgmr.msra.gmra.mxu1 %v11788_v55 }
0x1040   :  { %5557 = vmatpush.bf16.msra.mxu0 %v9516_v14  ;;  %5571 = vmatpush.bf16.msrb.mxu1 %v9524_v18  ;;  %v8762_v18 = vld [vmem:[%s12349_s8 + $0x638] sm:$0xf] }
0x1042   :  { %5212 = vmatpush.bf16.msrb.mxu2 %v8402_v13  ;;  %5226 = vmatpush.bf16.msra.mxu3 %v8406_v20  ;;  %v8804_v13 = vld [vmem:[%s12349_s8 + $0x7f0] sm:$0xf0]  ;;  %v8803_v20 = vor.u32 %v9555_v12, %v8802_v11  ;;  %v8716_v11 = vld [vmem:[%s12349_s8 + $0x4f8] sm:$0xf0] }
0x1043   :  { %v8807_v14 = vor.u32 %v9553_v58, %v8804_v13 }
0x1044   :  { %5558 = vmatpush.bf16.msra.mxu0 %v9515_v15  ;;  %5572 = vmatpush.bf16.msrb.mxu1 %v9523_v27  ;;  %v9544_v15 = vld [vmem:[%s12349_s8 + $0x674] sm:$0xf0] }
0x1045   :  { %5213 = vmatmul.bf16.vlgmr.msrb.gmra.mxu2 %v11788_v55  ;;  %5227 = vmatmul.bf16.vlgmr.msra.gmra.mxu3 %v11788_v55 }
0x1046   :  { %5529 = vmatpush.bf16.msra.mxu2 %v9500_v53  ;;  %5543 = vmatpush.bf16.msrb.mxu3 %v9508_v37  ;;  %v9542_v53 = vld [vmem:[%s12349_s8 + $0x63c] sm:$0xf] }
0x1047   :  { %v8764_v37 = vld [vmem:[%s12349_s8 + $0x678] sm:$0xf0] }
0x1048   :  { %5559 = vmatpush.bf16.msra.mxu0 %v9514_v6  ;;  %5573 = vmatpush.bf16.msrb.mxu1 %v9522_v16  ;;  %v8763_v16 = vor.u32 %v9544_v15, %v8762_v18  ;;  %v9537_v18 = vld [vmem:[%s12349_s8 + $0x5b4] sm:$0xf] }
0x104a   :  { %5530 = vmatpush.bf16.msra.mxu2 %v9499_v60  ;;  %5544 = vmatpush.bf16.msrb.mxu3 %v9507_v28  ;;  %v8786_v60 = vld [vmem:[%s12349_s8 + $0x730] sm:$0xf] }
0x104b   :  { %v9551_v28 = vld [vmem:[%s12349_s8 + $0x76c] sm:$0xf0] }
0x104c   :  { %5560 = vmatpush.bf16.msra.mxu0 %v9513_v22  ;;  %5574 = vmatpush.bf16.msrb.mxu1 %v9521_v63  ;;  %v8767_v63 = vor.u32 %v9542_v53, %v8764_v37  ;;  %v9526_v37 = vld [vmem:[%s12349_s8 + $0x43c] sm:$0xf] }
0x104e   :  { %5531 = vmatpush.bf16.msra.mxu2 %v9498_v30  ;;  %5545 = vmatpush.bf16.msrb.mxu3 %v9506_v57  ;;  %v8788_v30 = vld [vmem:[%s12349_s8 + $0x770] sm:$0xf0]  ;;  %v8746_v57 = vld [vmem:[%s12349_s8 + $0x5b8] sm:$0xf] }
0x1050   :  { %5561 = vmatpush.bf16.msra.mxu0 %v9512_v38  ;;  %5575 = vmatpush.bf16.msrb.mxu1 %v9520_v36  ;;  %v9549_v38 = vld [vmem:[%s12349_s8 + $0x734] sm:$0xf]  ;;  %v8787_v36 = vor.u32 %v9551_v28, %v8786_v60 }
0x1052   :  { %5532 = vmatpush.bf16.msra.mxu2 %v9497_v41  ;;  %5546 = vmatpush.bf16.msrb.mxu3 %v9505_v56  ;;  %v8791_v41 = vor.u32 %v9549_v38, %v8788_v30  ;;  %v9535_v30 = vld [vmem:[%s12349_s8 + $0x56c] sm:$0xf0] }
0x1054   :  { %5562 = vmatpush.bf16.msra.mxu0 %v9511_v24  ;;  %5576 = vmatpush.bf16.msrb.mxu1 %v9519_v9  ;;  %v9540_v24 = vld [vmem:[%s12349_s8 + $0x5f4] sm:$0xf0] }
0x1055   :  { %v8747_v56 = vor.u32 %v9540_v24, %v8746_v57  ;;  %v9533_v57 = vld [vmem:[%s12349_s8 + $0x534] sm:$0xf]  ;;  %v8398_v24 = vld [vmem:[%s12350_s9 + $0x18] sm:$0xf] }
0x1056   :  { %5533 = vmatpush.bf16.msra.mxu2 %v9496_v43  ;;  %5547 = vmatpush.bf16.msrb.mxu3 %v9504_v31 }
0x1058   :  { %5563 = vmatpush.bf16.msra.mxu0 %v9510_v25  ;;  %5577 = vmatpush.bf16.msrb.mxu1 %v9518_v42  ;;  %v9538_v25 = vld [vmem:[%s12349_s8 + $0x5bc] sm:$0xf] }
0x1059   :  { %v8748_v42 = vld [vmem:[%s12349_s8 + $0x5f8] sm:$0xf0] }
0x105a   :  { %5534 = vmatpush.bf16.msra.mxu2 %v9495_v39  ;;  %5548 = vmatpush.bf16.msrb.mxu3 %v9503_v40  ;;  %v9534_v40 = vld [vmem:[%s12349_s8 + $0x53c] sm:$0xf] }
0x105b   :  { %v8735_v21 = vor.u32 %v9534_v40, %v8732_v54  ;;  %v9525_v40 = vld [vmem:[%s12349_s8 + $0x434] sm:$0xf] }
0x105c   :  { %5564 = vmatpush.bf16.msra.mxu0 %v9509_v10  ;;  %5578 = vmatpush.bf16.msrb.mxu1 %v9517_v44  ;;  %v8751_v10 = vor.u32 %v9538_v25, %v8748_v42  ;;  %v8706_v42 = vld [vmem:[%s12349_s8 + $0x4b0] sm:$0xf] }
0x105e   :  { %5535 = vmatpush.bf16.msra.mxu2 %v9494_v29  ;;  %5549 = vmatpush.bf16.msrb.mxu3 %v9502_v3  ;;  %v9543_v29 = vld [vmem:[%s12349_s8 + $0x66c] sm:$0xf0]  ;;  %v9541_v3 = vld [vmem:[%s12349_s8 + $0x634] sm:$0xf] }
0x1060   :  { %5817 = vmatpush.bf16.msrb.mxu0 %v8811_v19  ;;  %5831 = vmatpush.bf16.msra.mxu1 %v8815_v49  ;;  %v8730_v19 = vld [vmem:[%s12349_s8 + $0x538] sm:$0xf] }
0x1061   :  { %v8731_v39 = vor.u32 %v9536_v48, %v8730_v19  ;;  %v8690_v48 = vld [vmem:[%s12349_s8 + $0x430] sm:$0xf] }
0x1062   :  { %5536 = vmatpush.bf16.msra.mxu2 %v9493_v8  ;;  %5550 = vmatpush.bf16.msrb.mxu3 %v9501_v5  ;;  %v8715_v8 = vor.u32 %v9532_v2, %v8714_v1  ;;  %v9530_v5 = vld [vmem:[%s12349_s8 + $0x4bc] sm:$0xf] }
0x1063   :  { %v8719_v13 = vor.u32 %v9530_v5, %v8716_v11 }
0x1064   :  { %5818 = vmatpush.bf16.msrb.mxu0 %v8795_v61  ;;  %5832 = vmatpush.bf16.msra.mxu1 %v8799_v62  ;;  %v8754_v62 = vld [vmem:[%s12349_s8 + $0x630] sm:$0xf] }
0x1065   :  { %v8755_v50 = vor.u32 %v9543_v29, %v8754_v62 }
0x1066   :  { %5789 = vmatpush.bf16.msrb.mxu2 %v8803_v20  ;;  %5803 = vmatpush.bf16.msra.mxu3 %v8807_v14  ;;  %v9539_v14 = vld [vmem:[%s12349_s8 + $0x5ec] sm:$0xf0] }
0x1068   :  { %5819 = vmatpush.bf16.msrb.mxu0 %v8779_v4  ;;  %5833 = vmatpush.bf16.msra.mxu1 %v8783_v51  ;;  %v8759_v51 = vor.u32 %v9541_v3, %v8756_v0 }
0x106a   :  { %5790 = vmatpush.bf16.msrb.mxu2 %v8787_v36  ;;  %5804 = vmatpush.bf16.msra.mxu3 %v8791_v41  ;;  %v8722_v36 = vld [vmem:[%s12349_s8 + $0x530] sm:$0xf]  ;;  %v8724_v41 = vld [vmem:[%s12349_s8 + $0x570] sm:$0xf0] }
0x106b   :  { %v8727_v25 = vor.u32 %v9533_v57, %v8724_v41  ;;  %v9588_v57 = vld [vmem:[#allocation5 + $0x7f8] sm:$0xff]  ;;  %v9578_v41 = vld [vmem:[#allocation5 + $0x7a8] sm:$0xff] }
0x106c   :  { %5820 = vmatpush.bf16.msrb.mxu0 %v8763_v16  ;;  %5834 = vmatpush.bf16.msra.mxu1 %v8767_v63 }
0x1070   :  { %5821 = vmatpush.bf16.msrb.mxu0 %v8747_v56  ;;  %5835 = vmatpush.bf16.msra.mxu1 %v8751_v10  ;;  %v9531_v10 = vld [vmem:[%s12349_s8 + $0x4ec] sm:$0xf0] }
0x1071   :  { %v8707_v19 = vor.u32 %v9531_v10, %v8706_v42  ;;  %v9585_v42 = vld [vmem:[#allocation5 + $0x7e0] sm:$0xff]  ;;  %v9576_v10 = vld [vmem:[#allocation5 + $0x798] sm:$0xff] }
0x1074   :  { %5822 = vmatpush.bf16.msrb.mxu0 %v8731_v39  ;;  %5836 = vmatpush.bf16.msra.mxu1 %v8735_v21  ;;  %v9527_v39 = vld [vmem:[%s12349_s8 + $0x46c] sm:$0xf0] }
0x1075   :  { %v8691_v62 = vor.u32 %v9527_v39, %v8690_v48  ;;  %v9582_v48 = vld [vmem:[#allocation5 + $0x7c8] sm:$0xff] }
0x1076   :  { %v9570_v39 = vld [vmem:[#allocation5 + $0x768] sm:$0xff] }
0x1078   :  { %5823 = vmatpush.bf16.msrb.mxu0 %v8715_v8  ;;  %5837 = vmatpush.bf16.msra.mxu1 %v8719_v13 }
0x109c   :  { %v12039_v47 = vpop.f32.mrf.mxu0  ;;  %v12041_v34 = vpop.f32.mrf.mxu1 }
0x10a4   :  { %v12070_v7 = vpop.f32.mrf.mxu0  ;;  %v12072_v23 = vpop.f32.mrf.mxu1 }
0x10a8   :  { %v4708_v27 = vpop.f32.mrf.mxu2  ;;  %v4722_v6 = vpop.f32.mrf.mxu3 }
0x10a9   :  { %v4723_v22 = vadd.f32 %v4722_v6, %v4708_v27  ;;  %v8698_v27 = vld [vmem:[%s12349_s8 + $0x438] sm:$0xf] }
0x10aa   :  { %v9528_v6 = vld [vmem:[%s12349_s8 + $0x474] sm:$0xf0] }
0x10ab   :  { %v4737_v9 = vadd.f32 %v12039_v47, %v4723_v22  ;;  %v8771_v47 = vor.u32 %v9547_v46, %v8770_v33  ;;  %v8699_v53 = vor.u32 %v9528_v6, %v8698_v27  ;;  %v8700_v22 = vld [vmem:[%s12349_s8 + $0x478] sm:$0xf0]  ;;  %v5038_v27 = vperm.slane %v8398_v24, 1 }
0x10ac   :  { %v12123_v43 = vpop.f32.mrf.mxu0  ;;  %v12125_v31 = vpop.f32.mrf.mxu1  ;;  %v8703_v28 = vor.u32 %v9526_v37, %v8700_v22 }
0x10ad   :  { %v4751_v44 = vadd.f32 %v12041_v34, %v4737_v9  ;;  %v8772_v34 = vld [vmem:[%s12349_s8 + $0x6f0] sm:$0xf0]  ;;  %5791 = vmatpush.bf16.msrb.mxu2 %v8771_v47  ;;  %5824 = vmatpush.bf16.msrb.mxu0 %v8699_v53  ;;  %v8723_v9 = vor.u32 %v9535_v30, %v8722_v36  ;;  %v9580_v30 = vld [vmem:[#allocation5 + $0x7b8] sm:$0xff] }
0x10ae   :  { %v8775_v49 = vor.u32 %v9545_v26, %v8772_v34  ;;  %5838 = vmatpush.bf16.msra.mxu1 %v8703_v28  ;;  %v8708_v26 = vld [vmem:[%s12349_s8 + $0x4f0] sm:$0xf0]  ;;  %v5039_v34 = vperm.slane %v8398_v24, 2 }
0x10b0   :  { %v4710_v17 = vpop.f32.mrf.mxu2  ;;  %v4724_v45 = vpop.f32.mrf.mxu3  ;;  %5805 = vmatpush.bf16.msra.mxu3 %v8775_v49 }
0x10b1   :  { %v4725_v61 = vadd.f32 %v4724_v45, %v4710_v17  ;;  %5792 = vmatpush.bf16.msrb.mxu2 %v8755_v50  ;;  %v5040_v17 = vperm.slane %v8398_v24, 3 }
0x10b3   :  { %v4739_v4 = vadd.f32 %v12070_v7, %v4725_v61  ;;  %v8738_v7 = vld [vmem:[%s12349_s8 + $0x5b0] sm:$0xf] }
0x10b4   :  { %v12177_v12 = vpop.f32.mrf.mxu0  ;;  %v12179_v58 = vpop.f32.mrf.mxu1  ;;  %5806 = vmatpush.bf16.msra.mxu3 %v8759_v51  ;;  %v8739_v15 = vor.u32 %v9539_v14, %v8738_v7 }
0x10b5   :  { %v4753_v20 = vadd.f32 %v12072_v23, %v4739_v4  ;;  %v8740_v23 = vld [vmem:[%s12349_s8 + $0x5f0] sm:$0xf0] }
0x10b6   :  { %v8743_v16 = vor.u32 %v9537_v18, %v8740_v23  ;;  %5793 = vmatpush.bf16.msrb.mxu2 %v8739_v15  ;;  %v5037_v23 = vperm.slane %v8398_v24, 0  ;;  %v9579_v24 = vld [vmem:[#allocation5 + $0x7b0] sm:$0xff] }
0x10b8   :  { %v4956_v63 = vpop.f32.mrf.mxu2  ;;  %v4970_v60 = vpop.f32.mrf.mxu3  ;;  %5807 = vmatpush.bf16.msra.mxu3 %v8743_v16 }
0x10b9   :  { %v4957_v38 = vadd.f32 %v4956_v63, %v4751_v44  ;;  %v9529_v44 = vld [vmem:[%s12349_s8 + $0x4b4] sm:$0xf] }
0x10ba   :  { %5794 = vmatpush.bf16.msrb.mxu2 %v8723_v9  ;;  %v8711_v49 = vor.u32 %v9529_v44, %v8708_v26  ;;  %v9587_v9 = vld [vmem:[#allocation5 + $0x7f0] sm:$0xff]  ;;  %v9584_v44 = vld [vmem:[#allocation5 + $0x7d8] sm:$0xff] }
0x10bb   :  { %v4971_v56 = vadd.f32 %v4970_v60, %v4957_v38  ;;  %v9583_v26 = vld [vmem:[#allocation5 + $0x7d0] sm:$0xff] }
0x10bc   :  { %v5242_v33 = vpop.f32.mrf.mxu0  ;;  %v5256_v46 = vpop.f32.mrf.mxu1  ;;  %5808 = vmatpush.bf16.msra.mxu3 %v8727_v25  ;;  %v9577_v25 = vld [vmem:[#allocation5 + $0x7a0] sm:$0xff] }
0x10bd   :  { %v4985_v47 = vadd.f32 %v12123_v43, %v4971_v56  ;;  %v8692_v43 = vld [vmem:[%s12349_s8 + $0x470] sm:$0xf0]  ;;  %v5243_v3 = vadd.f32 %v5242_v33, %v5039_v34  ;;  %v5257_v50 = vadd.f32 %v5256_v46, %v5040_v17  ;;  %v9586_v56 = vld [vmem:[#allocation5 + $0x7e8] sm:$0xff]  ;;  %v9572_v33 = vld [vmem:[#allocation5 + $0x778] sm:$0xff] }
0x10be   :  { %5795 = vmatpush.bf16.msrb.mxu2 %v8707_v19  ;;  %v8695_v29 = vor.u32 %v9525_v40, %v8692_v43  ;;  %v9575_v46 = vld [vmem:[#allocation5 + $0x790] sm:$0xff]  ;;  %v9574_v19 = vld [vmem:[#allocation5 + $0x788] sm:$0xff]  ;;  %v9573_v40 = vld [vmem:[#allocation5 + $0x780] sm:$0xff] }
0x10bf   :  { %v12247_v54 = vadd.f32 %v12125_v31, %v4985_v47  ;;  %v5263_v31 = vmax.f32 %v5243_v3, 0.0  ;;  %v5264_v5 = vmax.f32 %v5257_v50, 0.0  ;;  %v9563_v47 = vld [vmem:[#allocation5 + $0x730] sm:$0xff]  ;;  %v9581_v43 = vld [vmem:[#allocation5 + $0x7c0] sm:$0xff] }
0x10c0   :  { %v4958_v45 = vpop.f32.mrf.mxu2  ;;  %v4972_v21 = vpop.f32.mrf.mxu3  ;;  %5809 = vmatpush.bf16.msra.mxu3 %v8711_v49  ;;  %v9562_v49 = vld [vmem:[#allocation5 + $0x728] sm:$0xff]  ;;  %v9559_v3 = vld [vmem:[#allocation5 + $0x710] sm:$0xff] }
0x10c1   :  { %v4959_v61 = vadd.f32 %v4958_v45, %v4753_v20  ;;  %v9569_v45 = vld [vmem:[#allocation5 + $0x760] sm:$0xff]  ;;  %v9567_v50 = vld [vmem:[#allocation5 + $0x750] sm:$0xff] }
0x10c2   :  { %5796 = vmatpush.bf16.msrb.mxu2 %v8691_v62  ;;  %v9560_v62 = vld [vmem:[#allocation5 + $0x718] sm:$0xff] }
0x10c3   :  { %v4973_v0 = vadd.f32 %v4972_v21, %v4959_v61 }
0x10c4   :  { %v5244_v1 = vpop.f32.mrf.mxu0  ;;  %v5258_v2 = vpop.f32.mrf.mxu1  ;;  %5810 = vmatpush.bf16.msra.mxu3 %v8695_v29  ;;  %v9568_v29 = vld [vmem:[#allocation5 + $0x758] sm:$0xff] }
0x10c5   :  { %v4987_v4 = vadd.f32 %v12177_v12, %v4973_v0  ;;  %v5245_v51 = vadd.f32 %v5244_v1, %v5039_v34  ;;  %v5259_v8 = vadd.f32 %v5258_v2, %v5040_v17  ;;  %v9571_v34 = vld [vmem:[#allocation5 + $0x770] sm:$0xff]  ;;  %v9561_v17 = vld [vmem:[#allocation5 + $0x720] sm:$0xff]  ;;  %v9558_v2 = vld [vmem:[#allocation5 + $0x708] sm:$0xff] }
0x10c7   :  { %v12251_v11 = vadd.f32 %v12179_v58, %v4987_v4  ;;  %v5267_v13 = vmax.f32 %v5245_v51, 0.0  ;;  %v5268_v20 = vmax.f32 %v5259_v8, 0.0  ;;  %v9566_v4 = vld [vmem:[#allocation5 + $0x748] sm:$0xff]  ;;  %v9557_v51 = vld [vmem:[#allocation5 + $0x700] sm:$0xff] }
0x10c8   :  { %v5214_v7 = vpop.f32.mrf.mxu2  ;;  %v5228_v14 = vpop.f32.mrf.mxu3  ;;  %v9565_v8 = vld [vmem:[#allocation5 + $0x740] sm:$0xff] }
0x10c9   :  { %v5271_v18 = vpack.c.bf16 %v5267_v13, %v5263_v31  ;;  %v5272_v15 = vpack.c.bf16 %v5268_v20, %v5264_v5  ;;  %v5215_v12 = vadd.f32 %v5214_v7, %v5037_v23  ;;  %v5229_v6 = vadd.f32 %v5228_v14, %v5038_v27  ;;  %v8687_v31 = vld [vmem:[%s12350_s9 + $0x1c] sm:$0xf] }
0x10ca   :  { %v5623_v20 = vperm.slane %v8687_v31, 2 }
0x10cb   :  { %5565 = vmatmul.bf16.vlgmr.msra.gmra.mxu0 %v5271_v18  ;;  %5579 = vmatmul.bf16.vlgmr.msrb.gmra.mxu1 %v5272_v15  ;;  %v5261_v63 = vmax.f32 %v5215_v12, 0.0  ;;  %v5262_v60 = vmax.f32 %v5229_v6, 0.0  ;;  %v5624_v18 = vperm.slane %v8687_v31, 3 }
0x10cc   :  { %6141 = vmatpush.bf16.msra.mxu0 %v9580_v30  ;;  %6155 = vmatpush.bf16.msrb.mxu1 %v9588_v57 }
0x10d0   :  { %v5216_v16 = vpop.f32.mrf.mxu2  ;;  %v5230_v53 = vpop.f32.mrf.mxu3  ;;  %6142 = vmatpush.bf16.msra.mxu0 %v9579_v24  ;;  %6156 = vmatpush.bf16.msrb.mxu1 %v9587_v9 }
0x10d1   :  { %v5217_v37 = vadd.f32 %v5216_v16, %v5037_v23  ;;  %v5231_v22 = vadd.f32 %v5230_v53, %v5038_v27 }
0x10d3   :  { %v5265_v58 = vmax.f32 %v5217_v37, 0.0  ;;  %v5266_v28 = vmax.f32 %v5231_v22, 0.0 }
0x10d4   :  { %6143 = vmatpush.bf16.msra.mxu0 %v9578_v41  ;;  %6157 = vmatpush.bf16.msrb.mxu1 %v9586_v56 }
0x10d5   :  { %v5269_v38 = vpack.c.bf16 %v5265_v58, %v5261_v63  ;;  %v5270_v36 = vpack.c.bf16 %v5266_v28, %v5262_v60 }
0x10d7   :  { %5537 = vmatmul.bf16.vlgmr.msra.gmra.mxu2 %v5269_v38  ;;  %5551 = vmatmul.bf16.vlgmr.msrb.gmra.mxu3 %v5270_v36 }
0x10d8   :  { %6144 = vmatpush.bf16.msra.mxu0 %v9577_v25  ;;  %6158 = vmatpush.bf16.msrb.mxu1 %v9585_v42 }
0x10d9   :  { %6127 = vmatpush.bf16.msrb.mxu3 %v9572_v33 }
0x10db   :  { %5825 = vmatmul.bf16.vlgmr.msrb.gmra.mxu0 %v11788_v55  ;;  %5839 = vmatmul.bf16.vlgmr.msra.gmra.mxu1 %v11788_v55 }
0x10dc   :  { %6145 = vmatpush.bf16.msra.mxu0 %v9576_v10  ;;  %6159 = vmatpush.bf16.msrb.mxu1 %v9584_v44  ;;  %v5622_v44 = vperm.slane %v8687_v31, 1 }
0x10dd   :  { %6128 = vmatpush.bf16.msrb.mxu3 %v9571_v34 }
0x10e0   :  { %6146 = vmatpush.bf16.msra.mxu0 %v9575_v46  ;;  %6160 = vmatpush.bf16.msrb.mxu1 %v9583_v26 }
0x10e1   :  { %6129 = vmatpush.bf16.msrb.mxu3 %v9570_v39 }
0x10e4   :  { %6147 = vmatpush.bf16.msra.mxu0 %v9574_v19  ;;  %6161 = vmatpush.bf16.msrb.mxu1 %v9582_v48 }
0x10e5   :  { %6130 = vmatpush.bf16.msrb.mxu3 %v9569_v45 }
0x10e7   :  { %5797 = vmatmul.bf16.vlgmr.msrb.gmra.mxu2 %v11788_v55  ;;  %5811 = vmatmul.bf16.vlgmr.msra.gmra.mxu3 %v11788_v55  ;;  %v9564_v55 = vld [vmem:[#allocation5 + $0x738] sm:$0xff] }
0x10e8   :  { %6113 = vmatpush.bf16.msra.mxu2 %v9564_v55  ;;  %6148 = vmatpush.bf16.msra.mxu0 %v9573_v40 }
0x10e9   :  { %6162 = vmatpush.bf16.msrb.mxu1 %v9581_v43  ;;  %6131 = vmatpush.bf16.msrb.mxu3 %v9568_v29 }
0x10ec   :  { %6114 = vmatpush.bf16.msra.mxu2 %v9563_v47 }
0x10ed   :  { %6132 = vmatpush.bf16.msrb.mxu3 %v9567_v50  ;;  %v9652_v50 = vld [vmem:[%s12352_s11 + $0x1] ss:$0 sm:$0xff] }
0x10f0   :  { %6115 = vmatpush.bf16.msra.mxu2 %v9562_v49 }
0x10f1   :  { %6133 = vmatpush.bf16.msrb.mxu3 %v9566_v4 }
0x10f4   :  { %6116 = vmatpush.bf16.msra.mxu2 %v9561_v17 }
0x10f5   :  { %6134 = vmatpush.bf16.msrb.mxu3 %v9565_v8 }
0x10f8   :  { %6117 = vmatpush.bf16.msra.mxu2 %v9560_v62 }
0x10fc   :  { %6118 = vmatpush.bf16.msra.mxu2 %v9559_v3 }
0x1100   :  { %6119 = vmatpush.bf16.msra.mxu2 %v9558_v2 }
0x1104   :  { %6120 = vmatpush.bf16.msra.mxu2 %v9557_v51 }
0x1148   :  { %v5566_v21 = vpop.f32.mrf.mxu0  ;;  %v5580_v61 = vpop.f32.mrf.mxu1 }
0x1150   :  { %v5568_v0 = vpop.f32.mrf.mxu0  ;;  %v5582_v1 = vpop.f32.mrf.mxu1 }
0x1158   :  { %v5826_v5 = vpop.f32.mrf.mxu0  ;;  %v5840_v13 = vpop.f32.mrf.mxu1 }
0x1159   :  { %v5827_v27 = vadd.f32 %v5826_v5, %v5623_v20  ;;  %v5841_v12 = vadd.f32 %v5840_v13, %v5624_v18 }
0x115a   :  { %v5538_v7 = vpop.f32.mrf.mxu2  ;;  %v5552_v14 = vpop.f32.mrf.mxu3 }
0x115b   :  { %v5553_v15 = vadd.f32 %v5552_v14, %v5538_v7  ;;  %v5847_v60 = vmax.f32 %v5827_v27, 0.0  ;;  %v5848_v38 = vmax.f32 %v5841_v12, 0.0 }
0x115d   :  { %v5567_v23 = vadd.f32 %v5566_v21, %v5553_v15 }
0x115f   :  { %v5581_v6 = vadd.f32 %v5580_v61, %v5567_v23 }
0x1160   :  { %v5828_v16 = vpop.f32.mrf.mxu0  ;;  %v5842_v53 = vpop.f32.mrf.mxu1 }
0x1161   :  { %v5585_v37 = vadd.f32 %v5581_v6, %v12247_v54  ;;  %v5829_v22 = vadd.f32 %v5828_v16, %v5623_v20  ;;  %v5843_v63 = vadd.f32 %v5842_v53, %v5624_v18  ;;  %v5621_v54 = vperm.slane %v8687_v31, 0  ;;  %v9596_v53 = vld [vmem:[%s12355_s14 + $0x38] sm:$0xff] }
0x1162   :  { %v5540_v58 = vpop.f32.mrf.mxu2  ;;  %v5554_v28 = vpop.f32.mrf.mxu3  ;;  %6317 = vmatpush.bf16.msrb.mxu2 %v9596_v53 }
0x1163   :  { %v5851_v36 = vmax.f32 %v5829_v22, 0.0  ;;  %v5852_v30 = vmax.f32 %v5843_v63, 0.0  ;;  %v5555_v57 = vadd.f32 %v5554_v28, %v5540_v58  ;;  %v9593_v22 = vld [vmem:[%s12355_s14 + $0x20] sm:$0xff]  ;;  %v9592_v58 = vld [vmem:[%s12355_s14 + $0x18] sm:$0xff] }
0x1165   :  { %v5855_v24 = vpack.c.bf16 %v5851_v36, %v5847_v60  ;;  %v5856_v9 = vpack.c.bf16 %v5852_v30, %v5848_v38  ;;  %v5569_v41 = vadd.f32 %v5568_v0, %v5555_v57  ;;  %v9591_v38 = vld [vmem:[%s12355_s14 + $0x10] sm:$0xff]  ;;  %v9590_v36 = vld [vmem:[%s12355_s14 + $0x8] sm:$0xff] }
0x1167   :  { %v5583_v56 = vadd.f32 %v5582_v1, %v5569_v41  ;;  %6149 = vmatmul.bf16.vlgmr.msra.gmra.mxu0 %v5855_v24  ;;  %6163 = vmatmul.bf16.vlgmr.msrb.gmra.mxu1 %v5856_v9  ;;  %v9589_v41 = vld [vmem:[%s12355_s14] sm:$0xff] }
0x1169   :  { %v5586_v25 = vadd.f32 %v5583_v56, %v12251_v11 }
0x116a   :  { %v5798_v42 = vpop.f32.mrf.mxu2  ;;  %v5812_v10 = vpop.f32.mrf.mxu3 }
0x116b   :  { %v5799_v55 = vadd.f32 %v5798_v42, %v5621_v54  ;;  %v5813_v33 = vadd.f32 %v5812_v10, %v5622_v44 }
0x116d   :  { %v5845_v19 = vmax.f32 %v5799_v55, 0.0  ;;  %v5846_v48 = vmax.f32 %v5813_v33, 0.0  ;;  %v9603_v33 = vld [vmem:[%s12357_s16 + $0x30] sm:$0xff] }
0x1172   :  { %v5800_v46 = vpop.f32.mrf.mxu2  ;;  %v5814_v26 = vpop.f32.mrf.mxu3 }
0x1173   :  { %v5801_v47 = vadd.f32 %v5800_v46, %v5621_v54  ;;  %v5815_v34 = vadd.f32 %v5814_v26, %v5622_v44  ;;  %v9604_v54 = vld [vmem:[%s12357_s16 + $0x38] sm:$0xff]  ;;  %v9653_v46 = vld [vmem:[%s12370_s10 + $0x1] ss:$0 sm:$0xff] }
0x1174   :  { %6400 = vmatpush.bf16.msra.mxu3 %v9604_v54 }
0x1175   :  { %v5849_v49 = vmax.f32 %v5801_v47, 0.0  ;;  %v5850_v39 = vmax.f32 %v5815_v34, 0.0  ;;  %v9654_v34 = vld [vmem:[%s12354_s13 + $0x1] ss:$0 sm:$0xff] }
0x1177   :  { %v5853_v40 = vpack.c.bf16 %v5849_v49, %v5845_v19  ;;  %v5854_v43 = vpack.c.bf16 %v5850_v39, %v5846_v48  ;;  %v9602_v49 = vld [vmem:[%s12357_s16 + $0x28] sm:$0xff] }
0x1178   :  { %6401 = vmatpush.bf16.msra.mxu3 %v9603_v33 }
0x1179   :  { %6121 = vmatmul.bf16.vlgmr.msra.gmra.mxu2 %v5853_v40  ;;  %6135 = vmatmul.bf16.vlgmr.msrb.gmra.mxu3 %v5854_v43 }
0x117c   :  { %6402 = vmatpush.bf16.msra.mxu3 %v9602_v49 }
0x11e4   :  { %v6150_v17 = vpop.f32.mrf.mxu0  ;;  %v6164_v61 = vpop.f32.mrf.mxu1 }
0x11ec   :  { %v6152_v51 = vpop.f32.mrf.mxu0  ;;  %v6166_v5 = vpop.f32.mrf.mxu1 }
0x11fc   :  { %v6122_v11 = vpop.f32.mrf.mxu2  ;;  %v6136_v45 = vpop.f32.mrf.mxu3 }
0x11fd   :  { %v6137_v21 = vadd.f32 %v6136_v45, %v6122_v11  ;;  %v9601_v11 = vld [vmem:[%s12357_s16 + $0x20] sm:$0xff] }
0x11fe   :  { %6403 = vmatpush.bf16.msra.mxu3 %v9601_v11 }
0x11ff   :  { %v6151_v62 = vadd.f32 %v6150_v17, %v6137_v21 }
0x1201   :  { %v6165_v29 = vadd.f32 %v6164_v61, %v6151_v62  ;;  %v9600_v61 = vld [vmem:[%s12357_s16 + $0x18] sm:$0xff] }
0x1202   :  { %6404 = vmatpush.bf16.msra.mxu3 %v9600_v61 }
0x1203   :  { %v6169_v3 = vadd.f32 %v6165_v29, %v5585_v37  ;;  %v9594_v37 = vld [vmem:[%s12355_s14 + $0x28] sm:$0xff] }
0x1204   :  { %v6124_v0 = vpop.f32.mrf.mxu2  ;;  %v6138_v1 = vpop.f32.mrf.mxu3 }
0x1205   :  { %v6139_v2 = vadd.f32 %v6138_v1, %v6124_v0  ;;  %v6171_v4 = vadd.f32 %v6169_v3, %v11782_v32 }
0x1207   :  { %v6153_v8 = vadd.f32 %v6152_v51, %v6139_v2  ;;  %v6178_v31 = vadd.f32 %v9652_v50, %v6171_v4  ;;  %v9599_v4 = vld [vmem:[%s12357_s16 + $0x10] sm:$0xff]  ;;  %v9598_v51 = vld [vmem:[%s12357_s16 + $0x8] sm:$0xff] }
0x1208   :  { %6405 = vmatpush.bf16.msra.mxu3 %v9599_v4 }
0x1209   :  { %v6167_v13 = vadd.f32 %v6166_v5, %v6153_v8  ;;  %6184 = vadd.xlane.f32.xlu0 %v6178_v31  ;;  %v9597_v8 = vld [vmem:[%s12357_s16] sm:$0xff] }
0x120b   :  { %v6170_v20 = vadd.f32 %v6167_v13, %v5586_v25 }
0x120c   :  { %6406 = vmatpush.bf16.msra.mxu3 %v9598_v51 }
0x120d   :  { %v6172_v7 = vadd.f32 %v6170_v20, %v11784_v59  ;;  %v9595_v59 = vld [vmem:[%s12355_s14 + $0x30] sm:$0xff] }
0x120e   :  { %6318 = vmatpush.bf16.msrb.mxu2 %v9595_v59 }
0x120f   :  { %v6179_v14 = vadd.f32 %v9652_v50, %v6172_v7 }
0x1210   :  { %6407 = vmatpush.bf16.msra.mxu3 %v9597_v8 }
0x1211   :  { %6186 = vadd.xlane.f32.xlu1 %v6179_v14 }
0x1212   :  { %6319 = vmatpush.bf16.msrb.mxu2 %v9594_v37 }
0x1216   :  { %6320 = vmatpush.bf16.msrb.mxu2 %v9593_v22 }
0x121a   :  { %6321 = vmatpush.bf16.msrb.mxu2 %v9592_v58 }
0x121e   :  { %6322 = vmatpush.bf16.msrb.mxu2 %v9591_v38 }
0x1222   :  { %6323 = vmatpush.bf16.msrb.mxu2 %v9590_v36 }
0x1226   :  { %6324 = vmatpush.bf16.msrb.mxu2 %v9589_v41 }
0x127c   :  { %v6185_v18 = vpop.xlane.xlu0 %6184 }
0x127d   :  { %v6188_v15 = vmul.f32 %v6185_v18, %v10216_v52  ;;  %v9656_v18 = vld [vmem:[%s12358_s17] ss:$0 sm:$0xff] }
0x127f   :  { %v6190_v23 = vsub.f32 %v6178_v31, %v6188_v15  ;;  %v9655_v31 = vld [vmem:[%s12356_s15] ss:$0 sm:$0xff] }
0x1281   :  { %v6192_v27 = vmul.f32 %v6190_v23, %v6190_v23 }
0x1283   :  { %6194 = vadd.xlane.f32.xlu2 %v6192_v27 }
0x1284   :  { %v6187_v12 = vpop.xlane.xlu1 %6186 }
0x1285   :  { %v6189_v32 = vmul.f32 %v6187_v12, %v10216_v52 }
0x1287   :  { %v6191_v6 = vsub.f32 %v6179_v14, %v6189_v32 }
0x1289   :  { %v6193_v16 = vmul.f32 %v6191_v6, %v6191_v6 }
0x128b   :  { %6196 = vadd.xlane.f32.xlu0 %v6193_v16 }
0x12f6   :  { %v6195_v63 = vpop.xlane.xlu2 %6194 }
0x12f7   :  { %v6198_v60 = vmul.f32 %v6195_v63, %v10216_v52 }
0x12f9   :  { %v6200_v28 = vadd.f32 1e-05, %v6198_v60 }
0x12fb   :  { %9735 = vrsqrt.f32 %v6200_v28  ;;  %vm6208_vm14 = vweird.f32 %v6200_v28 }
0x12fe   :  { %v6197_v30 = vpop.xlane.xlu0 %6196 }
0x12ff   :  { %v6199_v57 = vmul.f32 %v6197_v30, %v10216_v52 }
0x1301   :  { %v9736_v24 = vpop.eup %9735  ;;  %v6201_v9 = vadd.f32 1e-05, %v6199_v57 }
0x1302   :  { %v6203_v56 = vmul.f32 %v9736_v24, %v6200_v28  ;;  %vm6209_vm13 = vweird.f32 %v9736_v24 }
0x1303   :  { %9737 = vrsqrt.f32 %v6201_v9  ;;  %vm6210_vm15 = vmor %vm6208_vm14, %vm6209_vm13  ;;  %vm6218_vm2 = vweird.f32 %v6201_v9 }
0x1304   :  { %v6204_v25 = vmul.f32 %v9736_v24, %v6203_v56 }
0x1306   :  { %v6205_v42 = vmul.f32 0.5, %v6204_v25 }
0x1308   :  { %v6206_v10 = vsub.f32 1.5, %v6205_v42 }
0x1309   :  { %v9738_v44 = vpop.eup %9737 }
0x130a   :  { %v6207_v52 = vmul.f32 %v9736_v24, %v6206_v10  ;;  %v6213_v55 = vmul.f32 %v9738_v44, %v6201_v9  ;;  %vm6219_vm1 = vweird.f32 %v9738_v44 }
0x130b   :  { %vm6220_vm3 = vmor %vm6218_vm2, %vm6219_vm1 }
0x130c   :  { %v6211_v26 = vsel %vm6210_vm15, %v9736_v24, %v6207_v52  ;;  %v6214_v47 = vmul.f32 %v9738_v44, %v6213_v55 }
0x130d   :  { %v6222_v19 = vmul.f32 %v6211_v26, %v6190_v23 }
0x130e   :  { %v6215_v48 = vmul.f32 0.5, %v6214_v47 }
0x130f   :  { %v6227_v39 = vmul.f32 %v9653_v46, %v6222_v19 }
0x1310   :  { %v6216_v40 = vsub.f32 1.5, %v6215_v48 }
0x1311   :  { %v6232_v43 = vadd.f32 %v9654_v34, %v6227_v39 }
0x1312   :  { %v6217_v17 = vmul.f32 %v9738_v44, %v6216_v40 }
0x1313   :  { %6234 = vst [vmem:[#allocation2] sm:$0xff] %v6232_v43 }
0x1314   :  { %v6221_v45 = vsel %vm6220_vm3, %v9738_v44, %v6217_v17 }
0x1315   :  { %v6223_v21 = vmul.f32 %v6221_v45, %v6191_v6 }
0x1317   :  { %v6228_v62 = vmul.f32 %v9653_v46, %v6223_v21 }
0x1319   :  { %v6233_v29 = vadd.f32 %v9654_v34, %v6228_v62 }
0x131b   :  { %6235 = vst [vmem:[#allocation2 + $0x8] sm:$0xff] %v6233_v29 }
0x1322   :  { %v8948_v3 = vld [vmem:[%s6438_s23 + $0x8] sm:$0x1]  ;;  %v6238_v0 = vld [vmem:[%s6237_s22] sm:$0x1] }
0x1323   :  { %v6244_v50 = vrot.slane %v8948_v3, 7 }
0x1325   :  { %v6247_v1 = vsel %vm6246_vm5, %v6238_v0, %v6244_v50 }
0x1326   :  { %v6248_v2 = vpack.c.bf16 %v6247_v1, %v6247_v1 }
0x1328   :  { %6325 = vmatmul.bf16.vlgmr.msrb.gmra.mxu2 %v6248_v2 }
0x13ab   :  { %v6326_v5 = vpop.f32.mrf.mxu2 }
0x13ac   :  { %v6327_v13 = vadd.f32 %v9655_v31, %v6326_v5 }
0x13ae   :  { %9739 = vtanh.f32 %v6327_v13 }
0x13b3   :  { %v6328_v20 = vpop.f32.mrf.mxu2 }
0x13b4   :  { %v9740_v7 = vpop.eup %9739 }
0x13b5   :  { %v6331_v14 = vpack.c.bf16 %v9740_v7, %v9740_v7 }
0x13b7   :  { %6408 = vmatmul.bf16.vlgmr.msra.gmra.mxu3 %v6331_v14 }
0x143a   :  { %v6409_v15 = vpop.f32.mrf.mxu3 }
0x143b   :  { %v6410_v23 = vadd.f32 %v9656_v18, %v6409_v15 }
0x143d   :  { %v6414_v27 = vsel %vm6413_vm6, %v6410_v23, -1e+30 }
0x143e   :  { %v6416_v12 = vsel %vm6415_vm7, %v6414_v27, -inf }
0x143f   :  { %6417 = vmax.xlane.f32.xlu1 %v6416_v12 }
0x1442   :  { %v6411_v32 = vpop.f32.mrf.mxu3 }
0x14b2   :  { %v6418_v6 = vpop.xlane.xlu1 %6417 }
0x14b3   :  { %v6419_v16 = vsub.f32 %v6410_v23, %v6418_v6 }
0x14b5   :  { %v6420_v53 = vmul.f32 1.442695, %v6419_v16 }
0x14b7   :  { %9741 = vpow2.f32 %v6420_v53 }
0x14bd   :  { %v9742_v59 = vpop.eup %9741 }
0x14be   :  { %v6422_v37 = vsel %vm6413_vm6, %v9742_v59, 0.0 }
0x14bf   :  { %v6423_v22 = vsel %vm6415_vm7, %v6422_v37, 0.0 }
0x14c0   :  { %6424 = vadd.xlane.f32.xlu2 %v6423_v22 }
0x1533   :  { %v6425_v63 = vpop.xlane.xlu2 %6424 }
0x1534   :  { %9743 = vlog2.f32 %v6425_v63 }
0x153a   :  { %v9744_v60 = vpop.eup %9743 }
0x153b   :  { %v6427_v58 = vmul.f32 0.6931472, %v9744_v60 }
0x153d   :  { %v6428_v28 = vadd.f32 %v6427_v58, %v6418_v6 }
0x153f   :  { %v6429_v38 = vsub.f32 %v6410_v23, %v6428_v28 }
0x1541   :  { %v6430_v36 = vsel %vm6413_vm6, %v6429_v38, %v6410_v23 }
0x1542   :  { %6431 = vst [vmem:[%s12359_s18] sm:$0x3] %v6430_v36 }
0x1543   :  { %6436 = vsyncpa [#allocation6], 1 }

</bundles_post_ra>
